<compile_context>
chip_gen: v7x
topology: tpu7x:2x2x1
jax: 0.10.0
libtpu: 0.0.40
codegen_flags: <defaults>
</compile_context>

<pallas_src>
import math

import jax
import jax.numpy as jnp
from jax.experimental import pallas as pl
from jax.experimental.pallas import tpu as pltpu


CFG = [64, 'M', 16, 'M', 32, 32]
IMAGE_SIZE = 16
HIDDEN = 64
N_OUT = 1470
N_OUT_PAD = 1536          # 12 * 128 lanes -> unmasked vector stores
K1_PAD = 32               # conv1 im2col K (27 -> 32, aligned rows)
BLOCK_B = 32              # images per grid step


# --------------------------------------------------------------------------
# in-kernel helper: 3x3 / stride-1 conv over a zero-padded VMEM scratch ref
# laid out (h_pad, w_pad, B, Cin), computed as an accumulation of 9 batched
# MXU dots (one per tap), + bias + ReLU.  Output rows ordered (h, w, b).
# --------------------------------------------------------------------------
def _conv3x3_relu(p_ref, w_ref, b_ref, ho, wo, B):
    cin = p_ref.shape[-1]
    acc = None
    for k in range(9):
        kh, kw = divmod(k, 3)
        slab = p_ref[kh:kh + ho, kw:kw + wo].reshape(ho * wo * B, cin)  # bf16
        d = jnp.dot(slab, w_ref[k], preferred_element_type=jnp.float32)
        acc = d if acc is None else acc + d
    return jnp.maximum(acc + b_ref[...], 0.0)                           # f32


# --------------------------------------------------------------------------
# fused forward kernel (B images per grid step).  Specialized to the scaled
# config above: 16x16x3 -> 8x8x64 -> 4x4x64 -> 4x4x16 -> 2x2x16 -> 2x2x32
# -> 2x2x32 -> flat 128 -> 64 -> 1470(+pad) -> sigmoid.
# --------------------------------------------------------------------------
def _yolo_fused_kernel(x1_ref, w1c_ref, b1c_ref, w2c_ref, b2c_ref,
                       w3c_ref, b3c_ref, w4c_ref, b4c_ref,
                       w1l_ref, b1l_ref, w2l_ref, b2l_ref,
                       o_ref,
                       p2_ref, p3_ref, p4_ref):
    f32 = jnp.float32
    bf16 = jnp.bfloat16
    B = x1_ref.shape[1]

    # ---- conv1 (3x3, stride 2, pad 1): pre-im2col'd -> one batched matmul --
    # x1 rows ordered (hi, wi, hb, wb, b); columns (kh, kw, cin) + pad
    x1 = x1_ref[...].reshape(64 * B, K1_PAD)                       # bf16
    a1 = jnp.dot(x1, w1c_ref[...], preferred_element_type=f32)
    a1 = jnp.maximum(a1 + b1c_ref[...], 0.0)                       # (64B, 64)

    # ---- maxpool 2x2: the 4 pooling phases are contiguous 16B-row slabs ----
    a1r = a1.reshape(4, 16 * B, 64)
    pooled1 = jnp.maximum(jnp.maximum(a1r[0], a1r[1]),
                          jnp.maximum(a1r[2], a1r[3]))             # (16B,64) rows (h,w,b)
    p1b = pooled1.astype(bf16).reshape(4, 4, B, 64)

    # ---- zero-padded conv2 input: border-only zeroing + big slab stores ----
    z2row = jnp.zeros((6, B, 64), bf16)
    z2cel = jnp.zeros((B, 64), bf16)
    p2_ref[0] = z2row
    p2_ref[5] = z2row
    for h in range(4):
        p2_ref[1 + h, 0] = z2cel
        p2_ref[1 + h, 1:5] = p1b[h]
        p2_ref[1 + h, 5] = z2cel

    # ---- conv2 (64 -> 16), 4x4 output --------------------------------------
    a2 = _conv3x3_relu(p2_ref, w2c_ref, b2c_ref, 4, 4, B)          # (16B, 16)

    # ---- maxpool 2x2 -> padded conv3 input (whole (B,16) block per write) --
    a2_4 = a2.reshape(4, 4, B, 16)
    z3row = jnp.zeros((4, B, 16), bf16)
    z3cel = jnp.zeros((B, 16), bf16)
    p3_ref[0] = z3row
    p3_ref[3] = z3row
    for hb in range(2):
        p3_ref[1 + hb, 0] = z3cel
        p3_ref[1 + hb, 3] = z3cel
        for wb in range(2):
            m = jnp.maximum(
                jnp.maximum(a2_4[2 * hb, 2 * wb], a2_4[2 * hb, 2 * wb + 1]),
                jnp.maximum(a2_4[2 * hb + 1, 2 * wb], a2_4[2 * hb + 1, 2 * wb + 1]))
            p3_ref[1 + hb, 1 + wb] = m.astype(bf16)                # (B, 16)

    # ---- conv3 (16 -> 32), 2x2 output --------------------------------------
    a3 = _conv3x3_relu(p3_ref, w3c_ref, b3c_ref, 2, 2, B)          # (4B, 32)
    a3b = a3.astype(bf16).reshape(2, 2, B, 32)
    z4row = jnp.zeros((4, B, 32), bf16)
    z4cel = jnp.zeros((B, 32), bf16)
    p4_ref[0] = z4row
    p4_ref[3] = z4row
    for h in range(2):
        p4_ref[1 + h, 0] = z4cel
        p4_ref[1 + h, 1:3] = a3b[h]
        p4_ref[1 + h, 3] = z4cel

    # ---- conv4 (32 -> 32), 2x2 output --------------------------------------
    a4 = _conv3x3_relu(p4_ref, w4c_ref, b4c_ref, 2, 2, B)          # (4B, 32), rows (h,w,b)

    # ---- classifier: Linear -> ReLU -> Dropout(eval=id) -> Linear -> sigmoid
    # torch's NCHW flatten order (c*4 + p) is baked into w1l (shape (4,32,H)).
    a4b = a4.astype(bf16).reshape(4, B, 32)                        # dim0 = pixel p = h*2+w
    h1 = jnp.dot(a4b[0], w1l_ref[0], preferred_element_type=f32)
    for p in range(1, 4):
        h1 = h1 + jnp.dot(a4b[p], w1l_ref[p], preferred_element_type=f32)
    h1 = jnp.maximum(h1 + b1l_ref[...], 0.0)                       # (B, HIDDEN)
    # TODO(synk): training-mode dropout (random Bernoulli masking) not implemented.

    y = jnp.dot(h1.astype(bf16), w2l_ref[...],
                preferred_element_type=f32) + b2l_ref[...]         # (B, 1536)
    o_ref[...] = pl.reciprocal(1.0 + jnp.exp(-y), approx=True)     # sigmoid


# --------------------------------------------------------------------------
# wrapper-side im2col for the stride-2 first conv (folds NCHW->NHWC, padding
# and the stride-2 gather into one cheap XLA gather on the tiny input).
# Output shape (64, N, 32): dim0 ordered (hi, wi, hb, wb), columns (kh,kw,cin).
# --------------------------------------------------------------------------
def _conv1_im2col(x_nchw):
    n = x_nchw.shape[0]
    x = jnp.transpose(x_nchw, (0, 2, 3, 1))                       # (N, 16, 16, 3)
    xp = jnp.pad(x, ((0, 0), (1, 1), (1, 1), (0, 0)))             # (N, 18, 18, 3)
    taps = [xp[:, kh:kh + 16:2, kw:kw + 16:2, :]                  # (N, 8, 8, 3)
            for kh in range(3) for kw in range(3)]
    pats = jnp.concatenate(taps, axis=-1)                         # (N, 8, 8, 27)
    pats = jnp.pad(pats, ((0, 0), (0, 0), (0, 0), (0, K1_PAD - 27)))
    # output pixel (h, w) = (2*hb + hi, 2*wb + wi); reorder to (hi, wi, hb, wb, n)
    pats = pats.reshape(n, 4, 2, 4, 2, K1_PAD).transpose(2, 4, 1, 3, 0, 5)
    return pats.reshape(64, n, K1_PAD).astype(jnp.bfloat16)


def yolov1_forward(params, x_nchw, block_b=BLOCK_B):
    n = x_nchw.shape[0]
    g = max(1, (n + block_b - 1) // block_b)
    npad = g * block_b
    if npad != n:
        x_nchw = jnp.pad(x_nchw, ((0, npad - n), (0, 0), (0, 0), (0, 0)))
    x1col = _conv1_im2col(x_nchw)                                 # (64, npad, 32) bf16

    out = pl.pallas_call(
        _yolo_fused_kernel,
        out_shape=jax.ShapeDtypeStruct((npad, N_OUT_PAD), jnp.float32),
        grid=(g,),
        in_specs=[
            pl.BlockSpec((64, block_b, K1_PAD), lambda i: (0, i, 0)),   # conv1 patches
            pl.BlockSpec((K1_PAD, 64), lambda i: (0, 0)),               # w1c
            pl.BlockSpec((1, 64), lambda i: (0, 0)),                    # b1c
            pl.BlockSpec((9, 64, 16), lambda i: (0, 0, 0)),             # w2c
            pl.BlockSpec((1, 16), lambda i: (0, 0)),                    # b2c
            pl.BlockSpec((9, 16, 32), lambda i: (0, 0, 0)),             # w3c
            pl.BlockSpec((1, 32), lambda i: (0, 0)),                    # b3c
            pl.BlockSpec((9, 32, 32), lambda i: (0, 0, 0)),             # w4c
            pl.BlockSpec((1, 32), lambda i: (0, 0)),                    # b4c
            pl.BlockSpec((4, 32, HIDDEN), lambda i: (0, 0, 0)),         # w1l
            pl.BlockSpec((1, HIDDEN), lambda i: (0, 0)),                # b1l
            pl.BlockSpec((HIDDEN, N_OUT_PAD), lambda i: (0, 0)),        # w2l (padded)
            pl.BlockSpec((1, N_OUT_PAD), lambda i: (0, 0)),             # b2l (padded)
        ],
        out_specs=pl.BlockSpec((block_b, N_OUT_PAD), lambda i: (i, 0)),
        scratch_shapes=[
            pltpu.VMEM((6, 6, block_b, 64), jnp.bfloat16),   # padded conv2 input
            pltpu.VMEM((4, 4, block_b, 16), jnp.bfloat16),   # padded conv3 input
            pltpu.VMEM((4, 4, block_b, 32), jnp.bfloat16),   # padded conv4 input
        ],
        compiler_params=pltpu.CompilerParams(
            dimension_semantics=("parallel",),
            vmem_limit_bytes=32 * 1024 * 1024,
        ),
    )(x1col, params['w1c'], params['b1c'], params['w2c'], params['b2c'],
      params['w3c'], params['b3c'], params['w4c'], params['b4c'],
      params['w1l'], params['b1l'], params['w2l'], params['b2l'])

    return out[:n, :N_OUT].reshape(n, 7, 7, 30)


# --------------------------------------------------------------------------
# parameters (kernel layout + raw copies for the pure-JAX reference check)
# --------------------------------------------------------------------------
def init_params(key):
    ks = jax.random.split(key, 6)
    bf16 = jnp.bfloat16

    def conv_w(k, cin, cout):
        # matches the module's _initialize_weights: n = k*k*out_channels
        std = math.sqrt(2.0 / (3 * 3 * cout))
        return std * jax.random.normal(k, (3, 3, cin, cout), jnp.float32)  # HWIO

    w1 = conv_w(ks[0], 3, 64)      # stride 2
    w2 = conv_w(ks[1], 64, 16)
    w3 = conv_w(ks[2], 16, 32)
    w4 = conv_w(ks[3], 32, 32)

    flat = 32 * 2 * 2              # torch NCHW flatten: index = c*4 + (h*2+w)
    w1l_mat = 0.01 * jax.random.normal(ks[4], (flat, HIDDEN), jnp.float32)
    w2l_mat = 0.01 * jax.random.normal(ks[5], (HIDDEN, N_OUT), jnp.float32)

    params = dict(
        # conv weights: (9*Cin -> padded, Cout) / (9, Cin, Cout), tap order (kh, kw)
        w1c=jnp.pad(w1.reshape(27, 64), ((0, K1_PAD - 27), (0, 0))).astype(bf16),
        b1c=jnp.zeros((1, 64), jnp.float32),
        w2c=w2.reshape(9, 64, 16).astype(bf16), b2c=jnp.zeros((1, 16), jnp.float32),
        w3c=w3.reshape(9, 16, 32).astype(bf16), b3c=jnp.zeros((1, 32), jnp.float32),
        w4c=w4.reshape(9, 32, 32).astype(bf16), b4c=jnp.zeros((1, 32), jnp.float32),
        # bake the torch (C,H,W) flatten order into linear1: (pixel, channel, hidden)
        w1l=w1l_mat.reshape(32, 4, HIDDEN).transpose(1, 0, 2).astype(bf16),
        b1l=jnp.zeros((1, HIDDEN), jnp.float32),
        # linear2 padded to 1536 output columns (lane-dense store)
        w2l=jnp.pad(w2l_mat, ((0, 0), (0, N_OUT_PAD - N_OUT))).astype(bf16),
        b2l=jnp.zeros((1, N_OUT_PAD), jnp.float32),
    )
    ref = dict(w1=w1, w2=w2, w3=w3, w4=w4, w1l=w1l_mat, w2l=w2l_mat)
    return params, ref


# --------------------------------------------------------------------------
# pure-JAX reference (same semantics as the PyTorch module, eval mode)
# --------------------------------------------------------------------------
def _reference_forward(ref, x_nchw):
    x = jnp.transpose(x_nchw, (0, 2, 3, 1))
    dn = jax.lax.conv_dimension_numbers(x.shape, ref['w1'].shape,
                                        ('NHWC', 'HWIO', 'NHWC'))

    def conv(h, w, stride):
        return jax.lax.conv_general_dilated(
            h, w, window_strides=(stride, stride), padding=((1, 1), (1, 1)),
            dimension_numbers=dn, precision=jax.lax.Precision.HIGHEST)

    def pool(h):
        return jax.lax.reduce_window(h, -jnp.inf, jax.lax.max,
                                     (1, 2, 2, 1), (1, 2, 2, 1), 'VALID')

    x = jax.nn.relu(conv(x, ref['w1'], 2))
    x = pool(x)
    x = jax.nn.relu(conv(x, ref['w2'], 1))
    x = pool(x)
    x = jax.nn.relu(conv(x, ref['w3'], 1))
    x = jax.nn.relu(conv(x, ref['w4'], 1))
    x = jnp.transpose(x, (0, 3, 1, 2)).reshape(x.shape[0], -1)   # torch .view(N, -1)
    h = jax.nn.relu(x @ ref['w1l'])
    y = h @ ref['w2l']
    return jax.nn.sigmoid(y).reshape(-1, 7, 7, 30)


if __name__ == "__main__":
    key = jax.random.PRNGKey(0)
    pkey, xkey = jax.random.split(key)
    params, ref = init_params(pkey)

    # PyTorch NCHW convention input; N=64 -> 2 grid steps of B=32 (even, megacore-friendly)
    N = 64
    x = jax.random.normal(xkey, (N, 3, IMAGE_SIZE, IMAGE_SIZE), jnp.float32)

    fwd = jax.jit(yolov1_forward)
    out = jax.block_until_ready(fwd(params, x))

    assert out.shape == (N, 7, 7, 30), out.shape
    assert bool(jnp.all(jnp.isfinite(out)))
    assert bool(jnp.all((out > 0.0) & (out < 1.0)))       # post-sigmoid range

    expected = _reference_forward(ref, x)
    max_err = float(jnp.max(jnp.abs(out - expected)))
    assert max_err < 5e-3, f"mismatch vs pure-JAX reference: {max_err}"

    print("KERNEL_OK")
</pallas_src>

<mosaic_0001>
module attributes {stable_mosaic.version = 11 : i64} {
  func.func @_yolo_fused_kernel(%arg0: i32, %arg1: memref<64x32x32xbf16, #tpu.memory_space<vmem>>, %arg2: memref<32x64xbf16, #tpu.memory_space<vmem>>, %arg3: memref<1x64xf32, #tpu.memory_space<vmem>>, %arg4: memref<9x64x16xbf16, #tpu.memory_space<vmem>>, %arg5: memref<1x16xf32, #tpu.memory_space<vmem>>, %arg6: memref<9x16x32xbf16, #tpu.memory_space<vmem>>, %arg7: memref<1x32xf32, #tpu.memory_space<vmem>>, %arg8: memref<9x32x32xbf16, #tpu.memory_space<vmem>>, %arg9: memref<1x32xf32, #tpu.memory_space<vmem>>, %arg10: memref<4x32x64xbf16, #tpu.memory_space<vmem>>, %arg11: memref<1x64xf32, #tpu.memory_space<vmem>>, %arg12: memref<64x1536xbf16, #tpu.memory_space<vmem>>, %arg13: memref<1x1536xf32, #tpu.memory_space<vmem>>, %arg14: memref<32x1536xf32, #tpu.memory_space<vmem>>, %arg15: memref<6x6x32x64xbf16, #tpu.memory_space<vmem>>, %arg16: memref<4x4x32x16xbf16, #tpu.memory_space<vmem>>, %arg17: memref<4x4x32x32xbf16, #tpu.memory_space<vmem>>) attributes {dimension_semantics = [#tpu.dimension_semantics<parallel>], iteration_bounds = array<i64: 2>, scalar_prefetch = 0 : i64, scratch_operands = 3 : i64, tpu.core_type = #tpu.core_type<tc>, window_params = [{transform_indices = @transform_0, window_bounds = array<i64: 64, 32, 32>}, {pipeline_mode = #tpu.pipeline_mode<synchronous>, transform_indices = @transform_1, window_bounds = array<i64: 32, 64>}, {pipeline_mode = #tpu.pipeline_mode<synchronous>, transform_indices = @transform_2, window_bounds = array<i64: 1, 64>}, {pipeline_mode = #tpu.pipeline_mode<synchronous>, transform_indices = @transform_3, window_bounds = array<i64: 9, 64, 16>}, {pipeline_mode = #tpu.pipeline_mode<synchronous>, transform_indices = @transform_4, window_bounds = array<i64: 1, 16>}, {pipeline_mode = #tpu.pipeline_mode<synchronous>, transform_indices = @transform_5, window_bounds = array<i64: 9, 16, 32>}, {pipeline_mode = #tpu.pipeline_mode<synchronous>, transform_indices = @transform_6, window_bounds = array<i64: 1, 32>}, {pipeline_mode = #tpu.pipeline_mode<synchronous>, transform_indices = @transform_7, window_bounds = array<i64: 9, 32, 32>}, {pipeline_mode = #tpu.pipeline_mode<synchronous>, transform_indices = @transform_8, window_bounds = array<i64: 1, 32>}, {pipeline_mode = #tpu.pipeline_mode<synchronous>, transform_indices = @transform_9, window_bounds = array<i64: 4, 32, 64>}, {pipeline_mode = #tpu.pipeline_mode<synchronous>, transform_indices = @transform_10, window_bounds = array<i64: 1, 64>}, {pipeline_mode = #tpu.pipeline_mode<synchronous>, transform_indices = @transform_11, window_bounds = array<i64: 64, 1536>}, {pipeline_mode = #tpu.pipeline_mode<synchronous>, transform_indices = @transform_12, window_bounds = array<i64: 1, 1536>}, {transform_indices = @transform_13, window_bounds = array<i64: 32, 1536>}]} {
    %c0 = arith.constant 0 : index
    %c0_0 = arith.constant 0 : index
    %c0_1 = arith.constant 0 : index
    %0 = vector.load %arg1[%c0, %c0_0, %c0_1] : memref<64x32x32xbf16, #tpu.memory_space<vmem>>, vector<64x32x32xbf16>
    %1 = vector.shape_cast %0 : vector<64x32x32xbf16> to vector<2048x32xbf16>
    %c0_2 = arith.constant 0 : index
    %c0_3 = arith.constant 0 : index
    %2 = vector.load %arg2[%c0_2, %c0_3] : memref<32x64xbf16, #tpu.memory_space<vmem>>, vector<32x64xbf16>
    %cst = arith.constant dense<0.000000e+00> : vector<2048x64xf32>
    %3 = tpu.matmul %1, %2, %cst {dimension_numbers = #tpu.dot_dimension_numbers<[1], [0], [0], [1], [0, 0, 1, 1], [], []>} : vector<2048x32xbf16>, vector<32x64xbf16>, vector<2048x64xf32> -> vector<2048x64xf32>
    %c0_4 = arith.constant 0 : index
    %c0_5 = arith.constant 0 : index
    %4 = vector.load %arg3[%c0_4, %c0_5] : memref<1x64xf32, #tpu.memory_space<vmem>>, vector<1x64xf32>
    %5 = vector.broadcast %4 : vector<1x64xf32> to vector<2048x64xf32>
    %6 = arith.addf %3, %5 : vector<2048x64xf32>
    %cst_6 = arith.constant 0.000000e+00 : f32
    %7 = vector.broadcast %cst_6 : f32 to vector<2048x64xf32>
    %8 = arith.maximumf %6, %7 : vector<2048x64xf32>
    %9 = vector.shape_cast %8 : vector<2048x64xf32> to vector<4x512x64xf32>
    %10 = vector.extract_strided_slice %9 {offsets = [0, 0, 0], sizes = [1, 512, 64], strides = [1, 1, 1]} : vector<4x512x64xf32> to vector<1x512x64xf32>
    %11 = vector.shape_cast %10 : vector<1x512x64xf32> to vector<512x64xf32>
    %12 = vector.extract_strided_slice %9 {offsets = [1, 0, 0], sizes = [1, 512, 64], strides = [1, 1, 1]} : vector<4x512x64xf32> to vector<1x512x64xf32>
    %13 = vector.shape_cast %12 : vector<1x512x64xf32> to vector<512x64xf32>
    %14 = arith.maximumf %11, %13 : vector<512x64xf32>
    %15 = vector.extract_strided_slice %9 {offsets = [2, 0, 0], sizes = [1, 512, 64], strides = [1, 1, 1]} : vector<4x512x64xf32> to vector<1x512x64xf32>
    %16 = vector.shape_cast %15 : vector<1x512x64xf32> to vector<512x64xf32>
    %17 = vector.extract_strided_slice %9 {offsets = [3, 0, 0], sizes = [1, 512, 64], strides = [1, 1, 1]} : vector<4x512x64xf32> to vector<1x512x64xf32>
    %18 = vector.shape_cast %17 : vector<1x512x64xf32> to vector<512x64xf32>
    %19 = arith.maximumf %16, %18 : vector<512x64xf32>
    %20 = arith.maximumf %14, %19 : vector<512x64xf32>
    %21 = arith.truncf %20 : vector<512x64xf32> to vector<512x64xbf16>
    %22 = vector.shape_cast %21 : vector<512x64xbf16> to vector<4x4x32x64xbf16>
    %cst_7 = arith.constant 0.000000e+00 : bf16
    %23 = vector.broadcast %cst_7 : bf16 to vector<6x32x64xbf16>
    %cst_8 = arith.constant 0.000000e+00 : bf16
    %24 = vector.broadcast %cst_8 : bf16 to vector<32x64xbf16>
    %c0_9 = arith.constant 0 : index
    %c0_10 = arith.constant 0 : index
    %c0_11 = arith.constant 0 : index
    %c0_12 = arith.constant 0 : index
    %25 = vector.load %arg15[%c0_9, %c0_10, %c0_11, %c0_12] : memref<6x6x32x64xbf16, #tpu.memory_space<vmem>>, vector<1x6x32x64xbf16>
    %26 = vector.shape_cast %25 : vector<1x6x32x64xbf16> to vector<6x32x64xbf16>
    %27 = vector.shape_cast %23 : vector<6x32x64xbf16> to vector<1x6x32x64xbf16>
    tpu.vector_store %arg15[%c0_9, %c0_10, %c0_11, %c0_12], %27 {strides = array<i32>} : memref<6x6x32x64xbf16, #tpu.memory_space<vmem>>, vector<1x6x32x64xbf16>,
    %c5 = arith.constant 5 : index
    %c0_13 = arith.constant 0 : index
    %c0_14 = arith.constant 0 : index
    %c0_15 = arith.constant 0 : index
    %28 = vector.load %arg15[%c5, %c0_13, %c0_14, %c0_15] : memref<6x6x32x64xbf16, #tpu.memory_space<vmem>>, vector<1x6x32x64xbf16>
    %29 = vector.shape_cast %28 : vector<1x6x32x64xbf16> to vector<6x32x64xbf16>
    %30 = vector.shape_cast %23 : vector<6x32x64xbf16> to vector<1x6x32x64xbf16>
    tpu.vector_store %arg15[%c5, %c0_13, %c0_14, %c0_15], %30 {strides = array<i32>} : memref<6x6x32x64xbf16, #tpu.memory_space<vmem>>, vector<1x6x32x64xbf16>,
    %c1 = arith.constant 1 : index
    %c0_16 = arith.constant 0 : index
    %c0_17 = arith.constant 0 : index
    %c0_18 = arith.constant 0 : index
    %31 = vector.load %arg15[%c1, %c0_16, %c0_17, %c0_18] : memref<6x6x32x64xbf16, #tpu.memory_space<vmem>>, vector<1x1x32x64xbf16>
    %32 = vector.shape_cast %31 : vector<1x1x32x64xbf16> to vector<32x64xbf16>
    %33 = vector.shape_cast %24 : vector<32x64xbf16> to vector<1x1x32x64xbf16>
    tpu.vector_store %arg15[%c1, %c0_16, %c0_17, %c0_18], %33 {strides = array<i32>} : memref<6x6x32x64xbf16, #tpu.memory_space<vmem>>, vector<1x1x32x64xbf16>,
    %34 = vector.extract_strided_slice %22 {offsets = [0, 0, 0, 0], sizes = [1, 4, 32, 64], strides = [1, 1, 1, 1]} : vector<4x4x32x64xbf16> to vector<1x4x32x64xbf16>
    %35 = vector.shape_cast %34 : vector<1x4x32x64xbf16> to vector<4x32x64xbf16>
    %c1_19 = arith.constant 1 : index
    %c1_20 = arith.constant 1 : index
    %c0_21 = arith.constant 0 : index
    %c0_22 = arith.constant 0 : index
    %36 = vector.load %arg15[%c1_19, %c1_20, %c0_21, %c0_22] : memref<6x6x32x64xbf16, #tpu.memory_space<vmem>>, vector<1x4x32x64xbf16>
    %37 = vector.shape_cast %36 : vector<1x4x32x64xbf16> to vector<4x32x64xbf16>
    %38 = vector.shape_cast %35 : vector<4x32x64xbf16> to vector<1x4x32x64xbf16>
    tpu.vector_store %arg15[%c1_19, %c1_20, %c0_21, %c0_22], %38 {strides = array<i32>} : memref<6x6x32x64xbf16, #tpu.memory_space<vmem>>, vector<1x4x32x64xbf16>,
    %c1_23 = arith.constant 1 : index
    %c5_24 = arith.constant 5 : index
    %c0_25 = arith.constant 0 : index
    %c0_26 = arith.constant 0 : index
    %39 = vector.load %arg15[%c1_23, %c5_24, %c0_25, %c0_26] : memref<6x6x32x64xbf16, #tpu.memory_space<vmem>>, vector<1x1x32x64xbf16>
    %40 = vector.shape_cast %39 : vector<1x1x32x64xbf16> to vector<32x64xbf16>
    %41 = vector.shape_cast %24 : vector<32x64xbf16> to vector<1x1x32x64xbf16>
    tpu.vector_store %arg15[%c1_23, %c5_24, %c0_25, %c0_26], %41 {strides = array<i32>} : memref<6x6x32x64xbf16, #tpu.memory_space<vmem>>, vector<1x1x32x64xbf16>,
    %c2 = arith.constant 2 : index
    %c0_27 = arith.constant 0 : index
    %c0_28 = arith.constant 0 : index
    %c0_29 = arith.constant 0 : index
    %42 = vector.load %arg15[%c2, %c0_27, %c0_28, %c0_29] : memref<6x6x32x64xbf16, #tpu.memory_space<vmem>>, vector<1x1x32x64xbf16>
    %43 = vector.shape_cast %42 : vector<1x1x32x64xbf16> to vector<32x64xbf16>
    %44 = vector.shape_cast %24 : vector<32x64xbf16> to vector<1x1x32x64xbf16>
    tpu.vector_store %arg15[%c2, %c0_27, %c0_28, %c0_29], %44 {strides = array<i32>} : memref<6x6x32x64xbf16, #tpu.memory_space<vmem>>, vector<1x1x32x64xbf16>,
    %45 = vector.extract_strided_slice %22 {offsets = [1, 0, 0, 0], sizes = [1, 4, 32, 64], strides = [1, 1, 1, 1]} : vector<4x4x32x64xbf16> to vector<1x4x32x64xbf16>
    %46 = vector.shape_cast %45 : vector<1x4x32x64xbf16> to vector<4x32x64xbf16>
    %c2_30 = arith.constant 2 : index
    %c1_31 = arith.constant 1 : index
    %c0_32 = arith.constant 0 : index
    %c0_33 = arith.constant 0 : index
    %47 = vector.load %arg15[%c2_30, %c1_31, %c0_32, %c0_33] : memref<6x6x32x64xbf16, #tpu.memory_space<vmem>>, vector<1x4x32x64xbf16>
    %48 = vector.shape_cast %47 : vector<1x4x32x64xbf16> to vector<4x32x64xbf16>
    %49 = vector.shape_cast %46 : vector<4x32x64xbf16> to vector<1x4x32x64xbf16>
    tpu.vector_store %arg15[%c2_30, %c1_31, %c0_32, %c0_33], %49 {strides = array<i32>} : memref<6x6x32x64xbf16, #tpu.memory_space<vmem>>, vector<1x4x32x64xbf16>,
    %c2_34 = arith.constant 2 : index
    %c5_35 = arith.constant 5 : index
    %c0_36 = arith.constant 0 : index
    %c0_37 = arith.constant 0 : index
    %50 = vector.load %arg15[%c2_34, %c5_35, %c0_36, %c0_37] : memref<6x6x32x64xbf16, #tpu.memory_space<vmem>>, vector<1x1x32x64xbf16>
    %51 = vector.shape_cast %50 : vector<1x1x32x64xbf16> to vector<32x64xbf16>
    %52 = vector.shape_cast %24 : vector<32x64xbf16> to vector<1x1x32x64xbf16>
    tpu.vector_store %arg15[%c2_34, %c5_35, %c0_36, %c0_37], %52 {strides = array<i32>} : memref<6x6x32x64xbf16, #tpu.memory_space<vmem>>, vector<1x1x32x64xbf16>,
    %c3 = arith.constant 3 : index
    %c0_38 = arith.constant 0 : index
    %c0_39 = arith.constant 0 : index
    %c0_40 = arith.constant 0 : index
    %53 = vector.load %arg15[%c3, %c0_38, %c0_39, %c0_40] : memref<6x6x32x64xbf16, #tpu.memory_space<vmem>>, vector<1x1x32x64xbf16>
    %54 = vector.shape_cast %53 : vector<1x1x32x64xbf16> to vector<32x64xbf16>
    %55 = vector.shape_cast %24 : vector<32x64xbf16> to vector<1x1x32x64xbf16>
    tpu.vector_store %arg15[%c3, %c0_38, %c0_39, %c0_40], %55 {strides = array<i32>} : memref<6x6x32x64xbf16, #tpu.memory_space<vmem>>, vector<1x1x32x64xbf16>,
    %56 = vector.extract_strided_slice %22 {offsets = [2, 0, 0, 0], sizes = [1, 4, 32, 64], strides = [1, 1, 1, 1]} : vector<4x4x32x64xbf16> to vector<1x4x32x64xbf16>
    %57 = vector.shape_cast %56 : vector<1x4x32x64xbf16> to vector<4x32x64xbf16>
    %c3_41 = arith.constant 3 : index
    %c1_42 = arith.constant 1 : index
    %c0_43 = arith.constant 0 : index
    %c0_44 = arith.constant 0 : index
    %58 = vector.load %arg15[%c3_41, %c1_42, %c0_43, %c0_44] : memref<6x6x32x64xbf16, #tpu.memory_space<vmem>>, vector<1x4x32x64xbf16>
    %59 = vector.shape_cast %58 : vector<1x4x32x64xbf16> to vector<4x32x64xbf16>
    %60 = vector.shape_cast %57 : vector<4x32x64xbf16> to vector<1x4x32x64xbf16>
    tpu.vector_store %arg15[%c3_41, %c1_42, %c0_43, %c0_44], %60 {strides = array<i32>} : memref<6x6x32x64xbf16, #tpu.memory_space<vmem>>, vector<1x4x32x64xbf16>,
    %c3_45 = arith.constant 3 : index
    %c5_46 = arith.constant 5 : index
    %c0_47 = arith.constant 0 : index
    %c0_48 = arith.constant 0 : index
    %61 = vector.load %arg15[%c3_45, %c5_46, %c0_47, %c0_48] : memref<6x6x32x64xbf16, #tpu.memory_space<vmem>>, vector<1x1x32x64xbf16>
    %62 = vector.shape_cast %61 : vector<1x1x32x64xbf16> to vector<32x64xbf16>
    %63 = vector.shape_cast %24 : vector<32x64xbf16> to vector<1x1x32x64xbf16>
    tpu.vector_store %arg15[%c3_45, %c5_46, %c0_47, %c0_48], %63 {strides = array<i32>} : memref<6x6x32x64xbf16, #tpu.memory_space<vmem>>, vector<1x1x32x64xbf16>,
    %c4 = arith.constant 4 : index
    %c0_49 = arith.constant 0 : index
    %c0_50 = arith.constant 0 : index
    %c0_51 = arith.constant 0 : index
    %64 = vector.load %arg15[%c4, %c0_49, %c0_50, %c0_51] : memref<6x6x32x64xbf16, #tpu.memory_space<vmem>>, vector<1x1x32x64xbf16>
    %65 = vector.shape_cast %64 : vector<1x1x32x64xbf16> to vector<32x64xbf16>
    %66 = vector.shape_cast %24 : vector<32x64xbf16> to vector<1x1x32x64xbf16>
    tpu.vector_store %arg15[%c4, %c0_49, %c0_50, %c0_51], %66 {strides = array<i32>} : memref<6x6x32x64xbf16, #tpu.memory_space<vmem>>, vector<1x1x32x64xbf16>,
    %67 = vector.extract_strided_slice %22 {offsets = [3, 0, 0, 0], sizes = [1, 4, 32, 64], strides = [1, 1, 1, 1]} : vector<4x4x32x64xbf16> to vector<1x4x32x64xbf16>
    %68 = vector.shape_cast %67 : vector<1x4x32x64xbf16> to vector<4x32x64xbf16>
    %c4_52 = arith.constant 4 : index
    %c1_53 = arith.constant 1 : index
    %c0_54 = arith.constant 0 : index
    %c0_55 = arith.constant 0 : index
    %69 = vector.load %arg15[%c4_52, %c1_53, %c0_54, %c0_55] : memref<6x6x32x64xbf16, #tpu.memory_space<vmem>>, vector<1x4x32x64xbf16>
    %70 = vector.shape_cast %69 : vector<1x4x32x64xbf16> to vector<4x32x64xbf16>
    %71 = vector.shape_cast %68 : vector<4x32x64xbf16> to vector<1x4x32x64xbf16>
    tpu.vector_store %arg15[%c4_52, %c1_53, %c0_54, %c0_55], %71 {strides = array<i32>} : memref<6x6x32x64xbf16, #tpu.memory_space<vmem>>, vector<1x4x32x64xbf16>,
    %c4_56 = arith.constant 4 : index
    %c5_57 = arith.constant 5 : index
    %c0_58 = arith.constant 0 : index
    %c0_59 = arith.constant 0 : index
    %72 = vector.load %arg15[%c4_56, %c5_57, %c0_58, %c0_59] : memref<6x6x32x64xbf16, #tpu.memory_space<vmem>>, vector<1x1x32x64xbf16>
    %73 = vector.shape_cast %72 : vector<1x1x32x64xbf16> to vector<32x64xbf16>
    %74 = vector.shape_cast %24 : vector<32x64xbf16> to vector<1x1x32x64xbf16>
    tpu.vector_store %arg15[%c4_56, %c5_57, %c0_58, %c0_59], %74 {strides = array<i32>} : memref<6x6x32x64xbf16, #tpu.memory_space<vmem>>, vector<1x1x32x64xbf16>,
    %c0_60 = arith.constant 0 : index
    %c0_61 = arith.constant 0 : index
    %c0_62 = arith.constant 0 : index
    %c0_63 = arith.constant 0 : index
    %75 = vector.load %arg15[%c0_60, %c0_61, %c0_62, %c0_63] : memref<6x6x32x64xbf16, #tpu.memory_space<vmem>>, vector<4x4x32x64xbf16>
    %76 = vector.shape_cast %75 : vector<4x4x32x64xbf16> to vector<512x64xbf16>
    %c0_64 = arith.constant 0 : index
    %c0_65 = arith.constant 0 : index
    %c0_66 = arith.constant 0 : index
    %77 = vector.load %arg4[%c0_64, %c0_65, %c0_66] : memref<9x64x16xbf16, #tpu.memory_space<vmem>>, vector<1x64x16xbf16>
    %78 = vector.shape_cast %77 : vector<1x64x16xbf16> to vector<64x16xbf16>
    %cst_67 = arith.constant dense<0.000000e+00> : vector<512x16xf32>
    %79 = tpu.matmul %76, %78, %cst_67 {dimension_numbers = #tpu.dot_dimension_numbers<[1], [0], [0], [1], [0, 0, 1, 1], [], []>} : vector<512x64xbf16>, vector<64x16xbf16>, vector<512x16xf32> -> vector<512x16xf32>
    %c0_68 = arith.constant 0 : index
    %c1_69 = arith.constant 1 : index
    %c0_70 = arith.constant 0 : index
    %c0_71 = arith.constant 0 : index
    %80 = vector.load %arg15[%c0_68, %c1_69, %c0_70, %c0_71] : memref<6x6x32x64xbf16, #tpu.memory_space<vmem>>, vector<4x4x32x64xbf16>
    %81 = vector.shape_cast %80 : vector<4x4x32x64xbf16> to vector<512x64xbf16>
    %c1_72 = arith.constant 1 : index
    %c0_73 = arith.constant 0 : index
    %c0_74 = arith.constant 0 : index
    %82 = vector.load %arg4[%c1_72, %c0_73, %c0_74] : memref<9x64x16xbf16, #tpu.memory_space<vmem>>, vector<1x64x16xbf16>
    %83 = vector.shape_cast %82 : vector<1x64x16xbf16> to vector<64x16xbf16>
    %cst_75 = arith.constant dense<0.000000e+00> : vector<512x16xf32>
    %84 = tpu.matmul %81, %83, %cst_75 {dimension_numbers = #tpu.dot_dimension_numbers<[1], [0], [0], [1], [0, 0, 1, 1], [], []>} : vector<512x64xbf16>, vector<64x16xbf16>, vector<512x16xf32> -> vector<512x16xf32>
    %85 = arith.addf %79, %84 : vector<512x16xf32>
    %c0_76 = arith.constant 0 : index
    %c2_77 = arith.constant 2 : index
    %c0_78 = arith.constant 0 : index
    %c0_79 = arith.constant 0 : index
    %86 = vector.load %arg15[%c0_76, %c2_77, %c0_78, %c0_79] : memref<6x6x32x64xbf16, #tpu.memory_space<vmem>>, vector<4x4x32x64xbf16>
    %87 = vector.shape_cast %86 : vector<4x4x32x64xbf16> to vector<512x64xbf16>
    %c2_80 = arith.constant 2 : index
    %c0_81 = arith.constant 0 : index
    %c0_82 = arith.constant 0 : index
    %88 = vector.load %arg4[%c2_80, %c0_81, %c0_82] : memref<9x64x16xbf16, #tpu.memory_space<vmem>>, vector<1x64x16xbf16>
    %89 = vector.shape_cast %88 : vector<1x64x16xbf16> to vector<64x16xbf16>
    %cst_83 = arith.constant dense<0.000000e+00> : vector<512x16xf32>
    %90 = tpu.matmul %87, %89, %cst_83 {dimension_numbers = #tpu.dot_dimension_numbers<[1], [0], [0], [1], [0, 0, 1, 1], [], []>} : vector<512x64xbf16>, vector<64x16xbf16>, vector<512x16xf32> -> vector<512x16xf32>
    %91 = arith.addf %85, %90 : vector<512x16xf32>
    %c1_84 = arith.constant 1 : index
    %c0_85 = arith.constant 0 : index
    %c0_86 = arith.constant 0 : index
    %c0_87 = arith.constant 0 : index
    %92 = vector.load %arg15[%c1_84, %c0_85, %c0_86, %c0_87] : memref<6x6x32x64xbf16, #tpu.memory_space<vmem>>, vector<4x4x32x64xbf16>
    %93 = vector.shape_cast %92 : vector<4x4x32x64xbf16> to vector<512x64xbf16>
    %c3_88 = arith.constant 3 : index
    %c0_89 = arith.constant 0 : index
    %c0_90 = arith.constant 0 : index
    %94 = vector.load %arg4[%c3_88, %c0_89, %c0_90] : memref<9x64x16xbf16, #tpu.memory_space<vmem>>, vector<1x64x16xbf16>
    %95 = vector.shape_cast %94 : vector<1x64x16xbf16> to vector<64x16xbf16>
    %cst_91 = arith.constant dense<0.000000e+00> : vector<512x16xf32>
    %96 = tpu.matmul %93, %95, %cst_91 {dimension_numbers = #tpu.dot_dimension_numbers<[1], [0], [0], [1], [0, 0, 1, 1], [], []>} : vector<512x64xbf16>, vector<64x16xbf16>, vector<512x16xf32> -> vector<512x16xf32>
    %97 = arith.addf %91, %96 : vector<512x16xf32>
    %c1_92 = arith.constant 1 : index
    %c1_93 = arith.constant 1 : index
    %c0_94 = arith.constant 0 : index
    %c0_95 = arith.constant 0 : index
    %98 = vector.load %arg15[%c1_92, %c1_93, %c0_94, %c0_95] : memref<6x6x32x64xbf16, #tpu.memory_space<vmem>>, vector<4x4x32x64xbf16>
    %99 = vector.shape_cast %98 : vector<4x4x32x64xbf16> to vector<512x64xbf16>
    %c4_96 = arith.constant 4 : index
    %c0_97 = arith.constant 0 : index
    %c0_98 = arith.constant 0 : index
    %100 = vector.load %arg4[%c4_96, %c0_97, %c0_98] : memref<9x64x16xbf16, #tpu.memory_space<vmem>>, vector<1x64x16xbf16>
    %101 = vector.shape_cast %100 : vector<1x64x16xbf16> to vector<64x16xbf16>
    %cst_99 = arith.constant dense<0.000000e+00> : vector<512x16xf32>
    %102 = tpu.matmul %99, %101, %cst_99 {dimension_numbers = #tpu.dot_dimension_numbers<[1], [0], [0], [1], [0, 0, 1, 1], [], []>} : vector<512x64xbf16>, vector<64x16xbf16>, vector<512x16xf32> -> vector<512x16xf32>
    %103 = arith.addf %97, %102 : vector<512x16xf32>
    %c1_100 = arith.constant 1 : index
    %c2_101 = arith.constant 2 : index
    %c0_102 = arith.constant 0 : index
    %c0_103 = arith.constant 0 : index
    %104 = vector.load %arg15[%c1_100, %c2_101, %c0_102, %c0_103] : memref<6x6x32x64xbf16, #tpu.memory_space<vmem>>, vector<4x4x32x64xbf16>
    %105 = vector.shape_cast %104 : vector<4x4x32x64xbf16> to vector<512x64xbf16>
    %c5_104 = arith.constant 5 : index
    %c0_105 = arith.constant 0 : index
    %c0_106 = arith.constant 0 : index
    %106 = vector.load %arg4[%c5_104, %c0_105, %c0_106] : memref<9x64x16xbf16, #tpu.memory_space<vmem>>, vector<1x64x16xbf16>
    %107 = vector.shape_cast %106 : vector<1x64x16xbf16> to vector<64x16xbf16>
    %cst_107 = arith.constant dense<0.000000e+00> : vector<512x16xf32>
    %108 = tpu.matmul %105, %107, %cst_107 {dimension_numbers = #tpu.dot_dimension_numbers<[1], [0], [0], [1], [0, 0, 1, 1], [], []>} : vector<512x64xbf16>, vector<64x16xbf16>, vector<512x16xf32> -> vector<512x16xf32>
    %109 = arith.addf %103, %108 : vector<512x16xf32>
    %c2_108 = arith.constant 2 : index
    %c0_109 = arith.constant 0 : index
    %c0_110 = arith.constant 0 : index
    %c0_111 = arith.constant 0 : index
    %110 = vector.load %arg15[%c2_108, %c0_109, %c0_110, %c0_111] : memref<6x6x32x64xbf16, #tpu.memory_space<vmem>>, vector<4x4x32x64xbf16>
    %111 = vector.shape_cast %110 : vector<4x4x32x64xbf16> to vector<512x64xbf16>
    %c6 = arith.constant 6 : index
    %c0_112 = arith.constant 0 : index
    %c0_113 = arith.constant 0 : index
    %112 = vector.load %arg4[%c6, %c0_112, %c0_113] : memref<9x64x16xbf16, #tpu.memory_space<vmem>>, vector<1x64x16xbf16>
    %113 = vector.shape_cast %112 : vector<1x64x16xbf16> to vector<64x16xbf16>
    %cst_114 = arith.constant dense<0.000000e+00> : vector<512x16xf32>
    %114 = tpu.matmul %111, %113, %cst_114 {dimension_numbers = #tpu.dot_dimension_numbers<[1], [0], [0], [1], [0, 0, 1, 1], [], []>} : vector<512x64xbf16>, vector<64x16xbf16>, vector<512x16xf32> -> vector<512x16xf32>
    %115 = arith.addf %109, %114 : vector<512x16xf32>
    %c2_115 = arith.constant 2 : index
    %c1_116 = arith.constant 1 : index
    %c0_117 = arith.constant 0 : index
    %c0_118 = arith.constant 0 : index
    %116 = vector.load %arg15[%c2_115, %c1_116, %c0_117, %c0_118] : memref<6x6x32x64xbf16, #tpu.memory_space<vmem>>, vector<4x4x32x64xbf16>
    %117 = vector.shape_cast %116 : vector<4x4x32x64xbf16> to vector<512x64xbf16>
    %c7 = arith.constant 7 : index
    %c0_119 = arith.constant 0 : index
    %c0_120 = arith.constant 0 : index
    %118 = vector.load %arg4[%c7, %c0_119, %c0_120] : memref<9x64x16xbf16, #tpu.memory_space<vmem>>, vector<1x64x16xbf16>
    %119 = vector.shape_cast %118 : vector<1x64x16xbf16> to vector<64x16xbf16>
    %cst_121 = arith.constant dense<0.000000e+00> : vector<512x16xf32>
    %120 = tpu.matmul %117, %119, %cst_121 {dimension_numbers = #tpu.dot_dimension_numbers<[1], [0], [0], [1], [0, 0, 1, 1], [], []>} : vector<512x64xbf16>, vector<64x16xbf16>, vector<512x16xf32> -> vector<512x16xf32>
    %121 = arith.addf %115, %120 : vector<512x16xf32>
    %c2_122 = arith.constant 2 : index
    %c2_123 = arith.constant 2 : index
    %c0_124 = arith.constant 0 : index
    %c0_125 = arith.constant 0 : index
    %122 = vector.load %arg15[%c2_122, %c2_123, %c0_124, %c0_125] : memref<6x6x32x64xbf16, #tpu.memory_space<vmem>>, vector<4x4x32x64xbf16>
    %123 = vector.shape_cast %122 : vector<4x4x32x64xbf16> to vector<512x64xbf16>
    %c8 = arith.constant 8 : index
    %c0_126 = arith.constant 0 : index
    %c0_127 = arith.constant 0 : index
    %124 = vector.load %arg4[%c8, %c0_126, %c0_127] : memref<9x64x16xbf16, #tpu.memory_space<vmem>>, vector<1x64x16xbf16>
    %125 = vector.shape_cast %124 : vector<1x64x16xbf16> to vector<64x16xbf16>
    %cst_128 = arith.constant dense<0.000000e+00> : vector<512x16xf32>
    %126 = tpu.matmul %123, %125, %cst_128 {dimension_numbers = #tpu.dot_dimension_numbers<[1], [0], [0], [1], [0, 0, 1, 1], [], []>} : vector<512x64xbf16>, vector<64x16xbf16>, vector<512x16xf32> -> vector<512x16xf32>
    %127 = arith.addf %121, %126 : vector<512x16xf32>
    %c0_129 = arith.constant 0 : index
    %c0_130 = arith.constant 0 : index
    %128 = vector.load %arg5[%c0_129, %c0_130] : memref<1x16xf32, #tpu.memory_space<vmem>>, vector<1x16xf32>
    %129 = vector.broadcast %128 : vector<1x16xf32> to vector<512x16xf32>
    %130 = arith.addf %127, %129 : vector<512x16xf32>
    %cst_131 = arith.constant 0.000000e+00 : f32
    %131 = vector.broadcast %cst_131 : f32 to vector<512x16xf32>
    %132 = arith.maximumf %130, %131 : vector<512x16xf32>
    %133 = vector.shape_cast %132 : vector<512x16xf32> to vector<4x4x32x16xf32>
    %cst_132 = arith.constant 0.000000e+00 : bf16
    %134 = vector.broadcast %cst_132 : bf16 to vector<4x32x16xbf16>
    %cst_133 = arith.constant 0.000000e+00 : bf16
    %135 = vector.broadcast %cst_133 : bf16 to vector<32x16xbf16>
    %c0_134 = arith.constant 0 : index
    %c0_135 = arith.constant 0 : index
    %c0_136 = arith.constant 0 : index
    %c0_137 = arith.constant 0 : index
    %136 = vector.load %arg16[%c0_134, %c0_135, %c0_136, %c0_137] : memref<4x4x32x16xbf16, #tpu.memory_space<vmem>>, vector<1x4x32x16xbf16>
    %137 = vector.shape_cast %136 : vector<1x4x32x16xbf16> to vector<4x32x16xbf16>
    %138 = vector.shape_cast %134 : vector<4x32x16xbf16> to vector<1x4x32x16xbf16>
    tpu.vector_store %arg16[%c0_134, %c0_135, %c0_136, %c0_137], %138 {strides = array<i32>} : memref<4x4x32x16xbf16, #tpu.memory_space<vmem>>, vector<1x4x32x16xbf16>,
    %c3_138 = arith.constant 3 : index
    %c0_139 = arith.constant 0 : index
    %c0_140 = arith.constant 0 : index
    %c0_141 = arith.constant 0 : index
    %139 = vector.load %arg16[%c3_138, %c0_139, %c0_140, %c0_141] : memref<4x4x32x16xbf16, #tpu.memory_space<vmem>>, vector<1x4x32x16xbf16>
    %140 = vector.shape_cast %139 : vector<1x4x32x16xbf16> to vector<4x32x16xbf16>
    %141 = vector.shape_cast %134 : vector<4x32x16xbf16> to vector<1x4x32x16xbf16>
    tpu.vector_store %arg16[%c3_138, %c0_139, %c0_140, %c0_141], %141 {strides = array<i32>} : memref<4x4x32x16xbf16, #tpu.memory_space<vmem>>, vector<1x4x32x16xbf16>,
    %c1_142 = arith.constant 1 : index
    %c0_143 = arith.constant 0 : index
    %c0_144 = arith.constant 0 : index
    %c0_145 = arith.constant 0 : index
    %142 = vector.load %arg16[%c1_142, %c0_143, %c0_144, %c0_145] : memref<4x4x32x16xbf16, #tpu.memory_space<vmem>>, vector<1x1x32x16xbf16>
    %143 = vector.shape_cast %142 : vector<1x1x32x16xbf16> to vector<32x16xbf16>
    %144 = vector.shape_cast %135 : vector<32x16xbf16> to vector<1x1x32x16xbf16>
    tpu.vector_store %arg16[%c1_142, %c0_143, %c0_144, %c0_145], %144 {strides = array<i32>} : memref<4x4x32x16xbf16, #tpu.memory_space<vmem>>, vector<1x1x32x16xbf16>,
    %c1_146 = arith.constant 1 : index
    %c3_147 = arith.constant 3 : index
    %c0_148 = arith.constant 0 : index
    %c0_149 = arith.constant 0 : index
    %145 = vector.load %arg16[%c1_146, %c3_147, %c0_148, %c0_149] : memref<4x4x32x16xbf16, #tpu.memory_space<vmem>>, vector<1x1x32x16xbf16>
    %146 = vector.shape_cast %145 : vector<1x1x32x16xbf16> to vector<32x16xbf16>
    %147 = vector.shape_cast %135 : vector<32x16xbf16> to vector<1x1x32x16xbf16>
    tpu.vector_store %arg16[%c1_146, %c3_147, %c0_148, %c0_149], %147 {strides = array<i32>} : memref<4x4x32x16xbf16, #tpu.memory_space<vmem>>, vector<1x1x32x16xbf16>,
    %148 = vector.extract_strided_slice %133 {offsets = [0, 0, 0, 0], sizes = [1, 1, 32, 16], strides = [1, 1, 1, 1]} : vector<4x4x32x16xf32> to vector<1x1x32x16xf32>
    %149 = vector.shape_cast %148 : vector<1x1x32x16xf32> to vector<32x16xf32>
    %150 = vector.extract_strided_slice %133 {offsets = [0, 1, 0, 0], sizes = [1, 1, 32, 16], strides = [1, 1, 1, 1]} : vector<4x4x32x16xf32> to vector<1x1x32x16xf32>
    %151 = vector.shape_cast %150 : vector<1x1x32x16xf32> to vector<32x16xf32>
    %152 = arith.maximumf %149, %151 : vector<32x16xf32>
    %153 = vector.extract_strided_slice %133 {offsets = [1, 0, 0, 0], sizes = [1, 1, 32, 16], strides = [1, 1, 1, 1]} : vector<4x4x32x16xf32> to vector<1x1x32x16xf32>
    %154 = vector.shape_cast %153 : vector<1x1x32x16xf32> to vector<32x16xf32>
    %155 = vector.extract_strided_slice %133 {offsets = [1, 1, 0, 0], sizes = [1, 1, 32, 16], strides = [1, 1, 1, 1]} : vector<4x4x32x16xf32> to vector<1x1x32x16xf32>
    %156 = vector.shape_cast %155 : vector<1x1x32x16xf32> to vector<32x16xf32>
    %157 = arith.maximumf %154, %156 : vector<32x16xf32>
    %158 = arith.maximumf %152, %157 : vector<32x16xf32>
    %159 = arith.truncf %158 : vector<32x16xf32> to vector<32x16xbf16>
    %c1_150 = arith.constant 1 : index
    %c1_151 = arith.constant 1 : index
    %c0_152 = arith.constant 0 : index
    %c0_153 = arith.constant 0 : index
    %160 = vector.load %arg16[%c1_150, %c1_151, %c0_152, %c0_153] : memref<4x4x32x16xbf16, #tpu.memory_space<vmem>>, vector<1x1x32x16xbf16>
    %161 = vector.shape_cast %160 : vector<1x1x32x16xbf16> to vector<32x16xbf16>
    %162 = vector.shape_cast %159 : vector<32x16xbf16> to vector<1x1x32x16xbf16>
    tpu.vector_store %arg16[%c1_150, %c1_151, %c0_152, %c0_153], %162 {strides = array<i32>} : memref<4x4x32x16xbf16, #tpu.memory_space<vmem>>, vector<1x1x32x16xbf16>,
    %163 = vector.extract_strided_slice %133 {offsets = [0, 2, 0, 0], sizes = [1, 1, 32, 16], strides = [1, 1, 1, 1]} : vector<4x4x32x16xf32> to vector<1x1x32x16xf32>
    %164 = vector.shape_cast %163 : vector<1x1x32x16xf32> to vector<32x16xf32>
    %165 = vector.extract_strided_slice %133 {offsets = [0, 3, 0, 0], sizes = [1, 1, 32, 16], strides = [1, 1, 1, 1]} : vector<4x4x32x16xf32> to vector<1x1x32x16xf32>
    %166 = vector.shape_cast %165 : vector<1x1x32x16xf32> to vector<32x16xf32>
    %167 = arith.maximumf %164, %166 : vector<32x16xf32>
    %168 = vector.extract_strided_slice %133 {offsets = [1, 2, 0, 0], sizes = [1, 1, 32, 16], strides = [1, 1, 1, 1]} : vector<4x4x32x16xf32> to vector<1x1x32x16xf32>
    %169 = vector.shape_cast %168 : vector<1x1x32x16xf32> to vector<32x16xf32>
    %170 = vector.extract_strided_slice %133 {offsets = [1, 3, 0, 0], sizes = [1, 1, 32, 16], strides = [1, 1, 1, 1]} : vector<4x4x32x16xf32> to vector<1x1x32x16xf32>
    %171 = vector.shape_cast %170 : vector<1x1x32x16xf32> to vector<32x16xf32>
    %172 = arith.maximumf %169, %171 : vector<32x16xf32>
    %173 = arith.maximumf %167, %172 : vector<32x16xf32>
    %174 = arith.truncf %173 : vector<32x16xf32> to vector<32x16xbf16>
    %c1_154 = arith.constant 1 : index
    %c2_155 = arith.constant 2 : index
    %c0_156 = arith.constant 0 : index
    %c0_157 = arith.constant 0 : index
    %175 = vector.load %arg16[%c1_154, %c2_155, %c0_156, %c0_157] : memref<4x4x32x16xbf16, #tpu.memory_space<vmem>>, vector<1x1x32x16xbf16>
    %176 = vector.shape_cast %175 : vector<1x1x32x16xbf16> to vector<32x16xbf16>
    %177 = vector.shape_cast %174 : vector<32x16xbf16> to vector<1x1x32x16xbf16>
    tpu.vector_store %arg16[%c1_154, %c2_155, %c0_156, %c0_157], %177 {strides = array<i32>} : memref<4x4x32x16xbf16, #tpu.memory_space<vmem>>, vector<1x1x32x16xbf16>,
    %c2_158 = arith.constant 2 : index
    %c0_159 = arith.constant 0 : index
    %c0_160 = arith.constant 0 : index
    %c0_161 = arith.constant 0 : index
    %178 = vector.load %arg16[%c2_158, %c0_159, %c0_160, %c0_161] : memref<4x4x32x16xbf16, #tpu.memory_space<vmem>>, vector<1x1x32x16xbf16>
    %179 = vector.shape_cast %178 : vector<1x1x32x16xbf16> to vector<32x16xbf16>
    %180 = vector.shape_cast %135 : vector<32x16xbf16> to vector<1x1x32x16xbf16>
    tpu.vector_store %arg16[%c2_158, %c0_159, %c0_160, %c0_161], %180 {strides = array<i32>} : memref<4x4x32x16xbf16, #tpu.memory_space<vmem>>, vector<1x1x32x16xbf16>,
    %c2_162 = arith.constant 2 : index
    %c3_163 = arith.constant 3 : index
    %c0_164 = arith.constant 0 : index
    %c0_165 = arith.constant 0 : index
    %181 = vector.load %arg16[%c2_162, %c3_163, %c0_164, %c0_165] : memref<4x4x32x16xbf16, #tpu.memory_space<vmem>>, vector<1x1x32x16xbf16>
    %182 = vector.shape_cast %181 : vector<1x1x32x16xbf16> to vector<32x16xbf16>
    %183 = vector.shape_cast %135 : vector<32x16xbf16> to vector<1x1x32x16xbf16>
    tpu.vector_store %arg16[%c2_162, %c3_163, %c0_164, %c0_165], %183 {strides = array<i32>} : memref<4x4x32x16xbf16, #tpu.memory_space<vmem>>, vector<1x1x32x16xbf16>,
    %184 = vector.extract_strided_slice %133 {offsets = [2, 0, 0, 0], sizes = [1, 1, 32, 16], strides = [1, 1, 1, 1]} : vector<4x4x32x16xf32> to vector<1x1x32x16xf32>
    %185 = vector.shape_cast %184 : vector<1x1x32x16xf32> to vector<32x16xf32>
    %186 = vector.extract_strided_slice %133 {offsets = [2, 1, 0, 0], sizes = [1, 1, 32, 16], strides = [1, 1, 1, 1]} : vector<4x4x32x16xf32> to vector<1x1x32x16xf32>
    %187 = vector.shape_cast %186 : vector<1x1x32x16xf32> to vector<32x16xf32>
    %188 = arith.maximumf %185, %187 : vector<32x16xf32>
    %189 = vector.extract_strided_slice %133 {offsets = [3, 0, 0, 0], sizes = [1, 1, 32, 16], strides = [1, 1, 1, 1]} : vector<4x4x32x16xf32> to vector<1x1x32x16xf32>
    %190 = vector.shape_cast %189 : vector<1x1x32x16xf32> to vector<32x16xf32>
    %191 = vector.extract_strided_slice %133 {offsets = [3, 1, 0, 0], sizes = [1, 1, 32, 16], strides = [1, 1, 1, 1]} : vector<4x4x32x16xf32> to vector<1x1x32x16xf32>
    %192 = vector.shape_cast %191 : vector<1x1x32x16xf32> to vector<32x16xf32>
    %193 = arith.maximumf %190, %192 : vector<32x16xf32>
    %194 = arith.maximumf %188, %193 : vector<32x16xf32>
    %195 = arith.truncf %194 : vector<32x16xf32> to vector<32x16xbf16>
    %c2_166 = arith.constant 2 : index
    %c1_167 = arith.constant 1 : index
    %c0_168 = arith.constant 0 : index
    %c0_169 = arith.constant 0 : index
    %196 = vector.load %arg16[%c2_166, %c1_167, %c0_168, %c0_169] : memref<4x4x32x16xbf16, #tpu.memory_space<vmem>>, vector<1x1x32x16xbf16>
    %197 = vector.shape_cast %196 : vector<1x1x32x16xbf16> to vector<32x16xbf16>
    %198 = vector.shape_cast %195 : vector<32x16xbf16> to vector<1x1x32x16xbf16>
    tpu.vector_store %arg16[%c2_166, %c1_167, %c0_168, %c0_169], %198 {strides = array<i32>} : memref<4x4x32x16xbf16, #tpu.memory_space<vmem>>, vector<1x1x32x16xbf16>,
    %199 = vector.extract_strided_slice %133 {offsets = [2, 2, 0, 0], sizes = [1, 1, 32, 16], strides = [1, 1, 1, 1]} : vector<4x4x32x16xf32> to vector<1x1x32x16xf32>
    %200 = vector.shape_cast %199 : vector<1x1x32x16xf32> to vector<32x16xf32>
    %201 = vector.extract_strided_slice %133 {offsets = [2, 3, 0, 0], sizes = [1, 1, 32, 16], strides = [1, 1, 1, 1]} : vector<4x4x32x16xf32> to vector<1x1x32x16xf32>
    %202 = vector.shape_cast %201 : vector<1x1x32x16xf32> to vector<32x16xf32>
    %203 = arith.maximumf %200, %202 : vector<32x16xf32>
    %204 = vector.extract_strided_slice %133 {offsets = [3, 2, 0, 0], sizes = [1, 1, 32, 16], strides = [1, 1, 1, 1]} : vector<4x4x32x16xf32> to vector<1x1x32x16xf32>
    %205 = vector.shape_cast %204 : vector<1x1x32x16xf32> to vector<32x16xf32>
    %206 = vector.extract_strided_slice %133 {offsets = [3, 3, 0, 0], sizes = [1, 1, 32, 16], strides = [1, 1, 1, 1]} : vector<4x4x32x16xf32> to vector<1x1x32x16xf32>
    %207 = vector.shape_cast %206 : vector<1x1x32x16xf32> to vector<32x16xf32>
    %208 = arith.maximumf %205, %207 : vector<32x16xf32>
    %209 = arith.maximumf %203, %208 : vector<32x16xf32>
    %210 = arith.truncf %209 : vector<32x16xf32> to vector<32x16xbf16>
    %c2_170 = arith.constant 2 : index
    %c2_171 = arith.constant 2 : index
    %c0_172 = arith.constant 0 : index
    %c0_173 = arith.constant 0 : index
    %211 = vector.load %arg16[%c2_170, %c2_171, %c0_172, %c0_173] : memref<4x4x32x16xbf16, #tpu.memory_space<vmem>>, vector<1x1x32x16xbf16>
    %212 = vector.shape_cast %211 : vector<1x1x32x16xbf16> to vector<32x16xbf16>
    %213 = vector.shape_cast %210 : vector<32x16xbf16> to vector<1x1x32x16xbf16>
    tpu.vector_store %arg16[%c2_170, %c2_171, %c0_172, %c0_173], %213 {strides = array<i32>} : memref<4x4x32x16xbf16, #tpu.memory_space<vmem>>, vector<1x1x32x16xbf16>,
    %c0_174 = arith.constant 0 : index
    %c0_175 = arith.constant 0 : index
    %c0_176 = arith.constant 0 : index
    %c0_177 = arith.constant 0 : index
    %214 = vector.load %arg16[%c0_174, %c0_175, %c0_176, %c0_177] : memref<4x4x32x16xbf16, #tpu.memory_space<vmem>>, vector<2x2x32x16xbf16>
    %215 = vector.shape_cast %214 : vector<2x2x32x16xbf16> to vector<128x16xbf16>
    %c0_178 = arith.constant 0 : index
    %c0_179 = arith.constant 0 : index
    %c0_180 = arith.constant 0 : index
    %216 = vector.load %arg6[%c0_178, %c0_179, %c0_180] : memref<9x16x32xbf16, #tpu.memory_space<vmem>>, vector<1x16x32xbf16>
    %217 = vector.shape_cast %216 : vector<1x16x32xbf16> to vector<16x32xbf16>
    %cst_181 = arith.constant dense<0.000000e+00> : vector<128x32xf32>
    %218 = tpu.matmul %215, %217, %cst_181 {dimension_numbers = #tpu.dot_dimension_numbers<[1], [0], [0], [1], [0, 0, 1, 1], [], []>} : vector<128x16xbf16>, vector<16x32xbf16>, vector<128x32xf32> -> vector<128x32xf32>
    %c0_182 = arith.constant 0 : index
    %c1_183 = arith.constant 1 : index
    %c0_184 = arith.constant 0 : index
    %c0_185 = arith.constant 0 : index
    %219 = vector.load %arg16[%c0_182, %c1_183, %c0_184, %c0_185] : memref<4x4x32x16xbf16, #tpu.memory_space<vmem>>, vector<2x2x32x16xbf16>
    %220 = vector.shape_cast %219 : vector<2x2x32x16xbf16> to vector<128x16xbf16>
    %c1_186 = arith.constant 1 : index
    %c0_187 = arith.constant 0 : index
    %c0_188 = arith.constant 0 : index
    %221 = vector.load %arg6[%c1_186, %c0_187, %c0_188] : memref<9x16x32xbf16, #tpu.memory_space<vmem>>, vector<1x16x32xbf16>
    %222 = vector.shape_cast %221 : vector<1x16x32xbf16> to vector<16x32xbf16>
    %cst_189 = arith.constant dense<0.000000e+00> : vector<128x32xf32>
    %223 = tpu.matmul %220, %222, %cst_189 {dimension_numbers = #tpu.dot_dimension_numbers<[1], [0], [0], [1], [0, 0, 1, 1], [], []>} : vector<128x16xbf16>, vector<16x32xbf16>, vector<128x32xf32> -> vector<128x32xf32>
    %224 = arith.addf %218, %223 : vector<128x32xf32>
    %c0_190 = arith.constant 0 : index
    %c2_191 = arith.constant 2 : index
    %c0_192 = arith.constant 0 : index
    %c0_193 = arith.constant 0 : index
    %225 = vector.load %arg16[%c0_190, %c2_191, %c0_192, %c0_193] : memref<4x4x32x16xbf16, #tpu.memory_space<vmem>>, vector<2x2x32x16xbf16>
    %226 = vector.shape_cast %225 : vector<2x2x32x16xbf16> to vector<128x16xbf16>
    %c2_194 = arith.constant 2 : index
    %c0_195 = arith.constant 0 : index
    %c0_196 = arith.constant 0 : index
    %227 = vector.load %arg6[%c2_194, %c0_195, %c0_196] : memref<9x16x32xbf16, #tpu.memory_space<vmem>>, vector<1x16x32xbf16>
    %228 = vector.shape_cast %227 : vector<1x16x32xbf16> to vector<16x32xbf16>
    %cst_197 = arith.constant dense<0.000000e+00> : vector<128x32xf32>
    %229 = tpu.matmul %226, %228, %cst_197 {dimension_numbers = #tpu.dot_dimension_numbers<[1], [0], [0], [1], [0, 0, 1, 1], [], []>} : vector<128x16xbf16>, vector<16x32xbf16>, vector<128x32xf32> -> vector<128x32xf32>
    %230 = arith.addf %224, %229 : vector<128x32xf32>
    %c1_198 = arith.constant 1 : index
    %c0_199 = arith.constant 0 : index
    %c0_200 = arith.constant 0 : index
    %c0_201 = arith.constant 0 : index
    %231 = vector.load %arg16[%c1_198, %c0_199, %c0_200, %c0_201] : memref<4x4x32x16xbf16, #tpu.memory_space<vmem>>, vector<2x2x32x16xbf16>
    %232 = vector.shape_cast %231 : vector<2x2x32x16xbf16> to vector<128x16xbf16>
    %c3_202 = arith.constant 3 : index
    %c0_203 = arith.constant 0 : index
    %c0_204 = arith.constant 0 : index
    %233 = vector.load %arg6[%c3_202, %c0_203, %c0_204] : memref<9x16x32xbf16, #tpu.memory_space<vmem>>, vector<1x16x32xbf16>
    %234 = vector.shape_cast %233 : vector<1x16x32xbf16> to vector<16x32xbf16>
    %cst_205 = arith.constant dense<0.000000e+00> : vector<128x32xf32>
    %235 = tpu.matmul %232, %234, %cst_205 {dimension_numbers = #tpu.dot_dimension_numbers<[1], [0], [0], [1], [0, 0, 1, 1], [], []>} : vector<128x16xbf16>, vector<16x32xbf16>, vector<128x32xf32> -> vector<128x32xf32>
    %236 = arith.addf %230, %235 : vector<128x32xf32>
    %c1_206 = arith.constant 1 : index
    %c1_207 = arith.constant 1 : index
    %c0_208 = arith.constant 0 : index
    %c0_209 = arith.constant 0 : index
    %237 = vector.load %arg16[%c1_206, %c1_207, %c0_208, %c0_209] : memref<4x4x32x16xbf16, #tpu.memory_space<vmem>>, vector<2x2x32x16xbf16>
    %238 = vector.shape_cast %237 : vector<2x2x32x16xbf16> to vector<128x16xbf16>
    %c4_210 = arith.constant 4 : index
    %c0_211 = arith.constant 0 : index
    %c0_212 = arith.constant 0 : index
    %239 = vector.load %arg6[%c4_210, %c0_211, %c0_212] : memref<9x16x32xbf16, #tpu.memory_space<vmem>>, vector<1x16x32xbf16>
    %240 = vector.shape_cast %239 : vector<1x16x32xbf16> to vector<16x32xbf16>
    %cst_213 = arith.constant dense<0.000000e+00> : vector<128x32xf32>
    %241 = tpu.matmul %238, %240, %cst_213 {dimension_numbers = #tpu.dot_dimension_numbers<[1], [0], [0], [1], [0, 0, 1, 1], [], []>} : vector<128x16xbf16>, vector<16x32xbf16>, vector<128x32xf32> -> vector<128x32xf32>
    %242 = arith.addf %236, %241 : vector<128x32xf32>
    %c1_214 = arith.constant 1 : index
    %c2_215 = arith.constant 2 : index
    %c0_216 = arith.constant 0 : index
    %c0_217 = arith.constant 0 : index
    %243 = vector.load %arg16[%c1_214, %c2_215, %c0_216, %c0_217] : memref<4x4x32x16xbf16, #tpu.memory_space<vmem>>, vector<2x2x32x16xbf16>
    %244 = vector.shape_cast %243 : vector<2x2x32x16xbf16> to vector<128x16xbf16>
    %c5_218 = arith.constant 5 : index
    %c0_219 = arith.constant 0 : index
    %c0_220 = arith.constant 0 : index
    %245 = vector.load %arg6[%c5_218, %c0_219, %c0_220] : memref<9x16x32xbf16, #tpu.memory_space<vmem>>, vector<1x16x32xbf16>
    %246 = vector.shape_cast %245 : vector<1x16x32xbf16> to vector<16x32xbf16>
    %cst_221 = arith.constant dense<0.000000e+00> : vector<128x32xf32>
    %247 = tpu.matmul %244, %246, %cst_221 {dimension_numbers = #tpu.dot_dimension_numbers<[1], [0], [0], [1], [0, 0, 1, 1], [], []>} : vector<128x16xbf16>, vector<16x32xbf16>, vector<128x32xf32> -> vector<128x32xf32>
    %248 = arith.addf %242, %247 : vector<128x32xf32>
    %c2_222 = arith.constant 2 : index
    %c0_223 = arith.constant 0 : index
    %c0_224 = arith.constant 0 : index
    %c0_225 = arith.constant 0 : index
    %249 = vector.load %arg16[%c2_222, %c0_223, %c0_224, %c0_225] : memref<4x4x32x16xbf16, #tpu.memory_space<vmem>>, vector<2x2x32x16xbf16>
    %250 = vector.shape_cast %249 : vector<2x2x32x16xbf16> to vector<128x16xbf16>
    %c6_226 = arith.constant 6 : index
    %c0_227 = arith.constant 0 : index
    %c0_228 = arith.constant 0 : index
    %251 = vector.load %arg6[%c6_226, %c0_227, %c0_228] : memref<9x16x32xbf16, #tpu.memory_space<vmem>>, vector<1x16x32xbf16>
    %252 = vector.shape_cast %251 : vector<1x16x32xbf16> to vector<16x32xbf16>
    %cst_229 = arith.constant dense<0.000000e+00> : vector<128x32xf32>
    %253 = tpu.matmul %250, %252, %cst_229 {dimension_numbers = #tpu.dot_dimension_numbers<[1], [0], [0], [1], [0, 0, 1, 1], [], []>} : vector<128x16xbf16>, vector<16x32xbf16>, vector<128x32xf32> -> vector<128x32xf32>
    %254 = arith.addf %248, %253 : vector<128x32xf32>
    %c2_230 = arith.constant 2 : index
    %c1_231 = arith.constant 1 : index
    %c0_232 = arith.constant 0 : index
    %c0_233 = arith.constant 0 : index
    %255 = vector.load %arg16[%c2_230, %c1_231, %c0_232, %c0_233] : memref<4x4x32x16xbf16, #tpu.memory_space<vmem>>, vector<2x2x32x16xbf16>
    %256 = vector.shape_cast %255 : vector<2x2x32x16xbf16> to vector<128x16xbf16>
    %c7_234 = arith.constant 7 : index
    %c0_235 = arith.constant 0 : index
    %c0_236 = arith.constant 0 : index
    %257 = vector.load %arg6[%c7_234, %c0_235, %c0_236] : memref<9x16x32xbf16, #tpu.memory_space<vmem>>, vector<1x16x32xbf16>
    %258 = vector.shape_cast %257 : vector<1x16x32xbf16> to vector<16x32xbf16>
    %cst_237 = arith.constant dense<0.000000e+00> : vector<128x32xf32>
    %259 = tpu.matmul %256, %258, %cst_237 {dimension_numbers = #tpu.dot_dimension_numbers<[1], [0], [0], [1], [0, 0, 1, 1], [], []>} : vector<128x16xbf16>, vector<16x32xbf16>, vector<128x32xf32> -> vector<128x32xf32>
    %260 = arith.addf %254, %259 : vector<128x32xf32>
    %c2_238 = arith.constant 2 : index
    %c2_239 = arith.constant 2 : index
    %c0_240 = arith.constant 0 : index
    %c0_241 = arith.constant 0 : index
    %261 = vector.load %arg16[%c2_238, %c2_239, %c0_240, %c0_241] : memref<4x4x32x16xbf16, #tpu.memory_space<vmem>>, vector<2x2x32x16xbf16>
    %262 = vector.shape_cast %261 : vector<2x2x32x16xbf16> to vector<128x16xbf16>
    %c8_242 = arith.constant 8 : index
    %c0_243 = arith.constant 0 : index
    %c0_244 = arith.constant 0 : index
    %263 = vector.load %arg6[%c8_242, %c0_243, %c0_244] : memref<9x16x32xbf16, #tpu.memory_space<vmem>>, vector<1x16x32xbf16>
    %264 = vector.shape_cast %263 : vector<1x16x32xbf16> to vector<16x32xbf16>
    %cst_245 = arith.constant dense<0.000000e+00> : vector<128x32xf32>
    %265 = tpu.matmul %262, %264, %cst_245 {dimension_numbers = #tpu.dot_dimension_numbers<[1], [0], [0], [1], [0, 0, 1, 1], [], []>} : vector<128x16xbf16>, vector<16x32xbf16>, vector<128x32xf32> -> vector<128x32xf32>
    %266 = arith.addf %260, %265 : vector<128x32xf32>
    %c0_246 = arith.constant 0 : index
    %c0_247 = arith.constant 0 : index
    %267 = vector.load %arg7[%c0_246, %c0_247] : memref<1x32xf32, #tpu.memory_space<vmem>>, vector<1x32xf32>
    %268 = vector.broadcast %267 : vector<1x32xf32> to vector<128x32xf32>
    %269 = arith.addf %266, %268 : vector<128x32xf32>
    %cst_248 = arith.constant 0.000000e+00 : f32
    %270 = vector.broadcast %cst_248 : f32 to vector<128x32xf32>
    %271 = arith.maximumf %269, %270 : vector<128x32xf32>
    %272 = arith.truncf %271 : vector<128x32xf32> to vector<128x32xbf16>
    %273 = vector.shape_cast %272 : vector<128x32xbf16> to vector<2x2x32x32xbf16>
    %cst_249 = arith.constant 0.000000e+00 : bf16
    %274 = vector.broadcast %cst_249 : bf16 to vector<4x32x32xbf16>
    %cst_250 = arith.constant 0.000000e+00 : bf16
    %275 = vector.broadcast %cst_250 : bf16 to vector<32x32xbf16>
    %c0_251 = arith.constant 0 : index
    %c0_252 = arith.constant 0 : index
    %c0_253 = arith.constant 0 : index
    %c0_254 = arith.constant 0 : index
    %276 = vector.load %arg17[%c0_251, %c0_252, %c0_253, %c0_254] : memref<4x4x32x32xbf16, #tpu.memory_space<vmem>>, vector<1x4x32x32xbf16>
    %277 = vector.shape_cast %276 : vector<1x4x32x32xbf16> to vector<4x32x32xbf16>
    %278 = vector.shape_cast %274 : vector<4x32x32xbf16> to vector<1x4x32x32xbf16>
    tpu.vector_store %arg17[%c0_251, %c0_252, %c0_253, %c0_254], %278 {strides = array<i32>} : memref<4x4x32x32xbf16, #tpu.memory_space<vmem>>, vector<1x4x32x32xbf16>,
    %c3_255 = arith.constant 3 : index
    %c0_256 = arith.constant 0 : index
    %c0_257 = arith.constant 0 : index
    %c0_258 = arith.constant 0 : index
    %279 = vector.load %arg17[%c3_255, %c0_256, %c0_257, %c0_258] : memref<4x4x32x32xbf16, #tpu.memory_space<vmem>>, vector<1x4x32x32xbf16>
    %280 = vector.shape_cast %279 : vector<1x4x32x32xbf16> to vector<4x32x32xbf16>
    %281 = vector.shape_cast %274 : vector<4x32x32xbf16> to vector<1x4x32x32xbf16>
    tpu.vector_store %arg17[%c3_255, %c0_256, %c0_257, %c0_258], %281 {strides = array<i32>} : memref<4x4x32x32xbf16, #tpu.memory_space<vmem>>, vector<1x4x32x32xbf16>,
    %c1_259 = arith.constant 1 : index
    %c0_260 = arith.constant 0 : index
    %c0_261 = arith.constant 0 : index
    %c0_262 = arith.constant 0 : index
    %282 = vector.load %arg17[%c1_259, %c0_260, %c0_261, %c0_262] : memref<4x4x32x32xbf16, #tpu.memory_space<vmem>>, vector<1x1x32x32xbf16>
    %283 = vector.shape_cast %282 : vector<1x1x32x32xbf16> to vector<32x32xbf16>
    %284 = vector.shape_cast %275 : vector<32x32xbf16> to vector<1x1x32x32xbf16>
    tpu.vector_store %arg17[%c1_259, %c0_260, %c0_261, %c0_262], %284 {strides = array<i32>} : memref<4x4x32x32xbf16, #tpu.memory_space<vmem>>, vector<1x1x32x32xbf16>,
    %285 = vector.extract_strided_slice %273 {offsets = [0, 0, 0, 0], sizes = [1, 2, 32, 32], strides = [1, 1, 1, 1]} : vector<2x2x32x32xbf16> to vector<1x2x32x32xbf16>
    %286 = vector.shape_cast %285 : vector<1x2x32x32xbf16> to vector<2x32x32xbf16>
    %c1_263 = arith.constant 1 : index
    %c1_264 = arith.constant 1 : index
    %c0_265 = arith.constant 0 : index
    %c0_266 = arith.constant 0 : index
    %287 = vector.load %arg17[%c1_263, %c1_264, %c0_265, %c0_266] : memref<4x4x32x32xbf16, #tpu.memory_space<vmem>>, vector<1x2x32x32xbf16>
    %288 = vector.shape_cast %287 : vector<1x2x32x32xbf16> to vector<2x32x32xbf16>
    %289 = vector.shape_cast %286 : vector<2x32x32xbf16> to vector<1x2x32x32xbf16>
    tpu.vector_store %arg17[%c1_263, %c1_264, %c0_265, %c0_266], %289 {strides = array<i32>} : memref<4x4x32x32xbf16, #tpu.memory_space<vmem>>, vector<1x2x32x32xbf16>,
    %c1_267 = arith.constant 1 : index
    %c3_268 = arith.constant 3 : index
    %c0_269 = arith.constant 0 : index
    %c0_270 = arith.constant 0 : index
    %290 = vector.load %arg17[%c1_267, %c3_268, %c0_269, %c0_270] : memref<4x4x32x32xbf16, #tpu.memory_space<vmem>>, vector<1x1x32x32xbf16>
    %291 = vector.shape_cast %290 : vector<1x1x32x32xbf16> to vector<32x32xbf16>
    %292 = vector.shape_cast %275 : vector<32x32xbf16> to vector<1x1x32x32xbf16>
    tpu.vector_store %arg17[%c1_267, %c3_268, %c0_269, %c0_270], %292 {strides = array<i32>} : memref<4x4x32x32xbf16, #tpu.memory_space<vmem>>, vector<1x1x32x32xbf16>,
    %c2_271 = arith.constant 2 : index
    %c0_272 = arith.constant 0 : index
    %c0_273 = arith.constant 0 : index
    %c0_274 = arith.constant 0 : index
    %293 = vector.load %arg17[%c2_271, %c0_272, %c0_273, %c0_274] : memref<4x4x32x32xbf16, #tpu.memory_space<vmem>>, vector<1x1x32x32xbf16>
    %294 = vector.shape_cast %293 : vector<1x1x32x32xbf16> to vector<32x32xbf16>
    %295 = vector.shape_cast %275 : vector<32x32xbf16> to vector<1x1x32x32xbf16>
    tpu.vector_store %arg17[%c2_271, %c0_272, %c0_273, %c0_274], %295 {strides = array<i32>} : memref<4x4x32x32xbf16, #tpu.memory_space<vmem>>, vector<1x1x32x32xbf16>,
    %296 = vector.extract_strided_slice %273 {offsets = [1, 0, 0, 0], sizes = [1, 2, 32, 32], strides = [1, 1, 1, 1]} : vector<2x2x32x32xbf16> to vector<1x2x32x32xbf16>
    %297 = vector.shape_cast %296 : vector<1x2x32x32xbf16> to vector<2x32x32xbf16>
    %c2_275 = arith.constant 2 : index
    %c1_276 = arith.constant 1 : index
    %c0_277 = arith.constant 0 : index
    %c0_278 = arith.constant 0 : index
    %298 = vector.load %arg17[%c2_275, %c1_276, %c0_277, %c0_278] : memref<4x4x32x32xbf16, #tpu.memory_space<vmem>>, vector<1x2x32x32xbf16>
    %299 = vector.shape_cast %298 : vector<1x2x32x32xbf16> to vector<2x32x32xbf16>
    %300 = vector.shape_cast %297 : vector<2x32x32xbf16> to vector<1x2x32x32xbf16>
    tpu.vector_store %arg17[%c2_275, %c1_276, %c0_277, %c0_278], %300 {strides = array<i32>} : memref<4x4x32x32xbf16, #tpu.memory_space<vmem>>, vector<1x2x32x32xbf16>,
    %c2_279 = arith.constant 2 : index
    %c3_280 = arith.constant 3 : index
    %c0_281 = arith.constant 0 : index
    %c0_282 = arith.constant 0 : index
    %301 = vector.load %arg17[%c2_279, %c3_280, %c0_281, %c0_282] : memref<4x4x32x32xbf16, #tpu.memory_space<vmem>>, vector<1x1x32x32xbf16>
    %302 = vector.shape_cast %301 : vector<1x1x32x32xbf16> to vector<32x32xbf16>
    %303 = vector.shape_cast %275 : vector<32x32xbf16> to vector<1x1x32x32xbf16>
    tpu.vector_store %arg17[%c2_279, %c3_280, %c0_281, %c0_282], %303 {strides = array<i32>} : memref<4x4x32x32xbf16, #tpu.memory_space<vmem>>, vector<1x1x32x32xbf16>,
    %c0_283 = arith.constant 0 : index
    %c0_284 = arith.constant 0 : index
    %c0_285 = arith.constant 0 : index
    %c0_286 = arith.constant 0 : index
    %304 = vector.load %arg17[%c0_283, %c0_284, %c0_285, %c0_286] : memref<4x4x32x32xbf16, #tpu.memory_space<vmem>>, vector<2x2x32x32xbf16>
    %305 = vector.shape_cast %304 : vector<2x2x32x32xbf16> to vector<128x32xbf16>
    %c0_287 = arith.constant 0 : index
    %c0_288 = arith.constant 0 : index
    %c0_289 = arith.constant 0 : index
    %306 = vector.load %arg8[%c0_287, %c0_288, %c0_289] : memref<9x32x32xbf16, #tpu.memory_space<vmem>>, vector<1x32x32xbf16>
    %307 = vector.shape_cast %306 : vector<1x32x32xbf16> to vector<32x32xbf16>
    %cst_290 = arith.constant dense<0.000000e+00> : vector<128x32xf32>
    %308 = tpu.matmul %305, %307, %cst_290 {dimension_numbers = #tpu.dot_dimension_numbers<[1], [0], [0], [1], [0, 0, 1, 1], [], []>} : vector<128x32xbf16>, vector<32x32xbf16>, vector<128x32xf32> -> vector<128x32xf32>
    %c0_291 = arith.constant 0 : index
    %c1_292 = arith.constant 1 : index
    %c0_293 = arith.constant 0 : index
    %c0_294 = arith.constant 0 : index
    %309 = vector.load %arg17[%c0_291, %c1_292, %c0_293, %c0_294] : memref<4x4x32x32xbf16, #tpu.memory_space<vmem>>, vector<2x2x32x32xbf16>
    %310 = vector.shape_cast %309 : vector<2x2x32x32xbf16> to vector<128x32xbf16>
    %c1_295 = arith.constant 1 : index
    %c0_296 = arith.constant 0 : index
    %c0_297 = arith.constant 0 : index
    %311 = vector.load %arg8[%c1_295, %c0_296, %c0_297] : memref<9x32x32xbf16, #tpu.memory_space<vmem>>, vector<1x32x32xbf16>
    %312 = vector.shape_cast %311 : vector<1x32x32xbf16> to vector<32x32xbf16>
    %cst_298 = arith.constant dense<0.000000e+00> : vector<128x32xf32>
    %313 = tpu.matmul %310, %312, %cst_298 {dimension_numbers = #tpu.dot_dimension_numbers<[1], [0], [0], [1], [0, 0, 1, 1], [], []>} : vector<128x32xbf16>, vector<32x32xbf16>, vector<128x32xf32> -> vector<128x32xf32>
    %314 = arith.addf %308, %313 : vector<128x32xf32>
    %c0_299 = arith.constant 0 : index
    %c2_300 = arith.constant 2 : index
    %c0_301 = arith.constant 0 : index
    %c0_302 = arith.constant 0 : index
    %315 = vector.load %arg17[%c0_299, %c2_300, %c0_301, %c0_302] : memref<4x4x32x32xbf16, #tpu.memory_space<vmem>>, vector<2x2x32x32xbf16>
    %316 = vector.shape_cast %315 : vector<2x2x32x32xbf16> to vector<128x32xbf16>
    %c2_303 = arith.constant 2 : index
    %c0_304 = arith.constant 0 : index
    %c0_305 = arith.constant 0 : index
    %317 = vector.load %arg8[%c2_303, %c0_304, %c0_305] : memref<9x32x32xbf16, #tpu.memory_space<vmem>>, vector<1x32x32xbf16>
    %318 = vector.shape_cast %317 : vector<1x32x32xbf16> to vector<32x32xbf16>
    %cst_306 = arith.constant dense<0.000000e+00> : vector<128x32xf32>
    %319 = tpu.matmul %316, %318, %cst_306 {dimension_numbers = #tpu.dot_dimension_numbers<[1], [0], [0], [1], [0, 0, 1, 1], [], []>} : vector<128x32xbf16>, vector<32x32xbf16>, vector<128x32xf32> -> vector<128x32xf32>
    %320 = arith.addf %314, %319 : vector<128x32xf32>
    %c1_307 = arith.constant 1 : index
    %c0_308 = arith.constant 0 : index
    %c0_309 = arith.constant 0 : index
    %c0_310 = arith.constant 0 : index
    %321 = vector.load %arg17[%c1_307, %c0_308, %c0_309, %c0_310] : memref<4x4x32x32xbf16, #tpu.memory_space<vmem>>, vector<2x2x32x32xbf16>
    %322 = vector.shape_cast %321 : vector<2x2x32x32xbf16> to vector<128x32xbf16>
    %c3_311 = arith.constant 3 : index
    %c0_312 = arith.constant 0 : index
    %c0_313 = arith.constant 0 : index
    %323 = vector.load %arg8[%c3_311, %c0_312, %c0_313] : memref<9x32x32xbf16, #tpu.memory_space<vmem>>, vector<1x32x32xbf16>
    %324 = vector.shape_cast %323 : vector<1x32x32xbf16> to vector<32x32xbf16>
    %cst_314 = arith.constant dense<0.000000e+00> : vector<128x32xf32>
    %325 = tpu.matmul %322, %324, %cst_314 {dimension_numbers = #tpu.dot_dimension_numbers<[1], [0], [0], [1], [0, 0, 1, 1], [], []>} : vector<128x32xbf16>, vector<32x32xbf16>, vector<128x32xf32> -> vector<128x32xf32>
    %326 = arith.addf %320, %325 : vector<128x32xf32>
    %c1_315 = arith.constant 1 : index
    %c1_316 = arith.constant 1 : index
    %c0_317 = arith.constant 0 : index
    %c0_318 = arith.constant 0 : index
    %327 = vector.load %arg17[%c1_315, %c1_316, %c0_317, %c0_318] : memref<4x4x32x32xbf16, #tpu.memory_space<vmem>>, vector<2x2x32x32xbf16>
    %328 = vector.shape_cast %327 : vector<2x2x32x32xbf16> to vector<128x32xbf16>
    %c4_319 = arith.constant 4 : index
    %c0_320 = arith.constant 0 : index
    %c0_321 = arith.constant 0 : index
    %329 = vector.load %arg8[%c4_319, %c0_320, %c0_321] : memref<9x32x32xbf16, #tpu.memory_space<vmem>>, vector<1x32x32xbf16>
    %330 = vector.shape_cast %329 : vector<1x32x32xbf16> to vector<32x32xbf16>
    %cst_322 = arith.constant dense<0.000000e+00> : vector<128x32xf32>
    %331 = tpu.matmul %328, %330, %cst_322 {dimension_numbers = #tpu.dot_dimension_numbers<[1], [0], [0], [1], [0, 0, 1, 1], [], []>} : vector<128x32xbf16>, vector<32x32xbf16>, vector<128x32xf32> -> vector<128x32xf32>
    %332 = arith.addf %326, %331 : vector<128x32xf32>
    %c1_323 = arith.constant 1 : index
    %c2_324 = arith.constant 2 : index
    %c0_325 = arith.constant 0 : index
    %c0_326 = arith.constant 0 : index
    %333 = vector.load %arg17[%c1_323, %c2_324, %c0_325, %c0_326] : memref<4x4x32x32xbf16, #tpu.memory_space<vmem>>, vector<2x2x32x32xbf16>
    %334 = vector.shape_cast %333 : vector<2x2x32x32xbf16> to vector<128x32xbf16>
    %c5_327 = arith.constant 5 : index
    %c0_328 = arith.constant 0 : index
    %c0_329 = arith.constant 0 : index
    %335 = vector.load %arg8[%c5_327, %c0_328, %c0_329] : memref<9x32x32xbf16, #tpu.memory_space<vmem>>, vector<1x32x32xbf16>
    %336 = vector.shape_cast %335 : vector<1x32x32xbf16> to vector<32x32xbf16>
    %cst_330 = arith.constant dense<0.000000e+00> : vector<128x32xf32>
    %337 = tpu.matmul %334, %336, %cst_330 {dimension_numbers = #tpu.dot_dimension_numbers<[1], [0], [0], [1], [0, 0, 1, 1], [], []>} : vector<128x32xbf16>, vector<32x32xbf16>, vector<128x32xf32> -> vector<128x32xf32>
    %338 = arith.addf %332, %337 : vector<128x32xf32>
    %c2_331 = arith.constant 2 : index
    %c0_332 = arith.constant 0 : index
    %c0_333 = arith.constant 0 : index
    %c0_334 = arith.constant 0 : index
    %339 = vector.load %arg17[%c2_331, %c0_332, %c0_333, %c0_334] : memref<4x4x32x32xbf16, #tpu.memory_space<vmem>>, vector<2x2x32x32xbf16>
    %340 = vector.shape_cast %339 : vector<2x2x32x32xbf16> to vector<128x32xbf16>
    %c6_335 = arith.constant 6 : index
    %c0_336 = arith.constant 0 : index
    %c0_337 = arith.constant 0 : index
    %341 = vector.load %arg8[%c6_335, %c0_336, %c0_337] : memref<9x32x32xbf16, #tpu.memory_space<vmem>>, vector<1x32x32xbf16>
    %342 = vector.shape_cast %341 : vector<1x32x32xbf16> to vector<32x32xbf16>
    %cst_338 = arith.constant dense<0.000000e+00> : vector<128x32xf32>
    %343 = tpu.matmul %340, %342, %cst_338 {dimension_numbers = #tpu.dot_dimension_numbers<[1], [0], [0], [1], [0, 0, 1, 1], [], []>} : vector<128x32xbf16>, vector<32x32xbf16>, vector<128x32xf32> -> vector<128x32xf32>
    %344 = arith.addf %338, %343 : vector<128x32xf32>
    %c2_339 = arith.constant 2 : index
    %c1_340 = arith.constant 1 : index
    %c0_341 = arith.constant 0 : index
    %c0_342 = arith.constant 0 : index
    %345 = vector.load %arg17[%c2_339, %c1_340, %c0_341, %c0_342] : memref<4x4x32x32xbf16, #tpu.memory_space<vmem>>, vector<2x2x32x32xbf16>
    %346 = vector.shape_cast %345 : vector<2x2x32x32xbf16> to vector<128x32xbf16>
    %c7_343 = arith.constant 7 : index
    %c0_344 = arith.constant 0 : index
    %c0_345 = arith.constant 0 : index
    %347 = vector.load %arg8[%c7_343, %c0_344, %c0_345] : memref<9x32x32xbf16, #tpu.memory_space<vmem>>, vector<1x32x32xbf16>
    %348 = vector.shape_cast %347 : vector<1x32x32xbf16> to vector<32x32xbf16>
    %cst_346 = arith.constant dense<0.000000e+00> : vector<128x32xf32>
    %349 = tpu.matmul %346, %348, %cst_346 {dimension_numbers = #tpu.dot_dimension_numbers<[1], [0], [0], [1], [0, 0, 1, 1], [], []>} : vector<128x32xbf16>, vector<32x32xbf16>, vector<128x32xf32> -> vector<128x32xf32>
    %350 = arith.addf %344, %349 : vector<128x32xf32>
    %c2_347 = arith.constant 2 : index
    %c2_348 = arith.constant 2 : index
    %c0_349 = arith.constant 0 : index
    %c0_350 = arith.constant 0 : index
    %351 = vector.load %arg17[%c2_347, %c2_348, %c0_349, %c0_350] : memref<4x4x32x32xbf16, #tpu.memory_space<vmem>>, vector<2x2x32x32xbf16>
    %352 = vector.shape_cast %351 : vector<2x2x32x32xbf16> to vector<128x32xbf16>
    %c8_351 = arith.constant 8 : index
    %c0_352 = arith.constant 0 : index
    %c0_353 = arith.constant 0 : index
    %353 = vector.load %arg8[%c8_351, %c0_352, %c0_353] : memref<9x32x32xbf16, #tpu.memory_space<vmem>>, vector<1x32x32xbf16>
    %354 = vector.shape_cast %353 : vector<1x32x32xbf16> to vector<32x32xbf16>
    %cst_354 = arith.constant dense<0.000000e+00> : vector<128x32xf32>
    %355 = tpu.matmul %352, %354, %cst_354 {dimension_numbers = #tpu.dot_dimension_numbers<[1], [0], [0], [1], [0, 0, 1, 1], [], []>} : vector<128x32xbf16>, vector<32x32xbf16>, vector<128x32xf32> -> vector<128x32xf32>
    %356 = arith.addf %350, %355 : vector<128x32xf32>
    %c0_355 = arith.constant 0 : index
    %c0_356 = arith.constant 0 : index
    %357 = vector.load %arg9[%c0_355, %c0_356] : memref<1x32xf32, #tpu.memory_space<vmem>>, vector<1x32xf32>
    %358 = vector.broadcast %357 : vector<1x32xf32> to vector<128x32xf32>
    %359 = arith.addf %356, %358 : vector<128x32xf32>
    %cst_357 = arith.constant 0.000000e+00 : f32
    %360 = vector.broadcast %cst_357 : f32 to vector<128x32xf32>
    %361 = arith.maximumf %359, %360 : vector<128x32xf32>
    %362 = arith.truncf %361 : vector<128x32xf32> to vector<128x32xbf16>
    %363 = vector.shape_cast %362 : vector<128x32xbf16> to vector<4x32x32xbf16>
    %364 = vector.extract_strided_slice %363 {offsets = [0, 0, 0], sizes = [1, 32, 32], strides = [1, 1, 1]} : vector<4x32x32xbf16> to vector<1x32x32xbf16>
    %365 = vector.shape_cast %364 : vector<1x32x32xbf16> to vector<32x32xbf16>
    %c0_358 = arith.constant 0 : index
    %c0_359 = arith.constant 0 : index
    %c0_360 = arith.constant 0 : index
    %366 = vector.load %arg10[%c0_358, %c0_359, %c0_360] : memref<4x32x64xbf16, #tpu.memory_space<vmem>>, vector<1x32x64xbf16>
    %367 = vector.shape_cast %366 : vector<1x32x64xbf16> to vector<32x64xbf16>
    %cst_361 = arith.constant dense<0.000000e+00> : vector<32x64xf32>
    %368 = tpu.matmul %365, %367, %cst_361 {dimension_numbers = #tpu.dot_dimension_numbers<[1], [0], [0], [1], [0, 0, 1, 1], [], []>} : vector<32x32xbf16>, vector<32x64xbf16>, vector<32x64xf32> -> vector<32x64xf32>
    %369 = vector.extract_strided_slice %363 {offsets = [1, 0, 0], sizes = [1, 32, 32], strides = [1, 1, 1]} : vector<4x32x32xbf16> to vector<1x32x32xbf16>
    %370 = vector.shape_cast %369 : vector<1x32x32xbf16> to vector<32x32xbf16>
    %c1_362 = arith.constant 1 : index
    %c0_363 = arith.constant 0 : index
    %c0_364 = arith.constant 0 : index
    %371 = vector.load %arg10[%c1_362, %c0_363, %c0_364] : memref<4x32x64xbf16, #tpu.memory_space<vmem>>, vector<1x32x64xbf16>
    %372 = vector.shape_cast %371 : vector<1x32x64xbf16> to vector<32x64xbf16>
    %cst_365 = arith.constant dense<0.000000e+00> : vector<32x64xf32>
    %373 = tpu.matmul %370, %372, %cst_365 {dimension_numbers = #tpu.dot_dimension_numbers<[1], [0], [0], [1], [0, 0, 1, 1], [], []>} : vector<32x32xbf16>, vector<32x64xbf16>, vector<32x64xf32> -> vector<32x64xf32>
    %374 = arith.addf %368, %373 : vector<32x64xf32>
    %375 = vector.extract_strided_slice %363 {offsets = [2, 0, 0], sizes = [1, 32, 32], strides = [1, 1, 1]} : vector<4x32x32xbf16> to vector<1x32x32xbf16>
    %376 = vector.shape_cast %375 : vector<1x32x32xbf16> to vector<32x32xbf16>
    %c2_366 = arith.constant 2 : index
    %c0_367 = arith.constant 0 : index
    %c0_368 = arith.constant 0 : index
    %377 = vector.load %arg10[%c2_366, %c0_367, %c0_368] : memref<4x32x64xbf16, #tpu.memory_space<vmem>>, vector<1x32x64xbf16>
    %378 = vector.shape_cast %377 : vector<1x32x64xbf16> to vector<32x64xbf16>
    %cst_369 = arith.constant dense<0.000000e+00> : vector<32x64xf32>
    %379 = tpu.matmul %376, %378, %cst_369 {dimension_numbers = #tpu.dot_dimension_numbers<[1], [0], [0], [1], [0, 0, 1, 1], [], []>} : vector<32x32xbf16>, vector<32x64xbf16>, vector<32x64xf32> -> vector<32x64xf32>
    %380 = arith.addf %374, %379 : vector<32x64xf32>
    %381 = vector.extract_strided_slice %363 {offsets = [3, 0, 0], sizes = [1, 32, 32], strides = [1, 1, 1]} : vector<4x32x32xbf16> to vector<1x32x32xbf16>
    %382 = vector.shape_cast %381 : vector<1x32x32xbf16> to vector<32x32xbf16>
    %c3_370 = arith.constant 3 : index
    %c0_371 = arith.constant 0 : index
    %c0_372 = arith.constant 0 : index
    %383 = vector.load %arg10[%c3_370, %c0_371, %c0_372] : memref<4x32x64xbf16, #tpu.memory_space<vmem>>, vector<1x32x64xbf16>
    %384 = vector.shape_cast %383 : vector<1x32x64xbf16> to vector<32x64xbf16>
    %cst_373 = arith.constant dense<0.000000e+00> : vector<32x64xf32>
    %385 = tpu.matmul %382, %384, %cst_373 {dimension_numbers = #tpu.dot_dimension_numbers<[1], [0], [0], [1], [0, 0, 1, 1], [], []>} : vector<32x32xbf16>, vector<32x64xbf16>, vector<32x64xf32> -> vector<32x64xf32>
    %386 = arith.addf %380, %385 : vector<32x64xf32>
    %c0_374 = arith.constant 0 : index
    %c0_375 = arith.constant 0 : index
    %387 = vector.load %arg11[%c0_374, %c0_375] : memref<1x64xf32, #tpu.memory_space<vmem>>, vector<1x64xf32>
    %388 = vector.broadcast %387 : vector<1x64xf32> to vector<32x64xf32>
    %389 = arith.addf %386, %388 : vector<32x64xf32>
    %cst_376 = arith.constant 0.000000e+00 : f32
    %390 = vector.broadcast %cst_376 : f32 to vector<32x64xf32>
    %391 = arith.maximumf %389, %390 : vector<32x64xf32>
    %392 = arith.truncf %391 : vector<32x64xf32> to vector<32x64xbf16>
    %c0_377 = arith.constant 0 : index
    %c0_378 = arith.constant 0 : index
    %393 = vector.load %arg12[%c0_377, %c0_378] : memref<64x1536xbf16, #tpu.memory_space<vmem>>, vector<64x1536xbf16>
    %cst_379 = arith.constant dense<0.000000e+00> : vector<32x1536xf32>
    %394 = tpu.matmul %392, %393, %cst_379 {dimension_numbers = #tpu.dot_dimension_numbers<[1], [0], [0], [1], [0, 0, 1, 1], [], []>} : vector<32x64xbf16>, vector<64x1536xbf16>, vector<32x1536xf32> -> vector<32x1536xf32>
    %c0_380 = arith.constant 0 : index
    %c0_381 = arith.constant 0 : index
    %395 = vector.load %arg13[%c0_380, %c0_381] : memref<1x1536xf32, #tpu.memory_space<vmem>>, vector<1x1536xf32>
    %396 = vector.broadcast %395 : vector<1x1536xf32> to vector<32x1536xf32>
    %397 = arith.addf %394, %396 : vector<32x1536xf32>
    %cst_382 = arith.constant 0.000000e+00 : f32
    %398 = vector.broadcast %cst_382 : f32 to vector<32x1536xf32>
    %399 = arith.subf %398, %397 : vector<32x1536xf32>
    %400 = math.exp %399 : vector<32x1536xf32>
    %cst_383 = arith.constant 1.000000e+00 : f32
    %401 = vector.broadcast %cst_383 : f32 to vector<32x1536xf32>
    %402 = arith.addf %401, %400 : vector<32x1536xf32>
    %403 = tpu.reciprocal %402 {approx = true} : vector<32x1536xf32> -> vector<32x1536xf32>
    %c0_384 = arith.constant 0 : index
    %c0_385 = arith.constant 0 : index
    %404 = vector.load %arg14[%c0_384, %c0_385] : memref<32x1536xf32, #tpu.memory_space<vmem>>, vector<32x1536xf32>
    tpu.vector_store %arg14[%c0_384, %c0_385], %403 {strides = array<i32>} : memref<32x1536xf32, #tpu.memory_space<vmem>>, vector<32x1536xf32>,
    return
  }
  func.func @transform_0(%arg0: i32) -> (i32, i32, i32) {
    %c0_i32 = arith.constant 0 : i32
    %c0_i32_0 = arith.constant 0 : i32
    %c0_i32_1 = arith.constant 0 : i32
    return %c0_i32, %arg0, %c0_i32_0 : i32, i32, i32
  }
  func.func @transform_1(%arg0: i32) -> (i32, i32) {
    %c0_i32 = arith.constant 0 : i32
    %c0_i32_0 = arith.constant 0 : i32
    %c0_i32_1 = arith.constant 0 : i32
    return %c0_i32, %c0_i32_0 : i32, i32
  }
  func.func @transform_2(%arg0: i32) -> (i32, i32) {
    %c0_i32 = arith.constant 0 : i32
    %c0_i32_0 = arith.constant 0 : i32
    %c0_i32_1 = arith.constant 0 : i32
    return %c0_i32, %c0_i32_0 : i32, i32
  }
  func.func @transform_3(%arg0: i32) -> (i32, i32, i32) {
    %c0_i32 = arith.constant 0 : i32
    %c0_i32_0 = arith.constant 0 : i32
    %c0_i32_1 = arith.constant 0 : i32
    %c0_i32_2 = arith.constant 0 : i32
    return %c0_i32, %c0_i32_0, %c0_i32_1 : i32, i32, i32
  }
  func.func @transform_4(%arg0: i32) -> (i32, i32) {
    %c0_i32 = arith.constant 0 : i32
    %c0_i32_0 = arith.constant 0 : i32
    %c0_i32_1 = arith.constant 0 : i32
    return %c0_i32, %c0_i32_0 : i32, i32
  }
  func.func @transform_5(%arg0: i32) -> (i32, i32, i32) {
    %c0_i32 = arith.constant 0 : i32
    %c0_i32_0 = arith.constant 0 : i32
    %c0_i32_1 = arith.constant 0 : i32
    %c0_i32_2 = arith.constant 0 : i32
    return %c0_i32, %c0_i32_0, %c0_i32_1 : i32, i32, i32
  }
  func.func @transform_6(%arg0: i32) -> (i32, i32) {
    %c0_i32 = arith.constant 0 : i32
    %c0_i32_0 = arith.constant 0 : i32
    %c0_i32_1 = arith.constant 0 : i32
    return %c0_i32, %c0_i32_0 : i32, i32
  }
  func.func @transform_7(%arg0: i32) -> (i32, i32, i32) {
    %c0_i32 = arith.constant 0 : i32
    %c0_i32_0 = arith.constant 0 : i32
    %c0_i32_1 = arith.constant 0 : i32
    %c0_i32_2 = arith.constant 0 : i32
    return %c0_i32, %c0_i32_0, %c0_i32_1 : i32, i32, i32
  }
  func.func @transform_8(%arg0: i32) -> (i32, i32) {
    %c0_i32 = arith.constant 0 : i32
    %c0_i32_0 = arith.constant 0 : i32
    %c0_i32_1 = arith.constant 0 : i32
    return %c0_i32, %c0_i32_0 : i32, i32
  }
  func.func @transform_9(%arg0: i32) -> (i32, i32, i32) {
    %c0_i32 = arith.constant 0 : i32
    %c0_i32_0 = arith.constant 0 : i32
    %c0_i32_1 = arith.constant 0 : i32
    %c0_i32_2 = arith.constant 0 : i32
    return %c0_i32, %c0_i32_0, %c0_i32_1 : i32, i32, i32
  }
  func.func @transform_10(%arg0: i32) -> (i32, i32) {
    %c0_i32 = arith.constant 0 : i32
    %c0_i32_0 = arith.constant 0 : i32
    %c0_i32_1 = arith.constant 0 : i32
    return %c0_i32, %c0_i32_0 : i32, i32
  }
  func.func @transform_11(%arg0: i32) -> (i32, i32) {
    %c0_i32 = arith.constant 0 : i32
    %c0_i32_0 = arith.constant 0 : i32
    %c0_i32_1 = arith.constant 0 : i32
    return %c0_i32, %c0_i32_0 : i32, i32
  }
  func.func @transform_12(%arg0: i32) -> (i32, i32) {
    %c0_i32 = arith.constant 0 : i32
    %c0_i32_0 = arith.constant 0 : i32
    %c0_i32_1 = arith.constant 0 : i32
    return %c0_i32, %c0_i32_0 : i32, i32
  }
  func.func @transform_13(%arg0: i32) -> (i32, i32) {
    %c0_i32 = arith.constant 0 : i32
    %c0_i32_0 = arith.constant 0 : i32
    return %arg0, %c0_i32 : i32, i32
  }
}

</mosaic_0001>

<bundles_post_ra>
// kernel: yolov1_forward.1
= control target key start
LH: loop header
LB: loop body
LE: loop exit
PB: predicated region body
PF: predicated region fallthrough
CT: control target
= control target key end

     0   :  { %s17701_s25 = smov 0   ;;  %s17703_s26 = smov 0   ;;  %s21038_s0 = inlined_call_operand.vmem [shape: bf16[64,64,32], index: 0, kind: input, shape index: {}]   ;;  %s21039_s1 = inlined_call_operand.vmem [shape: bf16[32,64], index: 1, kind: input, shape index: {}]   ;;  %s21040_s2 = inlined_call_operand.vmem [shape: f32[1,64], index: 2, kind: input, shape index: {}]   ;;  %s21041_s3 = inlined_call_operand.vmem [shape: bf16[9,64,16], index: 3, kind: input, shape index: {}]   ;;  %s21042_s4 = inlined_call_operand.vmem [shape: f32[1,16], index: 4, kind: input, shape index: {}]   ;;  %s21043_s5 = inlined_call_operand.vmem [shape: bf16[9,16,32], index: 5, kind: input, shape index: {}]   ;;  %s21044_s6 = inlined_call_operand.vmem [shape: f32[1,32], index: 6, kind: input, shape index: {}]   ;;  %s21045_s7 = inlined_call_operand.vmem [shape: bf16[9,32,32], index: 7, kind: input, shape index: {}]   ;;  %s21046_s8 = inlined_call_operand.vmem [shape: f32[1,32], index: 8, kind: input, shape index: {}]   ;;  %s21047_s9 = inlined_call_operand.vmem [shape: bf16[4,32,64], index: 9, kind: input, shape index: {}]   ;;  %s21048_s10 = inlined_call_operand.vmem [shape: f32[1,64], index: 10, kind: input, shape index: {}]   ;;  %s21049_s11 = inlined_call_operand.vmem [shape: bf16[64,1536], index: 11, kind: input, shape index: {}]   ;;  %s21050_s12 = inlined_call_operand.vmem [shape: f32[1,1536], index: 12, kind: input, shape index: {}]   ;;  %s21051_s13 = inlined_call_operand.vmem [shape: f32[64,1536], index: 13, kind: output, shape index: {}]  }
   0x1   :  { %s17705_s27 = smov 0  }
   0x2 LB: > { %s13426_s28 = sadd.s32 4294967295, %s17628_s27   ;;  %s17718_s29 = sadd.s32 1, %s17628_s27   ;;  %s17628_s27 = sphi %s17705_s27, %s21259_s27   ;;  %s17624_s26 = sphi %s17703_s26, %s21258_s26   ;;  %s17620_s25 = sphi %s17701_s25, %s21257_s25  }
   0x3   : > { %s27_s30 = ssub.s32 %s17628_s27, %s17718_s29  ;;  %s30_s14 = sadd.s32 1, %s17624_s26 }
   0x4   : > { %p28_p0 = scmp.eq.s32.totalorder %s27_s30, 0  ;;  %p37_p1 = scmp.ne.s32.totalorder %s17624_s26, %s17620_s25 }
   0x5   : > { %p38_p2 = scmp.eq.s32.totalorder %s17628_s27, 0  ;;  %p13429_p4 = scmp.ge.s32.totalorder %s17628_s27, 2 }
   0x6   : > { %s17727_s15 = scalar_select %p28_p0, %s17624_s26, %s30_s14  }
   0x7   : > { %p39_p3 = por %p38_p2, %p37_p1  ;;  %377 = sbr.rel (%p13429_p4) target bundleno = 82 (0x52), region = 64 }
   0xe   : > { %380 = sbr.rel (!%p39_p3) target bundleno = 82 (0x52), region = 68  ;;  %s382_s16 = sand.u32 (%p39_p3), 1, %s17624_s26  }
   0xf   : > { %s14397_s17 = sshll.u32 (%p39_p3), %s17628_s27, 4  ;;  %s13430_s18 = sshll.u32 (%p39_p3), %s382_s16, 10 }
  0x10   : > { %s17735_s21 = scalar_lea.vmem (%p39_p3), %s21038_s0, %s14397_s17  ;;  %s17740_s22 = scalar_lea.vmem (%p39_p3), [#allocation5], %s13430_s18 }
  0x11   : > { %v403_v0 = vld [vmem:[%s17735_s21] sm:$0xff] (%p39_p3)   ;;  %v407_v1 = vld [vmem:[%s17735_s21 + $0x8] sm:$0xff] (%p39_p3)  }
  0x12   : > { %v411_v2 = vld [vmem:[%s17735_s21 + $0x20] sm:$0xff] (%p39_p3)   ;;  %404 = vst [vmem:[%s17740_s22] sm:$0xff] (%p39_p3), %v403_v0   ;;  %408 = vst [vmem:[%s17740_s22 + $0x8] sm:$0xff] (%p39_p3), %v407_v1   ;;  %v415_v3 = vld [vmem:[%s17735_s21 + $0x28] sm:$0xff] (%p39_p3)  }
  0x13   : > { %412 = vst [vmem:[%s17740_s22 + $0x10] sm:$0xff] (%p39_p3), %v411_v2   ;;  %v419_v4 = vld [vmem:[%s17735_s21 + $0x40] sm:$0xff] (%p39_p3)   ;;  %v423_v5 = vld [vmem:[%s17735_s21 + $0x48] sm:$0xff] (%p39_p3)   ;;  %416 = vst [vmem:[%s17740_s22 + $0x18] sm:$0xff] (%p39_p3), %v415_v3  }
  0x14   : > { %420 = vst [vmem:[%s17740_s22 + $0x20] sm:$0xff] (%p39_p3), %v419_v4   ;;  %424 = vst [vmem:[%s17740_s22 + $0x28] sm:$0xff] (%p39_p3), %v423_v5   ;;  %v427_v6 = vld [vmem:[%s17735_s21 + $0x60] sm:$0xff] (%p39_p3)   ;;  %v431_v7 = vld [vmem:[%s17735_s21 + $0x68] sm:$0xff] (%p39_p3)  }
  0x15   : > { %v435_v8 = vld [vmem:[%s17735_s21 + $0x80] sm:$0xff]   ;;  %428 = vst [vmem:[%s17740_s22 + $0x30] sm:$0xff] %v427_v6   ;;  %432 = vst [vmem:[%s17740_s22 + $0x38] sm:$0xff] %v431_v7   ;;  %v439_v9 = vld [vmem:[%s17735_s21 + $0x88] sm:$0xff]  }
  0x16   : > { %436 = vst [vmem:[%s17740_s22 + $0x40] sm:$0xff] %v435_v8   ;;  %v443_v10 = vld [vmem:[%s17735_s21 + $0xa0] sm:$0xff]   ;;  %v447_v11 = vld [vmem:[%s17735_s21 + $0xa8] sm:$0xff]   ;;  %440 = vst [vmem:[%s17740_s22 + $0x48] sm:$0xff] %v439_v9  }
  0x17   : > { %444 = vst [vmem:[%s17740_s22 + $0x50] sm:$0xff] %v443_v10   ;;  %448 = vst [vmem:[%s17740_s22 + $0x58] sm:$0xff] %v447_v11   ;;  %v451_v12 = vld [vmem:[%s17735_s21 + $0xc0] sm:$0xff]   ;;  %v455_v13 = vld [vmem:[%s17735_s21 + $0xc8] sm:$0xff]  }
  0x18   : > { %v459_v14 = vld [vmem:[%s17735_s21 + $0xe0] sm:$0xff]   ;;  %452 = vst [vmem:[%s17740_s22 + $0x60] sm:$0xff] %v451_v12   ;;  %456 = vst [vmem:[%s17740_s22 + $0x68] sm:$0xff] %v455_v13   ;;  %v463_v15 = vld [vmem:[%s17735_s21 + $0xe8] sm:$0xff]  }
  0x19   : > { %460 = vst [vmem:[%s17740_s22 + $0x70] sm:$0xff] %v459_v14   ;;  %v467_v16 = vld [vmem:[%s17735_s21 + $0x100] sm:$0xff]   ;;  %v471_v17 = vld [vmem:[%s17735_s21 + $0x108] sm:$0xff]   ;;  %464 = vst [vmem:[%s17740_s22 + $0x78] sm:$0xff] %v463_v15  }
  0x1a   : > { %468 = vst [vmem:[%s17740_s22 + $0x80] sm:$0xff] %v467_v16   ;;  %472 = vst [vmem:[%s17740_s22 + $0x88] sm:$0xff] %v471_v17   ;;  %v475_v18 = vld [vmem:[%s17735_s21 + $0x120] sm:$0xff]   ;;  %v479_v19 = vld [vmem:[%s17735_s21 + $0x128] sm:$0xff]  }
  0x1b   : > { %v483_v20 = vld [vmem:[%s17735_s21 + $0x140] sm:$0xff]   ;;  %476 = vst [vmem:[%s17740_s22 + $0x90] sm:$0xff] %v475_v18   ;;  %480 = vst [vmem:[%s17740_s22 + $0x98] sm:$0xff] %v479_v19   ;;  %v487_v21 = vld [vmem:[%s17735_s21 + $0x148] sm:$0xff]  }
  0x1c   : > { %484 = vst [vmem:[%s17740_s22 + $0xa0] sm:$0xff] %v483_v20   ;;  %v491_v22 = vld [vmem:[%s17735_s21 + $0x160] sm:$0xff]   ;;  %v495_v23 = vld [vmem:[%s17735_s21 + $0x168] sm:$0xff]   ;;  %488 = vst [vmem:[%s17740_s22 + $0xa8] sm:$0xff] %v487_v21  }
  0x1d   : > { %492 = vst [vmem:[%s17740_s22 + $0xb0] sm:$0xff] %v491_v22   ;;  %496 = vst [vmem:[%s17740_s22 + $0xb8] sm:$0xff] %v495_v23   ;;  %v499_v24 = vld [vmem:[%s17735_s21 + $0x180] sm:$0xff]   ;;  %v503_v25 = vld [vmem:[%s17735_s21 + $0x188] sm:$0xff]  }
  0x1e   : > { %v507_v26 = vld [vmem:[%s17735_s21 + $0x1a0] sm:$0xff]   ;;  %500 = vst [vmem:[%s17740_s22 + $0xc0] sm:$0xff] %v499_v24   ;;  %504 = vst [vmem:[%s17740_s22 + $0xc8] sm:$0xff] %v503_v25   ;;  %v511_v27 = vld [vmem:[%s17735_s21 + $0x1a8] sm:$0xff]  }
  0x1f   : > { %508 = vst [vmem:[%s17740_s22 + $0xd0] sm:$0xff] %v507_v26   ;;  %v515_v28 = vld [vmem:[%s17735_s21 + $0x1c0] sm:$0xff]   ;;  %v519_v29 = vld [vmem:[%s17735_s21 + $0x1c8] sm:$0xff]   ;;  %512 = vst [vmem:[%s17740_s22 + $0xd8] sm:$0xff] %v511_v27  }
  0x20   : > { %516 = vst [vmem:[%s17740_s22 + $0xe0] sm:$0xff] %v515_v28   ;;  %520 = vst [vmem:[%s17740_s22 + $0xe8] sm:$0xff] %v519_v29   ;;  %v523_v30 = vld [vmem:[%s17735_s21 + $0x1e0] sm:$0xff]   ;;  %v527_v31 = vld [vmem:[%s17735_s21 + $0x1e8] sm:$0xff]  }
  0x21   : > { %v531_v32 = vld [vmem:[%s17735_s21 + $0x200] sm:$0xff]   ;;  %524 = vst [vmem:[%s17740_s22 + $0xf0] sm:$0xff] %v523_v30   ;;  %528 = vst [vmem:[%s17740_s22 + $0xf8] sm:$0xff] %v527_v31   ;;  %v535_v33 = vld [vmem:[%s17735_s21 + $0x208] sm:$0xff]  }
  0x22   : > { %532 = vst [vmem:[%s17740_s22 + $0x100] sm:$0xff] %v531_v32   ;;  %v539_v34 = vld [vmem:[%s17735_s21 + $0x220] sm:$0xff]   ;;  %v543_v35 = vld [vmem:[%s17735_s21 + $0x228] sm:$0xff]   ;;  %536 = vst [vmem:[%s17740_s22 + $0x108] sm:$0xff] %v535_v33  }
  0x23   : > { %540 = vst [vmem:[%s17740_s22 + $0x110] sm:$0xff] %v539_v34   ;;  %544 = vst [vmem:[%s17740_s22 + $0x118] sm:$0xff] %v543_v35   ;;  %v547_v36 = vld [vmem:[%s17735_s21 + $0x240] sm:$0xff]   ;;  %v551_v37 = vld [vmem:[%s17735_s21 + $0x248] sm:$0xff]  }
  0x24   : > { %v555_v38 = vld [vmem:[%s17735_s21 + $0x260] sm:$0xff]   ;;  %548 = vst [vmem:[%s17740_s22 + $0x120] sm:$0xff] %v547_v36   ;;  %552 = vst [vmem:[%s17740_s22 + $0x128] sm:$0xff] %v551_v37   ;;  %v559_v39 = vld [vmem:[%s17735_s21 + $0x268] sm:$0xff]  }
  0x25   : > { %556 = vst [vmem:[%s17740_s22 + $0x130] sm:$0xff] %v555_v38   ;;  %v563_v40 = vld [vmem:[%s17735_s21 + $0x280] sm:$0xff]   ;;  %v567_v41 = vld [vmem:[%s17735_s21 + $0x288] sm:$0xff]   ;;  %560 = vst [vmem:[%s17740_s22 + $0x138] sm:$0xff] %v559_v39  }
  0x26   : > { %564 = vst [vmem:[%s17740_s22 + $0x140] sm:$0xff] %v563_v40   ;;  %568 = vst [vmem:[%s17740_s22 + $0x148] sm:$0xff] %v567_v41   ;;  %v571_v42 = vld [vmem:[%s17735_s21 + $0x2a0] sm:$0xff]   ;;  %v575_v43 = vld [vmem:[%s17735_s21 + $0x2a8] sm:$0xff]  }
  0x27   : > { %v579_v44 = vld [vmem:[%s17735_s21 + $0x2c0] sm:$0xff]   ;;  %572 = vst [vmem:[%s17740_s22 + $0x150] sm:$0xff] %v571_v42   ;;  %576 = vst [vmem:[%s17740_s22 + $0x158] sm:$0xff] %v575_v43   ;;  %v583_v45 = vld [vmem:[%s17735_s21 + $0x2c8] sm:$0xff]  }
  0x28   : > { %580 = vst [vmem:[%s17740_s22 + $0x160] sm:$0xff] %v579_v44   ;;  %v587_v46 = vld [vmem:[%s17735_s21 + $0x2e0] sm:$0xff]   ;;  %v591_v47 = vld [vmem:[%s17735_s21 + $0x2e8] sm:$0xff]   ;;  %584 = vst [vmem:[%s17740_s22 + $0x168] sm:$0xff] %v583_v45  }
  0x29   : > { %588 = vst [vmem:[%s17740_s22 + $0x170] sm:$0xff] %v587_v46   ;;  %592 = vst [vmem:[%s17740_s22 + $0x178] sm:$0xff] %v591_v47   ;;  %v595_v48 = vld [vmem:[%s17735_s21 + $0x300] sm:$0xff]   ;;  %v599_v49 = vld [vmem:[%s17735_s21 + $0x308] sm:$0xff]  }
  0x2a   : > { %v603_v50 = vld [vmem:[%s17735_s21 + $0x320] sm:$0xff]   ;;  %596 = vst [vmem:[%s17740_s22 + $0x180] sm:$0xff] %v595_v48   ;;  %600 = vst [vmem:[%s17740_s22 + $0x188] sm:$0xff] %v599_v49   ;;  %v607_v51 = vld [vmem:[%s17735_s21 + $0x328] sm:$0xff]  }
  0x2b   : > { %604 = vst [vmem:[%s17740_s22 + $0x190] sm:$0xff] %v603_v50   ;;  %v611_v52 = vld [vmem:[%s17735_s21 + $0x340] sm:$0xff]   ;;  %v615_v53 = vld [vmem:[%s17735_s21 + $0x348] sm:$0xff]   ;;  %608 = vst [vmem:[%s17740_s22 + $0x198] sm:$0xff] %v607_v51  }
  0x2c   : > { %612 = vst [vmem:[%s17740_s22 + $0x1a0] sm:$0xff] %v611_v52   ;;  %616 = vst [vmem:[%s17740_s22 + $0x1a8] sm:$0xff] %v615_v53   ;;  %v619_v54 = vld [vmem:[%s17735_s21 + $0x360] sm:$0xff]   ;;  %v623_v55 = vld [vmem:[%s17735_s21 + $0x368] sm:$0xff]  }
  0x2d   : > { %v627_v56 = vld [vmem:[%s17735_s21 + $0x380] sm:$0xff]   ;;  %620 = vst [vmem:[%s17740_s22 + $0x1b0] sm:$0xff] %v619_v54   ;;  %624 = vst [vmem:[%s17740_s22 + $0x1b8] sm:$0xff] %v623_v55   ;;  %v631_v57 = vld [vmem:[%s17735_s21 + $0x388] sm:$0xff]  }
  0x2e   : > { %628 = vst [vmem:[%s17740_s22 + $0x1c0] sm:$0xff] %v627_v56   ;;  %v635_v58 = vld [vmem:[%s17735_s21 + $0x3a0] sm:$0xff]   ;;  %v639_v59 = vld [vmem:[%s17735_s21 + $0x3a8] sm:$0xff]   ;;  %632 = vst [vmem:[%s17740_s22 + $0x1c8] sm:$0xff] %v631_v57  }
  0x2f   : > { %636 = vst [vmem:[%s17740_s22 + $0x1d0] sm:$0xff] %v635_v58   ;;  %640 = vst [vmem:[%s17740_s22 + $0x1d8] sm:$0xff] %v639_v59   ;;  %v643_v60 = vld [vmem:[%s17735_s21 + $0x3c0] sm:$0xff]   ;;  %v647_v61 = vld [vmem:[%s17735_s21 + $0x3c8] sm:$0xff]  }
  0x30   : > { %v651_v62 = vld [vmem:[%s17735_s21 + $0x3e0] sm:$0xff]   ;;  %644 = vst [vmem:[%s17740_s22 + $0x1e0] sm:$0xff] %v643_v60   ;;  %648 = vst [vmem:[%s17740_s22 + $0x1e8] sm:$0xff] %v647_v61   ;;  %v655_v63 = vld [vmem:[%s17735_s21 + $0x3e8] sm:$0xff]  }
  0x31   : > { %652 = vst [vmem:[%s17740_s22 + $0x1f0] sm:$0xff] %v651_v62   ;;  %v659_v0 = vld [vmem:[%s17735_s21 + $0x400] sm:$0xff]   ;;  %v663_v1 = vld [vmem:[%s17735_s21 + $0x408] sm:$0xff]   ;;  %656 = vst [vmem:[%s17740_s22 + $0x1f8] sm:$0xff] %v655_v63  }
  0x32   : > { %660 = vst [vmem:[%s17740_s22 + $0x200] sm:$0xff] %v659_v0   ;;  %664 = vst [vmem:[%s17740_s22 + $0x208] sm:$0xff] %v663_v1   ;;  %v667_v2 = vld [vmem:[%s17735_s21 + $0x420] sm:$0xff]   ;;  %v671_v3 = vld [vmem:[%s17735_s21 + $0x428] sm:$0xff]  }
  0x33   : > { %v675_v4 = vld [vmem:[%s17735_s21 + $0x440] sm:$0xff]   ;;  %668 = vst [vmem:[%s17740_s22 + $0x210] sm:$0xff] %v667_v2   ;;  %672 = vst [vmem:[%s17740_s22 + $0x218] sm:$0xff] %v671_v3   ;;  %v679_v5 = vld [vmem:[%s17735_s21 + $0x448] sm:$0xff]  }
  0x34   : > { %676 = vst [vmem:[%s17740_s22 + $0x220] sm:$0xff] %v675_v4   ;;  %v683_v6 = vld [vmem:[%s17735_s21 + $0x460] sm:$0xff]   ;;  %v687_v7 = vld [vmem:[%s17735_s21 + $0x468] sm:$0xff]   ;;  %680 = vst [vmem:[%s17740_s22 + $0x228] sm:$0xff] %v679_v5  }
  0x35   : > { %684 = vst [vmem:[%s17740_s22 + $0x230] sm:$0xff] %v683_v6   ;;  %688 = vst [vmem:[%s17740_s22 + $0x238] sm:$0xff] %v687_v7   ;;  %v691_v8 = vld [vmem:[%s17735_s21 + $0x480] sm:$0xff]   ;;  %v695_v9 = vld [vmem:[%s17735_s21 + $0x488] sm:$0xff]  }
  0x36   : > { %v699_v10 = vld [vmem:[%s17735_s21 + $0x4a0] sm:$0xff]   ;;  %692 = vst [vmem:[%s17740_s22 + $0x240] sm:$0xff] %v691_v8   ;;  %696 = vst [vmem:[%s17740_s22 + $0x248] sm:$0xff] %v695_v9   ;;  %v703_v11 = vld [vmem:[%s17735_s21 + $0x4a8] sm:$0xff]  }
  0x37   : > { %700 = vst [vmem:[%s17740_s22 + $0x250] sm:$0xff] %v699_v10   ;;  %v707_v12 = vld [vmem:[%s17735_s21 + $0x4c0] sm:$0xff]   ;;  %v711_v13 = vld [vmem:[%s17735_s21 + $0x4c8] sm:$0xff]   ;;  %704 = vst [vmem:[%s17740_s22 + $0x258] sm:$0xff] %v703_v11  }
  0x38   : > { %708 = vst [vmem:[%s17740_s22 + $0x260] sm:$0xff] %v707_v12   ;;  %712 = vst [vmem:[%s17740_s22 + $0x268] sm:$0xff] %v711_v13   ;;  %v715_v14 = vld [vmem:[%s17735_s21 + $0x4e0] sm:$0xff]   ;;  %v719_v15 = vld [vmem:[%s17735_s21 + $0x4e8] sm:$0xff]  }
  0x39   : > { %v723_v16 = vld [vmem:[%s17735_s21 + $0x500] sm:$0xff]   ;;  %716 = vst [vmem:[%s17740_s22 + $0x270] sm:$0xff] %v715_v14   ;;  %720 = vst [vmem:[%s17740_s22 + $0x278] sm:$0xff] %v719_v15   ;;  %v727_v17 = vld [vmem:[%s17735_s21 + $0x508] sm:$0xff]  }
  0x3a   : > { %724 = vst [vmem:[%s17740_s22 + $0x280] sm:$0xff] %v723_v16   ;;  %v731_v18 = vld [vmem:[%s17735_s21 + $0x520] sm:$0xff]   ;;  %v735_v19 = vld [vmem:[%s17735_s21 + $0x528] sm:$0xff]   ;;  %728 = vst [vmem:[%s17740_s22 + $0x288] sm:$0xff] %v727_v17  }
  0x3b   : > { %732 = vst [vmem:[%s17740_s22 + $0x290] sm:$0xff] %v731_v18   ;;  %736 = vst [vmem:[%s17740_s22 + $0x298] sm:$0xff] %v735_v19   ;;  %v739_v20 = vld [vmem:[%s17735_s21 + $0x540] sm:$0xff]   ;;  %v743_v21 = vld [vmem:[%s17735_s21 + $0x548] sm:$0xff]  }
  0x3c   : > { %v747_v22 = vld [vmem:[%s17735_s21 + $0x560] sm:$0xff]   ;;  %740 = vst [vmem:[%s17740_s22 + $0x2a0] sm:$0xff] %v739_v20   ;;  %744 = vst [vmem:[%s17740_s22 + $0x2a8] sm:$0xff] %v743_v21   ;;  %v751_v23 = vld [vmem:[%s17735_s21 + $0x568] sm:$0xff]  }
  0x3d   : > { %748 = vst [vmem:[%s17740_s22 + $0x2b0] sm:$0xff] %v747_v22   ;;  %v755_v24 = vld [vmem:[%s17735_s21 + $0x580] sm:$0xff]   ;;  %v759_v25 = vld [vmem:[%s17735_s21 + $0x588] sm:$0xff]   ;;  %752 = vst [vmem:[%s17740_s22 + $0x2b8] sm:$0xff] %v751_v23  }
  0x3e   : > { %756 = vst [vmem:[%s17740_s22 + $0x2c0] sm:$0xff] %v755_v24   ;;  %760 = vst [vmem:[%s17740_s22 + $0x2c8] sm:$0xff] %v759_v25   ;;  %v763_v26 = vld [vmem:[%s17735_s21 + $0x5a0] sm:$0xff]   ;;  %v767_v27 = vld [vmem:[%s17735_s21 + $0x5a8] sm:$0xff]  }
  0x3f   : > { %v771_v28 = vld [vmem:[%s17735_s21 + $0x5c0] sm:$0xff]   ;;  %764 = vst [vmem:[%s17740_s22 + $0x2d0] sm:$0xff] %v763_v26   ;;  %768 = vst [vmem:[%s17740_s22 + $0x2d8] sm:$0xff] %v767_v27   ;;  %v775_v29 = vld [vmem:[%s17735_s21 + $0x5c8] sm:$0xff]  }
  0x40   : > { %772 = vst [vmem:[%s17740_s22 + $0x2e0] sm:$0xff] %v771_v28   ;;  %v779_v30 = vld [vmem:[%s17735_s21 + $0x5e0] sm:$0xff]   ;;  %v783_v31 = vld [vmem:[%s17735_s21 + $0x5e8] sm:$0xff]   ;;  %776 = vst [vmem:[%s17740_s22 + $0x2e8] sm:$0xff] %v775_v29  }
  0x41   : > { %780 = vst [vmem:[%s17740_s22 + $0x2f0] sm:$0xff] %v779_v30   ;;  %784 = vst [vmem:[%s17740_s22 + $0x2f8] sm:$0xff] %v783_v31   ;;  %v787_v32 = vld [vmem:[%s17735_s21 + $0x600] sm:$0xff]   ;;  %v791_v33 = vld [vmem:[%s17735_s21 + $0x608] sm:$0xff]  }
  0x42   : > { %v795_v34 = vld [vmem:[%s17735_s21 + $0x620] sm:$0xff]   ;;  %788 = vst [vmem:[%s17740_s22 + $0x300] sm:$0xff] %v787_v32   ;;  %792 = vst [vmem:[%s17740_s22 + $0x308] sm:$0xff] %v791_v33   ;;  %v799_v35 = vld [vmem:[%s17735_s21 + $0x628] sm:$0xff]  }
  0x43   : > { %796 = vst [vmem:[%s17740_s22 + $0x310] sm:$0xff] %v795_v34   ;;  %v803_v36 = vld [vmem:[%s17735_s21 + $0x640] sm:$0xff]   ;;  %v807_v37 = vld [vmem:[%s17735_s21 + $0x648] sm:$0xff]   ;;  %800 = vst [vmem:[%s17740_s22 + $0x318] sm:$0xff] %v799_v35  }
  0x44   : > { %804 = vst [vmem:[%s17740_s22 + $0x320] sm:$0xff] %v803_v36   ;;  %808 = vst [vmem:[%s17740_s22 + $0x328] sm:$0xff] %v807_v37   ;;  %v811_v38 = vld [vmem:[%s17735_s21 + $0x660] sm:$0xff]   ;;  %v815_v39 = vld [vmem:[%s17735_s21 + $0x668] sm:$0xff]  }
  0x45   : > { %v819_v40 = vld [vmem:[%s17735_s21 + $0x680] sm:$0xff]   ;;  %812 = vst [vmem:[%s17740_s22 + $0x330] sm:$0xff] %v811_v38   ;;  %816 = vst [vmem:[%s17740_s22 + $0x338] sm:$0xff] %v815_v39   ;;  %v823_v41 = vld [vmem:[%s17735_s21 + $0x688] sm:$0xff]  }
  0x46   : > { %820 = vst [vmem:[%s17740_s22 + $0x340] sm:$0xff] %v819_v40   ;;  %v827_v42 = vld [vmem:[%s17735_s21 + $0x6a0] sm:$0xff]   ;;  %v831_v43 = vld [vmem:[%s17735_s21 + $0x6a8] sm:$0xff]   ;;  %824 = vst [vmem:[%s17740_s22 + $0x348] sm:$0xff] %v823_v41  }
  0x47   : > { %828 = vst [vmem:[%s17740_s22 + $0x350] sm:$0xff] %v827_v42   ;;  %832 = vst [vmem:[%s17740_s22 + $0x358] sm:$0xff] %v831_v43   ;;  %v835_v44 = vld [vmem:[%s17735_s21 + $0x6c0] sm:$0xff]   ;;  %v839_v45 = vld [vmem:[%s17735_s21 + $0x6c8] sm:$0xff]  }
  0x48   : > { %v843_v46 = vld [vmem:[%s17735_s21 + $0x6e0] sm:$0xff]   ;;  %836 = vst [vmem:[%s17740_s22 + $0x360] sm:$0xff] %v835_v44   ;;  %840 = vst [vmem:[%s17740_s22 + $0x368] sm:$0xff] %v839_v45   ;;  %v847_v47 = vld [vmem:[%s17735_s21 + $0x6e8] sm:$0xff]  }
  0x49   : > { %844 = vst [vmem:[%s17740_s22 + $0x370] sm:$0xff] %v843_v46   ;;  %v851_v48 = vld [vmem:[%s17735_s21 + $0x700] sm:$0xff]   ;;  %v855_v49 = vld [vmem:[%s17735_s21 + $0x708] sm:$0xff]   ;;  %848 = vst [vmem:[%s17740_s22 + $0x378] sm:$0xff] %v847_v47  }
  0x4a   : > { %852 = vst [vmem:[%s17740_s22 + $0x380] sm:$0xff] %v851_v48   ;;  %856 = vst [vmem:[%s17740_s22 + $0x388] sm:$0xff] %v855_v49   ;;  %v859_v50 = vld [vmem:[%s17735_s21 + $0x720] sm:$0xff]   ;;  %v863_v51 = vld [vmem:[%s17735_s21 + $0x728] sm:$0xff]  }
  0x4b   : > { %v867_v52 = vld [vmem:[%s17735_s21 + $0x740] sm:$0xff]   ;;  %860 = vst [vmem:[%s17740_s22 + $0x390] sm:$0xff] %v859_v50   ;;  %864 = vst [vmem:[%s17740_s22 + $0x398] sm:$0xff] %v863_v51   ;;  %v871_v53 = vld [vmem:[%s17735_s21 + $0x748] sm:$0xff]  }
  0x4c   : > { %868 = vst [vmem:[%s17740_s22 + $0x3a0] sm:$0xff] %v867_v52   ;;  %v875_v54 = vld [vmem:[%s17735_s21 + $0x760] sm:$0xff]   ;;  %v879_v55 = vld [vmem:[%s17735_s21 + $0x768] sm:$0xff]   ;;  %872 = vst [vmem:[%s17740_s22 + $0x3a8] sm:$0xff] %v871_v53  }
  0x4d   : > { %876 = vst [vmem:[%s17740_s22 + $0x3b0] sm:$0xff] %v875_v54   ;;  %880 = vst [vmem:[%s17740_s22 + $0x3b8] sm:$0xff] %v879_v55   ;;  %v883_v56 = vld [vmem:[%s17735_s21 + $0x780] sm:$0xff]   ;;  %v887_v57 = vld [vmem:[%s17735_s21 + $0x788] sm:$0xff]  }
  0x4e   : > { %v891_v58 = vld [vmem:[%s17735_s21 + $0x7a0] sm:$0xff]   ;;  %884 = vst [vmem:[%s17740_s22 + $0x3c0] sm:$0xff] %v883_v56   ;;  %888 = vst [vmem:[%s17740_s22 + $0x3c8] sm:$0xff] %v887_v57   ;;  %v895_v59 = vld [vmem:[%s17735_s21 + $0x7a8] sm:$0xff]  }
  0x4f   : > { %892 = vst [vmem:[%s17740_s22 + $0x3d0] sm:$0xff] %v891_v58   ;;  %v899_v60 = vld [vmem:[%s17735_s21 + $0x7c0] sm:$0xff]   ;;  %v903_v61 = vld [vmem:[%s17735_s21 + $0x7c8] sm:$0xff]   ;;  %896 = vst [vmem:[%s17740_s22 + $0x3d8] sm:$0xff] %v895_v59  }
  0x50   : > { %900 = vst [vmem:[%s17740_s22 + $0x3e0] sm:$0xff] %v899_v60   ;;  %904 = vst [vmem:[%s17740_s22 + $0x3e8] sm:$0xff] %v903_v61   ;;  %v907_v62 = vld [vmem:[%s17735_s21 + $0x7e0] sm:$0xff]   ;;  %v911_v63 = vld [vmem:[%s17735_s21 + $0x7e8] sm:$0xff]  }
  0x51   : > { %908 = vst [vmem:[%s17740_s22 + $0x3f0] sm:$0xff] %v907_v62   ;;  %912 = vst [vmem:[%s17740_s22 + $0x3f8] sm:$0xff] %v911_v63  }
  0x52 PF: > { %p13433_p5 = scmp.ge.s32.totalorder %s17628_s27, 1  ;;  %p1448_p6 = scmp.lt.s32.totalorder %s17628_s27, 3 }
  0x54   : > { %p1449_p7 = pnand %p13433_p5, %p1448_p6 }
  0x56   : > { %1452 = sbr.rel (%p1449_p7) target bundleno = 3539 (0xdd3), region = 109 }
  0x5d   : > { %v17127_v0 = vld [vmem:[%s21039_s1] sm:$0xff]   ;;  %s1455_s30 = sand.u32 1, %s17620_s25   ;;  %v17128_v1 = vld [vmem:[%s21039_s1 + $0x8] sm:$0xff]   ;;  %vm2427_vm0 = vcmask 261120   ;;  %vm4349_vm1 = vcmask 523264   ;;  %vm9071_vm2 = vcmask 130048  }
  0x5e   : > { %s13434_s17 = sshll.u32 %s1455_s30, 10  ;;  %15039 = vmatprep.subr.bf16.mxu0 %v17127_v0 }
  0x5f   : > { %15040 = vmatpush3.bf16.msra.mxu0 %v17127_v0  ;;  %s18004_s18 = scalar_lea.vmem [#allocation5], %s13434_s17 }
  0x60   : > { %v17129_v2 = vld [vmem:[%s18004_s18] sm:$0xff]   ;;  %15041 = vmatprep.subr.bf16.mxu0 %v17128_v1  ;;  %v17130_v3 = vld [vmem:[%s18004_s18 + $0x8] sm:$0xff]   ;;  %v17131_v4 = vld [vmem:[%s18004_s18 + $0x10] sm:$0xff]  }
  0x61   : > { %15043 = vmatprep.mubr.msk.bf16.mxu0 %vm2427_vm0, %v17129_v2  ;;  %v17132_v5 = vld [vmem:[%s18004_s18 + $0x18] sm:$0xff]   ;;  %v17133_v6 = vld [vmem:[%s18004_s18 + $0x20] sm:$0xff]   ;;  %v17134_v7 = vld [vmem:[%s18004_s18 + $0x28] sm:$0xff]  }
  0x62   : > { %v17135_v8 = vld [vmem:[%s18004_s18 + $0x30] sm:$0xff]   ;;  %v17136_v9 = vld [vmem:[%s18004_s18 + $0x38] sm:$0xff]   ;;  %v17137_v10 = vld [vmem:[%s18004_s18 + $0x40] sm:$0xff]  }
  0x63   : > { %15042 = vmatpush3.bf16.msra.mxu0 %v17128_v1  ;;  %v17138_v11 = vld [vmem:[%s18004_s18 + $0x48] sm:$0xff]   ;;  %v17139_v12 = vld [vmem:[%s18004_s18 + $0x50] sm:$0xff]   ;;  %v17140_v13 = vld [vmem:[%s18004_s18 + $0x58] sm:$0xff]  }
  0x64   : > { %v17141_v14 = vld [vmem:[%s18004_s18 + $0x60] sm:$0xff]   ;;  %v17142_v15 = vld [vmem:[%s18004_s18 + $0x68] sm:$0xff]   ;;  %v17143_v16 = vld [vmem:[%s18004_s18 + $0x70] sm:$0xff]  }
  0x65   : > { %v17144_v17 = vld [vmem:[%s18004_s18 + $0x78] sm:$0xff]   ;;  %v17145_v18 = vld [vmem:[%s18004_s18 + $0x80] sm:$0xff]   ;;  %v17146_v19 = vld [vmem:[%s18004_s18 + $0x88] sm:$0xff]  }
  0x66   : > { %15044 = vmatmul.mubr.msk.bf16.vlgmr.msra.gmra.mrb[0].mxu0 %vm2427_vm0, %v17130_v3  ;;  %v17147_v20 = vld [vmem:[%s18004_s18 + $0x90] sm:$0xff]   ;;  %v17148_v21 = vld [vmem:[%s18004_s18 + $0x98] sm:$0xff]   ;;  %v17149_v22 = vld [vmem:[%s18004_s18 + $0xa0] sm:$0xff]  }
  0x67   : > { %15047 = vmatprep.mubr.msk.bf16.mxu0 %vm2427_vm0, %v17131_v4  ;;  %v17150_v23 = vld [vmem:[%s18004_s18 + $0xa8] sm:$0xff]   ;;  %v17151_v24 = vld [vmem:[%s18004_s18 + $0xb0] sm:$0xff]   ;;  %v17152_v25 = vld [vmem:[%s18004_s18 + $0xb8] sm:$0xff]  }
  0x68   : > { %v17153_v26 = vld [vmem:[%s18004_s18 + $0xc0] sm:$0xff]   ;;  %v17154_v27 = vld [vmem:[%s18004_s18 + $0xc8] sm:$0xff]   ;;  %v17155_v28 = vld [vmem:[%s18004_s18 + $0xd0] sm:$0xff]  }
  0x69   : > { %v17156_v29 = vld [vmem:[%s18004_s18 + $0xd8] sm:$0xff]   ;;  %v17157_v30 = vld [vmem:[%s18004_s18 + $0xe0] sm:$0xff]   ;;  %v17158_v31 = vld [vmem:[%s18004_s18 + $0xe8] sm:$0xff]  }
  0x6a   : > { %v17159_v32 = vld [vmem:[%s18004_s18 + $0xf0] sm:$0xff]   ;;  %v17160_v33 = vld [vmem:[%s18004_s18 + $0xf8] sm:$0xff]   ;;  %v17161_v34 = vld [vmem:[%s18004_s18 + $0x100] sm:$0xff]  }
  0x6b   : > { %v17162_v35 = vld [vmem:[%s18004_s18 + $0x108] sm:$0xff]   ;;  %v17163_v36 = vld [vmem:[%s18004_s18 + $0x110] sm:$0xff]   ;;  %v17164_v37 = vld [vmem:[%s18004_s18 + $0x118] sm:$0xff]  }
  0x6c   : > { %v17165_v38 = vld [vmem:[%s18004_s18 + $0x120] sm:$0xff]   ;;  %v17166_v39 = vld [vmem:[%s18004_s18 + $0x128] sm:$0xff]   ;;  %v17167_v40 = vld [vmem:[%s18004_s18 + $0x130] sm:$0xff]  }
  0x6d   : > { %v17168_v41 = vld [vmem:[%s18004_s18 + $0x138] sm:$0xff]   ;;  %v17169_v42 = vld [vmem:[%s18004_s18 + $0x140] sm:$0xff]   ;;  %v17170_v43 = vld [vmem:[%s18004_s18 + $0x148] sm:$0xff]  }
  0x6e   : > { %15048 = vmatmul.mubr.msk.bf16.gmra.mrb[4].mxu0 %vm2427_vm0, %v17132_v5  ;;  %v17171_v44 = vld [vmem:[%s18004_s18 + $0x150] sm:$0xff]   ;;  %v17172_v45 = vld [vmem:[%s18004_s18 + $0x158] sm:$0xff]   ;;  %v17173_v46 = vld [vmem:[%s18004_s18 + $0x160] sm:$0xff]  }
  0x6f   : > { %15051 = vmatprep.mubr.msk.bf16.mxu0 %vm2427_vm0, %v17133_v6  ;;  %v17174_v47 = vld [vmem:[%s18004_s18 + $0x168] sm:$0xff]   ;;  %v17175_v48 = vld [vmem:[%s18004_s18 + $0x170] sm:$0xff]   ;;  %v17176_v49 = vld [vmem:[%s18004_s18 + $0x178] sm:$0xff]  }
  0x70   : > { %v17177_v50 = vld [vmem:[%s18004_s18 + $0x180] sm:$0xff]   ;;  %v17178_v51 = vld [vmem:[%s18004_s18 + $0x188] sm:$0xff]   ;;  %v17179_v52 = vld [vmem:[%s18004_s18 + $0x190] sm:$0xff]  }
  0x71   : > { %v17180_v53 = vld [vmem:[%s18004_s18 + $0x198] sm:$0xff]   ;;  %v17181_v54 = vld [vmem:[%s18004_s18 + $0x1a0] sm:$0xff]   ;;  %v17182_v55 = vld [vmem:[%s18004_s18 + $0x1a8] sm:$0xff]  }
  0x72   : > { %v17183_v56 = vld [vmem:[%s18004_s18 + $0x1b0] sm:$0xff]   ;;  %v17184_v59 = vld [vmem:[%s18004_s18 + $0x1b8] sm:$0xff]   ;;  %v17185_v61 = vld [vmem:[%s18004_s18 + $0x1c0] sm:$0xff]  }
  0x73   : > { %v17186_v1 = vld [vmem:[%s18004_s18 + $0x1c8] sm:$0xff]   ;;  %v17187_v3 = vld [vmem:[%s18004_s18 + $0x1d0] sm:$0xff]  }
  0x76   : > { %15052 = vmatmul.mubr.msk.bf16.gmra.mrb[8].mxu0 %vm2427_vm0, %v17134_v7  ;;  %v17188_v7 = vld [vmem:[%s18004_s18 + $0x1d8] sm:$0xff]  }
  0x77   : > { %15055 = vmatprep.mubr.msk.bf16.mxu0 %vm2427_vm0, %v17135_v8 }
  0x7e   : > { %15056 = vmatmul.mubr.msk.bf16.gmra.mrb[12].mxu0 %vm2427_vm0, %v17136_v9  ;;  %v17189_v9 = vld [vmem:[%s18004_s18 + $0x1e0] sm:$0xff]  }
  0x7f   : > { %15059 = vmatprep.mubr.msk.bf16.mxu0 %vm2427_vm0, %v17137_v10 }
  0x86   : > { %15060 = vmatmul.mubr.msk.bf16.gmra.mrb[16].mxu0 %vm2427_vm0, %v17138_v11 }
  0x87   : > { %15063 = vmatprep.mubr.msk.bf16.mxu0 %vm2427_vm0, %v17139_v12 }
  0x8e   : > { %15064 = vmatmul.mubr.msk.bf16.gmra.mrb[20].mxu0 %vm2427_vm0, %v17140_v13  ;;  %v17190_v13 = vld [vmem:[%s18004_s18 + $0x1e8] sm:$0xff]  }
  0x8f   : > { %15067 = vmatprep.mubr.msk.bf16.mxu0 %vm2427_vm0, %v17141_v14 }
  0x96   : > { %15068 = vmatmul.mubr.msk.bf16.gmra.mrb[24].mxu0 %vm2427_vm0, %v17142_v15  ;;  %v17191_v15 = vld [vmem:[%s18004_s18 + $0x1f0] sm:$0xff]  }
  0x97   : > { %15071 = vmatprep.mubr.msk.bf16.mxu0 %vm2427_vm0, %v17143_v16 }
  0x9e   : > { %15072 = vmatmul.mubr.msk.bf16.gmra.mrb[28].mxu0 %vm2427_vm0, %v17144_v17 }
  0x9f   : > { %15075 = vmatprep.mubr.msk.bf16.mxu0 %vm2427_vm0, %v17145_v18 }
  0xa6   : > { %15076 = vmatmul.mubr.msk.bf16.gmra.mrb[32].mxu0 %vm2427_vm0, %v17146_v19  ;;  %v17192_v19 = vld [vmem:[%s18004_s18 + $0x1f8] sm:$0xff]  }
  0xa7   : > { %15079 = vmatprep.mubr.msk.bf16.mxu0 %vm2427_vm0, %v17147_v20 }
  0xae   : > { %15080 = vmatmul.mubr.msk.bf16.gmra.mrb[36].mxu0 %vm2427_vm0, %v17148_v21  ;;  %v17193_v21 = vld [vmem:[%s18004_s18 + $0x200] sm:$0xff]  }
  0xaf   : > { %15083 = vmatprep.mubr.msk.bf16.mxu0 %vm2427_vm0, %v17149_v22 }
  0xb6   : > { %15084 = vmatmul.mubr.msk.bf16.gmra.mrb[40].mxu0 %vm2427_vm0, %v17150_v23 }
  0xb7   : > { %15087 = vmatprep.mubr.msk.bf16.mxu0 %vm2427_vm0, %v17151_v24 }
  0xbe   : > { %15088 = vmatmul.mubr.msk.bf16.gmra.mrb[44].mxu0 %vm2427_vm0, %v17152_v25  ;;  %v17194_v25 = vld [vmem:[%s18004_s18 + $0x208] sm:$0xff]  }
  0xbf   : > { %15091 = vmatprep.mubr.msk.bf16.mxu0 %vm2427_vm0, %v17153_v26 }
  0xc6   : > { %15092 = vmatmul.mubr.msk.bf16.gmra.mrb[48].mxu0 %vm2427_vm0, %v17154_v27  ;;  %v17195_v27 = vld [vmem:[%s18004_s18 + $0x210] sm:$0xff]  }
  0xc7   : > { %15095 = vmatprep.mubr.msk.bf16.mxu0 %vm2427_vm0, %v17155_v28 }
  0xce   : > { %15096 = vmatmul.mubr.msk.bf16.gmra.mrb[52].mxu0 %vm2427_vm0, %v17156_v29 }
  0xcf   : > { %15099 = vmatprep.mubr.msk.bf16.mxu0 %vm2427_vm0, %v17157_v30 }
  0xd6   : > { %15100 = vmatmul.mubr.msk.bf16.gmra.mrb[56].mxu0 %vm2427_vm0, %v17158_v31  ;;  %v17196_v31 = vld [vmem:[%s18004_s18 + $0x218] sm:$0xff]  }
  0xd7   : > { %15103 = vmatprep.mubr.msk.bf16.mxu0 %vm2427_vm0, %v17159_v32 }
  0xde   : > { %15104 = vmatmul.mubr.msk.bf16.gmra.mrb[60].mxu0 %vm2427_vm0, %v17160_v33  ;;  %v17197_v33 = vld [vmem:[%s18004_s18 + $0x220] sm:$0xff]  }
  0xdf   : > { %15107 = vmatprep.mubr.msk.bf16.mxu0 %vm2427_vm0, %v17161_v34 }
  0xe6   : > { %15108 = vmatmul.mubr.msk.bf16.gmra.mrb[64].mxu0 %vm2427_vm0, %v17162_v35 }
  0xe7   : > { %15111 = vmatprep.mubr.msk.bf16.mxu0 %vm2427_vm0, %v17163_v36 }
  0xee   : > { %15112 = vmatmul.mubr.msk.bf16.gmra.mrb[68].mxu0 %vm2427_vm0, %v17164_v37  ;;  %v17198_v37 = vld [vmem:[%s18004_s18 + $0x228] sm:$0xff]  }
  0xef   : > { %15115 = vmatprep.mubr.msk.bf16.mxu0 %vm2427_vm0, %v17165_v38 }
  0xf6   : > { %15116 = vmatmul.mubr.msk.bf16.gmra.mrb[72].mxu0 %vm2427_vm0, %v17166_v39  ;;  %v17199_v39 = vld [vmem:[%s18004_s18 + $0x230] sm:$0xff]  }
  0xf7   : > { %15119 = vmatprep.mubr.msk.bf16.mxu0 %vm2427_vm0, %v17167_v40 }
  0xfe   : > { %15120 = vmatmul.mubr.msk.bf16.gmra.mrb[76].mxu0 %vm2427_vm0, %v17168_v41 }
  0xff   : > { %15123 = vmatprep.mubr.msk.bf16.mxu0 %vm2427_vm0, %v17169_v42 }
 0x106   : > { %15124 = vmatmul.mubr.msk.bf16.gmra.mrb[80].mxu0 %vm2427_vm0, %v17170_v43  ;;  %v17200_v43 = vld [vmem:[%s18004_s18 + $0x238] sm:$0xff]  }
 0x107   : > { %15127 = vmatprep.mubr.msk.bf16.mxu0 %vm2427_vm0, %v17171_v44 }
 0x10e   : > { %15128 = vmatmul.mubr.msk.bf16.gmra.mrb[84].mxu0 %vm2427_vm0, %v17172_v45  ;;  %v17201_v45 = vld [vmem:[%s18004_s18 + $0x240] sm:$0xff]  }
 0x10f   : > { %15131 = vmatprep.mubr.msk.bf16.mxu0 %vm2427_vm0, %v17173_v46 }
 0x116   : > { %15132 = vmatmul.mubr.msk.bf16.gmra.mrb[88].mxu0 %vm2427_vm0, %v17174_v47 }
 0x117   : > { %15135 = vmatprep.mubr.msk.bf16.mxu0 %vm2427_vm0, %v17175_v48 }
 0x11e   : > { %15136 = vmatmul.mubr.msk.bf16.gmra.mrb[92].mxu0 %vm2427_vm0, %v17176_v49  ;;  %v17202_v49 = vld [vmem:[%s18004_s18 + $0x248] sm:$0xff]  }
 0x11f   : > { %15139 = vmatprep.mubr.msk.bf16.mxu0 %vm2427_vm0, %v17177_v50 }
 0x126   : > { %15140 = vmatmul.mubr.msk.bf16.gmra.mrb[96].mxu0 %vm2427_vm0, %v17178_v51  ;;  %v17203_v51 = vld [vmem:[%s18004_s18 + $0x250] sm:$0xff]  }
 0x127   : > { %15143 = vmatprep.mubr.msk.bf16.mxu0 %vm2427_vm0, %v17179_v52 }
 0x12e   : > { %15144 = vmatmul.mubr.msk.bf16.gmra.mrb[100].mxu0 %vm2427_vm0, %v17180_v53 }
 0x12f   : > { %15147 = vmatprep.mubr.msk.bf16.mxu0 %vm2427_vm0, %v17181_v54 }
 0x136   : > { %15148 = vmatmul.mubr.msk.bf16.gmra.mrb[104].mxu0 %vm2427_vm0, %v17182_v55  ;;  %v17204_v55 = vld [vmem:[%s18004_s18 + $0x258] sm:$0xff]  }
 0x137   : > { %15151 = vmatprep.mubr.msk.bf16.mxu0 %vm2427_vm0, %v17183_v56 }
 0x139   : > { %v18116_v57 = vpop.f32.mrb[0].mxu0 }
 0x13a   : > { %v18118_v58 = vpop.f32.mrb[1].mxu0 }
 0x13b   : > { %v18121_v60 = vpop.f32.mrb[2].mxu0 }
 0x13c   : > { %v18124_v62 = vpop.f32.mrb[3].mxu0 }
 0x13e   : > { %15152 = vmatmul.mubr.msk.bf16.gmra.mrb[108].mxu0 %vm2427_vm0, %v17184_v59  ;;  %v17205_v59 = vld [vmem:[%s18004_s18 + $0x260] sm:$0xff]  }
 0x13f   : > { %15155 = vmatprep.mubr.msk.bf16.mxu0 %vm2427_vm0, %v17185_v61 }
 0x141   : > { %v18128_v63 = vpop.f32.mrb[4].mxu0 }
 0x142   : > { %v18130_v0 = vpop.f32.mrb[5].mxu0 }
 0x143   : > { %v18133_v2 = vpop.f32.mrb[6].mxu0 }
 0x144   : > { %v18136_v4 = vpop.f32.mrb[7].mxu0 }
 0x146   : > { %15156 = vmatmul.mubr.msk.bf16.gmra.mrb[112].mxu0 %vm2427_vm0, %v17186_v1 }
 0x147   : > { %15159 = vmatprep.mubr.msk.bf16.mxu0 %vm2427_vm0, %v17187_v3 }
 0x149   : > { %v18140_v5 = vpop.f32.mrb[8].mxu0 }
 0x14a   : > { %v18142_v6 = vpop.f32.mrb[9].mxu0 }
 0x14b   : > { %v18145_v8 = vpop.f32.mrb[10].mxu0 }
 0x14c   : > { %v18148_v10 = vpop.f32.mrb[11].mxu0 }
 0x14e   : > { %15160 = vmatmul.mubr.msk.bf16.gmra.mrb[116].mxu0 %vm2427_vm0, %v17188_v7  ;;  %v17206_v7 = vld [vmem:[%s18004_s18 + $0x268] sm:$0xff]  }
 0x14f   : > { %15163 = vmatprep.mubr.msk.bf16.mxu0 %vm2427_vm0, %v17189_v9 }
 0x151   : > { %v18152_v11 = vpop.f32.mrb[12].mxu0 }
 0x152   : > { %v18154_v12 = vpop.f32.mrb[13].mxu0 }
 0x153   : > { %v18157_v14 = vpop.f32.mrb[14].mxu0 }
 0x154   : > { %v18160_v16 = vpop.f32.mrb[15].mxu0 }
 0x156   : > { %15164 = vmatmul.mubr.msk.bf16.gmra.mrb[120].mxu0 %vm2427_vm0, %v17190_v13  ;;  %v17207_v13 = vld [vmem:[%s18004_s18 + $0x270] sm:$0xff]  }
 0x157   : > { %15167 = vmatprep.mubr.msk.bf16.mxu0 %vm2427_vm0, %v17191_v15 }
 0x159   : > { %v18164_v17 = vpop.f32.mrb[16].mxu0 }
 0x15a   : > { %v18166_v18 = vpop.f32.mrb[17].mxu0 }
 0x15b   : > { %v18169_v20 = vpop.f32.mrb[18].mxu0 }
 0x15c   : > { %v18172_v22 = vpop.f32.mrb[19].mxu0 }
 0x15e   : > { %15168 = vmatmul.mubr.msk.bf16.gmra.mrb[124].mxu0 %vm2427_vm0, %v17192_v19 }
 0x15f   : > { %15171 = vmatprep.mubr.msk.bf16.mxu0 %vm2427_vm0, %v17193_v21 }
 0x161   : > { %v18176_v23 = vpop.f32.mrb[20].mxu0 }
 0x162   : > { %v18178_v24 = vpop.f32.mrb[21].mxu0 }
 0x163   : > { %v18181_v26 = vpop.f32.mrb[22].mxu0 }
 0x164   : > { %v18184_v28 = vpop.f32.mrb[23].mxu0 }
 0x166   : > { %15172 = vmatmul.mubr.msk.bf16.gmra.mrb[128].mxu0 %vm2427_vm0, %v17194_v25  ;;  %v17208_v25 = vld [vmem:[%s18004_s18 + $0x278] sm:$0xff]  }
 0x167   : > { %15175 = vmatprep.mubr.msk.bf16.mxu0 %vm2427_vm0, %v17195_v27 }
 0x169   : > { %v18188_v29 = vpop.f32.mrb[24].mxu0 }
 0x16a   : > { %v18190_v30 = vpop.f32.mrb[25].mxu0 }
 0x16b   : > { %v18193_v32 = vpop.f32.mrb[26].mxu0 }
 0x16c   : > { %v18196_v34 = vpop.f32.mrb[27].mxu0 }
 0x16e   : > { %15176 = vmatmul.mubr.msk.bf16.gmra.mrb[132].mxu0 %vm2427_vm0, %v17196_v31  ;;  %v17209_v31 = vld [vmem:[%s18004_s18 + $0x280] sm:$0xff]  }
 0x16f   : > { %15179 = vmatprep.mubr.msk.bf16.mxu0 %vm2427_vm0, %v17197_v33 }
 0x171   : > { %v18200_v35 = vpop.f32.mrb[28].mxu0 }
 0x172   : > { %v18202_v36 = vpop.f32.mrb[29].mxu0 }
 0x173   : > { %v18205_v38 = vpop.f32.mrb[30].mxu0 }
 0x174   : > { %v18208_v40 = vpop.f32.mrb[31].mxu0 }
 0x176   : > { %15180 = vmatmul.mubr.msk.bf16.gmra.mrb[136].mxu0 %vm2427_vm0, %v17198_v37 }
 0x177   : > { %15183 = vmatprep.mubr.msk.bf16.mxu0 %vm2427_vm0, %v17199_v39 }
 0x179   : > { %v18212_v41 = vpop.f32.mrb[32].mxu0 }
 0x17a   : > { %v18214_v42 = vpop.f32.mrb[33].mxu0 }
 0x17b   : > { %v18217_v44 = vpop.f32.mrb[34].mxu0 }
 0x17c   : > { %v18220_v46 = vpop.f32.mrb[35].mxu0 }
 0x17e   : > { %15184 = vmatmul.mubr.msk.bf16.gmra.mrb[140].mxu0 %vm2427_vm0, %v17200_v43  ;;  %v17210_v43 = vld [vmem:[%s18004_s18 + $0x288] sm:$0xff]  }
 0x17f   : > { %15187 = vmatprep.mubr.msk.bf16.mxu0 %vm2427_vm0, %v17201_v45 }
 0x181   : > { %v18224_v47 = vpop.f32.mrb[36].mxu0 }
 0x182   : > { %v18226_v48 = vpop.f32.mrb[37].mxu0 }
 0x183   : > { %v18229_v50 = vpop.f32.mrb[38].mxu0 }
 0x184   : > { %v18232_v52 = vpop.f32.mrb[39].mxu0 }
 0x186   : > { %15188 = vmatmul.mubr.msk.bf16.gmra.mrb[144].mxu0 %vm2427_vm0, %v17202_v49  ;;  %v17211_v49 = vld [vmem:[%s18004_s18 + $0x290] sm:$0xff]  }
 0x187   : > { %15191 = vmatprep.mubr.msk.bf16.mxu0 %vm2427_vm0, %v17203_v51 }
 0x189   : > { %v18236_v53 = vpop.f32.mrb[40].mxu0 }
 0x18a   : > { %v18238_v54 = vpop.f32.mrb[41].mxu0 }
 0x18b   : > { %v18241_v56 = vpop.f32.mrb[42].mxu0 }
 0x18c   : > { %v18244_v61 = vpop.f32.mrb[43].mxu0 }
 0x18e   : > { %15192 = vmatmul.mubr.msk.bf16.gmra.mrb[148].mxu0 %vm2427_vm0, %v17204_v55 }
 0x18f   : > { %15195 = vmatprep.mubr.msk.bf16.mxu0 %vm2427_vm0, %v17205_v59 }
 0x191   : > { %v18248_v1 = vpop.f32.mrb[44].mxu0 }
 0x192   : > { %v18250_v3 = vpop.f32.mrb[45].mxu0 }
 0x193   : > { %v18253_v9 = vpop.f32.mrb[46].mxu0 }
 0x194   : > { %21054 = vst [vmem:[#allocation6_spill] sm:$0xff] %v18253_v9  ;;  %v18256_v15 = vpop.f32.mrb[47].mxu0 }
 0x195   : > { %21055 = vst [vmem:[#allocation7_spill] sm:$0xff] %v18256_v15 }
 0x196   : > { %15196 = vmatmul.mubr.msk.bf16.gmra.mrb[152].mxu0 %vm2427_vm0, %v17206_v7  ;;  %v17212_v7 = vld [vmem:[%s18004_s18 + $0x298] sm:$0xff]  }
 0x197   : > { %15199 = vmatprep.mubr.msk.bf16.mxu0 %vm2427_vm0, %v17207_v13 }
 0x199   : > { %v18260_v19 = vpop.f32.mrb[48].mxu0 }
 0x19a   : > { %21056 = vst [vmem:[#allocation8_spill] sm:$0xff] %v18260_v19  ;;  %v18262_v21 = vpop.f32.mrb[49].mxu0 }
 0x19b   : > { %21057 = vst [vmem:[#allocation9_spill] sm:$0xff] %v18262_v21  ;;  %v18265_v27 = vpop.f32.mrb[50].mxu0 }
 0x19c   : > { %21058 = vst [vmem:[#allocation10_spill] sm:$0xff] %v18265_v27  ;;  %v18268_v33 = vpop.f32.mrb[51].mxu0 }
 0x19d   : > { %21059 = vst [vmem:[#allocation11_spill] sm:$0xff] %v18268_v33 }
 0x19e   : > { %15200 = vmatmul.mubr.msk.bf16.gmra.mrb[156].mxu0 %vm2427_vm0, %v17208_v25  ;;  %v17213_v25 = vld [vmem:[%s18004_s18 + $0x2a0] sm:$0xff]  }
 0x19f   : > { %15203 = vmatprep.mubr.msk.bf16.mxu0 %vm2427_vm0, %v17209_v31 }
 0x1a1   : > { %v18272_v37 = vpop.f32.mrb[52].mxu0 }
 0x1a2   : > { %21060 = vst [vmem:[#allocation12_spill] sm:$0xff] %v18272_v37  ;;  %v18274_v39 = vpop.f32.mrb[53].mxu0 }
 0x1a3   : > { %21061 = vst [vmem:[#allocation13_spill] sm:$0xff] %v18274_v39  ;;  %v18277_v45 = vpop.f32.mrb[54].mxu0 }
 0x1a4   : > { %21062 = vst [vmem:[#allocation14_spill] sm:$0xff] %v18277_v45  ;;  %v18280_v51 = vpop.f32.mrb[55].mxu0 }
 0x1a5   : > { %21063 = vst [vmem:[#allocation15_spill] sm:$0xff] %v18280_v51 }
 0x1a6   : > { %15204 = vmatmul.mubr.msk.bf16.gmra.mrb[160].mxu0 %vm2427_vm0, %v17210_v43 }
 0x1a7   : > { %15207 = vmatprep.mubr.msk.bf16.mxu0 %vm2427_vm0, %v17211_v49  ;;  %v17214_v49 = vld [vmem:[%s18004_s18 + $0x2a8] sm:$0xff]  }
 0x1a9   : > { %v18284_v55 = vpop.f32.mrb[56].mxu0 }
 0x1aa   : > { %21064 = vst [vmem:[#allocation16_spill] sm:$0xff] %v18284_v55  ;;  %v18286_v59 = vpop.f32.mrb[57].mxu0 }
 0x1ab   : > { %21065 = vst [vmem:[#allocation17_spill] sm:$0xff] %v18286_v59  ;;  %v18289_v13 = vpop.f32.mrb[58].mxu0  ;;  %v17215_v59 = vld [vmem:[%s18004_s18 + $0x2b0] sm:$0xff]  }
 0x1ac   : > { %21066 = vst [vmem:[#allocation18_spill] sm:$0xff] %v18289_v13  ;;  %v18292_v31 = vpop.f32.mrb[59].mxu0  ;;  %v17216_v13 = vld [vmem:[%s18004_s18 + $0x2b8] sm:$0xff]  }
 0x1ad   : > { %21067 = vst [vmem:[#allocation19_spill] sm:$0xff] %v18292_v31  ;;  %v18309_v31 = vld [vmem:[%s21040_s2] ss:$0 sm:$0xff] }
 0x1ae   : > { %15208 = vmatmul.mubr.msk.bf16.gmra.mrb[164].mxu0 %vm2427_vm0, %v17212_v7  ;;  %v2855_v7 = vadd.f32 %v18116_v57, %v18309_v31 }
 0x1af   : > { %15211 = vmatprep.mubr.msk.bf16.mxu0 %vm2427_vm0, %v17213_v25 }
 0x1b0   : > { %v3871_v33 = vmax.f32 %v2855_v7, 0.0 }
 0x1b1   : > { %v18296_v51 = vpop.f32.mrb[60].mxu0 }
 0x1b2   : > { %21068 = vst [vmem:[#allocation20_spill] sm:$0xff] %v18296_v51  ;;  %v18298_v43 = vpop.f32.mrb[61].mxu0 }
 0x1b3   : > { %21069 = vst [vmem:[#allocation21_spill] sm:$0xff] %v18298_v43  ;;  %v18301_v45 = vpop.f32.mrb[62].mxu0 }
 0x1b4   : > { %21070 = vst [vmem:[#allocation22_spill] sm:$0xff] %v18301_v45  ;;  %v18304_v55 = vpop.f32.mrb[63].mxu0  ;;  %v2847_v45 = vadd.f32 %v18309_v31, %v18118_v58 }
 0x1b5   : > { %21071 = vst [vmem:[#allocation23_spill] sm:$0xff] %v18304_v55  ;;  %v2858_v55 = vadd.f32 %v18121_v60, %v18309_v31 }
 0x1b6   : > { %15212 = vmatmul.mubr.msk.bf16.gmra.mrb[168].mxu0 %vm2427_vm0, %v17214_v49  ;;  %v17217_v49 = vld [vmem:[%s18004_s18 + $0x2c0] sm:$0xff]   ;;  %v3869_v58 = vmax.f32 %v2847_v45, 0.0 }
 0x1b7   : > { %15215 = vmatprep.mubr.msk.bf16.mxu0 %vm2427_vm0, %v17215_v59  ;;  %v2850_v59 = vadd.f32 %v18309_v31, %v18124_v62  ;;  %v3872_v60 = vmax.f32 %v2858_v55, 0.0  ;;  %v2874_v55 = vadd.f32 %v18133_v2, %v18309_v31 }
 0x1b9   : > { %v15109_v25 = vpop.f32.mrb[64].mxu0  ;;  %v3870_v62 = vmax.f32 %v2850_v59, 0.0  ;;  %v2866_v59 = vadd.f32 %v18309_v31, %v18136_v4  ;;  %v3876_v2 = vmax.f32 %v2874_v55, 0.0  ;;  %v2879_v55 = vadd.f32 %v18309_v31, %v18142_v6 }
 0x1ba   : > { %v3111_v43 = vadd.f32 %v15109_v25, %v18309_v31  ;;  %v3102_v51 = vpop.f32.mrb[65].mxu0 }
 0x1bb   : > { %v3103_v39 = vadd.f32 %v18309_v31, %v3102_v51  ;;  %v15110_v37 = vpop.f32.mrb[66].mxu0  ;;  %v3874_v4 = vmax.f32 %v2866_v59, 0.0  ;;  %v2890_v59 = vadd.f32 %v18145_v8, %v18309_v31  ;;  %v3877_v6 = vmax.f32 %v2879_v55, 0.0 }
 0x1bc   : > { %v3935_v57 = vmax.f32 %v3111_v43, 0.0  ;;  %v3114_v27 = vadd.f32 %v15110_v37, %v18309_v31  ;;  %v3105_v21 = vpop.f32.mrb[67].mxu0  ;;  %v2903_v55 = vadd.f32 %v18152_v11, %v18309_v31  ;;  %v17223_v11 = vld [vmem:[%s18004_s18 + $0x2f0] sm:$0xff]  }
 0x1bd   : > { %v3933_v19 = vmax.f32 %v3103_v39, 0.0  ;;  %v3106_v25 = vadd.f32 %v18309_v31, %v3105_v21  ;;  %v2871_v39 = vadd.f32 %v18128_v63, %v18309_v31  ;;  %v17219_v63 = vld [vmem:[%s18004_s18 + $0x2d0] sm:$0xff]   ;;  %v3880_v8 = vmax.f32 %v2890_v59, 0.0 }
 0x1be   : > { %v18327_v15 = vmax.f32 %v3871_v33, %v3935_v57  ;;  %v3936_v9 = vmax.f32 %v3114_v27, 0.0  ;;  %15216 = vmatmul.mubr.msk.bf16.gmra.mrb[172].mxu0 %vm2427_vm0, %v17216_v13  ;;  %v2863_v27 = vadd.f32 %v18309_v31, %v18130_v0  ;;  %v17218_v13 = vld [vmem:[%s18004_s18 + $0x2c8] sm:$0xff]   ;;  %v2895_v59 = vadd.f32 %v18309_v31, %v18154_v12 }
 0x1bf   : > { %v18330_v51 = vmax.f32 %v3869_v58, %v3933_v19  ;;  %v3934_v7 = vmax.f32 %v3106_v25, 0.0  ;;  %15219 = vmatprep.mubr.msk.bf16.mxu0 %vm2427_vm0, %v17217_v49  ;;  %v3875_v49 = vmax.f32 %v2871_v39, 0.0 }
 0x1c0   : > { %v18333_v37 = vmax.f32 %v3872_v60, %v3936_v9  ;;  %v3873_v0 = vmax.f32 %v2863_v27, 0.0  ;;  %v2887_v27 = vadd.f32 %v18140_v5, %v18309_v31  ;;  %v17221_v5 = vld [vmem:[%s18004_s18 + $0x2e0] sm:$0xff]   ;;  %v3881_v12 = vmax.f32 %v2895_v59, 0.0 }
 0x1c1   : > { %v18337_v21 = vmax.f32 %v3870_v62, %v3934_v7  ;;  %v15113_v33 = vpop.f32.mrb[68].mxu0  ;;  %v2919_v59 = vadd.f32 %v18164_v17, %v18309_v31  ;;  %v17225_v17 = vld [vmem:[%s18004_s18 + $0x300] sm:$0xff]  }
 0x1c2   : > { %v3127_v45 = vadd.f32 %v15113_v33, %v18309_v31  ;;  %v3118_v19 = vpop.f32.mrb[69].mxu0 }
 0x1c3   : > { %v3119_v43 = vadd.f32 %v18309_v31, %v3118_v19  ;;  %v15114_v9 = vpop.f32.mrb[70].mxu0 }
 0x1c4   : > { %v3939_v57 = vmax.f32 %v3127_v45, 0.0  ;;  %v3130_v58 = vadd.f32 %v15114_v9, %v18309_v31  ;;  %v3121_v25 = vpop.f32.mrb[71].mxu0 }
 0x1c5   : > { %v3937_v60 = vmax.f32 %v3119_v43, 0.0  ;;  %v3122_v62 = vadd.f32 %v18309_v31, %v3121_v25  ;;  %v2882_v25 = vadd.f32 %v18309_v31, %v18148_v10 }
 0x1c6   : > { %v18351_v7 = vmax.f32 %v3875_v49, %v3939_v57  ;;  %v3940_v33 = vmax.f32 %v3130_v58, 0.0  ;;  %15220 = vmatmul.mubr.msk.bf16.gmra.mrb[176].mxu0 %vm2427_vm0, %v17218_v13  ;;  %v17220_v57 = vld [vmem:[%s18004_s18 + $0x2d8] sm:$0xff]  }
 0x1c7   : > { %v18354_v19 = vmax.f32 %v3873_v0, %v3937_v60  ;;  %v3938_v39 = vmax.f32 %v3122_v62, 0.0  ;;  %15223 = vmatprep.mubr.msk.bf16.mxu0 %vm2427_vm0, %v17219_v63  ;;  %v3879_v0 = vmax.f32 %v2887_v27, 0.0  ;;  %v3878_v10 = vmax.f32 %v2882_v25, 0.0 }
 0x1c8   : > { %v18357_v45 = vmax.f32 %v3876_v2, %v3940_v33  ;;  %v2906_v25 = vadd.f32 %v18157_v14, %v18309_v31 }
 0x1c9   : > { %v18361_v43 = vmax.f32 %v3874_v4, %v3938_v39  ;;  %v15117_v9 = vpop.f32.mrb[72].mxu0 }
 0x1ca   : > { %v3143_v13 = vadd.f32 %v15117_v9, %v18309_v31  ;;  %v3134_v49 = vpop.f32.mrb[73].mxu0  ;;  %v3884_v14 = vmax.f32 %v2906_v25, 0.0  ;;  %v2911_v25 = vadd.f32 %v18309_v31, %v18166_v18 }
 0x1cb   : > { %v3135_v63 = vadd.f32 %v18309_v31, %v3134_v49  ;;  %v15118_v58 = vpop.f32.mrb[74].mxu0 }
 0x1cc   : > { %v3943_v60 = vmax.f32 %v3143_v13, 0.0  ;;  %v3146_v62 = vadd.f32 %v15118_v58, %v18309_v31  ;;  %v3137_v2 = vpop.f32.mrb[75].mxu0  ;;  %v3885_v18 = vmax.f32 %v2911_v25, 0.0  ;;  %v2935_v25 = vadd.f32 %v18176_v23, %v18309_v31  ;;  %v17227_v23 = vld [vmem:[%s18004_s18 + $0x310] sm:$0xff]  }
 0x1cd   : > { %v3941_v33 = vmax.f32 %v3135_v63, 0.0  ;;  %v3138_v4 = vadd.f32 %v18309_v31, %v3137_v2  ;;  %v2898_v2 = vadd.f32 %v18309_v31, %v18160_v16 }
 0x1ce   : > { %v18375_v39 = vmax.f32 %v3879_v0, %v3943_v60  ;;  %v3944_v9 = vmax.f32 %v3146_v62, 0.0  ;;  %15224 = vmatmul.mubr.msk.bf16.gmra.mrb[180].mxu0 %vm2427_vm0, %v17220_v57  ;;  %v17222_v60 = vld [vmem:[%s18004_s18 + $0x2e8] sm:$0xff]  }
 0x1cf   : > { %v18378_v49 = vmax.f32 %v3877_v6, %v3941_v33  ;;  %v3942_v27 = vmax.f32 %v3138_v4, 0.0  ;;  %15227 = vmatprep.mubr.msk.bf16.mxu0 %vm2427_vm0, %v17221_v5  ;;  %v3883_v6 = vmax.f32 %v2903_v55, 0.0  ;;  %v3882_v16 = vmax.f32 %v2898_v2, 0.0 }
 0x1d0   : > { %v18381_v13 = vmax.f32 %v3880_v8, %v3944_v9  ;;  %v2922_v2 = vadd.f32 %v18169_v20, %v18309_v31 }
 0x1d1   : > { %v18385_v63 = vmax.f32 %v3878_v10, %v3942_v27  ;;  %v15121_v58 = vpop.f32.mrb[76].mxu0 }
 0x1d2   : > { %v3159_v57 = vadd.f32 %v15121_v58, %v18309_v31  ;;  %v3150_v0 = vpop.f32.mrb[77].mxu0  ;;  %v3888_v20 = vmax.f32 %v2922_v2, 0.0  ;;  %v2927_v2 = vadd.f32 %v18309_v31, %v18178_v24 }
 0x1d3   : > { %v3151_v5 = vadd.f32 %v18309_v31, %v3150_v0  ;;  %v15122_v62 = vpop.f32.mrb[78].mxu0 }
 0x1d4   : > { %v3947_v33 = vmax.f32 %v3159_v57, 0.0  ;;  %v3162_v4 = vadd.f32 %v15122_v62, %v18309_v31  ;;  %v3153_v8 = vpop.f32.mrb[79].mxu0  ;;  %v3889_v24 = vmax.f32 %v2927_v2, 0.0  ;;  %v2951_v2 = vadd.f32 %v18188_v29, %v18309_v31  ;;  %v17229_v29 = vld [vmem:[%s18004_s18 + $0x320] sm:$0xff]  }
 0x1d5   : > { %v3945_v9 = vmax.f32 %v3151_v5, 0.0  ;;  %v3154_v10 = vadd.f32 %v18309_v31, %v3153_v8  ;;  %v2914_v8 = vadd.f32 %v18309_v31, %v18172_v22 }
 0x1d6   : > { %v18399_v27 = vmax.f32 %v3883_v6, %v3947_v33  ;;  %v3948_v58 = vmax.f32 %v3162_v4, 0.0  ;;  %15228 = vmatmul.mubr.msk.bf16.gmra.mrb[184].mxu0 %vm2427_vm0, %v17222_v60  ;;  %v17224_v33 = vld [vmem:[%s18004_s18 + $0x2f8] sm:$0xff]  }
 0x1d7   : > { %v18402_v0 = vmax.f32 %v3881_v12, %v3945_v9  ;;  %v3946_v55 = vmax.f32 %v3154_v10, 0.0  ;;  %15231 = vmatprep.mubr.msk.bf16.mxu0 %vm2427_vm0, %v17223_v11  ;;  %v3887_v12 = vmax.f32 %v2919_v59, 0.0  ;;  %v3886_v22 = vmax.f32 %v2914_v8, 0.0 }
 0x1d8   : > { %v18405_v57 = vmax.f32 %v3884_v14, %v3948_v58  ;;  %v2938_v8 = vadd.f32 %v18181_v26, %v18309_v31 }
 0x1d9   : > { %v18409_v5 = vmax.f32 %v3882_v16, %v3946_v55  ;;  %v15125_v62 = vpop.f32.mrb[80].mxu0 }
 0x1da   : > { %v3175_v60 = vadd.f32 %v15125_v62, %v18309_v31  ;;  %v3166_v6 = vpop.f32.mrb[81].mxu0  ;;  %v3892_v26 = vmax.f32 %v2938_v8, 0.0  ;;  %v2943_v8 = vadd.f32 %v18309_v31, %v18190_v30 }
 0x1db   : > { %v3167_v11 = vadd.f32 %v18309_v31, %v3166_v6  ;;  %v15126_v4 = vpop.f32.mrb[82].mxu0 }
 0x1dc   : > { %v3951_v9 = vmax.f32 %v3175_v60, 0.0  ;;  %v3178_v10 = vadd.f32 %v15126_v4, %v18309_v31  ;;  %v3169_v14 = vpop.f32.mrb[83].mxu0  ;;  %v3893_v30 = vmax.f32 %v2943_v8, 0.0  ;;  %v2967_v8 = vadd.f32 %v18200_v35, %v18309_v31  ;;  %v17231_v35 = vld [vmem:[%s18004_s18 + $0x330] sm:$0xff]  }
 0x1dd   : > { %v3949_v58 = vmax.f32 %v3167_v11, 0.0  ;;  %v3170_v16 = vadd.f32 %v18309_v31, %v3169_v14  ;;  %v2930_v14 = vadd.f32 %v18309_v31, %v18184_v28 }
 0x1de   : > { %v18423_v55 = vmax.f32 %v3887_v12, %v3951_v9  ;;  %v3952_v62 = vmax.f32 %v3178_v10, 0.0  ;;  %15232 = vmatmul.mubr.msk.bf16.gmra.mrb[188].mxu0 %vm2427_vm0, %v17224_v33  ;;  %v17226_v9 = vld [vmem:[%s18004_s18 + $0x308] sm:$0xff]  }
 0x1df   : > { %v18426_v6 = vmax.f32 %v3885_v18, %v3949_v58  ;;  %v3950_v59 = vmax.f32 %v3170_v16, 0.0  ;;  %15235 = vmatprep.mubr.msk.bf16.mxu0 %vm2427_vm0, %v17225_v17  ;;  %v3891_v18 = vmax.f32 %v2935_v25, 0.0  ;;  %v3890_v28 = vmax.f32 %v2930_v14, 0.0 }
 0x1e0   : > { %v18429_v60 = vmax.f32 %v3888_v20, %v3952_v62  ;;  %v2954_v14 = vadd.f32 %v18193_v32, %v18309_v31 }
 0x1e1   : > { %v18433_v11 = vmax.f32 %v3886_v22, %v3950_v59  ;;  %v15129_v4 = vpop.f32.mrb[84].mxu0 }
 0x1e2   : > { %v3191_v33 = vadd.f32 %v15129_v4, %v18309_v31  ;;  %v3182_v12 = vpop.f32.mrb[85].mxu0  ;;  %v3896_v32 = vmax.f32 %v2954_v14, 0.0  ;;  %v2959_v14 = vadd.f32 %v18309_v31, %v18202_v36 }
 0x1e3   : > { %v3183_v17 = vadd.f32 %v18309_v31, %v3182_v12  ;;  %v15130_v10 = vpop.f32.mrb[86].mxu0 }
 0x1e4   : > { %v3955_v58 = vmax.f32 %v3191_v33, 0.0  ;;  %v3194_v16 = vadd.f32 %v15130_v10, %v18309_v31  ;;  %v3185_v20 = vpop.f32.mrb[87].mxu0  ;;  %v3897_v36 = vmax.f32 %v2959_v14, 0.0  ;;  %v2983_v14 = vadd.f32 %v18212_v41, %v18309_v31  ;;  %v17233_v41 = vld [vmem:[%s18004_s18 + $0x340] sm:$0xff]  }
 0x1e5   : > { %v3953_v62 = vmax.f32 %v3183_v17, 0.0  ;;  %v3186_v22 = vadd.f32 %v18309_v31, %v3185_v20  ;;  %v2946_v20 = vadd.f32 %v18309_v31, %v18196_v34 }
 0x1e6   : > { %v18447_v59 = vmax.f32 %v3891_v18, %v3955_v58  ;;  %v3956_v4 = vmax.f32 %v3194_v16, 0.0  ;;  %15236 = vmatmul.mubr.msk.bf16.gmra.mrb[192].mxu0 %vm2427_vm0, %v17226_v9  ;;  %v17228_v58 = vld [vmem:[%s18004_s18 + $0x318] sm:$0xff]  }
 0x1e7   : > { %v18450_v12 = vmax.f32 %v3889_v24, %v3953_v62  ;;  %v3954_v25 = vmax.f32 %v3186_v22, 0.0  ;;  %15239 = vmatprep.mubr.msk.bf16.mxu0 %vm2427_vm0, %v17227_v23  ;;  %v3895_v24 = vmax.f32 %v2951_v2, 0.0  ;;  %v3894_v34 = vmax.f32 %v2946_v20, 0.0 }
 0x1e8   : > { %21072 = vst [vmem:[#allocation24_spill] sm:$0xff] %v18447_v59  ;;  %v18453_v33 = vmax.f32 %v3892_v26, %v3956_v4  ;;  %v2970_v20 = vadd.f32 %v18205_v38, %v18309_v31 }
 0x1e9   : > { %21073 = vst [vmem:[#allocation25_spill] sm:$0xff] %v18450_v12  ;;  %v18457_v17 = vmax.f32 %v3890_v28, %v3954_v25  ;;  %v15133_v10 = vpop.f32.mrb[88].mxu0 }
 0x1ea   : > { %21074 = vst [vmem:[#allocation26_spill] sm:$0xff] %v18453_v33  ;;  %v3207_v9 = vadd.f32 %v15133_v10, %v18309_v31  ;;  %v3198_v18 = vpop.f32.mrb[89].mxu0  ;;  %v3900_v38 = vmax.f32 %v2970_v20, 0.0  ;;  %v2975_v20 = vadd.f32 %v18309_v31, %v18214_v42 }
 0x1eb   : > { %21075 = vst [vmem:[#allocation27_spill] sm:$0xff] %v18457_v17  ;;  %v3199_v23 = vadd.f32 %v18309_v31, %v3198_v18  ;;  %v15134_v16 = vpop.f32.mrb[90].mxu0 }
 0x1ec   : > { %v3959_v62 = vmax.f32 %v3207_v9, 0.0  ;;  %v3210_v22 = vadd.f32 %v15134_v16, %v18309_v31  ;;  %v3201_v26 = vpop.f32.mrb[91].mxu0  ;;  %v3901_v42 = vmax.f32 %v2975_v20, 0.0  ;;  %v2999_v20 = vadd.f32 %v18224_v47, %v18309_v31 }
 0x1ed   : > { %v3957_v4 = vmax.f32 %v3199_v23, 0.0  ;;  %v3202_v28 = vadd.f32 %v18309_v31, %v3201_v26  ;;  %v2962_v26 = vadd.f32 %v18309_v31, %v18208_v40 }
 0x1ee   : > { %v18471_v25 = vmax.f32 %v3895_v24, %v3959_v62  ;;  %v3960_v10 = vmax.f32 %v3210_v22, 0.0  ;;  %15240 = vmatmul.mubr.msk.bf16.gmra.mrb[196].mxu0 %vm2427_vm0, %v17228_v58  ;;  %v17230_v62 = vld [vmem:[%s18004_s18 + $0x328] sm:$0xff]  }
 0x1ef   : > { %v18474_v18 = vmax.f32 %v3893_v30, %v3957_v4  ;;  %v3958_v2 = vmax.f32 %v3202_v28, 0.0  ;;  %15243 = vmatprep.mubr.msk.bf16.mxu0 %vm2427_vm0, %v17229_v29  ;;  %v3899_v30 = vmax.f32 %v2967_v8, 0.0  ;;  %v3898_v40 = vmax.f32 %v2962_v26, 0.0 }
 0x1f0   : > { %21076 = vst [vmem:[#allocation28_spill] sm:$0xff] %v18471_v25  ;;  %v18477_v9 = vmax.f32 %v3896_v32, %v3960_v10  ;;  %v2986_v26 = vadd.f32 %v18217_v44, %v18309_v31 }
 0x1f1   : > { %21077 = vst [vmem:[#allocation29_spill] sm:$0xff] %v18474_v18  ;;  %v18481_v23 = vmax.f32 %v3894_v34, %v3958_v2  ;;  %v15137_v16 = vpop.f32.mrb[92].mxu0 }
 0x1f2   : > { %21078 = vst [vmem:[#allocation30_spill] sm:$0xff] %v18477_v9  ;;  %v3223_v58 = vadd.f32 %v15137_v16, %v18309_v31  ;;  %v3214_v24 = vpop.f32.mrb[93].mxu0  ;;  %v3904_v44 = vmax.f32 %v2986_v26, 0.0 }
 0x1f3   : > { %21079 = vst [vmem:[#allocation31_spill] sm:$0xff] %v18481_v23  ;;  %v3215_v29 = vadd.f32 %v18309_v31, %v3214_v24  ;;  %v15138_v22 = vpop.f32.mrb[94].mxu0 }
 0x1f4   : > { %v3963_v4 = vmax.f32 %v3223_v58, 0.0  ;;  %v3226_v28 = vadd.f32 %v15138_v22, %v18309_v31  ;;  %v3217_v32 = vpop.f32.mrb[95].mxu0 }
 0x1f5   : > { %v3961_v10 = vmax.f32 %v3215_v29, 0.0  ;;  %v3218_v34 = vadd.f32 %v18309_v31, %v3217_v32  ;;  %v2978_v32 = vadd.f32 %v18309_v31, %v18220_v46 }
 0x1f6   : > { %v18495_v2 = vmax.f32 %v3899_v30, %v3963_v4  ;;  %v3964_v16 = vmax.f32 %v3226_v28, 0.0  ;;  %15244 = vmatmul.mubr.msk.bf16.gmra.mrb[200].mxu0 %vm2427_vm0, %v17230_v62  ;;  %v17232_v4 = vld [vmem:[%s18004_s18 + $0x338] sm:$0xff]  }
 0x1f7   : > { %v18498_v24 = vmax.f32 %v3897_v36, %v3961_v10  ;;  %v3962_v8 = vmax.f32 %v3218_v34, 0.0  ;;  %15247 = vmatprep.mubr.msk.bf16.mxu0 %vm2427_vm0, %v17231_v35  ;;  %v3903_v36 = vmax.f32 %v2983_v14, 0.0  ;;  %v3902_v46 = vmax.f32 %v2978_v32, 0.0 }
 0x1f8   : > { %21080 = vst [vmem:[#allocation32_spill] sm:$0xff] %v18495_v2  ;;  %v18501_v58 = vmax.f32 %v3900_v38, %v3964_v16 }
 0x1f9   : > { %21081 = vst [vmem:[#allocation33_spill] sm:$0xff] %v18498_v24  ;;  %v18505_v29 = vmax.f32 %v3898_v40, %v3962_v8  ;;  %v15141_v22 = vpop.f32.mrb[96].mxu0 }
 0x1fa   : > { %21082 = vst [vmem:[#allocation34_spill] sm:$0xff] %v18501_v58  ;;  %v3239_v62 = vadd.f32 %v15141_v22, %v18309_v31  ;;  %v3230_v30 = vpop.f32.mrb[97].mxu0  ;;  %v17263_v58 = vld [vmem:[%s21041_s3 + $0x10] sm:$0xff]  }
 0x1fb   : > { %21083 = vst [vmem:[#allocation35_spill] sm:$0xff] %v18505_v29  ;;  %v3231_v35 = vadd.f32 %v18309_v31, %v3230_v30  ;;  %v15142_v28 = vpop.f32.mrb[98].mxu0 }
 0x1fc   : > { %v3967_v10 = vmax.f32 %v3239_v62, 0.0  ;;  %v3242_v34 = vadd.f32 %v15142_v28, %v18309_v31  ;;  %v3233_v38 = vpop.f32.mrb[99].mxu0 }
 0x1fd   : > { %v3965_v16 = vmax.f32 %v3231_v35, 0.0  ;;  %v3234_v40 = vadd.f32 %v18309_v31, %v3233_v38  ;;  %v2991_v35 = vadd.f32 %v18309_v31, %v18226_v48  ;;  %v17235_v38 = vld [vmem:[%s18004_s18 + $0x350] sm:$0xff]  }
 0x1fe   : > { %v18519_v8 = vmax.f32 %v3903_v36, %v3967_v10  ;;  %v3968_v22 = vmax.f32 %v3242_v34, 0.0  ;;  %15248 = vmatmul.mubr.msk.bf16.gmra.mrb[204].mxu0 %vm2427_vm0, %v17232_v4  ;;  %v3002_v4 = vadd.f32 %v18229_v50, %v18309_v31  ;;  %v17234_v10 = vld [vmem:[%s18004_s18 + $0x348] sm:$0xff]  }
 0x1ff   : > { %v18522_v30 = vmax.f32 %v3901_v42, %v3965_v16  ;;  %v3966_v14 = vmax.f32 %v3234_v40, 0.0  ;;  %15251 = vmatprep.mubr.msk.bf16.mxu0 %vm2427_vm0, %v17233_v41  ;;  %v2994_v41 = vadd.f32 %v18309_v31, %v18232_v52  ;;  %v3907_v42 = vmax.f32 %v2999_v20, 0.0 }
 0x200   : > { %21084 = vst [vmem:[#allocation36_spill] sm:$0xff] %v18519_v8  ;;  %v18527_v62 = vmax.f32 %v3904_v44, %v3968_v22  ;;  %v3905_v44 = vmax.f32 %v2991_v35, 0.0  ;;  %v3015_v35 = vadd.f32 %v18236_v53, %v18309_v31 }
 0x201   : > { %21085 = vst [vmem:[#allocation37_spill] sm:$0xff] %v18522_v30  ;;  %v18531_v28 = vmax.f32 %v3902_v46, %v3966_v14  ;;  %v15145_v26 = vpop.f32.mrb[100].mxu0  ;;  %v3908_v46 = vmax.f32 %v3002_v4, 0.0  ;;  %v3906_v52 = vmax.f32 %v2994_v41, 0.0  ;;  %v3007_v4 = vadd.f32 %v18309_v31, %v18238_v54 }
 0x202   : > { %21086 = vst [vmem:[#allocation38_spill] sm:$0xff] %v18527_v62  ;;  %v3255_v36 = vadd.f32 %v15145_v26, %v18309_v31  ;;  %v3246_v32 = vpop.f32.mrb[101].mxu0 }
 0x203   : > { %21087 = vst [vmem:[#allocation39_spill] sm:$0xff] %v18531_v28  ;;  %v3247_v47 = vadd.f32 %v18309_v31, %v3246_v32  ;;  %v15146_v34 = vpop.f32.mrb[102].mxu0 }
 0x204   : > { %v3971_v16 = vmax.f32 %v3255_v36, 0.0  ;;  %v3258_v48 = vadd.f32 %v15146_v34, %v18309_v31  ;;  %v3249_v40 = vpop.f32.mrb[103].mxu0 }
 0x205   : > { %v3969_v22 = vmax.f32 %v3247_v47, 0.0  ;;  %v3250_v50 = vadd.f32 %v18309_v31, %v3249_v40  ;;  %v17237_v40 = vld [vmem:[%s18004_s18 + $0x360] sm:$0xff]  }
 0x206   : > { %v18543_v14 = vmax.f32 %v3907_v42, %v3971_v16  ;;  %v3972_v26 = vmax.f32 %v3258_v48, 0.0  ;;  %15252 = vmatmul.mubr.msk.bf16.gmra.mrb[208].mxu0 %vm2427_vm0, %v17234_v10  ;;  %v3018_v10 = vadd.f32 %v18241_v56, %v18309_v31  ;;  %v17236_v16 = vld [vmem:[%s18004_s18 + $0x358] sm:$0xff]  }
 0x207   : > { %v18546_v32 = vmax.f32 %v3905_v44, %v3969_v22  ;;  %v3970_v20 = vmax.f32 %v3250_v50, 0.0  ;;  %15255 = vmatprep.mubr.msk.bf16.mxu0 %vm2427_vm0, %v17235_v38  ;;  %v3010_v38 = vadd.f32 %v18309_v31, %v18244_v61  ;;  %v3911_v44 = vmax.f32 %v3015_v35, 0.0 }
 0x208   : > { %21088 = vst [vmem:[#allocation40_spill] sm:$0xff] %v18543_v14  ;;  %v18551_v36 = vmax.f32 %v3908_v46, %v3972_v26  ;;  %v3909_v46 = vmax.f32 %v3007_v4, 0.0  ;;  %v3031_v4 = vadd.f32 %v18248_v1, %v18309_v31 }
 0x209   : > { %21089 = vst [vmem:[#allocation41_spill] sm:$0xff] %v18546_v32  ;;  %v18555_v47 = vmax.f32 %v3906_v52, %v3970_v20  ;;  %v15149_v34 = vpop.f32.mrb[104].mxu0  ;;  %v3912_v52 = vmax.f32 %v3018_v10, 0.0  ;;  %v3910_v61 = vmax.f32 %v3010_v38, 0.0  ;;  %v3023_v10 = vadd.f32 %v18309_v31, %v18250_v3 }
 0x20a   : > { %21090 = vst [vmem:[#allocation42_spill] sm:$0xff] %v18551_v36  ;;  %v3271_v41 = vadd.f32 %v15149_v34, %v18309_v31  ;;  %v3262_v42 = vpop.f32.mrb[105].mxu0 }
 0x20b   : > { %21091 = vst [vmem:[#allocation43_spill] sm:$0xff] %v18555_v47  ;;  %v3263_v53 = vadd.f32 %v18309_v31, %v3262_v42  ;;  %v15150_v48 = vpop.f32.mrb[106].mxu0 }
 0x20c   : > { %v3975_v22 = vmax.f32 %v3271_v41, 0.0  ;;  %v3274_v54 = vadd.f32 %v15150_v48, %v18309_v31  ;;  %v3265_v50 = vpop.f32.mrb[107].mxu0 }
 0x20d   : > { %v3973_v26 = vmax.f32 %v3263_v53, 0.0  ;;  %v3266_v56 = vadd.f32 %v18309_v31, %v3265_v50  ;;  %v21097_v50 = vld [vmem:[#allocation7_spill] sm:$0xff] }
 0x20e   : > { %v18567_v20 = vmax.f32 %v3911_v44, %v3975_v22  ;;  %v3976_v34 = vmax.f32 %v3274_v54, 0.0  ;;  %15256 = vmatmul.mubr.msk.bf16.gmra.mrb[212].mxu0 %vm2427_vm0, %v17236_v16  ;;  %v21096_v16 = vld [vmem:[#allocation6_spill] sm:$0xff]  ;;  %v17238_v54 = vld [vmem:[%s18004_s18 + $0x368] sm:$0xff]  }
 0x20f   : > { %v18570_v42 = vmax.f32 %v3909_v46, %v3973_v26  ;;  %v3974_v35 = vmax.f32 %v3266_v56, 0.0  ;;  %15259 = vmatprep.mubr.msk.bf16.mxu0 %vm2427_vm0, %v17237_v40  ;;  %v3034_v38 = vadd.f32 %v21096_v16, %v18309_v31  ;;  %v3026_v40 = vadd.f32 %v18309_v31, %v21097_v50  ;;  %v17239_v26 = vld [vmem:[%s18004_s18 + $0x370] sm:$0xff]  }
 0x210   : > { %21092 = vst [vmem:[#allocation44_spill] sm:$0xff] %v18567_v20  ;;  %v18575_v41 = vmax.f32 %v3912_v52, %v3976_v34  ;;  %v3915_v56 = vmax.f32 %v3031_v4, 0.0 }
 0x211   : > { %21093 = vst [vmem:[#allocation45_spill] sm:$0xff] %v18570_v42  ;;  %v18579_v53 = vmax.f32 %v3910_v61, %v3974_v35  ;;  %v15153_v48 = vpop.f32.mrb[108].mxu0  ;;  %v3913_v61 = vmax.f32 %v3023_v10, 0.0  ;;  %v3914_v50 = vmax.f32 %v3026_v40, 0.0 }
 0x212   : > { %21094 = vst [vmem:[#allocation46_spill] sm:$0xff] %v18575_v41  ;;  %v3287_v44 = vadd.f32 %v15153_v48, %v18309_v31  ;;  %v3278_v22 = vpop.f32.mrb[109].mxu0 }
 0x213   : > { %21095 = vst [vmem:[#allocation47_spill] sm:$0xff] %v18579_v53  ;;  %v3279_v1 = vadd.f32 %v18309_v31, %v3278_v22  ;;  %v15154_v46 = vpop.f32.mrb[110].mxu0  ;;  %v3916_v53 = vmax.f32 %v3034_v38, 0.0 }
 0x214   : > { %v3979_v52 = vmax.f32 %v3287_v44, 0.0  ;;  %v3290_v3 = vadd.f32 %v15154_v46, %v18309_v31  ;;  %v3281_v34 = vpop.f32.mrb[111].mxu0  ;;  %v21100_v44 = vld [vmem:[#allocation8_spill] sm:$0xff]  ;;  %v21102_v46 = vld [vmem:[#allocation9_spill] sm:$0xff] }
 0x215   : > { %v3977_v35 = vmax.f32 %v3279_v1, 0.0  ;;  %v3282_v16 = vadd.f32 %v18309_v31, %v3281_v34  ;;  %v3047_v10 = vadd.f32 %v21100_v44, %v18309_v31  ;;  %v3039_v38 = vadd.f32 %v18309_v31, %v21102_v46 }
 0x216   : > { %v18591_v48 = vmax.f32 %v3915_v56, %v3979_v52  ;;  %v3980_v41 = vmax.f32 %v3290_v3, 0.0  ;;  %15260 = vmatmul.mubr.msk.bf16.gmra.mrb[216].mxu0 %vm2427_vm0, %v17238_v54  ;;  %v21104_v54 = vld [vmem:[#allocation10_spill] sm:$0xff] }
 0x217   : > { %v18594_v22 = vmax.f32 %v3913_v61, %v3977_v35  ;;  %v3978_v4 = vmax.f32 %v3282_v16, 0.0  ;;  %15263 = vmatprep.mubr.msk.bf16.mxu0 %vm2427_vm0, %v17239_v26  ;;  %v3050_v40 = vadd.f32 %v21104_v54, %v18309_v31  ;;  %v17240_v61 = vld [vmem:[%s18004_s18 + $0x378] sm:$0xff]   ;;  %v21105_v35 = vld [vmem:[#allocation11_spill] sm:$0xff]  ;;  %v3919_v44 = vmax.f32 %v3047_v10, 0.0 }
 0x218   : > { %21098 = vst [vmem:[#allocation6_spill] sm:$0xff] %v18591_v48  ;;  %v18599_v1 = vmax.f32 %v3916_v53, %v3980_v41  ;;  %v3042_v26 = vadd.f32 %v18309_v31, %v21105_v35  ;;  %v17241_v53 = vld [vmem:[%s18004_s18 + $0x380] sm:$0xff]   ;;  %v3917_v46 = vmax.f32 %v3039_v38, 0.0  ;;  %v21108_v38 = vld [vmem:[#allocation12_spill] sm:$0xff] }
 0x219   : > { %21099 = vst [vmem:[#allocation7_spill] sm:$0xff] %v18594_v22  ;;  %v18603_v56 = vmax.f32 %v3914_v50, %v3978_v4  ;;  %v15157_v52 = vpop.f32.mrb[112].mxu0  ;;  %v3920_v22 = vmax.f32 %v3050_v40, 0.0  ;;  %v3063_v40 = vadd.f32 %v21108_v38, %v18309_v31 }
 0x21a   : > { %21101 = vst [vmem:[#allocation8_spill] sm:$0xff] %v18599_v1  ;;  %v3303_v3 = vadd.f32 %v15157_v52, %v18309_v31  ;;  %v3294_v34 = vpop.f32.mrb[113].mxu0  ;;  %v3918_v10 = vmax.f32 %v3042_v26, 0.0 }
 0x21b   : > { %21103 = vst [vmem:[#allocation9_spill] sm:$0xff] %v18603_v56  ;;  %v3295_v16 = vadd.f32 %v18309_v31, %v3294_v34  ;;  %v15158_v41 = vpop.f32.mrb[114].mxu0  ;;  %v17257_v34 = vld [vmem:[%s21041_s3 + $0x20] sm:$0xff]  }
 0x21c   : > { %v3983_v1 = vmax.f32 %v3303_v3, 0.0  ;;  %v3306_v50 = vadd.f32 %v15158_v41, %v18309_v31  ;;  %v3297_v4 = vpop.f32.mrb[115].mxu0  ;;  %15299 = vmatprep.subr.bf16.mxu1 %v17257_v34  ;;  %v21111_v41 = vld [vmem:[#allocation14_spill] sm:$0xff] }
 0x21d   : > { %v3981_v56 = vmax.f32 %v3295_v16, 0.0  ;;  %v3298_v54 = vadd.f32 %v18309_v31, %v3297_v4  ;;  %v21110_v16 = vld [vmem:[#allocation13_spill] sm:$0xff]  ;;  %15300 = vmatpush3.bf16.msra.mxu1 %v17257_v34  ;;  %v17242_v4 = vld [vmem:[%s18004_s18 + $0x388] sm:$0xff]  }
 0x21e   : > { %v18615_v52 = vmax.f32 %v3919_v44, %v3983_v1  ;;  %v3984_v48 = vmax.f32 %v3306_v50, 0.0  ;;  %15264 = vmatmul.mubr.msk.bf16.gmra.mrb[220].mxu0 %vm2427_vm0, %v17240_v61  ;;  %v3055_v61 = vadd.f32 %v18309_v31, %v21110_v16  ;;  %v18632_v44 = vadd.f32 %v21111_v41, %v18309_v31  ;;  %v17243_v16 = vld [vmem:[%s18004_s18 + $0x390] sm:$0xff]  }
 0x21f   : > { %v18621_v3 = vmax.f32 %v3917_v46, %v3981_v56  ;;  %v3982_v35 = vmax.f32 %v3298_v54, 0.0  ;;  %15267 = vmatprep.mubr.msk.bf16.mxu0 %vm2427_vm0, %v17241_v53 }
 0x220   : > { %21106 = vst [vmem:[#allocation10_spill] sm:$0xff] %v18615_v52  ;;  %v18626_v1 = vmax.f32 %v3920_v22, %v3984_v48  ;;  %v17258_v48 = vld [vmem:[%s21041_s3 + $0x28] sm:$0xff]  }
 0x221   : > { %21107 = vst [vmem:[#allocation11_spill] sm:$0xff] %v18621_v3  ;;  %v18634_v26 = vmax.f32 %v3918_v10, %v3982_v35  ;;  %v15161_v56 = vpop.f32.mrb[116].mxu0  ;;  %v21113_v22 = vld [vmem:[#allocation15_spill] sm:$0xff]  ;;  %v3923_v10 = vmax.f32 %v3063_v40, 0.0  ;;  %15301 = vmatprep.subr.bf16.mxu1 %v17258_v48  ;;  %v18661_v40 = vld [vmem:[%s21041_s3 + $0x30] sm:$0xff]  }
 0x222   : > { %21109 = vst [vmem:[#allocation12_spill] sm:$0xff] %v18626_v1  ;;  %v3319_v53 = vadd.f32 %v15161_v56, %v18309_v31  ;;  %v3310_v50 = vpop.f32.mrb[117].mxu0  ;;  %v18643_v46 = vadd.f32 %v18309_v31, %v21113_v22  ;;  %v3921_v56 = vmax.f32 %v3055_v61, 0.0  ;;  %15302 = vmatpush3.bf16.msra.mxu1 %v17258_v48  ;;  %v21052_v48 = vmov 0  }
 0x223   : > { %21112 = vst [vmem:[#allocation13_spill] sm:$0xff] %v18634_v26  ;;  %v3311_v54 = vadd.f32 %v18309_v31, %v3310_v50  ;;  %v15162_v38 = vpop.f32.mrb[118].mxu0  ;;  %v3924_v26 = vmax.f32 %v18632_v44, 0.0  ;;  %4352 = vst.msk [vmem:[#allocation2 + $0x10] sm:$0xff] %vm4349_vm1, %v21052_v48  ;;  %15303 = vmatprep.subr.bf16.mxu1 %v18661_v40 }
 0x224   : > { %v3987_v35 = vmax.f32 %v3319_v53, 0.0  ;;  %v18648_v34 = vadd.f32 %v15162_v38, %v18309_v31  ;;  %v3313_v41 = vpop.f32.mrb[119].mxu0  ;;  %v3922_v61 = vmax.f32 %v18643_v46, 0.0  ;;  %4350 = vst.msk [vmem:[#allocation2] sm:$0xff] %vm4349_vm1, %v21052_v48  ;;  %4351 = vst.msk [vmem:[#allocation2 + $0x8] sm:$0xff] %vm4349_vm1, %v21052_v48 }
 0x225   : > { %v3985_v1 = vmax.f32 %v3311_v54, 0.0  ;;  %v18652_v3 = vadd.f32 %v18309_v31, %v3313_v41  ;;  %4353 = vst.msk [vmem:[#allocation2 + $0x18] sm:$0xff] %vm4349_vm1, %v21052_v48  ;;  %4354 = vst.msk [vmem:[#allocation2 + $0x20] sm:$0xff] %vm4349_vm1, %v21052_v48 }
 0x226   : > { %v18654_v22 = vmax.f32 %v3923_v10, %v3987_v35  ;;  %v3988_v50 = vmax.f32 %v18648_v34, 0.0  ;;  %15268 = vmatmul.mubr.msk.bf16.gmra.mrb[224].mxu0 %vm2427_vm0, %v17242_v4  ;;  %4355 = vst.msk [vmem:[#allocation2 + $0x28] sm:$0xff] %vm4349_vm1, %v21052_v48  ;;  %4356 = vst.msk [vmem:[#allocation2 + $0x30] sm:$0xff] %vm4349_vm1, %v21052_v48  ;;  %15304 = vmatpush3.bf16.msra.mxu1 %v18661_v40  ;;  %v21120_v34 = vld [vmem:[#allocation18_spill] sm:$0xff] }
 0x227   : > { %v18664_v53 = vmax.f32 %v3921_v56, %v3985_v1  ;;  %v3986_v54 = vmax.f32 %v18652_v3, 0.0  ;;  %15271 = vmatprep.mubr.msk.bf16.mxu0 %vm2427_vm0, %v17243_v16  ;;  %4357 = vst.msk [vmem:[#allocation2 + $0x38] sm:$0xff] %vm4349_vm1, %v21052_v48  ;;  %4358 = vst.msk [vmem:[#allocation2 + $0x40] sm:$0xff] %vm4349_vm1, %v21052_v48  ;;  %v21116_v1 = vld [vmem:[#allocation16_spill] sm:$0xff]  ;;  %v21118_v16 = vld [vmem:[#allocation17_spill] sm:$0xff]  ;;  %v3082_v56 = vadd.f32 %v21120_v34, %v18309_v31 }
 0x228   : > { %21114 = vst [vmem:[#allocation14_spill] sm:$0xff] %v18654_v22  ;;  %4359 = vst.msk [vmem:[#allocation2 + $0x48] sm:$0xff] %vm4349_vm1, %v21052_v48  ;;  %v3079_v4 = vadd.f32 %v21116_v1, %v18309_v31  ;;  %v18802_v38 = vmax.f32 %v3924_v26, %v3988_v50  ;;  %v3071_v10 = vadd.f32 %v18309_v31, %v21118_v16  ;;  %v17244_v50 = vld [vmem:[%s18004_s18 + $0x398] sm:$0xff]   ;;  %v21121_v16 = vld [vmem:[#allocation19_spill] sm:$0xff] }
 0x229   : > { %21115 = vst [vmem:[#allocation15_spill] sm:$0xff] %v18664_v53  ;;  %4360 = vst.msk [vmem:[#allocation2 + $0x50] sm:$0xff] %vm4349_vm1, %v21052_v48  ;;  %v18811_v35 = vmax.f32 %v3922_v61, %v3986_v54  ;;  %v15165_v41 = vpop.f32.mrb[120].mxu0  ;;  %v17260_v1 = vld [vmem:[%s21041_s3 + $0x38] sm:$0xff]   ;;  %v3074_v3 = vadd.f32 %v18309_v31, %v21121_v16  ;;  %v17245_v54 = vld [vmem:[%s18004_s18 + $0x3a0] sm:$0xff]   ;;  %v3928_v22 = vmax.f32 %v3082_v56, 0.0 }
 0x22a   : > { %4361 = vst.msk [vmem:[#allocation2 + $0x58] sm:$0xff] %vm4349_vm1, %v21052_v48  ;;  %4363 = vst.msk [vmem:[#allocation2 + $0x1e0] sm:$0xff] %vm4349_vm1, %v21052_v48  ;;  %v3335_v44 = vadd.f32 %v15165_v41, %v18309_v31  ;;  %v3326_v26 = vpop.f32.mrb[121].mxu0  ;;  %15305 = vmatprep.subr.bf16.mxu1 %v17260_v1  ;;  %v3925_v41 = vmax.f32 %v3071_v10, 0.0  ;;  %v17261_v10 = vld [vmem:[%s21041_s3] sm:$0xff]  }
 0x22b   : > { %4364 = vst.msk [vmem:[#allocation2 + $0x1e8] sm:$0xff] %vm4349_vm1, %v21052_v48  ;;  %4365 = vst.msk [vmem:[#allocation2 + $0x1f0] sm:$0xff] %vm4349_vm1, %v21052_v48  ;;  %v3327_v46 = vadd.f32 %v18309_v31, %v3326_v26  ;;  %v15166_v61 = vpop.f32.mrb[122].mxu0  ;;  %15306 = vmatpush3.bf16.msra.mxu1 %v17260_v1  ;;  %v4476_v26 = vld [vmem:[#allocation2 + $0x10] sm:$0xff]  ;;  %v3926_v16 = vmax.f32 %v3074_v3, 0.0  ;;  %v21128_v3 = vld [vmem:[#allocation22_spill] sm:$0xff] }
 0x22c   : > { %4366 = vst.msk [vmem:[#allocation2 + $0x1f8] sm:$0xff] %vm4349_vm1, %v21052_v48  ;;  %4367 = vst.msk [vmem:[#allocation2 + $0x200] sm:$0xff] %vm4349_vm1, %v21052_v48  ;;  %v3991_v40 = vmax.f32 %v3335_v44, 0.0  ;;  %v3329_v34 = vpop.f32.mrb[123].mxu0  ;;  %15307 = vmatprep.mubr.msk.bf16.mxu1 %vm4349_vm1, %v4476_v26  ;;  %v4477_v56 = vld [vmem:[#allocation2 + $0x18] sm:$0xff]  ;;  %15371 = vmatprep.subr.bf16.mxu1 %v17261_v10 }
 0x22d   : > { %4368 = vst.msk [vmem:[#allocation2 + $0x208] sm:$0xff] %vm4349_vm1, %v21052_v48  ;;  %4369 = vst.msk [vmem:[#allocation2 + $0x210] sm:$0xff] %vm4349_vm1, %v21052_v48  ;;  %v3330_v53 = vadd.f32 %v18309_v31, %v3329_v34 }
 0x22e   : > { %4370 = vst.msk [vmem:[#allocation2 + $0x218] sm:$0xff] %vm4349_vm1, %v21052_v48  ;;  %4371 = vst.msk [vmem:[#allocation2 + $0x220] sm:$0xff] %vm4349_vm1, %v21052_v48  ;;  %15272 = vmatmul.mubr.msk.bf16.gmra.mrb[228].mxu0 %vm2427_vm0, %v17244_v50  ;;  %15308 = vmatmul.mubr.msk.bf16.vlgmr.msra.gmra.mrb[0].mxu1 %vm4349_vm1, %v4477_v56 }
 0x22f   : > { %4372 = vst.msk [vmem:[#allocation2 + $0x228] sm:$0xff] %vm4349_vm1, %v21052_v48  ;;  %4373 = vst.msk [vmem:[#allocation2 + $0x230] sm:$0xff] %vm4349_vm1, %v21052_v48  ;;  %15275 = vmatprep.mubr.msk.bf16.mxu0 %vm2427_vm0, %v17245_v54  ;;  %15372 = vmatpush3.bf16.msra.mxu1 %v17261_v10 }
 0x230   : > { %4374 = vst.msk [vmem:[#allocation2 + $0x238] sm:$0xff] %vm4349_vm1, %v21052_v48  ;;  %4376 = vst.msk [vmem:[#allocation2 + $0x60] sm:$0xff] %vm4349_vm1, %v21052_v48 }
 0x231   : > { %4377 = vst.msk [vmem:[#allocation2 + $0x68] sm:$0xff] %vm4349_vm1, %v21052_v48  ;;  %4388 = vst.msk [vmem:[#allocation2 + $0xb0] sm:$0xff] %vm4349_vm1, %v21052_v48  ;;  %v15169_v1 = vpop.f32.mrb[124].mxu0 }
 0x232   : > { %4389 = vst.msk [vmem:[#allocation2 + $0xb8] sm:$0xff] %vm4349_vm1, %v21052_v48  ;;  %4391 = vst.msk [vmem:[#allocation2 + $0xc0] sm:$0xff] %vm4349_vm1, %v21052_v48  ;;  %v3342_v54 = vpop.f32.mrb[125].mxu0 }
 0x233   : > { %4392 = vst.msk [vmem:[#allocation2 + $0xc8] sm:$0xff] %vm4349_vm1, %v21052_v48  ;;  %4403 = vst.msk [vmem:[#allocation2 + $0x110] sm:$0xff] %vm4349_vm1, %v21052_v48  ;;  %v15170_v26 = vpop.f32.mrb[126].mxu0 }
 0x234   : > { %4404 = vst.msk [vmem:[#allocation2 + $0x118] sm:$0xff] %vm4349_vm1, %v21052_v48  ;;  %4406 = vst.msk [vmem:[#allocation2 + $0x120] sm:$0xff] %vm4349_vm1, %v21052_v48 }
 0x235   : > { %4407 = vst.msk [vmem:[#allocation2 + $0x128] sm:$0xff] %vm4349_vm1, %v21052_v48  ;;  %4418 = vst.msk [vmem:[#allocation2 + $0x170] sm:$0xff] %vm4349_vm1, %v21052_v48 }
 0x236   : > { %4419 = vst.msk [vmem:[#allocation2 + $0x178] sm:$0xff] %vm4349_vm1, %v21052_v48  ;;  %4421 = vst.msk [vmem:[#allocation2 + $0x180] sm:$0xff] %vm4349_vm1, %v21052_v48 }
 0x237   : > { %4422 = vst.msk [vmem:[#allocation2 + $0x188] sm:$0xff] %vm4349_vm1, %v21052_v48  ;;  %4433 = vst.msk [vmem:[#allocation2 + $0x1d0] sm:$0xff] %vm4349_vm1, %v21052_v48 }
 0x238   : > { %4434 = vst.msk [vmem:[#allocation2 + $0x1d8] sm:$0xff] %vm4349_vm1, %v21052_v48  ;;  %21117 = vst [vmem:[#allocation16_spill] sm:$0xff] %v18802_v38  ;;  %v3989_v38 = vmax.f32 %v3327_v46, 0.0  ;;  %v3098_v46 = vadd.f32 %v21128_v3, %v18309_v31 }
 0x239   : > { %10571 = vst.msk [vmem:[#allocation4] sm:$0xff] %vm2427_vm0, %v21052_v48  ;;  %10572 = vst.msk [vmem:[#allocation4 + $0x8] sm:$0xff] %vm2427_vm0, %v21052_v48 }
 0x23a   : > { %10573 = vst.msk [vmem:[#allocation4 + $0x10] sm:$0xff] %vm2427_vm0, %v21052_v48  ;;  %10574 = vst.msk [vmem:[#allocation4 + $0x18] sm:$0xff] %vm2427_vm0, %v21052_v48  ;;  %v18830_v20 = vmax.f32 %v3925_v41, %v3989_v38  ;;  %v21126_v38 = vld [vmem:[#allocation21_spill] sm:$0xff]  ;;  %v3932_v3 = vmax.f32 %v3098_v46, 0.0 }
 0x23b   : > { %10575 = vst.msk [vmem:[#allocation4 + $0x20] sm:$0xff] %vm2427_vm0, %v21052_v48  ;;  %10576 = vst.msk [vmem:[#allocation4 + $0x28] sm:$0xff] %vm2427_vm0, %v21052_v48 }
 0x23c   : > { %10577 = vst.msk [vmem:[#allocation4 + $0x30] sm:$0xff] %vm2427_vm0, %v21052_v48  ;;  %10578 = vst.msk [vmem:[#allocation4 + $0x38] sm:$0xff] %vm2427_vm0, %v21052_v48 }
 0x23d   : > { %10580 = vst.msk [vmem:[#allocation4 + $0xc0] sm:$0xff] %vm2427_vm0, %v21052_v48  ;;  %10581 = vst.msk [vmem:[#allocation4 + $0xc8] sm:$0xff] %vm2427_vm0, %v21052_v48 }
 0x23e   : > { %10582 = vst.msk [vmem:[#allocation4 + $0xd0] sm:$0xff] %vm2427_vm0, %v21052_v48  ;;  %10583 = vst.msk [vmem:[#allocation4 + $0xd8] sm:$0xff] %vm2427_vm0, %v21052_v48 }
 0x23f   : > { %10584 = vst.msk [vmem:[#allocation4 + $0xe0] sm:$0xff] %vm2427_vm0, %v21052_v48  ;;  %10585 = vst.msk [vmem:[#allocation4 + $0xe8] sm:$0xff] %vm2427_vm0, %v21052_v48 }
 0x240   : > { %10586 = vst.msk [vmem:[#allocation4 + $0xf0] sm:$0xff] %vm2427_vm0, %v21052_v48  ;;  %10587 = vst.msk [vmem:[#allocation4 + $0xf8] sm:$0xff] %vm2427_vm0, %v21052_v48 }
 0x241   : > { %10589 = vst.msk [vmem:[#allocation4 + $0x40] sm:$0xff] %vm2427_vm0, %v21052_v48  ;;  %10590 = vst.msk [vmem:[#allocation4 + $0x48] sm:$0xff] %vm2427_vm0, %v21052_v48 }
 0x242   : > { %10597 = vst.msk [vmem:[#allocation4 + $0x70] sm:$0xff] %vm2427_vm0, %v21052_v48  ;;  %10598 = vst.msk [vmem:[#allocation4 + $0x78] sm:$0xff] %vm2427_vm0, %v21052_v48 }
 0x243   : > { %10600 = vst.msk [vmem:[#allocation4 + $0x80] sm:$0xff] %vm2427_vm0, %v21052_v48  ;;  %10601 = vst.msk [vmem:[#allocation4 + $0x88] sm:$0xff] %vm2427_vm0, %v21052_v48 }
 0x244   : > { %10608 = vst.msk [vmem:[#allocation4 + $0xb0] sm:$0xff] %vm2427_vm0, %v21052_v48  ;;  %10609 = vst.msk [vmem:[#allocation4 + $0xb8] sm:$0xff] %vm2427_vm0, %v21052_v48  ;;  %v3927_v48 = vmax.f32 %v3079_v4, 0.0  ;;  %v3990_v4 = vmax.f32 %v3330_v53, 0.0  ;;  %v3087_v53 = vadd.f32 %v18309_v31, %v21126_v38 }
 0x245   : > { %21119 = vst [vmem:[#allocation17_spill] sm:$0xff] %v18811_v35  ;;  %v3338_v35 = vadd.f32 %v15166_v61, %v18309_v31  ;;  %21123 = vst [vmem:[#allocation19_spill] sm:$0xff] %v18830_v20  ;;  %v3351_v61 = vadd.f32 %v15169_v1, %v18309_v31 }
 0x246   : > { %v18827_v52 = vmax.f32 %v3927_v48, %v3991_v40  ;;  %v21124_v48 = vld [vmem:[#allocation20_spill] sm:$0xff]  ;;  %v18844_v50 = vmax.f32 %v3926_v16, %v3990_v4  ;;  %v17246_v40 = vld [vmem:[%s18004_s18 + $0x3a8] sm:$0xff]   ;;  %v3929_v38 = vmax.f32 %v3087_v53, 0.0 }
 0x247   : > { %v3992_v42 = vmax.f32 %v3338_v35, 0.0  ;;  %v3095_v35 = vadd.f32 %v21124_v48, %v18309_v31  ;;  %v17247_v16 = vld [vmem:[%s18004_s18 + $0x3b0] sm:$0xff]   ;;  %v3995_v56 = vmax.f32 %v3351_v61, 0.0  ;;  %v3345_v31 = vpop.f32.mrb[127].mxu0  ;;  %15276 = vmatmul.mubr.msk.bf16.gmra.mrb[232].mxu0 %vm2427_vm0, %v17246_v40  ;;  %v4479_v53 = vld [vmem:[#allocation2 + $0x28] sm:$0xff] }
 0x248   : > { %21122 = vst [vmem:[#allocation18_spill] sm:$0xff] %v18827_v52  ;;  %21127 = vst [vmem:[#allocation21_spill] sm:$0xff] %v18844_v50  ;;  %15279 = vmatprep.mubr.msk.bf16.mxu0 %vm2427_vm0, %v17247_v16 }
 0x249   : > { %v18839_v44 = vmax.f32 %v3928_v22, %v3992_v42  ;;  %v18853_v42 = vld [vmem:[%s21040_s2] ss:$0 sm:$0xff]  ;;  %v21129_v22 = vld [vmem:[#allocation23_spill] sm:$0xff]  ;;  %v3931_v4 = vmax.f32 %v3095_v35, 0.0 }
 0x24a   : > { %v3090_v34 = vadd.f32 %v18853_v42, %v21129_v22  ;;  %v3343_v41 = vadd.f32 %v18853_v42, %v3342_v54  ;;  %v3354_v48 = vadd.f32 %v18853_v42, %v15170_v26  ;;  %v3346_v10 = vadd.f32 %v18853_v42, %v3345_v31  ;;  %v4478_v54 = vld [vmem:[#allocation2 + $0x20] sm:$0xff] }
 0x24b   : > { %21125 = vst [vmem:[#allocation20_spill] sm:$0xff] %v18839_v44  ;;  %v18861_v50 = vmax.f32 %v3931_v4, %v3995_v56  ;;  %15311 = vmatprep.mubr.msk.bf16.mxu1 %vm4349_vm1, %v4478_v54  ;;  %v17249_v4 = vld [vmem:[%s18004_s18 + $0x3c0] sm:$0xff]   ;;  %v4481_v56 = vld [vmem:[#allocation2 + $0x38] sm:$0xff] }
 0x24c   : > { %v3993_v1 = vmax.f32 %v3343_v41, 0.0  ;;  %v3996_v44 = vmax.f32 %v3354_v48, 0.0  ;;  %v3930_v22 = vmax.f32 %v3090_v34, 0.0  ;;  %v3994_v35 = vmax.f32 %v3346_v10, 0.0  ;;  %15312 = vmatmul.mubr.msk.bf16.gmra.mrb[4].mxu1 %vm4349_vm1, %v4479_v53  ;;  %v18873_v41 = vpop.f32.mrb[128].mxu0  ;;  %v17248_v34 = vld [vmem:[%s18004_s18 + $0x3b8] sm:$0xff]  }
 0x24d   : > { %21130 = vst [vmem:[#allocation22_spill] sm:$0xff] %v18861_v50  ;;  %v18875_v40 = vpop.f32.mrb[129].mxu0  ;;  %v17251_v10 = vld [vmem:[%s18004_s18 + $0x3d0] sm:$0xff]   ;;  %v4482_v54 = vld [vmem:[#allocation2 + $0x40] sm:$0xff]  ;;  %v17256_v50 = vld [vmem:[%s18004_s18 + $0x3f8] sm:$0xff]  }
 0x24e   : > { %v18864_v20 = vmax.f32 %v3929_v38, %v3993_v1  ;;  %v18868_v61 = vmax.f32 %v3932_v3, %v3996_v44  ;;  %v18871_v46 = vmax.f32 %v3930_v22, %v3994_v35  ;;  %v18878_v26 = vpop.f32.mrb[130].mxu0  ;;  %v4480_v44 = vld [vmem:[#allocation2 + $0x30] sm:$0xff]  ;;  %v17250_v38 = vld [vmem:[%s18004_s18 + $0x3c8] sm:$0xff]  }
 0x24f   : > { %v18881_v16 = vpop.f32.mrb[131].mxu0  ;;  %15280 = vmatmul.mubr.msk.bf16.gmra.mrb[236].mxu0 %vm2427_vm0, %v17248_v34  ;;  %15315 = vmatprep.mubr.msk.bf16.mxu1 %vm4349_vm1, %v4480_v44  ;;  %v4483_v22 = vld [vmem:[#allocation2 + $0x48] sm:$0xff]  ;;  %v17252_v34 = vld [vmem:[%s18004_s18 + $0x3d8] sm:$0xff]   ;;  %v17253_v44 = vld [vmem:[%s18004_s18 + $0x3e0] sm:$0xff]  }
 0x250   : > { %21131 = vst [vmem:[#allocation23_spill] sm:$0xff] %v18864_v20  ;;  %21132 = vst [vmem:[#allocation48_spill] sm:$0xff] %v18868_v61  ;;  %15283 = vmatprep.mubr.msk.bf16.mxu0 %vm2427_vm0, %v17249_v4  ;;  %v18887_v48 = vpop.f32.mrb[132].mxu0 }
 0x251   : > { %21133 = vst [vmem:[#allocation49_spill] sm:$0xff] %v18871_v46  ;;  %v18889_v31 = vpop.f32.mrb[133].mxu0  ;;  %v17255_v46 = vld [vmem:[%s18004_s18 + $0x3f0] sm:$0xff]  }
 0x252   : > { %v18892_v1 = vpop.f32.mrb[134].mxu0 }
 0x253   : > { %v18895_v3 = vpop.f32.mrb[135].mxu0 }
 0x254   : > { %15316 = vmatmul.mubr.msk.bf16.gmra.mrb[8].mxu1 %vm4349_vm1, %v4481_v56  ;;  %v18901_v35 = vpop.f32.mrb[136].mxu0 }
 0x255   : > { %15319 = vmatprep.mubr.msk.bf16.mxu1 %vm4349_vm1, %v4482_v54  ;;  %v18903_v53 = vpop.f32.mrb[137].mxu0  ;;  %v17254_v54 = vld [vmem:[%s18004_s18 + $0x3e8] sm:$0xff]   ;;  %s20837_s18 = sshll.u32 %s13426_s28, 2 }
 0x256   : > { %v18906_v4 = vpop.f32.mrb[138].mxu0  ;;  %p1501_p8 = scmp.lt.s32.totalorder %s20837_s18, 7 }
 0x257   : > { %15284 = vmatmul.mubr.msk.bf16.gmra.mrb[240].mxu0 %vm2427_vm0, %v17250_v38  ;;  %v18909_v56 = vpop.f32.mrb[139].mxu0 }
 0x258   : > { %15287 = vmatprep.mubr.msk.bf16.mxu0 %vm2427_vm0, %v17251_v10  ;;  %v18913_v38 = vpop.f32.mrb[140].mxu0  ;;  %s21261_s18 = smov (!%p1501_p8, %s20837_s18), 7 }
 0x259   : > { %v18915_v10 = vpop.f32.mrb[141].mxu0  ;;  %s17101_s23 = smul.u32 96, %s21261_s18 }
 0x25b   : > { %s20893_s14 = scalar_lea.vmem %s21051_s13, %s17101_s23 }
 0x25c   : > { %15320 = vmatmul.mubr.msk.bf16.gmra.mrb[12].mxu1 %vm4349_vm1, %v4483_v22  ;;  %v18918_v22 = vpop.f32.mrb[142].mxu0 }
 0x25d   : > { %v18921_v61 = vpop.f32.mrb[143].mxu0 }
 0x25e   : > { %v18928_v20 = vpop.f32.mrb[144].mxu0 }
 0x25f   : > { %15288 = vmatmul.mubr.msk.bf16.gmra.mrb[244].mxu0 %vm2427_vm0, %v17252_v34  ;;  %v17262_v34 = vld [vmem:[%s21041_s3 + $0x8] sm:$0xff]  }
 0x260   : > { %15291 = vmatprep.mubr.msk.bf16.mxu0 %vm2427_vm0, %v17253_v44  ;;  %15373 = vmatprep.subr.bf16.mxu1 %v17262_v34  ;;  %v18930_v44 = vpop.f32.mrb[145].mxu0 }
 0x261   : > { %15374 = vmatpush3.bf16.msra.mxu1 %v17262_v34  ;;  %v18933_v52 = vpop.f32.mrb[146].mxu0 }
 0x262   : > { %v18935_v47 = vpop.f32.mrb[147].mxu0  ;;  %15375 = vmatprep.subr.bf16.mxu1 %v17263_v58 }
 0x265   : > { %15376 = vmatpush3.bf16.msra.mxu1 %v17263_v58 }
 0x267   : > { %15292 = vmatmul.mubr.msk.bf16.gmra.mrb[248].mxu0 %vm2427_vm0, %v17254_v54  ;;  %v18938_v54 = vpop.f32.mrb[148].mxu0 }
 0x268   : > { %15295 = vmatprep.mubr.msk.bf16.mxu0 %vm2427_vm0, %v17255_v46  ;;  %v18940_v46 = vpop.f32.mrb[149].mxu0 }
 0x269   : > { %v18942_v36 = vpop.f32.mrb[150].mxu0 }
 0x26a   : > { %v18944_v32 = vpop.f32.mrb[151].mxu0 }
 0x26b   : > { %v18946_v14 = vpop.f32.mrb[152].mxu0 }
 0x26c   : > { %v18948_v28 = vpop.f32.mrb[153].mxu0 }
 0x26d   : > { %21134 = vst [vmem:[#allocation50_spill] sm:$0xff] %v18948_v28  ;;  %v18950_v62 = vpop.f32.mrb[154].mxu0 }
 0x26e   : > { %21135 = vst [vmem:[#allocation51_spill] sm:$0xff] %v18950_v62  ;;  %v18952_v34 = vpop.f32.mrb[155].mxu0 }
 0x26f   : > { %15296 = vmatmul.mubr.msk.bf16.gmra.mrb[252].mxu0 %vm2427_vm0, %v17256_v50  ;;  %21136 = vst [vmem:[#allocation52_spill] sm:$0xff] %v18952_v34 }
 0x271   : > { %v18954_v30 = vpop.f32.mrb[156].mxu0 }
 0x272   : > { %21137 = vst [vmem:[#allocation53_spill] sm:$0xff] %v18954_v30  ;;  %v18956_v8 = vpop.f32.mrb[157].mxu0 }
 0x273   : > { %21138 = vst [vmem:[#allocation54_spill] sm:$0xff] %v18956_v8  ;;  %v18958_v50 = vpop.f32.mrb[158].mxu0 }
 0x274   : > { %21139 = vst [vmem:[#allocation55_spill] sm:$0xff] %v18958_v50  ;;  %v18960_v29 = vpop.f32.mrb[159].mxu0 }
 0x275   : > { %21140 = vst [vmem:[#allocation56_spill] sm:$0xff] %v18960_v29 }
 0x279   : > { %v18965_v24 = vpop.f32.mrb[160].mxu0 }
 0x27a   : > { %21141 = vst [vmem:[#allocation57_spill] sm:$0xff] %v18965_v24  ;;  %v18967_v2 = vpop.f32.mrb[161].mxu0 }
 0x27b   : > { %21142 = vst [vmem:[#allocation58_spill] sm:$0xff] %v18967_v2  ;;  %v18969_v23 = vpop.f32.mrb[162].mxu0 }
 0x27c   : > { %21143 = vst [vmem:[#allocation59_spill] sm:$0xff] %v18969_v23  ;;  %v18971_v9 = vpop.f32.mrb[163].mxu0 }
 0x27d   : > { %21144 = vst [vmem:[#allocation60_spill] sm:$0xff] %v18971_v9 }
 0x281   : > { %v18973_v18 = vpop.f32.mrb[164].mxu0 }
 0x282   : > { %21145 = vst [vmem:[#allocation61_spill] sm:$0xff] %v18973_v18  ;;  %v18975_v8 = vpop.f32.mrb[165].mxu0 }
 0x283   : > { %21146 = vst [vmem:[#allocation62_spill] sm:$0xff] %v18975_v8  ;;  %v18977_v50 = vpop.f32.mrb[166].mxu0 }
 0x284   : > { %21147 = vst [vmem:[#allocation63_spill] sm:$0xff] %v18977_v50  ;;  %v18979_v29 = vpop.f32.mrb[167].mxu0 }
 0x285   : > { %21148 = vst [vmem:[#allocation64_spill] sm:$0xff] %v18979_v29  ;;  %v17264_v29 = vld [vmem:[%s21041_s3 + $0x18] sm:$0xff]  }
 0x286   : > { %15377 = vmatprep.subr.bf16.mxu1 %v17264_v29 }
 0x287   : > { %15378 = vmatpush3.bf16.msra.mxu1 %v17264_v29 }
 0x289   : > { %v18981_v25 = vpop.f32.mrb[168].mxu0 }
 0x28a   : > { %21149 = vst [vmem:[#allocation65_spill] sm:$0xff] %v18981_v25  ;;  %v18983_v30 = vpop.f32.mrb[169].mxu0 }
 0x28b   : > { %21150 = vst [vmem:[#allocation66_spill] sm:$0xff] %v18983_v30  ;;  %v18985_v24 = vpop.f32.mrb[170].mxu0 }
 0x28c   : > { %21151 = vst [vmem:[#allocation67_spill] sm:$0xff] %v18985_v24  ;;  %v18987_v2 = vpop.f32.mrb[171].mxu0 }
 0x28d   : > { %21152 = vst [vmem:[#allocation68_spill] sm:$0xff] %v18987_v2 }
 0x291   : > { %v18989_v58 = vpop.f32.mrb[172].mxu0 }
 0x292   : > { %21153 = vst [vmem:[#allocation69_spill] sm:$0xff] %v18989_v58  ;;  %v18991_v23 = vpop.f32.mrb[173].mxu0 }
 0x293   : > { %21154 = vst [vmem:[#allocation70_spill] sm:$0xff] %v18991_v23  ;;  %v18993_v9 = vpop.f32.mrb[174].mxu0 }
 0x294   : > { %21155 = vst [vmem:[#allocation71_spill] sm:$0xff] %v18993_v9  ;;  %v18995_v18 = vpop.f32.mrb[175].mxu0 }
 0x295   : > { %21156 = vst [vmem:[#allocation72_spill] sm:$0xff] %v18995_v18 }
 0x299   : > { %v19000_v50 = vpop.f32.mrb[176].mxu0 }
 0x29a   : > { %21157 = vst [vmem:[#allocation73_spill] sm:$0xff] %v19000_v50  ;;  %v19002_v30 = vpop.f32.mrb[177].mxu0 }
 0x29b   : > { %21158 = vst [vmem:[#allocation74_spill] sm:$0xff] %v19002_v30  ;;  %v19004_v24 = vpop.f32.mrb[178].mxu0 }
 0x29c   : > { %21159 = vst [vmem:[#allocation75_spill] sm:$0xff] %v19004_v24  ;;  %v19006_v2 = vpop.f32.mrb[179].mxu0 }
 0x29d   : > { %21160 = vst [vmem:[#allocation76_spill] sm:$0xff] %v19006_v2 }
 0x2a1   : > { %v19008_v58 = vpop.f32.mrb[180].mxu0 }
 0x2a2   : > { %21161 = vst [vmem:[#allocation77_spill] sm:$0xff] %v19008_v58  ;;  %v19010_v23 = vpop.f32.mrb[181].mxu0 }
 0x2a3   : > { %21162 = vst [vmem:[#allocation78_spill] sm:$0xff] %v19010_v23  ;;  %v19012_v9 = vpop.f32.mrb[182].mxu0 }
 0x2a4   : > { %21163 = vst [vmem:[#allocation79_spill] sm:$0xff] %v19012_v9  ;;  %v19014_v18 = vpop.f32.mrb[183].mxu0 }
 0x2a5   : > { %21164 = vst [vmem:[#allocation80_spill] sm:$0xff] %v19014_v18  ;;  %v17265_v18 = vld [vmem:[%s21041_s3 + $0x40] sm:$0xff]  }
 0x2a6   : > { %15443 = vmatprep.subr.bf16.mxu1 %v17265_v18 }
 0x2a9   : > { %v19016_v25 = vpop.f32.mrb[184].mxu0 }
 0x2aa   : > { %21165 = vst [vmem:[#allocation81_spill] sm:$0xff] %v19016_v25  ;;  %v19018_v8 = vpop.f32.mrb[185].mxu0  ;;  %v3367_v25 = vadd.f32 %v18853_v42, %v18873_v41 }
 0x2ab   : > { %21166 = vst [vmem:[#allocation82_spill] sm:$0xff] %v19018_v8  ;;  %v19020_v50 = vpop.f32.mrb[186].mxu0 }
 0x2ac   : > { %21167 = vst [vmem:[#allocation83_spill] sm:$0xff] %v19020_v50  ;;  %v19022_v30 = vpop.f32.mrb[187].mxu0  ;;  %v3359_v50 = vadd.f32 %v18853_v42, %v18875_v40  ;;  %v3999_v23 = vmax.f32 %v3367_v25, 0.0 }
 0x2ad   : > { %21168 = vst [vmem:[#allocation84_spill] sm:$0xff] %v19022_v30 }
 0x2ae   : > { %v3997_v40 = vmax.f32 %v3359_v50, 0.0 }
 0x2b1   : > { %v19024_v29 = vpop.f32.mrb[188].mxu0 }
 0x2b2   : > { %21169 = vst [vmem:[#allocation85_spill] sm:$0xff] %v19024_v29  ;;  %v19026_v24 = vpop.f32.mrb[189].mxu0  ;;  %v3370_v29 = vadd.f32 %v18853_v42, %v18878_v26 }
 0x2b3   : > { %21170 = vst [vmem:[#allocation86_spill] sm:$0xff] %v19026_v24  ;;  %v19028_v2 = vpop.f32.mrb[190].mxu0 }
 0x2b4   : > { %21171 = vst [vmem:[#allocation87_spill] sm:$0xff] %v19028_v2  ;;  %v19030_v58 = vpop.f32.mrb[191].mxu0  ;;  %v4000_v62 = vmax.f32 %v3370_v29, 0.0 }
 0x2b5   : > { %21172 = vst [vmem:[#allocation88_spill] sm:$0xff] %v19030_v58  ;;  %v3362_v58 = vadd.f32 %v18853_v42, %v18881_v16  ;;  %v3383_v16 = vadd.f32 %v18853_v42, %v18887_v48  ;;  %v3378_v48 = vadd.f32 %v18853_v42, %v18895_v3 }
 0x2b9   : > { %v15237_v8 = vpop.f32.mrb[192].mxu0 }
 0x2ba   : > { %v3623_v24 = vadd.f32 %v18853_v42, %v15237_v8  ;;  %v3614_v2 = vpop.f32.mrb[193].mxu0  ;;  %v3998_v8 = vmax.f32 %v3362_v58, 0.0 }
 0x2bb   : > { %v3615_v30 = vadd.f32 %v18853_v42, %v3614_v2  ;;  %v15238_v9 = vpop.f32.mrb[194].mxu0 }
 0x2bc   : > { %v4063_v17 = vmax.f32 %v3623_v24, 0.0  ;;  %v3626_v41 = vadd.f32 %v18853_v42, %v15238_v9  ;;  %v3617_v34 = vpop.f32.mrb[195].mxu0  ;;  %v3375_v9 = vadd.f32 %v18853_v42, %v18889_v31  ;;  %v4003_v31 = vmax.f32 %v3383_v16, 0.0 }
 0x2bd   : > { %v4061_v33 = vmax.f32 %v3615_v30, 0.0  ;;  %v3618_v18 = vadd.f32 %v18853_v42, %v3617_v34  ;;  %v3399_v16 = vadd.f32 %v18853_v42, %v18901_v35  ;;  %v3394_v35 = vadd.f32 %v18853_v42, %v18909_v56 }
 0x2be   : > { %v4191_v26 = vmax.f32 %v3999_v23, %v4063_v17  ;;  %v4064_v12 = vmax.f32 %v3626_v41, 0.0  ;;  %v3386_v17 = vadd.f32 %v18853_v42, %v18892_v1  ;;  %v4001_v1 = vmax.f32 %v3375_v9, 0.0 }
 0x2bf   : > { %v4189_v28 = vmax.f32 %v3997_v40, %v4061_v33  ;;  %v4062_v59 = vmax.f32 %v3618_v18, 0.0  ;;  %v3391_v9 = vadd.f32 %v18853_v42, %v18903_v53 }
 0x2c0   : > { %v4255_v2 = vmax.f32 %v18327_v15, %v4191_v26  ;;  %v4192_v25 = vmax.f32 %v4000_v62, %v4064_v12  ;;  %v4004_v40 = vmax.f32 %v3386_v17, 0.0  ;;  %v3402_v17 = vadd.f32 %v18853_v42, %v18906_v4 }
 0x2c1   : > { %v4253_v24 = vmax.f32 %v18330_v51, %v4189_v28  ;;  %v4190_v30 = vmax.f32 %v3998_v8, %v4062_v59  ;;  %v15241_v50 = vpop.f32.mrb[196].mxu0  ;;  %v4005_v4 = vmax.f32 %v3391_v9, 0.0 }
 0x2c2   : > { %v4256_v23 = vmax.f32 %v18333_v37, %v4192_v25  ;;  %v3639_v33 = vadd.f32 %v18853_v42, %v15241_v50  ;;  %v3630_v34 = vpop.f32.mrb[197].mxu0 }
 0x2c3   : > { %v4254_v15 = vmax.f32 %v18337_v21, %v4190_v30  ;;  %v3631_v12 = vadd.f32 %v18853_v42, %v3630_v34  ;;  %v15242_v62 = vpop.f32.mrb[198].mxu0  ;;  %v4002_v21 = vmax.f32 %v3378_v48, 0.0 }
 0x2c4   : > { %v4318_v51 = vpack.c.bf16 %v4256_v23, %v4255_v2  ;;  %v4067_v59 = vmax.f32 %v3639_v33, 0.0  ;;  %v3642_v28 = vadd.f32 %v18853_v42, %v15242_v62  ;;  %v3633_v58 = vpop.f32.mrb[199].mxu0 }
 0x2c5   : > { %v4317_v29 = vpack.c.bf16 %v4254_v15, %v4253_v24  ;;  %v4065_v37 = vmax.f32 %v3631_v12, 0.0  ;;  %v3634_v41 = vadd.f32 %v18853_v42, %v3633_v58  ;;  %v4007_v15 = vmax.f32 %v3399_v16, 0.0 }
 0x2c6   : > { %4380 = vst.msk [vmem:[#allocation2 + $0x78] sm:$0xff] %vm4349_vm1, %v4318_v51  ;;  %v4195_v3 = vmax.f32 %v4003_v31, %v4067_v59  ;;  %v4068_v18 = vmax.f32 %v3642_v28, 0.0  ;;  %v4008_v28 = vmax.f32 %v3402_v17, 0.0 }
 0x2c7   : > { %4379 = vst.msk [vmem:[#allocation2 + $0x70] sm:$0xff] %vm4349_vm1, %v4317_v29  ;;  %v4193_v26 = vmax.f32 %v4001_v1, %v4065_v37  ;;  %v4066_v8 = vmax.f32 %v3634_v41, 0.0  ;;  %v4006_v1 = vmax.f32 %v3394_v35, 0.0 }
 0x2c8   : > { %v4259_v2 = vmax.f32 %v18351_v7, %v4195_v3  ;;  %v4196_v25 = vmax.f32 %v4004_v40, %v4068_v18  ;;  %v3415_v40 = vadd.f32 %v18853_v42, %v18913_v38 }
 0x2c9   : > { %v4257_v24 = vmax.f32 %v18354_v19, %v4193_v26  ;;  %v4194_v30 = vmax.f32 %v4002_v21, %v4066_v8  ;;  %v15245_v50 = vpop.f32.mrb[200].mxu0  ;;  %v3407_v21 = vadd.f32 %v18853_v42, %v18915_v10 }
 0x2ca   : > { %v4260_v23 = vmax.f32 %v18357_v45, %v4196_v25  ;;  %v3655_v33 = vadd.f32 %v18853_v42, %v15245_v50  ;;  %v3646_v34 = vpop.f32.mrb[201].mxu0  ;;  %v4011_v50 = vmax.f32 %v3415_v40, 0.0 }
 0x2cb   : > { %v4258_v7 = vmax.f32 %v18361_v43, %v4194_v30  ;;  %v3647_v48 = vadd.f32 %v18853_v42, %v3646_v34  ;;  %v15246_v53 = vpop.f32.mrb[202].mxu0 }
 0x2cc   : > { %v4320_v19 = vpack.c.bf16 %v4260_v23, %v4259_v2  ;;  %v4071_v12 = vmax.f32 %v3655_v33, 0.0  ;;  %v3658_v62 = vadd.f32 %v18853_v42, %v15246_v53  ;;  %v3649_v31 = vpop.f32.mrb[203].mxu0  ;;  %v3418_v2 = vadd.f32 %v18853_v42, %v18918_v22 }
 0x2cd   : > { %v4319_v51 = vpack.c.bf16 %v4258_v7, %v4257_v24  ;;  %v4069_v45 = vmax.f32 %v3647_v48, 0.0  ;;  %v3650_v59 = vadd.f32 %v18853_v42, %v3649_v31  ;;  %v19087_v41 = vld [vmem:[#allocation2 + $0x78] sm:$0xff]  ;;  %v4009_v22 = vmax.f32 %v3407_v21, 0.0 }
 0x2ce   : > { %4382 = vst.msk [vmem:[#allocation2 + $0x88] sm:$0xff] %vm4349_vm1, %v4320_v19  ;;  %v4199_v56 = vmax.f32 %v4007_v15, %v4071_v12  ;;  %v4072_v58 = vmax.f32 %v3658_v62, 0.0  ;;  %v19082_v43 = vld [vmem:[#allocation2 + $0x70] sm:$0xff]  ;;  %v4012_v7 = vmax.f32 %v3418_v2, 0.0  ;;  %v3431_v62 = vadd.f32 %v18853_v42, %v18928_v20 }
 0x2cf   : > { %4381 = vst.msk [vmem:[#allocation2 + $0x80] sm:$0xff] %vm4349_vm1, %v4319_v51  ;;  %v4197_v29 = vmax.f32 %v4005_v4, %v4069_v45  ;;  %v4070_v37 = vmax.f32 %v3650_v59, 0.0  ;;  %15323 = vmatprep.mubr.msk.bf16.mxu1 %vm4349_vm1, %v19082_v43  ;;  %v3423_v51 = vadd.f32 %v18853_v42, %v18930_v44 }
 0x2d0   : > { %v4263_v3 = vmax.f32 %v18375_v39, %v4199_v56  ;;  %v4200_v18 = vmax.f32 %v4008_v28, %v4072_v58  ;;  %15324 = vmatmul.mubr.msk.bf16.gmra.mrb[16].mxu1 %vm4349_vm1, %v19087_v41  ;;  %v3410_v39 = vadd.f32 %v18853_v42, %v18921_v61  ;;  %v3434_v56 = vadd.f32 %v18853_v42, %v18933_v52 }
 0x2d1   : > { %v4261_v26 = vmax.f32 %v18378_v49, %v4197_v29  ;;  %v4198_v8 = vmax.f32 %v4006_v1, %v4070_v37  ;;  %v15249_v16 = vpop.f32.mrb[204].mxu0  ;;  %v4015_v40 = vmax.f32 %v3431_v62, 0.0  ;;  %v4013_v52 = vmax.f32 %v3423_v51, 0.0 }
 0x2d2   : > { %v4264_v25 = vmax.f32 %v18381_v13, %v4200_v18  ;;  %v3671_v38 = vadd.f32 %v18853_v42, %v15249_v16  ;;  %v3662_v9 = vpop.f32.mrb[205].mxu0  ;;  %v4010_v53 = vmax.f32 %v3410_v39, 0.0  ;;  %v4016_v16 = vmax.f32 %v3434_v56, 0.0  ;;  %v21173_v56 = vld [vmem:[#allocation24_spill] sm:$0xff] }
 0x2d3   : > { %v4262_v24 = vmax.f32 %v18385_v63, %v4198_v8  ;;  %v3663_v30 = vadd.f32 %v18853_v42, %v3662_v9  ;;  %v15250_v10 = vpop.f32.mrb[206].mxu0 }
 0x2d4   : > { %v4322_v49 = vpack.c.bf16 %v4264_v25, %v4263_v3  ;;  %v4075_v17 = vmax.f32 %v3671_v38, 0.0  ;;  %v3674_v23 = vadd.f32 %v18853_v42, %v15250_v10  ;;  %v3665_v33 = vpop.f32.mrb[207].mxu0 }
 0x2d5   : > { %v4321_v34 = vpack.c.bf16 %v4262_v24, %v4261_v26  ;;  %v4073_v13 = vmax.f32 %v3663_v30, 0.0  ;;  %v3666_v35 = vadd.f32 %v18853_v42, %v3665_v33  ;;  %v19113_v12 = vld [vmem:[#allocation2 + $0x88] sm:$0xff]  ;;  %v3447_v24 = vadd.f32 %v18853_v42, %v18938_v54 }
 0x2d6   : > { %4384 = vst.msk [vmem:[#allocation2 + $0x98] sm:$0xff] %vm4349_vm1, %v4322_v49  ;;  %v4203_v61 = vmax.f32 %v4011_v50, %v4075_v17  ;;  %v4076_v48 = vmax.f32 %v3674_v23, 0.0  ;;  %v19108_v63 = vld [vmem:[#allocation2 + $0x80] sm:$0xff]  ;;  %v3439_v50 = vadd.f32 %v18853_v42, %v18940_v46  ;;  %v3450_v33 = vadd.f32 %v18853_v42, %v18942_v36 }
 0x2d7   : > { %4383 = vst.msk [vmem:[#allocation2 + $0x90] sm:$0xff] %vm4349_vm1, %v4321_v34  ;;  %v4201_v15 = vmax.f32 %v4009_v22, %v4073_v13  ;;  %v4074_v19 = vmax.f32 %v3666_v35, 0.0  ;;  %15327 = vmatprep.mubr.msk.bf16.mxu1 %vm4349_vm1, %v19108_v63 }
 0x2d8   : > { %v4267_v31 = vmax.f32 %v18399_v27, %v4203_v61  ;;  %v4204_v4 = vmax.f32 %v4012_v7, %v4076_v48  ;;  %15328 = vmatmul.mubr.msk.bf16.gmra.mrb[20].mxu1 %vm4349_vm1, %v19113_v12  ;;  %v3426_v27 = vadd.f32 %v18853_v42, %v18935_v47  ;;  %v4019_v7 = vmax.f32 %v3447_v24, 0.0 }
 0x2d9   : > { %v4265_v45 = vmax.f32 %v18402_v0, %v4201_v15  ;;  %v4202_v59 = vmax.f32 %v4010_v53, %v4074_v19  ;;  %v15253_v28 = vpop.f32.mrb[208].mxu0  ;;  %v4017_v36 = vmax.f32 %v3439_v50, 0.0  ;;  %v4020_v62 = vmax.f32 %v3450_v33, 0.0 }
 0x2da   : > { %v4268_v58 = vmax.f32 %v18405_v57, %v4204_v4  ;;  %v3687_v20 = vadd.f32 %v18853_v42, %v15253_v28  ;;  %v3678_v1 = vpop.f32.mrb[209].mxu0  ;;  %v4014_v25 = vmax.f32 %v3426_v27, 0.0  ;;  %v3463_v28 = vadd.f32 %v18853_v42, %v18946_v14 }
 0x2db   : > { %v4266_v29 = vmax.f32 %v18409_v5, %v4202_v59  ;;  %v3679_v37 = vadd.f32 %v18853_v42, %v3678_v1  ;;  %v15254_v44 = vpop.f32.mrb[210].mxu0  ;;  %v21174_v1 = vld [vmem:[#allocation50_spill] sm:$0xff] }
 0x2dc   : > { %v4324_v0 = vpack.c.bf16 %v4268_v58, %v4267_v31  ;;  %v4079_v3 = vmax.f32 %v3687_v20, 0.0  ;;  %v3690_v18 = vadd.f32 %v18853_v42, %v15254_v44  ;;  %v3681_v21 = vpop.f32.mrb[211].mxu0  ;;  %v3455_v27 = vadd.f32 %v18853_v42, %v21174_v1 }
 0x2dd   : > { %v4323_v26 = vpack.c.bf16 %v4266_v29, %v4265_v45  ;;  %v4077_v57 = vmax.f32 %v3679_v37, 0.0  ;;  %v3682_v8 = vadd.f32 %v18853_v42, %v3681_v21  ;;  %v19139_v39 = vld [vmem:[#allocation2 + $0x98] sm:$0xff] }
 0x2de   : > { %4386 = vst.msk [vmem:[#allocation2 + $0xa8] sm:$0xff] %vm4349_vm1, %v4324_v0  ;;  %v4207_v47 = vmax.f32 %v4015_v40, %v4079_v3  ;;  %v4080_v2 = vmax.f32 %v3690_v18, 0.0  ;;  %v19134_v5 = vld [vmem:[#allocation2 + $0x90] sm:$0xff]  ;;  %v21175_v29 = vld [vmem:[#allocation25_spill] sm:$0xff]  ;;  %v21176_v0 = vld [vmem:[#allocation51_spill] sm:$0xff] }
 0x2df   : > { %4385 = vst.msk [vmem:[#allocation2 + $0xa0] sm:$0xff] %vm4349_vm1, %v4323_v26  ;;  %v4205_v38 = vmax.f32 %v4013_v52, %v4077_v57  ;;  %v4078_v9 = vmax.f32 %v3682_v8, 0.0  ;;  %15331 = vmatprep.mubr.msk.bf16.mxu1 %vm4349_vm1, %v19134_v5  ;;  %v3466_v3 = vadd.f32 %v18853_v42, %v21176_v0  ;;  %v21177_v18 = vld [vmem:[#allocation26_spill] sm:$0xff]  ;;  %v21178_v26 = vld [vmem:[#allocation52_spill] sm:$0xff]  ;;  %v21179_v8 = vld [vmem:[#allocation27_spill] sm:$0xff] }
 0x2e0   : > { %v4271_v30 = vmax.f32 %v18423_v55, %v4207_v47  ;;  %v4208_v10 = vmax.f32 %v4016_v16, %v4080_v2  ;;  %15332 = vmatmul.mubr.msk.bf16.gmra.mrb[24].mxu1 %vm4349_vm1, %v19139_v39  ;;  %v3442_v55 = vadd.f32 %v18853_v42, %v18944_v32  ;;  %v3458_v57 = vadd.f32 %v18853_v42, %v21178_v26 }
 0x2e1   : > { %v4269_v49 = vmax.f32 %v18426_v6, %v4205_v38  ;;  %v4206_v17 = vmax.f32 %v4014_v25, %v4078_v9  ;;  %v15257_v23 = vpop.f32.mrb[212].mxu0  ;;  %v4023_v25 = vmax.f32 %v3463_v28, 0.0 }
 0x2e2   : > { %v4272_v22 = vmax.f32 %v18429_v60, %v4208_v10  ;;  %v3703_v54 = vadd.f32 %v18853_v42, %v15257_v23  ;;  %v3694_v34 = vpop.f32.mrb[213].mxu0  ;;  %v4018_v4 = vmax.f32 %v3442_v55, 0.0  ;;  %v4021_v10 = vmax.f32 %v3455_v27, 0.0 }
 0x2e3   : > { %v4270_v13 = vmax.f32 %v18433_v11, %v4206_v17  ;;  %v3695_v35 = vadd.f32 %v18853_v42, %v3694_v34  ;;  %v15258_v46 = vpop.f32.mrb[214].mxu0  ;;  %v4024_v23 = vmax.f32 %v3466_v3, 0.0  ;;  %v4022_v34 = vmax.f32 %v3458_v57, 0.0 }
 0x2e4   : > { %v4326_v6 = vpack.c.bf16 %v4272_v22, %v4271_v30  ;;  %v4083_v61 = vmax.f32 %v3703_v54, 0.0  ;;  %v3706_v48 = vadd.f32 %v18853_v42, %v15258_v46  ;;  %v3697_v53 = vpop.f32.mrb[215].mxu0  ;;  %v21180_v46 = vld [vmem:[#allocation53_spill] sm:$0xff] }
 0x2e5   : > { %v4325_v15 = vpack.c.bf16 %v4270_v13, %v4269_v49  ;;  %v4081_v60 = vmax.f32 %v3695_v35, 0.0  ;;  %v3698_v19 = vadd.f32 %v18853_v42, %v3697_v53  ;;  %v19165_v59 = vld [vmem:[#allocation2 + $0xa8] sm:$0xff]  ;;  %v21182_v53 = vld [vmem:[#allocation54_spill] sm:$0xff] }
 0x2e6   : > { %4395 = vst.msk [vmem:[#allocation2 + $0xd8] sm:$0xff] %vm4349_vm1, %v4326_v6  ;;  %v4211_v32 = vmax.f32 %v4019_v7, %v4083_v61  ;;  %v4084_v31 = vmax.f32 %v3706_v48, 0.0  ;;  %v19160_v11 = vld [vmem:[#allocation2 + $0xa0] sm:$0xff]  ;;  %v3479_v7 = vadd.f32 %v18853_v42, %v21180_v46  ;;  %v21181_v6 = vld [vmem:[#allocation28_spill] sm:$0xff] }
 0x2e7   : > { %4394 = vst.msk [vmem:[#allocation2 + $0xd0] sm:$0xff] %vm4349_vm1, %v4325_v15  ;;  %v4209_v51 = vmax.f32 %v4017_v36, %v4081_v60  ;;  %v4082_v45 = vmax.f32 %v3698_v19, 0.0  ;;  %15335 = vmatprep.mubr.msk.bf16.mxu1 %vm4349_vm1, %v19160_v11  ;;  %v3471_v36 = vadd.f32 %v18853_v42, %v21182_v53  ;;  %v21183_v15 = vld [vmem:[#allocation29_spill] sm:$0xff]  ;;  %v21193_v46 = vld [vmem:[#allocation34_spill] sm:$0xff] }
 0x2e8   : > { %v4275_v58 = vmax.f32 %v21173_v56, %v4211_v32  ;;  %v4212_v20 = vmax.f32 %v4020_v62, %v4084_v31  ;;  %15336 = vmatmul.mubr.msk.bf16.gmra.mrb[28].mxu1 %vm4349_vm1, %v19165_v59  ;;  %v21184_v32 = vld [vmem:[#allocation55_spill] sm:$0xff]  ;;  %v21186_v56 = vld [vmem:[#allocation56_spill] sm:$0xff] }
 0x2e9   : > { %v4273_v37 = vmax.f32 %v21175_v29, %v4209_v51  ;;  %v4210_v44 = vmax.f32 %v4018_v4, %v4082_v45  ;;  %v15261_v40 = vpop.f32.mrb[216].mxu0  ;;  %v3482_v31 = vadd.f32 %v18853_v42, %v21184_v32  ;;  %v21185_v4 = vld [vmem:[#allocation30_spill] sm:$0xff] }
 0x2ea   : > { %v4276_v21 = vmax.f32 %v21177_v18, %v4212_v20  ;;  %v3719_v14 = vadd.f32 %v18853_v42, %v15261_v40  ;;  %v3710_v52 = vpop.f32.mrb[217].mxu0  ;;  %v21187_v20 = vld [vmem:[#allocation31_spill] sm:$0xff]  ;;  %v4025_v18 = vmax.f32 %v3471_v36, 0.0 }
 0x2eb   : > { %v4274_v16 = vmax.f32 %v21179_v8, %v4210_v44  ;;  %v3711_v47 = vadd.f32 %v18853_v42, %v3710_v52  ;;  %v15262_v2 = vpop.f32.mrb[218].mxu0  ;;  %v4028_v26 = vmax.f32 %v3482_v31, 0.0  ;;  %v21195_v36 = vld [vmem:[#allocation35_spill] sm:$0xff] }
 0x2ec   : > { %v4328_v38 = vpack.c.bf16 %v4276_v21, %v4275_v58  ;;  %v4087_v9 = vmax.f32 %v3719_v14, 0.0  ;;  %v3722_v24 = vadd.f32 %v18853_v42, %v15262_v2  ;;  %v3713_v30 = vpop.f32.mrb[219].mxu0  ;;  %v3474_v58 = vadd.f32 %v18853_v42, %v21186_v56 }
 0x2ed   : > { %v4327_v50 = vpack.c.bf16 %v4274_v16, %v4273_v37  ;;  %v4085_v49 = vmax.f32 %v3711_v47, 0.0  ;;  %v3714_v17 = vadd.f32 %v18853_v42, %v3713_v30  ;;  %v19191_v35 = vld [vmem:[#allocation2 + $0xd8] sm:$0xff]  ;;  %v4027_v37 = vmax.f32 %v3479_v7, 0.0  ;;  %v21189_v30 = vld [vmem:[#allocation32_spill] sm:$0xff] }
 0x2ee   : > { %4397 = vst.msk [vmem:[#allocation2 + $0xe8] sm:$0xff] %vm4349_vm1, %v4328_v38  ;;  %v4215_v33 = vmax.f32 %v4023_v25, %v4087_v9  ;;  %v4088_v22 = vmax.f32 %v3722_v24, 0.0  ;;  %v19186_v54 = vld [vmem:[#allocation2 + $0xd0] sm:$0xff]  ;;  %v4026_v47 = vmax.f32 %v3474_v58, 0.0  ;;  %v21188_v9 = vld [vmem:[#allocation57_spill] sm:$0xff] }
 0x2ef   : > { %4396 = vst.msk [vmem:[#allocation2 + $0xe0] sm:$0xff] %vm4349_vm1, %v4327_v50  ;;  %v4213_v55 = vmax.f32 %v4021_v10, %v4085_v49  ;;  %v4086_v13 = vmax.f32 %v3714_v17, 0.0  ;;  %15339 = vmatprep.mubr.msk.bf16.mxu1 %vm4349_vm1, %v19186_v54  ;;  %v3495_v24 = vadd.f32 %v18853_v42, %v21188_v9  ;;  %v21190_v49 = vld [vmem:[#allocation58_spill] sm:$0xff]  ;;  %v21200_v9 = vld [vmem:[#allocation63_spill] sm:$0xff] }
 0x2f0   : > { %v4279_v61 = vmax.f32 %v21181_v6, %v4215_v33  ;;  %v4216_v48 = vmax.f32 %v4024_v23, %v4088_v22  ;;  %15340 = vmatmul.mubr.msk.bf16.gmra.mrb[32].mxu1 %vm4349_vm1, %v19191_v35  ;;  %v3487_v17 = vadd.f32 %v18853_v42, %v21190_v49  ;;  %v21191_v23 = vld [vmem:[#allocation33_spill] sm:$0xff] }
 0x2f1   : > { %v4277_v60 = vmax.f32 %v21183_v15, %v4213_v55  ;;  %v4214_v19 = vmax.f32 %v4022_v34, %v4086_v13  ;;  %v15265_v62 = vpop.f32.mrb[220].mxu0  ;;  %v21192_v55 = vld [vmem:[#allocation59_spill] sm:$0xff] }
 0x2f2   : > { %v4280_v51 = vmax.f32 %v21185_v4, %v4216_v48  ;;  %v3735_v45 = vadd.f32 %v18853_v42, %v15265_v62  ;;  %v3726_v28 = vpop.f32.mrb[221].mxu0  ;;  %v3498_v13 = vadd.f32 %v18853_v42, %v21192_v55  ;;  %v21194_v48 = vld [vmem:[#allocation60_spill] sm:$0xff]  ;;  %v4031_v62 = vmax.f32 %v3495_v24, 0.0 }
 0x2f3   : > { %v4278_v1 = vmax.f32 %v21187_v20, %v4214_v19  ;;  %v3727_v27 = vadd.f32 %v18853_v42, %v3726_v28  ;;  %v15266_v29 = vpop.f32.mrb[222].mxu0  ;;  %v3490_v53 = vadd.f32 %v18853_v42, %v21194_v48  ;;  %v3514_v24 = vadd.f32 %v18853_v42, %v21200_v9 }
 0x2f4   : > { %v4330_v44 = vpack.c.bf16 %v4280_v51, %v4279_v61  ;;  %v4091_v40 = vmax.f32 %v3735_v45, 0.0  ;;  %v3738_v0 = vadd.f32 %v18853_v42, %v15266_v29  ;;  %v3729_v3 = vpop.f32.mrb[223].mxu0  ;;  %v4029_v45 = vmax.f32 %v3487_v17, 0.0  ;;  %v21202_v17 = vld [vmem:[#allocation64_spill] sm:$0xff] }
 0x2f5   : > { %v4329_v21 = vpack.c.bf16 %v4278_v1, %v4277_v60  ;;  %v4089_v14 = vmax.f32 %v3727_v27, 0.0  ;;  %v3730_v52 = vadd.f32 %v18853_v42, %v3729_v3  ;;  %v19217_v38 = vld [vmem:[#allocation2 + $0xe8] sm:$0xff]  ;;  %v4032_v20 = vmax.f32 %v3498_v13, 0.0  ;;  %v21196_v3 = vld [vmem:[#allocation61_spill] sm:$0xff] }
 0x2f6   : > { %4399 = vst.msk [vmem:[#allocation2 + $0xf8] sm:$0xff] %vm4349_vm1, %v4330_v44  ;;  %v4219_v57 = vmax.f32 %v4027_v37, %v4091_v40  ;;  %v4092_v8 = vmax.f32 %v3738_v0, 0.0  ;;  %v19212_v16 = vld [vmem:[#allocation2 + $0xe0] sm:$0xff]  ;;  %v4030_v37 = vmax.f32 %v3490_v53, 0.0 }
 0x2f7   : > { %4398 = vst.msk [vmem:[#allocation2 + $0xf0] sm:$0xff] %vm4349_vm1, %v4329_v21  ;;  %v4217_v2 = vmax.f32 %v4025_v18, %v4089_v14  ;;  %v4090_v25 = vmax.f32 %v3730_v52, 0.0  ;;  %15343 = vmatprep.mubr.msk.bf16.mxu1 %vm4349_vm1, %v19212_v16  ;;  %v3511_v18 = vadd.f32 %v18853_v42, %v21196_v3  ;;  %v21197_v21 = vld [vmem:[#allocation36_spill] sm:$0xff] }
 0x2f8   : > { %v4283_v10 = vmax.f32 %v21189_v30, %v4219_v57  ;;  %v4220_v50 = vmax.f32 %v4028_v26, %v4092_v8  ;;  %15344 = vmatmul.mubr.msk.bf16.gmra.mrb[36].mxu1 %vm4349_vm1, %v19217_v38  ;;  %v21198_v26 = vld [vmem:[#allocation62_spill] sm:$0xff]  ;;  %v21199_v8 = vld [vmem:[#allocation37_spill] sm:$0xff] }
 0x2f9   : > { %v4281_v33 = vmax.f32 %v21191_v23, %v4217_v2  ;;  %v4218_v22 = vmax.f32 %v4026_v47, %v4090_v25  ;;  %v15269_v34 = vpop.f32.mrb[224].mxu0  ;;  %v3503_v57 = vadd.f32 %v18853_v42, %v21198_v26  ;;  %v21201_v30 = vld [vmem:[#allocation38_spill] sm:$0xff]  ;;  %v3506_v23 = vadd.f32 %v18853_v42, %v21202_v17 }
 0x2fa   : > { %v4284_v7 = vmax.f32 %v21193_v46, %v4220_v50  ;;  %v3751_v6 = vadd.f32 %v18853_v42, %v15269_v34  ;;  %v3742_v61 = vpop.f32.mrb[225].mxu0  ;;  %v4035_v13 = vmax.f32 %v3511_v18, 0.0 }
 0x2fb   : > { %v4282_v15 = vmax.f32 %v21195_v36, %v4218_v22  ;;  %v3743_v60 = vadd.f32 %v18853_v42, %v3742_v61  ;;  %v15270_v19 = vpop.f32.mrb[226].mxu0  ;;  %v4033_v48 = vmax.f32 %v3503_v57, 0.0 }
 0x2fc   : > { %v4332_v32 = vpack.c.bf16 %v4284_v7, %v4283_v10  ;;  %v4095_v31 = vmax.f32 %v3751_v6, 0.0  ;;  %v3754_v4 = vadd.f32 %v18853_v42, %v15270_v19  ;;  %v3745_v51 = vpop.f32.mrb[227].mxu0 }
 0x2fd   : > { %v4331_v28 = vpack.c.bf16 %v4282_v15, %v4281_v33  ;;  %v4093_v56 = vmax.f32 %v3743_v60, 0.0  ;;  %v3746_v58 = vadd.f32 %v18853_v42, %v3745_v51  ;;  %v19243_v0 = vld [vmem:[#allocation2 + $0xf8] sm:$0xff]  ;;  %v21203_v33 = vld [vmem:[#allocation39_spill] sm:$0xff]  ;;  %v4036_v60 = vmax.f32 %v3514_v24, 0.0 }
 0x2fe   : > { %4401 = vst.msk [vmem:[#allocation2 + $0x108] sm:$0xff] %vm4349_vm1, %v4332_v32  ;;  %v4223_v1 = vmax.f32 %v4031_v62, %v4095_v31  ;;  %v4096_v27 = vmax.f32 %v3754_v4, 0.0  ;;  %v19238_v29 = vld [vmem:[#allocation2 + $0xf0] sm:$0xff]  ;;  %v4034_v31 = vmax.f32 %v3506_v23, 0.0 }
 0x2ff   : > { %4400 = vst.msk [vmem:[#allocation2 + $0x100] sm:$0xff] %vm4349_vm1, %v4331_v28  ;;  %v4221_v44 = vmax.f32 %v4029_v45, %v4093_v56  ;;  %v4094_v40 = vmax.f32 %v3746_v58, 0.0  ;;  %15347 = vmatprep.mubr.msk.bf16.mxu1 %vm4349_vm1, %v19238_v29  ;;  %v21204_v28 = vld [vmem:[#allocation65_spill] sm:$0xff]  ;;  %v21205_v58 = vld [vmem:[#allocation40_spill] sm:$0xff] }
 0x300   : > { %v4287_v14 = vmax.f32 %v21197_v21, %v4223_v1  ;;  %v4224_v52 = vmax.f32 %v4032_v20, %v4096_v27  ;;  %15348 = vmatmul.mubr.msk.bf16.gmra.mrb[40].mxu1 %vm4349_vm1, %v19243_v0  ;;  %v3527_v56 = vadd.f32 %v18853_v42, %v21204_v28  ;;  %v21206_v27 = vld [vmem:[#allocation66_spill] sm:$0xff]  ;;  %v21208_v21 = vld [vmem:[#allocation67_spill] sm:$0xff]  ;;  %v21215_v28 = vld [vmem:[#allocation45_spill] sm:$0xff] }
 0x301   : > { %v4285_v47 = vmax.f32 %v21199_v8, %v4221_v44  ;;  %v4222_v2 = vmax.f32 %v4030_v37, %v4094_v40  ;;  %v15273_v25 = vpop.f32.mrb[228].mxu0  ;;  %v3519_v37 = vadd.f32 %v18853_v42, %v21206_v27  ;;  %v21207_v44 = vld [vmem:[#allocation41_spill] sm:$0xff] }
 0x302   : > { %v4288_v10 = vmax.f32 %v21201_v30, %v4224_v52  ;;  %v3767_v50 = vadd.f32 %v18853_v42, %v15273_v25  ;;  %v3758_v49 = vpop.f32.mrb[229].mxu0  ;;  %v21209_v52 = vld [vmem:[#allocation42_spill] sm:$0xff]  ;;  %v21211_v25 = vld [vmem:[#allocation43_spill] sm:$0xff] }
 0x303   : > { %v4286_v22 = vmax.f32 %v21203_v33, %v4222_v2  ;;  %v3759_v34 = vadd.f32 %v18853_v42, %v3758_v49  ;;  %v15274_v55 = vpop.f32.mrb[230].mxu0  ;;  %v4037_v33 = vmax.f32 %v3519_v37, 0.0  ;;  %v21217_v37 = vld [vmem:[#allocation46_spill] sm:$0xff] }
 0x304   : > { %v4334_v46 = vpack.c.bf16 %v4288_v10, %v4287_v14  ;;  %v4099_v7 = vmax.f32 %v3767_v50, 0.0  ;;  %v3770_v6 = vadd.f32 %v18853_v42, %v15274_v55  ;;  %v3761_v61 = vpop.f32.mrb[231].mxu0  ;;  %v3530_v14 = vadd.f32 %v18853_v42, %v21208_v21  ;;  %v21218_v21 = vld [vmem:[#allocation72_spill] sm:$0xff] }
 0x305   : > { %v4333_v53 = vpack.c.bf16 %v4286_v22, %v4285_v47  ;;  %v4097_v36 = vmax.f32 %v3759_v34, 0.0  ;;  %v3762_v15 = vadd.f32 %v18853_v42, %v3761_v61  ;;  %v19269_v45 = vld [vmem:[#allocation2 + $0x108] sm:$0xff]  ;;  %v21210_v47 = vld [vmem:[#allocation68_spill] sm:$0xff]  ;;  %v4039_v10 = vmax.f32 %v3527_v56, 0.0 }
 0x306   : > { %4410 = vst.msk [vmem:[#allocation2 + $0x138] sm:$0xff] %vm4349_vm1, %v4334_v46  ;;  %v4227_v19 = vmax.f32 %v4035_v13, %v4099_v7  ;;  %v4100_v62 = vmax.f32 %v3770_v6, 0.0  ;;  %v19264_v32 = vld [vmem:[#allocation2 + $0x100] sm:$0xff]  ;;  %v3522_v2 = vadd.f32 %v18853_v42, %v21210_v47  ;;  %v4040_v13 = vmax.f32 %v3530_v14, 0.0 }
 0x307   : > { %4409 = vst.msk [vmem:[#allocation2 + $0x130] sm:$0xff] %vm4349_vm1, %v4333_v53  ;;  %v4225_v4 = vmax.f32 %v4033_v48, %v4097_v36  ;;  %v4098_v51 = vmax.f32 %v3762_v15, 0.0  ;;  %15351 = vmatprep.mubr.msk.bf16.mxu1 %vm4349_vm1, %v19264_v32  ;;  %v21212_v15 = vld [vmem:[#allocation69_spill] sm:$0xff] }
 0x308   : > { %v4291_v20 = vmax.f32 %v21205_v58, %v4227_v19  ;;  %v4228_v1 = vmax.f32 %v4036_v60, %v4100_v62  ;;  %15352 = vmatmul.mubr.msk.bf16.gmra.mrb[44].mxu1 %vm4349_vm1, %v19269_v45  ;;  %v4038_v61 = vmax.f32 %v3522_v2, 0.0  ;;  %v3543_v60 = vadd.f32 %v18853_v42, %v21212_v15  ;;  %v21213_v19 = vld [vmem:[#allocation44_spill] sm:$0xff]  ;;  %v21222_v15 = vld [vmem:[#allocation74_spill] sm:$0xff] }
 0x309   : > { %v4289_v40 = vmax.f32 %v21207_v44, %v4225_v4  ;;  %v4226_v3 = vmax.f32 %v4034_v31, %v4098_v51  ;;  %v21214_v4 = vld [vmem:[#allocation70_spill] sm:$0xff] }
 0x30a   : > { %v4292_v26 = vmax.f32 %v21209_v52, %v4228_v1  ;;  %v3535_v51 = vadd.f32 %v18853_v42, %v21214_v4  ;;  %v21216_v1 = vld [vmem:[#allocation71_spill] sm:$0xff]  ;;  %v4043_v47 = vmax.f32 %v3543_v60, 0.0 }
 0x30b   : > { %v4290_v9 = vmax.f32 %v21211_v25, %v4226_v3  ;;  %v3546_v27 = vadd.f32 %v18853_v42, %v21216_v1  ;;  %v21219_v52 = vld [vmem:[#allocation47_spill] sm:$0xff] }
 0x30c   : > { %v4336_v50 = vpack.c.bf16 %v4292_v26, %v4291_v20 }
 0x30d   : > { %v4335_v22 = vpack.c.bf16 %v4290_v9, %v4289_v40  ;;  %v19295_v36 = vld [vmem:[#allocation2 + $0x138] sm:$0xff]  ;;  %v19311_v40 = vld [vmem:[%s21040_s2] ss:$0 sm:$0xff] }
 0x30e   : > { %4412 = vst.msk [vmem:[#allocation2 + $0x148] sm:$0xff] %vm4349_vm1, %v4336_v50  ;;  %v19290_v6 = vld [vmem:[#allocation2 + $0x130] sm:$0xff]  ;;  %v3538_v14 = vadd.f32 %v19311_v40, %v21218_v21  ;;  %v3551_v60 = vadd.f32 %v19311_v40, %v21222_v15 }
 0x30f   : > { %4411 = vst.msk [vmem:[#allocation2 + $0x140] sm:$0xff] %vm4349_vm1, %v4335_v22  ;;  %15355 = vmatprep.mubr.msk.bf16.mxu1 %vm4349_vm1, %v19290_v6 }
 0x310   : > { %15356 = vmatmul.mubr.msk.bf16.gmra.mrb[48].mxu1 %vm4349_vm1, %v19295_v36  ;;  %v4042_v22 = vmax.f32 %v3538_v14, 0.0 }
 0x31a   : > { %v15277_v18 = vpop.f32.mrb[232].mxu0 }
 0x31b   : > { %v3783_v57 = vadd.f32 %v18853_v42, %v15277_v18  ;;  %v3774_v8 = vpop.f32.mrb[233].mxu0 }
 0x31c   : > { %v3775_v24 = vadd.f32 %v18853_v42, %v3774_v8  ;;  %v15278_v30 = vpop.f32.mrb[234].mxu0 }
 0x31d   : > { %v4103_v49 = vmax.f32 %v3783_v57, 0.0  ;;  %v3786_v17 = vadd.f32 %v18853_v42, %v15278_v30  ;;  %v3777_v23 = vpop.f32.mrb[235].mxu0 }
 0x31e   : > { %v4101_v34 = vmax.f32 %v3775_v24, 0.0  ;;  %v3778_v55 = vadd.f32 %v18853_v42, %v3777_v23  ;;  %v4041_v24 = vmax.f32 %v3535_v51, 0.0  ;;  %v21224_v51 = vld [vmem:[#allocation75_spill] sm:$0xff] }
 0x31f   : > { %v4231_v46 = vmax.f32 %v4039_v10, %v4103_v49  ;;  %v4104_v7 = vmax.f32 %v3786_v17, 0.0  ;;  %v4044_v49 = vmax.f32 %v3546_v27, 0.0  ;;  %v21226_v27 = vld [vmem:[#allocation76_spill] sm:$0xff] }
 0x320   : > { %v4229_v48 = vmax.f32 %v4037_v33, %v4101_v34  ;;  %v4102_v53 = vmax.f32 %v3778_v55, 0.0  ;;  %v19321_v33 = vld [vmem:[#allocation2 + $0x140] sm:$0xff] }
 0x321   : > { %v4295_v62 = vmax.f32 %v21213_v19, %v4231_v46  ;;  %v4232_v31 = vmax.f32 %v4040_v13, %v4104_v7  ;;  %15359 = vmatprep.mubr.msk.bf16.mxu1 %vm4349_vm1, %v19321_v33  ;;  %v19326_v13 = vld [vmem:[#allocation2 + $0x148] sm:$0xff]  ;;  %v21220_v46 = vld [vmem:[#allocation73_spill] sm:$0xff] }
 0x322   : > { %v4293_v56 = vmax.f32 %v21215_v28, %v4229_v48  ;;  %v4230_v58 = vmax.f32 %v4038_v61, %v4102_v53  ;;  %v15281_v20 = vpop.f32.mrb[236].mxu0  ;;  %v3559_v7 = vadd.f32 %v19311_v40, %v21220_v46  ;;  %v21221_v61 = vld [vmem:[#allocation6_spill] sm:$0xff]  ;;  %15360 = vmatmul.mubr.msk.bf16.gmra.mrb[52].mxu1 %vm4349_vm1, %v19326_v13  ;;  %v21223_v19 = vld [vmem:[#allocation7_spill] sm:$0xff]  ;;  %v3562_v28 = vadd.f32 %v19311_v40, %v21224_v51 }
 0x323   : > { %v4296_v44 = vmax.f32 %v21217_v37, %v4232_v31  ;;  %v3799_v3 = vadd.f32 %v19311_v40, %v15281_v20  ;;  %v3790_v18 = vpop.f32.mrb[237].mxu0  ;;  %v3554_v37 = vadd.f32 %v19311_v40, %v21226_v27 }
 0x324   : > { %v4294_v26 = vmax.f32 %v21219_v52, %v4230_v58  ;;  %v3791_v57 = vadd.f32 %v19311_v40, %v3790_v18  ;;  %v15282_v8 = vpop.f32.mrb[238].mxu0  ;;  %v4047_v14 = vmax.f32 %v3559_v7, 0.0 }
 0x325   : > { %v4338_v42 = vpack.c.bf16 %v4296_v44, %v4295_v62  ;;  %v4107_v2 = vmax.f32 %v3799_v3, 0.0  ;;  %v3802_v25 = vadd.f32 %v19311_v40, %v15282_v8  ;;  %v3793_v9 = vpop.f32.mrb[239].mxu0  ;;  %v21227_v44 = vld [vmem:[#allocation9_spill] sm:$0xff] }
 0x326   : > { %v4337_v30 = vpack.c.bf16 %v4294_v26, %v4293_v56  ;;  %v4105_v10 = vmax.f32 %v3791_v57, 0.0  ;;  %v3794_v50 = vadd.f32 %v19311_v40, %v3793_v9  ;;  %v21225_v56 = vld [vmem:[#allocation8_spill] sm:$0xff]  ;;  %v4048_v9 = vmax.f32 %v3562_v28, 0.0 }
 0x327   : > { %4414 = vst.msk [vmem:[#allocation2 + $0x158] sm:$0xff] %vm4349_vm1, %v4338_v42  ;;  %v4235_v17 = vmax.f32 %v4043_v47, %v4107_v2  ;;  %v4108_v23 = vmax.f32 %v3802_v25, 0.0  ;;  %v4045_v47 = vmax.f32 %v3551_v60, 0.0 }
 0x328   : > { %4413 = vst.msk [vmem:[#allocation2 + $0x150] sm:$0xff] %vm4349_vm1, %v4337_v30  ;;  %v4233_v34 = vmax.f32 %v4041_v24, %v4105_v10  ;;  %v4106_v55 = vmax.f32 %v3794_v50, 0.0  ;;  %v4046_v50 = vmax.f32 %v3554_v37, 0.0 }
 0x329   : > { %v4299_v48 = vmax.f32 %v21221_v61, %v4235_v17  ;;  %v4236_v53 = vmax.f32 %v4044_v49, %v4108_v23  ;;  %v21230_v61 = vld [vmem:[#allocation78_spill] sm:$0xff] }
 0x32a   : > { %v4297_v62 = vmax.f32 %v21223_v19, %v4233_v34  ;;  %v4234_v31 = vmax.f32 %v4042_v22, %v4106_v55  ;;  %v15285_v4 = vpop.f32.mrb[240].mxu0  ;;  %v21228_v22 = vld [vmem:[#allocation77_spill] sm:$0xff]  ;;  %v21229_v55 = vld [vmem:[#allocation10_spill] sm:$0xff] }
 0x32b   : > { %v4300_v58 = vmax.f32 %v21225_v56, %v4236_v53  ;;  %v3815_v20 = vadd.f32 %v19311_v40, %v15285_v4  ;;  %v3806_v1 = vpop.f32.mrb[241].mxu0  ;;  %v3575_v34 = vadd.f32 %v19311_v40, %v21228_v22  ;;  %v21231_v53 = vld [vmem:[#allocation11_spill] sm:$0xff]  ;;  %v21233_v4 = vld [vmem:[#allocation12_spill] sm:$0xff]  ;;  %v21236_v22 = vld [vmem:[#allocation81_spill] sm:$0xff] }
 0x32c   : > { %v4298_v3 = vmax.f32 %v21227_v44, %v4234_v31  ;;  %v3807_v18 = vadd.f32 %v19311_v40, %v3806_v1  ;;  %v15286_v21 = vpop.f32.mrb[242].mxu0  ;;  %v21235_v1 = vld [vmem:[#allocation13_spill] sm:$0xff] }
 0x32d   : > { %v4340_v52 = vpack.c.bf16 %v4300_v58, %v4299_v48  ;;  %v4111_v26 = vmax.f32 %v3815_v20, 0.0  ;;  %v3818_v57 = vadd.f32 %v19311_v40, %v15286_v21  ;;  %v3809_v8 = vpop.f32.mrb[243].mxu0  ;;  %v3567_v48 = vadd.f32 %v19311_v40, %v21230_v61  ;;  %v21234_v58 = vld [vmem:[#allocation80_spill] sm:$0xff]  ;;  %v21238_v61 = vld [vmem:[#allocation82_spill] sm:$0xff] }
 0x32e   : > { %v4339_v42 = vpack.c.bf16 %v4298_v3, %v4297_v62  ;;  %v4109_v2 = vmax.f32 %v3807_v18, 0.0  ;;  %v3810_v25 = vadd.f32 %v19311_v40, %v3809_v8  ;;  %v19352_v23 = vld [vmem:[#allocation2 + $0x158] sm:$0xff]  ;;  %v21232_v62 = vld [vmem:[#allocation79_spill] sm:$0xff]  ;;  %v3570_v20 = vadd.f32 %v19311_v40, %v21234_v58  ;;  %v21242_v58 = vld [vmem:[#allocation84_spill] sm:$0xff] }
 0x32f   : > { %4416 = vst.msk [vmem:[#allocation2 + $0x168] sm:$0xff] %vm4349_vm1, %v4340_v52  ;;  %v4239_v24 = vmax.f32 %v4047_v14, %v4111_v26  ;;  %v4112_v30 = vmax.f32 %v3818_v57, 0.0  ;;  %v19347_v10 = vld [vmem:[#allocation2 + $0x150] sm:$0xff]  ;;  %v3578_v31 = vadd.f32 %v19311_v40, %v21232_v62  ;;  %v4051_v3 = vmax.f32 %v3575_v34, 0.0  ;;  %v21240_v62 = vld [vmem:[#allocation83_spill] sm:$0xff] }
 0x330   : > { %4415 = vst.msk [vmem:[#allocation2 + $0x160] sm:$0xff] %vm4349_vm1, %v4339_v42  ;;  %v4237_v49 = vmax.f32 %v4045_v47, %v4109_v2  ;;  %v4110_v17 = vmax.f32 %v3810_v25, 0.0  ;;  %15363 = vmatprep.mubr.msk.bf16.mxu1 %vm4349_vm1, %v19347_v10  ;;  %v4049_v26 = vmax.f32 %v3567_v48, 0.0  ;;  %v3591_v34 = vadd.f32 %v19311_v40, %v21236_v22 }
 0x331   : > { %v4303_v46 = vmax.f32 %v21229_v55, %v4239_v24  ;;  %v4240_v7 = vmax.f32 %v4048_v9, %v4112_v30  ;;  %15364 = vmatmul.mubr.msk.bf16.gmra.mrb[56].mxu1 %vm4349_vm1, %v19352_v23  ;;  %v4052_v42 = vmax.f32 %v3578_v31, 0.0  ;;  %v4435_v24 = vld [vmem:[#allocation2] sm:$0xff]  ;;  %v4050_v30 = vmax.f32 %v3570_v20, 0.0 }
 0x332   : > { %v4301_v15 = vmax.f32 %v21231_v53, %v4237_v49  ;;  %v4238_v60 = vmax.f32 %v4046_v50, %v4110_v17  ;;  %v15289_v19 = vpop.f32.mrb[244].mxu0  ;;  %v21237_v55 = vld [vmem:[#allocation14_spill] sm:$0xff]  ;;  %v3583_v48 = vadd.f32 %v19311_v40, %v21238_v61  ;;  %v21239_v53 = vld [vmem:[#allocation15_spill] sm:$0xff]  ;;  %v3594_v31 = vadd.f32 %v19311_v40, %v21240_v62 }
 0x333   : > { %v4304_v51 = vmax.f32 %v21233_v4, %v4240_v7  ;;  %v3831_v28 = vadd.f32 %v19311_v40, %v15289_v19  ;;  %v3822_v56 = vpop.f32.mrb[245].mxu0  ;;  %v21241_v4 = vld [vmem:[#allocation16_spill] sm:$0xff]  ;;  %v3586_v20 = vadd.f32 %v19311_v40, %v21242_v58 }
 0x334   : > { %v4302_v27 = vmax.f32 %v21235_v1, %v4238_v60  ;;  %v3823_v37 = vadd.f32 %v19311_v40, %v3822_v56  ;;  %v15290_v44 = vpop.f32.mrb[246].mxu0  ;;  %v21243_v1 = vld [vmem:[#allocation17_spill] sm:$0xff] }
 0x335   : > { %v4342_v18 = vpack.c.bf16 %v4304_v51, %v4303_v46  ;;  %v4115_v21 = vmax.f32 %v3831_v28, 0.0  ;;  %v3834_v14 = vadd.f32 %v19311_v40, %v15290_v44  ;;  %v3825_v52 = vpop.f32.mrb[247].mxu0 }
 0x336   : > { %v4341_v57 = vpack.c.bf16 %v4302_v27, %v4301_v15  ;;  %v4113_v8 = vmax.f32 %v3823_v37, 0.0  ;;  %v3826_v47 = vadd.f32 %v19311_v40, %v3825_v52  ;;  %v19378_v17 = vld [vmem:[#allocation2 + $0x168] sm:$0xff] }
 0x337   : > { %4425 = vst.msk [vmem:[#allocation2 + $0x198] sm:$0xff] %vm4349_vm1, %v4342_v18  ;;  %v4243_v2 = vmax.f32 %v4051_v3, %v4115_v21  ;;  %v4116_v25 = vmax.f32 %v3834_v14, 0.0  ;;  %v19373_v9 = vld [vmem:[#allocation2 + $0x160] sm:$0xff]  ;;  %v4055_v3 = vmax.f32 %v3591_v34, 0.0 }
 0x338   : > { %4424 = vst.msk [vmem:[#allocation2 + $0x190] sm:$0xff] %vm4349_vm1, %v4341_v57  ;;  %v4241_v50 = vmax.f32 %v4049_v26, %v4113_v8  ;;  %v4114_v49 = vmax.f32 %v3826_v47, 0.0  ;;  %15367 = vmatprep.mubr.msk.bf16.mxu1 %vm4349_vm1, %v19373_v9  ;;  %v4053_v26 = vmax.f32 %v3583_v48, 0.0 }
 0x339   : > { %v4307_v46 = vmax.f32 %v21237_v55, %v4243_v2  ;;  %v4244_v7 = vmax.f32 %v4052_v42, %v4116_v25  ;;  %15368 = vmatmul.mubr.msk.bf16.gmra.mrb[60].mxu1 %vm4349_vm1, %v19378_v17  ;;  %v4436_v42 = vld [vmem:[#allocation2 + $0x8] sm:$0xff]  ;;  %v4056_v2 = vmax.f32 %v3594_v31, 0.0  ;;  %v21244_v55 = vld [vmem:[#allocation85_spill] sm:$0xff]  ;;  %v17594_v31 = vld [vmem:[%s21041_s3 + $0x40] sm:$0xff]  }
 0x33a   : > { %v4305_v15 = vmax.f32 %v21239_v53, %v4241_v50  ;;  %v4242_v60 = vmax.f32 %v4050_v30, %v4114_v49  ;;  %v15293_v19 = vpop.f32.mrb[248].mxu0  ;;  %15379 = vmatprep.mubr.msk.bf16.mxu1 %vm4349_vm1, %v4435_v24  ;;  %v4437_v30 = vld [vmem:[#allocation2 + $0x10] sm:$0xff]  ;;  %v17266_v50 = vld [vmem:[%s21041_s3 + $0x48] sm:$0xff]   ;;  %v4054_v49 = vmax.f32 %v3586_v20, 0.0  ;;  %v21246_v53 = vld [vmem:[#allocation86_spill] sm:$0xff] }
 0x33b   : > { %v4308_v51 = vmax.f32 %v21241_v4, %v4244_v7  ;;  %v3847_v28 = vadd.f32 %v19311_v40, %v15293_v19  ;;  %v3838_v56 = vpop.f32.mrb[249].mxu0  ;;  %v21245_v7 = vld [vmem:[#allocation18_spill] sm:$0xff] }
 0x33c   : > { %v4306_v27 = vmax.f32 %v21243_v1, %v4242_v60  ;;  %v3839_v37 = vadd.f32 %v19311_v40, %v3838_v56  ;;  %v15294_v44 = vpop.f32.mrb[250].mxu0  ;;  %v21247_v60 = vld [vmem:[#allocation19_spill] sm:$0xff]  ;;  %v21249_v56 = vld [vmem:[#allocation20_spill] sm:$0xff] }
 0x33d   : > { %v4344_v18 = vpack.c.bf16 %v4308_v51, %v4307_v46  ;;  %v4119_v21 = vmax.f32 %v3847_v28, 0.0  ;;  %v3850_v14 = vadd.f32 %v19311_v40, %v15294_v44  ;;  %v3841_v52 = vpop.f32.mrb[251].mxu0  ;;  %v3607_v46 = vadd.f32 %v19311_v40, %v21244_v55  ;;  %v21248_v51 = vld [vmem:[#allocation87_spill] sm:$0xff] }
 0x33e   : > { %v4343_v57 = vpack.c.bf16 %v4306_v27, %v4305_v15  ;;  %v4117_v8 = vmax.f32 %v3839_v37, 0.0  ;;  %v3842_v47 = vadd.f32 %v19311_v40, %v3841_v52  ;;  %v3599_v15 = vadd.f32 %v19311_v40, %v21246_v53  ;;  %v17267_v27 = vld [vmem:[%s21041_s3 + $0x50] sm:$0xff]  }
 0x33f   : > { %4427 = vst.msk [vmem:[#allocation2 + $0x1a8] sm:$0xff] %vm4349_vm1, %v4344_v18  ;;  %v4247_v25 = vmax.f32 %v4055_v3, %v4119_v21  ;;  %v4120_v24 = vmax.f32 %v3850_v14, 0.0  ;;  %v3610_v28 = vadd.f32 %v19311_v40, %v21248_v51  ;;  %v21250_v37 = vld [vmem:[#allocation88_spill] sm:$0xff]  ;;  %v21251_v3 = vld [vmem:[#allocation21_spill] sm:$0xff]  ;;  %v4059_v52 = vmax.f32 %v3607_v46, 0.0 }
 0x340   : > { %4426 = vst.msk [vmem:[#allocation2 + $0x1a0] sm:$0xff] %vm4349_vm1, %v4343_v57  ;;  %v4245_v22 = vmax.f32 %v4053_v26, %v4117_v8  ;;  %v4118_v34 = vmax.f32 %v3842_v47, 0.0  ;;  %v3602_v44 = vadd.f32 %v19311_v40, %v21250_v37  ;;  %v21255_v51 = vld [vmem:[#allocation49_spill] sm:$0xff] }
 0x341   : > { %v4311_v61 = vmax.f32 %v21245_v7, %v4247_v25  ;;  %v4248_v48 = vmax.f32 %v4056_v2, %v4120_v24  ;;  %15380 = vmatmul.mubr.msk.bf16.vlgmr.msra.gmra.mrb[0].mxu1 %vm4349_vm1, %v4436_v42  ;;  %v4057_v42 = vmax.f32 %v3599_v15, 0.0  ;;  %v17599_v37 = vld [vmem:[#allocation2 + $0x38] sm:$0xff] }
 0x342   : > { %v4309_v19 = vmax.f32 %v21247_v60, %v4245_v22  ;;  %v4246_v62 = vmax.f32 %v4054_v49, %v4118_v34  ;;  %15444 = vmatpush3.bf16.msra.mxu1 %v17594_v31  ;;  %v15297_v4 = vpop.f32.mrb[252].mxu0  ;;  %15383 = vmatprep.mubr.msk.bf16.mxu1 %vm4349_vm1, %v4437_v30  ;;  %v4060_v30 = vmax.f32 %v3610_v28, 0.0  ;;  %v17268_v34 = vld [vmem:[%s21041_s3 + $0x58] sm:$0xff]   ;;  %v4058_v55 = vmax.f32 %v3602_v44, 0.0  ;;  %v19451_v44 = vld [vmem:[#allocation2 + $0x68] sm:$0xff] }
 0x343   : > { %v4312_v58 = vmax.f32 %v21249_v56, %v4248_v48  ;;  %v3863_v20 = vadd.f32 %v19311_v40, %v15297_v4  ;;  %v3854_v1 = vpop.f32.mrb[253].mxu0  ;;  %15445 = vmatprep.subr.bf16.mxu1 %v17266_v50  ;;  %v17269_v4 = vld [vmem:[%s21041_s3 + $0x60] sm:$0xff]  }
 0x344   : > { %v4310_v18 = vmax.f32 %v21251_v3, %v4246_v62  ;;  %v3855_v21 = vadd.f32 %v19311_v40, %v3854_v1  ;;  %v15298_v14 = vpop.f32.mrb[254].mxu0  ;;  %v21254_v62 = vld [vmem:[#allocation48_spill] sm:$0xff]  ;;  %v19465_v3 = vld [vmem:[#allocation2 + $0xc0] sm:$0xff] }
 0x345   : > { %v4346_v26 = vpack.c.bf16 %v4312_v58, %v4311_v61  ;;  %v4123_v57 = vmax.f32 %v3863_v20, 0.0  ;;  %v3866_v8 = vadd.f32 %v19311_v40, %v15298_v14  ;;  %v3857_v47 = vpop.f32.mrb[255].mxu0  ;;  %v21252_v61 = vld [vmem:[#allocation22_spill] sm:$0xff]  ;;  %v17597_v20 = vld [vmem:[#allocation2 + $0x28] sm:$0xff]  ;;  %v17598_v1 = vld [vmem:[#allocation2 + $0x30] sm:$0xff] }
 0x346   : > { %v4345_v2 = vpack.c.bf16 %v4310_v18, %v4309_v19  ;;  %v4121_v25 = vmax.f32 %v3855_v21, 0.0  ;;  %v3858_v24 = vadd.f32 %v19311_v40, %v3857_v47  ;;  %15446 = vmatpush3.bf16.msra.mxu1 %v17266_v50  ;;  %v17595_v40 = vld [vmem:[#allocation2 + $0x18] sm:$0xff]  ;;  %v21253_v50 = vld [vmem:[#allocation23_spill] sm:$0xff]  ;;  %v17596_v19 = vld [vmem:[#allocation2 + $0x20] sm:$0xff] }
 0x347   : > { %4429 = vst.msk [vmem:[#allocation2 + $0x1b8] sm:$0xff] %vm4349_vm1, %v4346_v26  ;;  %v4251_v49 = vmax.f32 %v4059_v52, %v4123_v57  ;;  %v4124_v22 = vmax.f32 %v3866_v8, 0.0  ;;  %15447 = vmatprep.subr.bf16.mxu1 %v17267_v27  ;;  %v5337_v18 = vld [vmem:[#allocation2 + $0x28] sm:$0xff]  ;;  %v5338_v21 = vld [vmem:[#allocation2 + $0x30] sm:$0xff]  ;;  %v5339_v26 = vld [vmem:[#allocation2 + $0x38] sm:$0xff] }
 0x348   : > { %4428 = vst.msk [vmem:[#allocation2 + $0x1b0] sm:$0xff] %vm4349_vm1, %v4345_v2  ;;  %v4249_v46 = vmax.f32 %v4057_v42, %v4121_v25  ;;  %v4122_v7 = vmax.f32 %v3858_v24, 0.0  ;;  %v17270_v14 = vld [vmem:[%s21041_s3 + $0x68] sm:$0xff]   ;;  %v17271_v52 = vld [vmem:[%s21041_s3 + $0x70] sm:$0xff]   ;;  %v17272_v57 = vld [vmem:[%s21041_s3 + $0x78] sm:$0xff]  }
 0x349   : > { %v4315_v48 = vmax.f32 %v21252_v61, %v4251_v49  ;;  %v4252_v53 = vmax.f32 %v4060_v30, %v4124_v22  ;;  %15384 = vmatmul.mubr.msk.bf16.gmra.mrb[4].mxu1 %vm4349_vm1, %v17595_v40  ;;  %v17600_v8 = vld [vmem:[#allocation2 + $0x40] sm:$0xff]  ;;  %v5342_v42 = vld [vmem:[#allocation2 + $0x50] sm:$0xff]  ;;  %v17601_v2 = vld [vmem:[#allocation2 + $0x48] sm:$0xff] }
 0x34a   : > { %v4313_v15 = vmax.f32 %v21253_v50, %v4249_v46  ;;  %v4250_v60 = vmax.f32 %v4058_v55, %v4122_v7  ;;  %15387 = vmatprep.mubr.msk.bf16.mxu1 %vm4349_vm1, %v17596_v19  ;;  %15448 = vmatpush3.bf16.msra.mxu1 %v17267_v27  ;;  %v19446_v27 = vld [vmem:[#allocation2 + $0x60] sm:$0xff]  ;;  %v5343_v25 = vld [vmem:[#allocation2 + $0x58] sm:$0xff]  ;;  %v17603_v30 = vld [vmem:[#allocation2 + $0x88] sm:$0xff] }
 0x34b   : > { %v4316_v31 = vmax.f32 %v21254_v62, %v4252_v53  ;;  %15449 = vmatprep.subr.bf16.mxu1 %v17268_v34  ;;  %v17273_v47 = vld [vmem:[%s21041_s3 + $0x80] sm:$0xff]   ;;  %v19535_v49 = vld [vmem:[#allocation2 + $0xb0] sm:$0xff]  ;;  %v19541_v22 = vld [vmem:[#allocation2 + $0xb8] sm:$0xff] }
 0x34c   : > { %v4314_v28 = vmax.f32 %v21255_v51, %v4250_v60  ;;  %v17602_v24 = vld [vmem:[#allocation2 + $0x80] sm:$0xff]  ;;  %v5852_v55 = vld [vmem:[#allocation2 + $0x70] sm:$0xff]  ;;  %v17276_v7 = vld [vmem:[%s21041_s3 + $0x98] sm:$0xff]  }
 0x34d   : > { %v4348_v56 = vpack.c.bf16 %v4316_v31, %v4315_v48  ;;  %v17275_v46 = vld [vmem:[%s21041_s3 + $0x90] sm:$0xff]   ;;  %v5853_v61 = vld [vmem:[#allocation2 + $0x78] sm:$0xff]  ;;  %v19600_v48 = vld [vmem:[#allocation2 + $0x80] sm:$0xff] }
 0x34e   : > { %v4347_v58 = vpack.c.bf16 %v4314_v28, %v4313_v15  ;;  %15450 = vmatpush3.bf16.msra.mxu1 %v17268_v34  ;;  %v17274_v34 = vld [vmem:[%s21041_s3 + $0x88] sm:$0xff]   ;;  %v17277_v53 = vld [vmem:[%s21041_s3 + $0xa0] sm:$0xff]   ;;  %v17604_v50 = vld [vmem:[#allocation2 + $0x90] sm:$0xff] }
 0x34f   : > { %4431 = vst.msk [vmem:[#allocation2 + $0x1c8] sm:$0xff] %vm4349_vm1, %v4348_v56  ;;  %15515 = vmatprep.subr.bf16.mxu1 %v17269_v4  ;;  %v19607_v40 = vld [vmem:[#allocation2 + $0x88] sm:$0xff]  ;;  %v17605_v15 = vld [vmem:[#allocation2 + $0x98] sm:$0xff]  ;;  %v19653_v60 = vld [vmem:[#allocation2 + $0x190] sm:$0xff] }
 0x350   : > { %4430 = vst.msk [vmem:[#allocation2 + $0x1c0] sm:$0xff] %vm4349_vm1, %v4347_v58  ;;  %v19657_v19 = vld [vmem:[#allocation2 + $0x198] sm:$0xff]  ;;  %v19661_v62 = vld [vmem:[#allocation2 + $0x1a0] sm:$0xff]  ;;  %v19665_v31 = vld [vmem:[#allocation2 + $0x1a8] sm:$0xff] }
 0x351   : > { %15388 = vmatmul.mubr.msk.bf16.gmra.mrb[8].mxu1 %vm4349_vm1, %v17597_v20  ;;  %v19673_v51 = vld [vmem:[#allocation2 + $0x1b8] sm:$0xff]  ;;  %v17278_v28 = vld [vmem:[%s21041_s3 + $0xa8] sm:$0xff]   ;;  %v17279_v56 = vld [vmem:[%s21041_s3 + $0xb0] sm:$0xff]  }
 0x352   : > { %15391 = vmatprep.mubr.msk.bf16.mxu1 %vm4349_vm1, %v17598_v1  ;;  %v17280_v58 = vld [vmem:[%s21041_s3 + $0xb8] sm:$0xff]   ;;  %v6368_v20 = vld [vmem:[#allocation2 + $0x90] sm:$0xff]  ;;  %v17281_v1 = vld [vmem:[%s21041_s3 + $0xc0] sm:$0xff]  }
 0x359   : > { %15392 = vmatmul.mubr.msk.bf16.gmra.mrb[12].mxu1 %vm4349_vm1, %v17599_v37  ;;  %v6370_v37 = vld [vmem:[#allocation2 + $0xa0] sm:$0xff] }
 0x35a   : > { %15395 = vmatprep.mubr.msk.bf16.mxu1 %vm4349_vm1, %v19446_v27 }
 0x361   : > { %15396 = vmatmul.mubr.msk.bf16.gmra.mrb[16].mxu1 %vm4349_vm1, %v19451_v44 }
 0x362   : > { %15399 = vmatprep.mubr.msk.bf16.mxu1 %vm4349_vm1, %v19082_v43  ;;  %v19471_v43 = vld [vmem:[#allocation2 + $0xc8] sm:$0xff] }
 0x369   : > { %15400 = vmatmul.mubr.msk.bf16.gmra.mrb[20].mxu1 %vm4349_vm1, %v19087_v41  ;;  %v19485_v41 = vld [vmem:[#allocation2 + $0x120] sm:$0xff] }
 0x36a   : > { %15403 = vmatprep.mubr.msk.bf16.mxu1 %vm4349_vm1, %v19108_v63  ;;  %v19491_v63 = vld [vmem:[#allocation2 + $0x128] sm:$0xff] }
 0x371   : > { %15404 = vmatmul.mubr.msk.bf16.gmra.mrb[24].mxu1 %vm4349_vm1, %v19113_v12  ;;  %v5336_v12 = vld [vmem:[#allocation2 + $0x20] sm:$0xff] }
 0x372   : > { %15407 = vmatprep.mubr.msk.bf16.mxu1 %vm4349_vm1, %v19134_v5 }
 0x379   : > { %15408 = vmatmul.mubr.msk.bf16.gmra.mrb[28].mxu1 %vm4349_vm1, %v19139_v39 }
 0x37a   : > { %15411 = vmatprep.mubr.msk.bf16.mxu1 %vm4349_vm1, %v19465_v3 }
 0x381   : > { %15412 = vmatmul.mubr.msk.bf16.gmra.mrb[32].mxu1 %vm4349_vm1, %v19471_v43 }
 0x382   : > { %15415 = vmatprep.mubr.msk.bf16.mxu1 %vm4349_vm1, %v19186_v54 }
 0x389   : > { %15416 = vmatmul.mubr.msk.bf16.gmra.mrb[36].mxu1 %vm4349_vm1, %v19191_v35 }
 0x38a   : > { %15419 = vmatprep.mubr.msk.bf16.mxu1 %vm4349_vm1, %v19212_v16 }
 0x391   : > { %15420 = vmatmul.mubr.msk.bf16.gmra.mrb[40].mxu1 %vm4349_vm1, %v19217_v38 }
 0x392   : > { %15423 = vmatprep.mubr.msk.bf16.mxu1 %vm4349_vm1, %v19238_v29 }
 0x399   : > { %15424 = vmatmul.mubr.msk.bf16.gmra.mrb[44].mxu1 %vm4349_vm1, %v19243_v0 }
 0x39a   : > { %15427 = vmatprep.mubr.msk.bf16.mxu1 %vm4349_vm1, %v19485_v41 }
 0x3a1   : > { %15428 = vmatmul.mubr.msk.bf16.gmra.mrb[48].mxu1 %vm4349_vm1, %v19491_v63 }
 0x3a2   : > { %15431 = vmatprep.mubr.msk.bf16.mxu1 %vm4349_vm1, %v19290_v6 }
 0x3a9   : > { %15432 = vmatmul.mubr.msk.bf16.gmra.mrb[52].mxu1 %vm4349_vm1, %v19295_v36 }
 0x3aa   : > { %15435 = vmatprep.mubr.msk.bf16.mxu1 %vm4349_vm1, %v19321_v33 }
 0x3b1   : > { %15436 = vmatmul.mubr.msk.bf16.gmra.mrb[56].mxu1 %vm4349_vm1, %v19326_v13 }
 0x3b2   : > { %15439 = vmatprep.mubr.msk.bf16.mxu1 %vm4349_vm1, %v19347_v10 }
 0x3b9   : > { %15440 = vmatmul.mubr.msk.bf16.gmra.mrb[60].mxu1 %vm4349_vm1, %v19352_v23 }
 0x3ba   : > { %15451 = vmatprep.mubr.msk.bf16.mxu1 %vm4349_vm1, %v5336_v12  ;;  %v19699_v12 = vld [vmem:[#allocation2 + $0xd0] sm:$0xff] }
 0x3c1   : > { %15452 = vmatmul.mubr.msk.bf16.vlgmr.msra.gmra.mrb[0].mxu1 %vm4349_vm1, %v5337_v18  ;;  %v19703_v18 = vld [vmem:[#allocation2 + $0xd8] sm:$0xff] }
 0x3c2   : > { %15516 = vmatpush3.bf16.msra.mxu1 %v17269_v4  ;;  %15455 = vmatprep.mubr.msk.bf16.mxu1 %vm4349_vm1, %v5338_v21  ;;  %v19669_v4 = vld [vmem:[#allocation2 + $0x1b0] sm:$0xff]  ;;  %v19786_v21 = vld [vmem:[#allocation2 + $0xe8] sm:$0xff] }
 0x3c3   : > { %15517 = vmatprep.subr.bf16.mxu1 %v17270_v14 }
 0x3c6   : > { %15518 = vmatpush3.bf16.msra.mxu1 %v17270_v14  ;;  %v19790_v14 = vld [vmem:[#allocation2 + $0xf0] sm:$0xff] }
 0x3c7   : > { %15519 = vmatprep.subr.bf16.mxu1 %v17271_v52 }
 0x3c9   : > { %15456 = vmatmul.mubr.msk.bf16.gmra.mrb[4].mxu1 %vm4349_vm1, %v5339_v26  ;;  %v19798_v26 = vld [vmem:[#allocation2 + $0x100] sm:$0xff] }
 0x3ca   : > { %15459 = vmatprep.mubr.msk.bf16.mxu1 %vm4349_vm1, %v17600_v8  ;;  %15520 = vmatpush3.bf16.msra.mxu1 %v17271_v52  ;;  %v19794_v52 = vld [vmem:[#allocation2 + $0xf8] sm:$0xff]  ;;  %v19880_v8 = vld [vmem:[#allocation2 + $0x140] sm:$0xff] }
 0x3cb   : > { %15521 = vmatprep.subr.bf16.mxu1 %v17272_v57 }
 0x3ce   : > { %15522 = vmatpush3.bf16.msra.mxu1 %v17272_v57  ;;  %v19802_v57 = vld [vmem:[#allocation2 + $0x108] sm:$0xff] }
 0x3cf   : > { %15587 = vmatprep.subr.bf16.mxu1 %v17273_v47 }
 0x3d1   : > { %15460 = vmatmul.mubr.msk.bf16.gmra.mrb[8].mxu1 %vm4349_vm1, %v17601_v2  ;;  %v7418_v2 = vld [vmem:[#allocation2 + $0x1e8] sm:$0xff] }
 0x3d2   : > { %15463 = vmatprep.mubr.msk.bf16.mxu1 %vm4349_vm1, %v5342_v42  ;;  %v7417_v42 = vld [vmem:[#allocation2 + $0x1e0] sm:$0xff] }
 0x3d9   : > { %15464 = vmatmul.mubr.msk.bf16.gmra.mrb[12].mxu1 %vm4349_vm1, %v5343_v25  ;;  %v7419_v25 = vld [vmem:[#allocation2 + $0x1f0] sm:$0xff] }
 0x3da   : > { %15467 = vmatprep.mubr.msk.bf16.mxu1 %vm4349_vm1, %v17602_v24  ;;  %v7420_v24 = vld [vmem:[#allocation2 + $0x1f8] sm:$0xff] }
 0x3e1   : > { %15468 = vmatmul.mubr.msk.bf16.gmra.mrb[16].mxu1 %vm4349_vm1, %v17603_v30  ;;  %v19915_v30 = vld [vmem:[#allocation2 + $0x200] sm:$0xff] }
 0x3e2   : > { %15471 = vmatprep.mubr.msk.bf16.mxu1 %vm4349_vm1, %v19134_v5  ;;  %v19555_v5 = vld [vmem:[#allocation2 + $0x110] sm:$0xff] }
 0x3e9   : > { %15472 = vmatmul.mubr.msk.bf16.gmra.mrb[20].mxu1 %vm4349_vm1, %v19139_v39  ;;  %v19561_v39 = vld [vmem:[#allocation2 + $0x118] sm:$0xff] }
 0x3ea   : > { %15475 = vmatprep.mubr.msk.bf16.mxu1 %vm4349_vm1, %v19160_v11  ;;  %v19575_v11 = vld [vmem:[#allocation2 + $0x170] sm:$0xff] }
 0x3f1   : > { %15476 = vmatmul.mubr.msk.bf16.gmra.mrb[24].mxu1 %vm4349_vm1, %v19165_v59  ;;  %v19581_v59 = vld [vmem:[#allocation2 + $0x178] sm:$0xff] }
 0x3f2   : > { %15479 = vmatprep.mubr.msk.bf16.mxu1 %vm4349_vm1, %v19535_v49 }
 0x3f9   : > { %15480 = vmatmul.mubr.msk.bf16.gmra.mrb[28].mxu1 %vm4349_vm1, %v19541_v22 }
 0x3fa   : > { %15483 = vmatprep.mubr.msk.bf16.mxu1 %vm4349_vm1, %v19212_v16 }
 0x401   : > { %15484 = vmatmul.mubr.msk.bf16.gmra.mrb[32].mxu1 %vm4349_vm1, %v19217_v38 }
 0x402   : > { %15487 = vmatprep.mubr.msk.bf16.mxu1 %vm4349_vm1, %v19238_v29 }
 0x409   : > { %15488 = vmatmul.mubr.msk.bf16.gmra.mrb[36].mxu1 %vm4349_vm1, %v19243_v0 }
 0x40a   : > { %15491 = vmatprep.mubr.msk.bf16.mxu1 %vm4349_vm1, %v19264_v32 }
 0x411   : > { %15492 = vmatmul.mubr.msk.bf16.gmra.mrb[40].mxu1 %vm4349_vm1, %v19269_v45 }
 0x412   : > { %15495 = vmatprep.mubr.msk.bf16.mxu1 %vm4349_vm1, %v19555_v5 }
 0x419   : > { %15496 = vmatmul.mubr.msk.bf16.gmra.mrb[44].mxu1 %vm4349_vm1, %v19561_v39 }
 0x41a   : > { %15499 = vmatprep.mubr.msk.bf16.mxu1 %vm4349_vm1, %v19321_v33 }
 0x421   : > { %15500 = vmatmul.mubr.msk.bf16.gmra.mrb[48].mxu1 %vm4349_vm1, %v19326_v13 }
 0x422   : > { %15503 = vmatprep.mubr.msk.bf16.mxu1 %vm4349_vm1, %v19347_v10 }
 0x429   : > { %15504 = vmatmul.mubr.msk.bf16.gmra.mrb[52].mxu1 %vm4349_vm1, %v19352_v23 }
 0x42a   : > { %15507 = vmatprep.mubr.msk.bf16.mxu1 %vm4349_vm1, %v19373_v9 }
 0x431   : > { %15508 = vmatmul.mubr.msk.bf16.gmra.mrb[56].mxu1 %vm4349_vm1, %v19378_v17 }
 0x432   : > { %15511 = vmatprep.mubr.msk.bf16.mxu1 %vm4349_vm1, %v19575_v11 }
 0x439   : > { %15512 = vmatmul.mubr.msk.bf16.gmra.mrb[60].mxu1 %vm4349_vm1, %v19581_v59 }
 0x43a   : > { %15523 = vmatprep.mubr.msk.bf16.mxu1 %vm4349_vm1, %v19446_v27  ;;  %v6369_v27 = vld [vmem:[#allocation2 + $0x98] sm:$0xff] }
 0x441   : > { %15524 = vmatmul.mubr.msk.bf16.vlgmr.msra.gmra.mrb[0].mxu1 %vm4349_vm1, %v19451_v44  ;;  %v6371_v44 = vld [vmem:[#allocation2 + $0xa8] sm:$0xff] }
 0x442   : > { %15588 = vmatpush3.bf16.msra.mxu1 %v17273_v47  ;;  %15527 = vmatprep.mubr.msk.bf16.mxu1 %vm4349_vm1, %v5852_v55  ;;  %v19884_v47 = vld [vmem:[#allocation2 + $0x148] sm:$0xff] }
 0x443   : > { %15589 = vmatprep.subr.bf16.mxu1 %v17274_v34 }
 0x446   : > { %15590 = vmatpush3.bf16.msra.mxu1 %v17274_v34  ;;  %v19928_v34 = vld [vmem:[#allocation2 + $0x218] sm:$0xff] }
 0x447   : > { %15591 = vmatprep.subr.bf16.mxu1 %v17275_v46 }
 0x449   : > { %15528 = vmatmul.mubr.msk.bf16.gmra.mrb[4].mxu1 %vm4349_vm1, %v5853_v61 }
 0x44a   : > { %15531 = vmatprep.mubr.msk.bf16.mxu1 %vm4349_vm1, %v19600_v48  ;;  %15592 = vmatpush3.bf16.msra.mxu1 %v17275_v46  ;;  %v17292_v46 = vld [vmem:[%s21041_s3 + $0x110] sm:$0xff]  }
 0x44b   : > { %15593 = vmatprep.subr.bf16.mxu1 %v17276_v7 }
 0x44e   : > { %15594 = vmatpush3.bf16.msra.mxu1 %v17276_v7  ;;  %v17293_v7 = vld [vmem:[%s21041_s3 + $0x118] sm:$0xff]  }
 0x44f   : > { %15659 = vmatprep.subr.bf16.mxu1 %v17277_v53 }
 0x451   : > { %15532 = vmatmul.mubr.msk.bf16.gmra.mrb[8].mxu1 %vm4349_vm1, %v19607_v40 }
 0x452   : > { %15535 = vmatprep.mubr.msk.bf16.mxu1 %vm4349_vm1, %v17604_v50 }
 0x459   : > { %15536 = vmatmul.mubr.msk.bf16.gmra.mrb[12].mxu1 %vm4349_vm1, %v17605_v15 }
 0x45a   : > { %15539 = vmatprep.mubr.msk.bf16.mxu1 %vm4349_vm1, %v19465_v3 }
 0x461   : > { %15540 = vmatmul.mubr.msk.bf16.gmra.mrb[16].mxu1 %vm4349_vm1, %v19471_v43 }
 0x462   : > { %15543 = vmatprep.mubr.msk.bf16.mxu1 %vm4349_vm1, %v19186_v54  ;;  %v19643_v54 = vld [vmem:[#allocation2 + $0x180] sm:$0xff] }
 0x469   : > { %15544 = vmatmul.mubr.msk.bf16.gmra.mrb[20].mxu1 %vm4349_vm1, %v19191_v35  ;;  %v19649_v35 = vld [vmem:[#allocation2 + $0x188] sm:$0xff] }
 0x46a   : > { %15547 = vmatprep.mubr.msk.bf16.mxu1 %vm4349_vm1, %v19212_v16 }
 0x471   : > { %15548 = vmatmul.mubr.msk.bf16.gmra.mrb[24].mxu1 %vm4349_vm1, %v19217_v38 }
 0x472   : > { %15551 = vmatprep.mubr.msk.bf16.mxu1 %vm4349_vm1, %v19238_v29 }
 0x479   : > { %15552 = vmatmul.mubr.msk.bf16.gmra.mrb[28].mxu1 %vm4349_vm1, %v19243_v0 }
 0x47a   : > { %15555 = vmatprep.mubr.msk.bf16.mxu1 %vm4349_vm1, %v19485_v41 }
 0x481   : > { %15556 = vmatmul.mubr.msk.bf16.gmra.mrb[32].mxu1 %vm4349_vm1, %v19491_v63 }
 0x482   : > { %15559 = vmatprep.mubr.msk.bf16.mxu1 %vm4349_vm1, %v19290_v6 }
 0x489   : > { %15560 = vmatmul.mubr.msk.bf16.gmra.mrb[36].mxu1 %vm4349_vm1, %v19295_v36 }
 0x48a   : > { %15563 = vmatprep.mubr.msk.bf16.mxu1 %vm4349_vm1, %v19321_v33 }
 0x491   : > { %15564 = vmatmul.mubr.msk.bf16.gmra.mrb[40].mxu1 %vm4349_vm1, %v19326_v13 }
 0x492   : > { %15567 = vmatprep.mubr.msk.bf16.mxu1 %vm4349_vm1, %v19347_v10 }
 0x499   : > { %15568 = vmatmul.mubr.msk.bf16.gmra.mrb[44].mxu1 %vm4349_vm1, %v19352_v23 }
 0x49a   : > { %15571 = vmatprep.mubr.msk.bf16.mxu1 %vm4349_vm1, %v19643_v54 }
 0x4a1   : > { %15572 = vmatmul.mubr.msk.bf16.gmra.mrb[48].mxu1 %vm4349_vm1, %v19649_v35 }
 0x4a2   : > { %15575 = vmatprep.mubr.msk.bf16.mxu1 %vm4349_vm1, %v19653_v60 }
 0x4a9   : > { %15576 = vmatmul.mubr.msk.bf16.gmra.mrb[52].mxu1 %vm4349_vm1, %v19657_v19 }
 0x4aa   : > { %15579 = vmatprep.mubr.msk.bf16.mxu1 %vm4349_vm1, %v19661_v62 }
 0x4b1   : > { %15580 = vmatmul.mubr.msk.bf16.gmra.mrb[56].mxu1 %vm4349_vm1, %v19665_v31 }
 0x4b2   : > { %15583 = vmatprep.mubr.msk.bf16.mxu1 %vm4349_vm1, %v19669_v4 }
 0x4b9   : > { %15584 = vmatmul.mubr.msk.bf16.gmra.mrb[60].mxu1 %vm4349_vm1, %v19673_v51 }
 0x4ba   : > { %15595 = vmatprep.mubr.msk.bf16.mxu1 %vm4349_vm1, %v5852_v55  ;;  %v17291_v55 = vld [vmem:[%s21041_s3 + $0x108] sm:$0xff]  }
 0x4c1   : > { %15596 = vmatmul.mubr.msk.bf16.vlgmr.msra.gmra.mrb[0].mxu1 %vm4349_vm1, %v5853_v61  ;;  %v7921_v61 = vld [vmem:[#allocation2 + $0x160] sm:$0xff] }
 0x4c2   : > { %15660 = vmatpush3.bf16.msra.mxu1 %v17277_v53  ;;  %15599 = vmatprep.mubr.msk.bf16.mxu1 %vm4349_vm1, %v19600_v48  ;;  %v7937_v53 = vld [vmem:[#allocation2 + $0x220] sm:$0xff] }
 0x4c3   : > { %15661 = vmatprep.subr.bf16.mxu1 %v17278_v28 }
 0x4c6   : > { %15662 = vmatpush3.bf16.msra.mxu1 %v17278_v28 }
 0x4c7   : > { %15663 = vmatprep.subr.bf16.mxu1 %v17279_v56 }
 0x4c9   : > { %15600 = vmatmul.mubr.msk.bf16.gmra.mrb[4].mxu1 %vm4349_vm1, %v19607_v40 }
 0x4ca   : > { %15603 = vmatprep.mubr.msk.bf16.mxu1 %vm4349_vm1, %v6368_v20  ;;  %15664 = vmatpush3.bf16.msra.mxu1 %v17279_v56 }
 0x4cb   : > { %15665 = vmatprep.subr.bf16.mxu1 %v17280_v58 }
 0x4ce   : > { %15666 = vmatpush3.bf16.msra.mxu1 %v17280_v58 }
 0x4cf   : > { %15731 = vmatprep.subr.bf16.mxu1 %v17281_v1 }
 0x4d1   : > { %15604 = vmatmul.mubr.msk.bf16.gmra.mrb[8].mxu1 %vm4349_vm1, %v6369_v27 }
 0x4d2   : > { %15607 = vmatprep.mubr.msk.bf16.mxu1 %vm4349_vm1, %v6370_v37 }
 0x4d9   : > { %15608 = vmatmul.mubr.msk.bf16.gmra.mrb[12].mxu1 %vm4349_vm1, %v6371_v44 }
 0x4da   : > { %15611 = vmatprep.mubr.msk.bf16.mxu1 %vm4349_vm1, %v19699_v12 }
 0x4e1   : > { %15612 = vmatmul.mubr.msk.bf16.gmra.mrb[16].mxu1 %vm4349_vm1, %v19703_v18 }
 0x4e2   : > { %15615 = vmatprep.mubr.msk.bf16.mxu1 %vm4349_vm1, %v19212_v16  ;;  %v19747_v16 = vld [vmem:[#allocation2 + $0x1c0] sm:$0xff] }
 0x4e9   : > { %15616 = vmatmul.mubr.msk.bf16.gmra.mrb[20].mxu1 %vm4349_vm1, %v19217_v38  ;;  %v19751_v38 = vld [vmem:[#allocation2 + $0x1c8] sm:$0xff] }
 0x4ea   : > { %15619 = vmatprep.mubr.msk.bf16.mxu1 %vm4349_vm1, %v19238_v29  ;;  %v17282_v29 = vld [vmem:[%s21041_s3 + $0xc8] sm:$0xff]  }
 0x4f1   : > { %15620 = vmatmul.mubr.msk.bf16.gmra.mrb[24].mxu1 %vm4349_vm1, %v19243_v0  ;;  %v17283_v0 = vld [vmem:[%s21041_s3 + $0xd0] sm:$0xff]  }
 0x4f2   : > { %15623 = vmatprep.mubr.msk.bf16.mxu1 %vm4349_vm1, %v19264_v32  ;;  %v17284_v32 = vld [vmem:[%s21041_s3 + $0xd8] sm:$0xff]  }
 0x4f9   : > { %15624 = vmatmul.mubr.msk.bf16.gmra.mrb[28].mxu1 %vm4349_vm1, %v19269_v45  ;;  %v17286_v45 = vld [vmem:[%s21043_s5 + $0x8] sm:$0xff]  }
 0x4fa   : > { %15627 = vmatprep.mubr.msk.bf16.mxu1 %vm4349_vm1, %v19290_v6  ;;  %v17285_v6 = vld [vmem:[%s21041_s3 + $0xe0] sm:$0xff]   ;;  %15947 = vmatprep.subr.bf16.mxu0 %v17286_v45 }
 0x4fb   : > { %15948 = vmatpush3.bf16.msra.mxu0 %v17286_v45 }
 0x501   : > { %15628 = vmatmul.mubr.msk.bf16.gmra.mrb[32].mxu1 %vm4349_vm1, %v19295_v36  ;;  %v19782_v36 = vld [vmem:[#allocation2 + $0xe0] sm:$0xff] }
 0x502   : > { %15631 = vmatprep.mubr.msk.bf16.mxu1 %vm4349_vm1, %v19321_v33 }
 0x509   : > { %15632 = vmatmul.mubr.msk.bf16.gmra.mrb[36].mxu1 %vm4349_vm1, %v19326_v13 }
 0x50a   : > { %15635 = vmatprep.mubr.msk.bf16.mxu1 %vm4349_vm1, %v19347_v10 }
 0x511   : > { %15636 = vmatmul.mubr.msk.bf16.gmra.mrb[40].mxu1 %vm4349_vm1, %v19352_v23 }
 0x512   : > { %15639 = vmatprep.mubr.msk.bf16.mxu1 %vm4349_vm1, %v19373_v9 }
 0x519   : > { %15640 = vmatmul.mubr.msk.bf16.gmra.mrb[44].mxu1 %vm4349_vm1, %v19378_v17 }
 0x51a   : > { %15643 = vmatprep.mubr.msk.bf16.mxu1 %vm4349_vm1, %v19653_v60 }
 0x521   : > { %15644 = vmatmul.mubr.msk.bf16.gmra.mrb[48].mxu1 %vm4349_vm1, %v19657_v19 }
 0x522   : > { %15647 = vmatprep.mubr.msk.bf16.mxu1 %vm4349_vm1, %v19661_v62 }
 0x529   : > { %15648 = vmatmul.mubr.msk.bf16.gmra.mrb[52].mxu1 %vm4349_vm1, %v19665_v31 }
 0x52a   : > { %15651 = vmatprep.mubr.msk.bf16.mxu1 %vm4349_vm1, %v19669_v4 }
 0x531   : > { %15652 = vmatmul.mubr.msk.bf16.gmra.mrb[56].mxu1 %vm4349_vm1, %v19673_v51 }
 0x532   : > { %15655 = vmatprep.mubr.msk.bf16.mxu1 %vm4349_vm1, %v19747_v16 }
 0x539   : > { %15656 = vmatmul.mubr.msk.bf16.gmra.mrb[60].mxu1 %vm4349_vm1, %v19751_v38 }
 0x53a   : > { %15667 = vmatprep.mubr.msk.bf16.mxu1 %vm4349_vm1, %v19600_v48  ;;  %v7922_v48 = vld [vmem:[#allocation2 + $0x168] sm:$0xff] }
 0x541   : > { %15668 = vmatmul.mubr.msk.bf16.vlgmr.msra.gmra.mrb[0].mxu1 %vm4349_vm1, %v19607_v40  ;;  %v7938_v40 = vld [vmem:[#allocation2 + $0x228] sm:$0xff] }
 0x542   : > { %15732 = vmatpush3.bf16.msra.mxu1 %v17281_v1  ;;  %15671 = vmatprep.mubr.msk.bf16.mxu1 %vm4349_vm1, %v6368_v20 }
 0x543   : > { %15733 = vmatprep.subr.bf16.mxu1 %v17282_v29 }
 0x546   : > { %15734 = vmatpush3.bf16.msra.mxu1 %v17282_v29 }
 0x547   : > { %15735 = vmatprep.subr.bf16.mxu1 %v17283_v0 }
 0x549   : > { %15672 = vmatmul.mubr.msk.bf16.gmra.mrb[4].mxu1 %vm4349_vm1, %v6369_v27 }
 0x54a   : > { %15675 = vmatprep.mubr.msk.bf16.mxu1 %vm4349_vm1, %v6370_v37  ;;  %15736 = vmatpush3.bf16.msra.mxu1 %v17283_v0 }
 0x54b   : > { %15737 = vmatprep.subr.bf16.mxu1 %v17284_v32 }
 0x54e   : > { %15738 = vmatpush3.bf16.msra.mxu1 %v17284_v32 }
 0x54f   : > { %15803 = vmatprep.subr.bf16.mxu1 %v17285_v6 }
 0x551   : > { %15676 = vmatmul.mubr.msk.bf16.gmra.mrb[8].mxu1 %vm4349_vm1, %v6371_v44 }
 0x552   : > { %15679 = vmatprep.mubr.msk.bf16.mxu1 %vm4349_vm1, %v19535_v49  ;;  %v19920_v49 = vld [vmem:[#allocation2 + $0x208] sm:$0xff] }
 0x559   : > { %15680 = vmatmul.mubr.msk.bf16.gmra.mrb[12].mxu1 %vm4349_vm1, %v19541_v22  ;;  %v19922_v22 = vld [vmem:[#allocation2 + $0x210] sm:$0xff] }
 0x55a   : > { %15683 = vmatprep.mubr.msk.bf16.mxu1 %vm4349_vm1, %v19782_v36 }
 0x561   : > { %15684 = vmatmul.mubr.msk.bf16.gmra.mrb[16].mxu1 %vm4349_vm1, %v19786_v21 }
 0x562   : > { %15687 = vmatprep.mubr.msk.bf16.mxu1 %vm4349_vm1, %v19790_v14 }
 0x569   : > { %15688 = vmatmul.mubr.msk.bf16.gmra.mrb[20].mxu1 %vm4349_vm1, %v19794_v52 }
 0x56a   : > { %15691 = vmatprep.mubr.msk.bf16.mxu1 %vm4349_vm1, %v19798_v26 }
 0x571   : > { %15692 = vmatmul.mubr.msk.bf16.gmra.mrb[24].mxu1 %vm4349_vm1, %v19802_v57 }
 0x572   : > { %15695 = vmatprep.mubr.msk.bf16.mxu1 %vm4349_vm1, %v19555_v5 }
 0x579   : > { %15696 = vmatmul.mubr.msk.bf16.gmra.mrb[28].mxu1 %vm4349_vm1, %v19561_v39 }
 0x57a   : > { %15699 = vmatprep.mubr.msk.bf16.mxu1 %vm4349_vm1, %v19321_v33  ;;  %v19836_v33 = vld [vmem:[#allocation2 + $0x1d0] sm:$0xff] }
 0x581   : > { %15700 = vmatmul.mubr.msk.bf16.gmra.mrb[32].mxu1 %vm4349_vm1, %v19326_v13  ;;  %v19842_v13 = vld [vmem:[#allocation2 + $0x1d8] sm:$0xff] }
 0x582   : > { %15703 = vmatprep.mubr.msk.bf16.mxu1 %vm4349_vm1, %v19347_v10  ;;  %v17287_v10 = vld [vmem:[%s21041_s3 + $0xe8] sm:$0xff]  }
 0x589   : > { %15704 = vmatmul.mubr.msk.bf16.gmra.mrb[36].mxu1 %vm4349_vm1, %v19352_v23  ;;  %v17288_v23 = vld [vmem:[%s21041_s3 + $0xf0] sm:$0xff]  }
 0x58a   : > { %15707 = vmatprep.mubr.msk.bf16.mxu1 %vm4349_vm1, %v19373_v9  ;;  %v17289_v9 = vld [vmem:[%s21041_s3 + $0xf8] sm:$0xff]  }
 0x591   : > { %15708 = vmatmul.mubr.msk.bf16.gmra.mrb[40].mxu1 %vm4349_vm1, %v19378_v17  ;;  %v17290_v17 = vld [vmem:[%s21041_s3 + $0x100] sm:$0xff]  }
 0x592   : > { %15711 = vmatprep.mubr.msk.bf16.mxu1 %vm4349_vm1, %v19575_v11 }
 0x599   : > { %15712 = vmatmul.mubr.msk.bf16.gmra.mrb[44].mxu1 %vm4349_vm1, %v19581_v59 }
 0x59a   : > { %15715 = vmatprep.mubr.msk.bf16.mxu1 %vm4349_vm1, %v19661_v62 }
 0x5a1   : > { %15716 = vmatmul.mubr.msk.bf16.gmra.mrb[48].mxu1 %vm4349_vm1, %v19665_v31 }
 0x5a2   : > { %15719 = vmatprep.mubr.msk.bf16.mxu1 %vm4349_vm1, %v19669_v4 }
 0x5a9   : > { %15720 = vmatmul.mubr.msk.bf16.gmra.mrb[52].mxu1 %vm4349_vm1, %v19673_v51 }
 0x5aa   : > { %15723 = vmatprep.mubr.msk.bf16.mxu1 %vm4349_vm1, %v19747_v16 }
 0x5b1   : > { %15724 = vmatmul.mubr.msk.bf16.gmra.mrb[56].mxu1 %vm4349_vm1, %v19751_v38 }
 0x5b2   : > { %15727 = vmatprep.mubr.msk.bf16.mxu1 %vm4349_vm1, %v19836_v33 }
 0x5b9   : > { %15728 = vmatmul.mubr.msk.bf16.gmra.mrb[60].mxu1 %vm4349_vm1, %v19842_v13 }
 0x5ba   : > { %15739 = vmatprep.mubr.msk.bf16.mxu1 %vm4349_vm1, %v19465_v3  ;;  %v7403_v3 = vld [vmem:[#allocation2 + $0x130] sm:$0xff] }
 0x5c1   : > { %15740 = vmatmul.mubr.msk.bf16.vlgmr.msra.gmra.mrb[0].mxu1 %vm4349_vm1, %v19471_v43  ;;  %v7404_v43 = vld [vmem:[#allocation2 + $0x138] sm:$0xff] }
 0x5c2   : > { %15804 = vmatpush3.bf16.msra.mxu1 %v17285_v6  ;;  %15743 = vmatprep.mubr.msk.bf16.mxu1 %vm4349_vm1, %v19699_v12 }
 0x5c3   : > { %15805 = vmatprep.subr.bf16.mxu1 %v17287_v10 }
 0x5c6   : > { %15806 = vmatpush3.bf16.msra.mxu1 %v17287_v10 }
 0x5c7   : > { %15807 = vmatprep.subr.bf16.mxu1 %v17288_v23 }
 0x5c9   : > { %15744 = vmatmul.mubr.msk.bf16.gmra.mrb[4].mxu1 %vm4349_vm1, %v19703_v18 }
 0x5ca   : > { %15747 = vmatprep.mubr.msk.bf16.mxu1 %vm4349_vm1, %v19782_v36  ;;  %15808 = vmatpush3.bf16.msra.mxu1 %v17288_v23 }
 0x5cb   : > { %15809 = vmatprep.subr.bf16.mxu1 %v17289_v9 }
 0x5ce   : > { %15810 = vmatpush3.bf16.msra.mxu1 %v17289_v9 }
 0x5cf   : > { %15875 = vmatprep.subr.bf16.mxu1 %v17290_v17 }
 0x5d1   : > { %15748 = vmatmul.mubr.msk.bf16.gmra.mrb[8].mxu1 %vm4349_vm1, %v19786_v21 }
 0x5d2   : > { %15751 = vmatprep.mubr.msk.bf16.mxu1 %vm4349_vm1, %v19790_v14 }
 0x5d9   : > { %15752 = vmatmul.mubr.msk.bf16.gmra.mrb[12].mxu1 %vm4349_vm1, %v19794_v52 }
 0x5da   : > { %15755 = vmatprep.mubr.msk.bf16.mxu1 %vm4349_vm1, %v19485_v41  ;;  %v19888_v41 = vld [vmem:[#allocation2 + $0x150] sm:$0xff] }
 0x5e1   : > { %15756 = vmatmul.mubr.msk.bf16.gmra.mrb[16].mxu1 %vm4349_vm1, %v19491_v63  ;;  %v19892_v63 = vld [vmem:[#allocation2 + $0x158] sm:$0xff] }
 0x5e2   : > { %15759 = vmatprep.mubr.msk.bf16.mxu1 %vm4349_vm1, %v7403_v3 }
 0x5e9   : > { %15760 = vmatmul.mubr.msk.bf16.gmra.mrb[20].mxu1 %vm4349_vm1, %v7404_v43 }
 0x5ea   : > { %15763 = vmatprep.mubr.msk.bf16.mxu1 %vm4349_vm1, %v19880_v8 }
 0x5f1   : > { %15764 = vmatmul.mubr.msk.bf16.gmra.mrb[24].mxu1 %vm4349_vm1, %v19884_v47 }
 0x5f2   : > { %15767 = vmatprep.mubr.msk.bf16.mxu1 %vm4349_vm1, %v19888_v41 }
 0x5f9   : > { %15768 = vmatmul.mubr.msk.bf16.gmra.mrb[28].mxu1 %vm4349_vm1, %v19892_v63 }
 0x5fa   : > { %15771 = vmatprep.mubr.msk.bf16.mxu1 %vm4349_vm1, %v19643_v54  ;;  %v17294_v54 = vld [vmem:[%s21043_s5] sm:$0xff]  }
 0x5fb   : > { %15965 = vmatprep.subr.bf16.mxu0 %v17294_v54 }
 0x601   : > { %15772 = vmatmul.mubr.msk.bf16.gmra.mrb[32].mxu1 %vm4349_vm1, %v19649_v35 }
 0x602   : > { %15775 = vmatprep.mubr.msk.bf16.mxu1 %vm4349_vm1, %v19653_v60 }
 0x609   : > { %15776 = vmatmul.mubr.msk.bf16.gmra.mrb[36].mxu1 %vm4349_vm1, %v19657_v19 }
 0x60a   : > { %15779 = vmatprep.mubr.msk.bf16.mxu1 %vm4349_vm1, %v19661_v62 }
 0x611   : > { %15780 = vmatmul.mubr.msk.bf16.gmra.mrb[40].mxu1 %vm4349_vm1, %v19665_v31 }
 0x612   : > { %15783 = vmatprep.mubr.msk.bf16.mxu1 %vm4349_vm1, %v19669_v4 }
 0x619   : > { %15784 = vmatmul.mubr.msk.bf16.gmra.mrb[44].mxu1 %vm4349_vm1, %v19673_v51 }
 0x61a   : > { %15787 = vmatprep.mubr.msk.bf16.mxu1 %vm4349_vm1, %v7417_v42 }
 0x621   : > { %15788 = vmatmul.mubr.msk.bf16.gmra.mrb[48].mxu1 %vm4349_vm1, %v7418_v2 }
 0x622   : > { %15791 = vmatprep.mubr.msk.bf16.mxu1 %vm4349_vm1, %v7419_v25 }
 0x629   : > { %15792 = vmatmul.mubr.msk.bf16.gmra.mrb[52].mxu1 %vm4349_vm1, %v7420_v24 }
 0x62a   : > { %15795 = vmatprep.mubr.msk.bf16.mxu1 %vm4349_vm1, %v19915_v30 }
 0x631   : > { %15796 = vmatmul.mubr.msk.bf16.gmra.mrb[56].mxu1 %vm4349_vm1, %v19920_v49 }
 0x632   : > { %15799 = vmatprep.mubr.msk.bf16.mxu1 %vm4349_vm1, %v19922_v22 }
 0x639   : > { %15800 = vmatmul.mubr.msk.bf16.gmra.mrb[60].mxu1 %vm4349_vm1, %v19928_v34 }
 0x63a   : > { %15811 = vmatprep.mubr.msk.bf16.mxu1 %vm4349_vm1, %v19699_v12 }
 0x641   : > { %15812 = vmatmul.mubr.msk.bf16.vlgmr.msra.gmra.mrb[0].mxu1 %vm4349_vm1, %v19703_v18 }
 0x642   : > { %15876 = vmatpush3.bf16.msra.mxu1 %v17290_v17  ;;  %15815 = vmatprep.mubr.msk.bf16.mxu1 %vm4349_vm1, %v19782_v36 }
 0x643   : > { %15877 = vmatprep.subr.bf16.mxu1 %v17291_v55 }
 0x646   : > { %15878 = vmatpush3.bf16.msra.mxu1 %v17291_v55 }
 0x647   : > { %15879 = vmatprep.subr.bf16.mxu1 %v17292_v46 }
 0x649   : > { %15816 = vmatmul.mubr.msk.bf16.gmra.mrb[4].mxu1 %vm4349_vm1, %v19786_v21 }
 0x64a   : > { %15819 = vmatprep.mubr.msk.bf16.mxu1 %vm4349_vm1, %v19790_v14  ;;  %15880 = vmatpush3.bf16.msra.mxu1 %v17292_v46 }
 0x64b   : > { %15881 = vmatprep.subr.bf16.mxu1 %v17293_v7 }
 0x64e   : > { %15882 = vmatpush3.bf16.msra.mxu1 %v17293_v7 }
 0x651   : > { %15820 = vmatmul.mubr.msk.bf16.gmra.mrb[8].mxu1 %vm4349_vm1, %v19794_v52 }
 0x652   : > { %15823 = vmatprep.mubr.msk.bf16.mxu1 %vm4349_vm1, %v19798_v26 }
 0x659   : > { %15824 = vmatmul.mubr.msk.bf16.gmra.mrb[12].mxu1 %vm4349_vm1, %v19802_v57 }
 0x65a   : > { %15827 = vmatprep.mubr.msk.bf16.mxu1 %vm4349_vm1, %v7403_v3 }
 0x661   : > { %15828 = vmatmul.mubr.msk.bf16.gmra.mrb[16].mxu1 %vm4349_vm1, %v7404_v43 }
 0x662   : > { %15831 = vmatprep.mubr.msk.bf16.mxu1 %vm4349_vm1, %v19880_v8 }
 0x669   : > { %15832 = vmatmul.mubr.msk.bf16.gmra.mrb[20].mxu1 %vm4349_vm1, %v19884_v47 }
 0x66a   : > { %15835 = vmatprep.mubr.msk.bf16.mxu1 %vm4349_vm1, %v19888_v41 }
 0x671   : > { %15836 = vmatmul.mubr.msk.bf16.gmra.mrb[24].mxu1 %vm4349_vm1, %v19892_v63 }
 0x672   : > { %15839 = vmatprep.mubr.msk.bf16.mxu1 %vm4349_vm1, %v7921_v61 }
 0x679   : > { %15840 = vmatmul.mubr.msk.bf16.gmra.mrb[28].mxu1 %vm4349_vm1, %v7922_v48 }
 0x67a   : > { %15843 = vmatprep.mubr.msk.bf16.mxu1 %vm4349_vm1, %v19653_v60  ;;  %v20126_v60 = vld [vmem:[%s21043_s5 + $0x10] sm:$0xff]  }
 0x681   : > { %15844 = vmatmul.mubr.msk.bf16.gmra.mrb[32].mxu1 %vm4349_vm1, %v19657_v19 }
 0x682   : > { %15847 = vmatprep.mubr.msk.bf16.mxu1 %vm4349_vm1, %v19661_v62 }
 0x689   : > { %15848 = vmatmul.mubr.msk.bf16.gmra.mrb[36].mxu1 %vm4349_vm1, %v19665_v31 }
 0x68a   : > { %15851 = vmatprep.mubr.msk.bf16.mxu1 %vm4349_vm1, %v19669_v4 }
 0x691   : > { %15852 = vmatmul.mubr.msk.bf16.gmra.mrb[40].mxu1 %vm4349_vm1, %v19673_v51 }
 0x692   : > { %15855 = vmatprep.mubr.msk.bf16.mxu1 %vm4349_vm1, %v19747_v16 }
 0x699   : > { %15856 = vmatmul.mubr.msk.bf16.gmra.mrb[44].mxu1 %vm4349_vm1, %v19751_v38 }
 0x69a   : > { %15859 = vmatprep.mubr.msk.bf16.mxu1 %vm4349_vm1, %v7419_v25 }
 0x6a1   : > { %15860 = vmatmul.mubr.msk.bf16.gmra.mrb[48].mxu1 %vm4349_vm1, %v7420_v24 }
 0x6a2   : > { %15863 = vmatprep.mubr.msk.bf16.mxu1 %vm4349_vm1, %v19915_v30 }
 0x6a9   : > { %15864 = vmatmul.mubr.msk.bf16.gmra.mrb[52].mxu1 %vm4349_vm1, %v19920_v49 }
 0x6aa   : > { %15867 = vmatprep.mubr.msk.bf16.mxu1 %vm4349_vm1, %v19922_v22 }
 0x6b1   : > { %15868 = vmatmul.mubr.msk.bf16.gmra.mrb[56].mxu1 %vm4349_vm1, %v19928_v34 }
 0x6b2   : > { %15871 = vmatprep.mubr.msk.bf16.mxu1 %vm4349_vm1, %v7937_v53 }
 0x6b9   : > { %15872 = vmatmul.mubr.msk.bf16.gmra.mrb[60].mxu1 %vm4349_vm1, %v7938_v40 }
 0x6ba   : > { %15883 = vmatprep.mubr.msk.bf16.mxu1 %vm4349_vm1, %v19782_v36 }
 0x6c1   : > { %15884 = vmatmul.mubr.msk.bf16.vlgmr.msra.gmra.mrb[0].mxu1 %vm4349_vm1, %v19786_v21 }
 0x6c2   : > { %15887 = vmatprep.mubr.msk.bf16.mxu1 %vm4349_vm1, %v19790_v14 }
 0x6c9   : > { %15888 = vmatmul.mubr.msk.bf16.gmra.mrb[4].mxu1 %vm4349_vm1, %v19794_v52 }
 0x6ca   : > { %15891 = vmatprep.mubr.msk.bf16.mxu1 %vm4349_vm1, %v19798_v26 }
 0x6d1   : > { %15892 = vmatmul.mubr.msk.bf16.gmra.mrb[8].mxu1 %vm4349_vm1, %v19802_v57 }
 0x6d2   : > { %15895 = vmatprep.mubr.msk.bf16.mxu1 %vm4349_vm1, %v19555_v5  ;;  %v8452_v5 = vld [vmem:[#allocation2 + $0x230] sm:$0xff] }
 0x6d9   : > { %15896 = vmatmul.mubr.msk.bf16.gmra.mrb[12].mxu1 %vm4349_vm1, %v19561_v39  ;;  %v8453_v39 = vld [vmem:[#allocation2 + $0x238] sm:$0xff] }
 0x6da   : > { %15899 = vmatprep.mubr.msk.bf16.mxu1 %vm4349_vm1, %v19880_v8 }
 0x6e1   : > { %15900 = vmatmul.mubr.msk.bf16.gmra.mrb[16].mxu1 %vm4349_vm1, %v19884_v47 }
 0x6e2   : > { %15903 = vmatprep.mubr.msk.bf16.mxu1 %vm4349_vm1, %v19888_v41 }
 0x6e9   : > { %15904 = vmatmul.mubr.msk.bf16.gmra.mrb[20].mxu1 %vm4349_vm1, %v19892_v63 }
 0x6ea   : > { %15907 = vmatprep.mubr.msk.bf16.mxu1 %vm4349_vm1, %v7921_v61 }
 0x6f1   : > { %15908 = vmatmul.mubr.msk.bf16.gmra.mrb[24].mxu1 %vm4349_vm1, %v7922_v48 }
 0x6f2   : > { %15911 = vmatprep.mubr.msk.bf16.mxu1 %vm4349_vm1, %v19575_v11  ;;  %v21256_v11 = vmov 0  }
 0x6f3   : > { %9072 = vst.msk [vmem:[#allocation3] sm:$0xff] %vm9071_vm2, %v21256_v11  ;;  %9073 = vst.msk [vmem:[#allocation3 + $0x8] sm:$0xff] %vm9071_vm2, %v21256_v11 }
 0x6f4   : > { %9074 = vst.msk [vmem:[#allocation3 + $0x10] sm:$0xff] %vm9071_vm2, %v21256_v11  ;;  %9075 = vst.msk [vmem:[#allocation3 + $0x18] sm:$0xff] %vm9071_vm2, %v21256_v11 }
 0x6f5   : > { %9076 = vst.msk [vmem:[#allocation3 + $0x20] sm:$0xff] %vm9071_vm2, %v21256_v11  ;;  %9077 = vst.msk [vmem:[#allocation3 + $0x28] sm:$0xff] %vm9071_vm2, %v21256_v11 }
 0x6f6   : > { %9078 = vst.msk [vmem:[#allocation3 + $0x30] sm:$0xff] %vm9071_vm2, %v21256_v11  ;;  %9079 = vst.msk [vmem:[#allocation3 + $0x38] sm:$0xff] %vm9071_vm2, %v21256_v11 }
 0x6f7   : > { %9081 = vst.msk [vmem:[#allocation3 + $0xc0] sm:$0xff] %vm9071_vm2, %v21256_v11  ;;  %9082 = vst.msk [vmem:[#allocation3 + $0xc8] sm:$0xff] %vm9071_vm2, %v21256_v11 }
 0x6f8   : > { %9083 = vst.msk [vmem:[#allocation3 + $0xd0] sm:$0xff] %vm9071_vm2, %v21256_v11  ;;  %9084 = vst.msk [vmem:[#allocation3 + $0xd8] sm:$0xff] %vm9071_vm2, %v21256_v11 }
 0x6f9   : > { %15912 = vmatmul.mubr.msk.bf16.gmra.mrb[28].mxu1 %vm4349_vm1, %v19581_v59  ;;  %9085 = vst.msk [vmem:[#allocation3 + $0xe0] sm:$0xff] %vm9071_vm2, %v21256_v11  ;;  %9086 = vst.msk [vmem:[#allocation3 + $0xe8] sm:$0xff] %vm9071_vm2, %v21256_v11 }
 0x6fa   : > { %15915 = vmatprep.mubr.msk.bf16.mxu1 %vm4349_vm1, %v19661_v62  ;;  %9087 = vst.msk [vmem:[#allocation3 + $0xf0] sm:$0xff] %vm9071_vm2, %v21256_v11  ;;  %9088 = vst.msk [vmem:[#allocation3 + $0xf8] sm:$0xff] %vm9071_vm2, %v21256_v11 }
 0x6fb   : > { %9090 = vst.msk [vmem:[#allocation3 + $0x40] sm:$0xff] %vm9071_vm2, %v21256_v11  ;;  %9091 = vst.msk [vmem:[#allocation3 + $0x48] sm:$0xff] %vm9071_vm2, %v21256_v11  ;;  %v20104_v59 = vld [vmem:[#allocation3 + $0x10] sm:$0xff]  ;;  %v20108_v50 = vld [vmem:[#allocation3 + $0x18] sm:$0xff] }
 0x6fc   : > { %9093 = vst.msk [vmem:[#allocation3 + $0x70] sm:$0xff] %vm9071_vm2, %v21256_v11  ;;  %9094 = vst.msk [vmem:[#allocation3 + $0x78] sm:$0xff] %vm9071_vm2, %v21256_v11  ;;  %15949 = vmatprep.mubr.msk.bf16.mxu0 %vm9071_vm2, %v20104_v59  ;;  %v20112_v15 = vld [vmem:[#allocation3 + $0x20] sm:$0xff]  ;;  %v20119_v35 = vld [vmem:[#allocation3 + $0x28] sm:$0xff] }
 0x6fd   : > { %9130 = vst.msk [vmem:[#allocation3 + $0x80] sm:$0xff] %vm9071_vm2, %v21256_v11  ;;  %9131 = vst.msk [vmem:[#allocation3 + $0x88] sm:$0xff] %vm9071_vm2, %v21256_v11  ;;  %15950 = vmatmul.mubr.msk.bf16.vlgmr.msra.gmra.mrb[0].mxu0 %vm9071_vm2, %v20108_v50 }
 0x6fe   : > { %9133 = vst.msk [vmem:[#allocation3 + $0xb0] sm:$0xff] %vm9071_vm2, %v21256_v11  ;;  %9134 = vst.msk [vmem:[#allocation3 + $0xb8] sm:$0xff] %vm9071_vm2, %v21256_v11  ;;  %15953 = vmatprep.mubr.msk.bf16.mxu0 %vm9071_vm2, %v20112_v15  ;;  %15966 = vmatpush3.bf16.msra.mxu0 %v17294_v54 }
 0x6ff   : > { %15983 = vmatprep.subr.bf16.mxu0 %v20126_v60 }
 0x701   : > { %15916 = vmatmul.mubr.msk.bf16.gmra.mrb[32].mxu1 %vm4349_vm1, %v19665_v31 }
 0x702   : > { %15919 = vmatprep.mubr.msk.bf16.mxu1 %vm4349_vm1, %v19669_v4 }
 0x705   : > { %15954 = vmatmul.mubr.msk.bf16.gmra.mrb[4].mxu0 %vm9071_vm2, %v20119_v35 }
 0x709   : > { %15920 = vmatmul.mubr.msk.bf16.gmra.mrb[36].mxu1 %vm4349_vm1, %v19673_v51  ;;  %v20132_v51 = vld [vmem:[%s21042_s4] ss:$0 sm:$0xff] }
 0x70a   : > { %15923 = vmatprep.mubr.msk.bf16.mxu1 %vm4349_vm1, %v19747_v16 }
 0x711   : > { %15924 = vmatmul.mubr.msk.bf16.gmra.mrb[40].mxu1 %vm4349_vm1, %v19751_v38 }
 0x712   : > { %15927 = vmatprep.mubr.msk.bf16.mxu1 %vm4349_vm1, %v19836_v33 }
 0x719   : > { %15928 = vmatmul.mubr.msk.bf16.gmra.mrb[44].mxu1 %vm4349_vm1, %v19842_v13 }
 0x71a   : > { %15931 = vmatprep.mubr.msk.bf16.mxu1 %vm4349_vm1, %v19915_v30 }
 0x721   : > { %15932 = vmatmul.mubr.msk.bf16.gmra.mrb[48].mxu1 %vm4349_vm1, %v19920_v49 }
 0x722   : > { %15935 = vmatprep.mubr.msk.bf16.mxu1 %vm4349_vm1, %v19922_v22 }
 0x729   : > { %15936 = vmatmul.mubr.msk.bf16.gmra.mrb[52].mxu1 %vm4349_vm1, %v19928_v34 }
 0x72a   : > { %15939 = vmatprep.mubr.msk.bf16.mxu1 %vm4349_vm1, %v7937_v53 }
 0x731   : > { %15940 = vmatmul.mubr.msk.bf16.gmra.mrb[56].mxu1 %vm4349_vm1, %v7938_v40 }
 0x732   : > { %15943 = vmatprep.mubr.msk.bf16.mxu1 %vm4349_vm1, %v8452_v5 }
 0x739   : > { %15944 = vmatmul.mubr.msk.bf16.gmra.mrb[60].mxu1 %vm4349_vm1, %v8453_v39 }
 0x73a   : > { %12947 = vmatprep.mubr.bf16.mxu1 %v21256_v11 }
 0x794   : > { %v15885_v19 = vpop.f32.mrb[0].mxu1 }
 0x795   : > { %v8617_v62 = vpop.f32.mrb[1].mxu1  ;;  %v8945_v28 = vadd.f32 %v15885_v19, %v20132_v51 }
 0x796   : > { %v15886_v31 = vpop.f32.mrb[2].mxu1  ;;  %v8943_v56 = vadd.f32 %v20132_v51, %v8617_v62 }
 0x797   : > { %v8620_v4 = vpop.f32.mrb[3].mxu1  ;;  %v8946_v20 = vadd.f32 %v15886_v31, %v20132_v51  ;;  %v9009_v18 = vmax.f32 %v8945_v28, 0.0 }
 0x798   : > { %v8944_v37 = vadd.f32 %v20132_v51, %v8620_v4  ;;  %v9007_v0 = vmax.f32 %v8943_v56, 0.0 }
 0x799   : > { %v9010_v6 = vmax.f32 %v8946_v20, 0.0 }
 0x79a   : > { %v9008_v14 = vmax.f32 %v8944_v37, 0.0 }
 0x79c   : > { %v15889_v58 = vpop.f32.mrb[4].mxu1 }
 0x79d   : > { %v8949_v1 = vadd.f32 %v15889_v58, %v20132_v51  ;;  %v8633_v27 = vpop.f32.mrb[5].mxu1 }
 0x79e   : > { %v8947_v44 = vadd.f32 %v20132_v51, %v8633_v27  ;;  %v15890_v12 = vpop.f32.mrb[6].mxu1 }
 0x79f   : > { %v9013_v16 = vmax.f32 %v8949_v1, 0.0  ;;  %v8950_v38 = vadd.f32 %v15890_v12, %v20132_v51  ;;  %v8636_v29 = vpop.f32.mrb[7].mxu1 }
 0x7a0   : > { %v9011_v32 = vmax.f32 %v8947_v44, 0.0  ;;  %v8948_v45 = vadd.f32 %v20132_v51, %v8636_v29 }
 0x7a1   : > { %v20142_v36 = vmax.f32 %v9009_v18, %v9013_v16  ;;  %v9014_v21 = vmax.f32 %v8950_v38, 0.0 }
 0x7a2   : > { %v20144_v52 = vmax.f32 %v9007_v0, %v9011_v32  ;;  %v9012_v26 = vmax.f32 %v8948_v45, 0.0 }
 0x7a3   : > { %v20146_v57 = vmax.f32 %v9010_v6, %v9014_v21 }
 0x7a4   : > { %v20148_v33 = vmax.f32 %v9008_v14, %v9012_v26  ;;  %v15893_v13 = vpop.f32.mrb[8].mxu1 }
 0x7a5   : > { %v8649_v10 = vpop.f32.mrb[9].mxu1  ;;  %v8953_v17 = vadd.f32 %v15893_v13, %v20132_v51 }
 0x7a6   : > { %v15894_v23 = vpop.f32.mrb[10].mxu1  ;;  %v8951_v3 = vadd.f32 %v20132_v51, %v8649_v10 }
 0x7a7   : > { %v8652_v9 = vpop.f32.mrb[11].mxu1  ;;  %v8954_v8 = vadd.f32 %v15894_v23, %v20132_v51  ;;  %v9017_v25 = vmax.f32 %v8953_v17, 0.0 }
 0x7a8   : > { %v8952_v63 = vadd.f32 %v20132_v51, %v8652_v9  ;;  %v9015_v22 = vmax.f32 %v8951_v3, 0.0 }
 0x7a9   : > { %v9018_v46 = vmax.f32 %v8954_v8, 0.0 }
 0x7aa   : > { %v9016_v48 = vmax.f32 %v8952_v63, 0.0 }
 0x7ac   : > { %v15897_v43 = vpop.f32.mrb[12].mxu1 }
 0x7ad   : > { %v8957_v47 = vadd.f32 %v15897_v43, %v20132_v51  ;;  %v8665_v41 = vpop.f32.mrb[13].mxu1 }
 0x7ae   : > { %v8955_v42 = vadd.f32 %v20132_v51, %v8665_v41  ;;  %v15898_v2 = vpop.f32.mrb[14].mxu1 }
 0x7af   : > { %v9021_v24 = vmax.f32 %v8957_v47, 0.0  ;;  %v8958_v30 = vadd.f32 %v15898_v2, %v20132_v51  ;;  %v8668_v49 = vpop.f32.mrb[15].mxu1 }
 0x7b0   : > { %v9019_v34 = vmax.f32 %v8955_v42, 0.0  ;;  %v8956_v55 = vadd.f32 %v20132_v51, %v8668_v49 }
 0x7b1   : > { %v20158_v7 = vmax.f32 %v9017_v25, %v9021_v24  ;;  %v9022_v61 = vmax.f32 %v8958_v30, 0.0 }
 0x7b2   : > { %v20160_v53 = vmax.f32 %v9015_v22, %v9019_v34  ;;  %v9020_v40 = vmax.f32 %v8956_v55, 0.0 }
 0x7b3   : > { %v20162_v5 = vmax.f32 %v9018_v46, %v9022_v61 }
 0x7b4   : > { %v20164_v39 = vmax.f32 %v9016_v48, %v9020_v40  ;;  %v15901_v54 = vpop.f32.mrb[16].mxu1 }
 0x7b5   : > { %v8681_v19 = vpop.f32.mrb[17].mxu1  ;;  %v8961_v4 = vadd.f32 %v15901_v54, %v20132_v51 }
 0x7b6   : > { %v15902_v62 = vpop.f32.mrb[18].mxu1  ;;  %v8959_v28 = vadd.f32 %v20132_v51, %v8681_v19 }
 0x7b7   : > { %v8684_v31 = vpop.f32.mrb[19].mxu1  ;;  %v8962_v58 = vadd.f32 %v15902_v62, %v20132_v51  ;;  %v9025_v12 = vmax.f32 %v8961_v4, 0.0 }
 0x7b8   : > { %v8960_v27 = vadd.f32 %v20132_v51, %v8684_v31  ;;  %v9023_v29 = vmax.f32 %v8959_v28, 0.0 }
 0x7b9   : > { %v9026_v45 = vmax.f32 %v8962_v58, 0.0 }
 0x7ba   : > { %v9024_v14 = vmax.f32 %v8960_v27, 0.0 }
 0x7bc   : > { %v15905_v56 = vpop.f32.mrb[20].mxu1 }
 0x7bd   : > { %v8965_v20 = vadd.f32 %v15905_v56, %v20132_v51  ;;  %v8697_v1 = vpop.f32.mrb[21].mxu1 }
 0x7be   : > { %v8963_v37 = vadd.f32 %v20132_v51, %v8697_v1  ;;  %v15906_v44 = vpop.f32.mrb[22].mxu1 }
 0x7bf   : > { %v9029_v18 = vmax.f32 %v8965_v20, 0.0  ;;  %v8966_v16 = vadd.f32 %v15906_v44, %v20132_v51  ;;  %v8700_v38 = vpop.f32.mrb[23].mxu1 }
 0x7c0   : > { %v9027_v0 = vmax.f32 %v8963_v37, 0.0  ;;  %v8964_v32 = vadd.f32 %v20132_v51, %v8700_v38 }
 0x7c1   : > { %v9101_v6 = vmax.f32 %v9025_v12, %v9029_v18  ;;  %v9030_v21 = vmax.f32 %v8966_v16, 0.0 }
 0x7c2   : > { %v9099_v26 = vmax.f32 %v9023_v29, %v9027_v0  ;;  %v9028_v13 = vmax.f32 %v8964_v32, 0.0 }
 0x7c3   : > { %v9105_v10 = vmax.f32 %v20142_v36, %v9101_v6  ;;  %v9102_v23 = vmax.f32 %v9026_v45, %v9030_v21 }
 0x7c4   : > { %v9103_v9 = vmax.f32 %v20144_v52, %v9099_v26  ;;  %v9100_v17 = vmax.f32 %v9024_v14, %v9028_v13  ;;  %v15909_v3 = vpop.f32.mrb[24].mxu1 }
 0x7c5   : > { %v9106_v43 = vmax.f32 %v20146_v57, %v9102_v23  ;;  %v8713_v8 = vpop.f32.mrb[25].mxu1  ;;  %v8969_v36 = vadd.f32 %v15909_v3, %v20132_v51 }
 0x7c6   : > { %v9104_v47 = vmax.f32 %v20148_v33, %v9100_v17  ;;  %v15910_v41 = vpop.f32.mrb[26].mxu1  ;;  %v8967_v25 = vadd.f32 %v20132_v51, %v8713_v8 }
 0x7c7   : > { %v9108_v63 = vpack.c.bf16 %v9106_v43, %v9105_v10  ;;  %v8716_v42 = vpop.f32.mrb[27].mxu1  ;;  %v8970_v24 = vadd.f32 %v15910_v41, %v20132_v51  ;;  %v9033_v34 = vmax.f32 %v8969_v36, 0.0 }
 0x7c8   : > { %v9107_v2 = vpack.c.bf16 %v9104_v47, %v9103_v9  ;;  %v8968_v33 = vadd.f32 %v20132_v51, %v8716_v42  ;;  %v9031_v48 = vmax.f32 %v8967_v25, 0.0 }
 0x7c9   : > { %9111 = vst.msk [vmem:[#allocation3 + $0x58] sm:$0xff] %vm9071_vm2, %v9108_v63  ;;  %v9034_v19 = vmax.f32 %v8970_v24, 0.0 }
 0x7ca   : > { %9110 = vst.msk [vmem:[#allocation3 + $0x50] sm:$0xff] %vm9071_vm2, %v9107_v2  ;;  %v9032_v28 = vmax.f32 %v8968_v33, 0.0  ;;  %v9169_v2 = vld [vmem:[#allocation3] sm:$0xff] }
 0x7cc   : > { %v15913_v52 = vpop.f32.mrb[28].mxu1 }
 0x7cd   : > { %v8973_v57 = vadd.f32 %v15913_v52, %v20132_v51  ;;  %v8729_v30 = vpop.f32.mrb[29].mxu1 }
 0x7ce   : > { %v8971_v49 = vadd.f32 %v20132_v51, %v8729_v30  ;;  %v15914_v22 = vpop.f32.mrb[30].mxu1 }
 0x7cf   : > { %v9037_v55 = vmax.f32 %v8973_v57, 0.0  ;;  %v8974_v46 = vadd.f32 %v15914_v22, %v20132_v51  ;;  %v8732_v61 = vpop.f32.mrb[31].mxu1 }
 0x7d0   : > { %v9035_v40 = vmax.f32 %v8971_v49, 0.0  ;;  %v8972_v54 = vadd.f32 %v20132_v51, %v8732_v61  ;;  %v20192_v20 = vld [vmem:[#allocation3 + $0x58] sm:$0xff] }
 0x7d1   : > { %v9118_v62 = vmax.f32 %v9033_v34, %v9037_v55  ;;  %v9038_v31 = vmax.f32 %v8974_v46, 0.0  ;;  %v20188_v4 = vld [vmem:[#allocation3 + $0x50] sm:$0xff]  ;;  %v9170_v55 = vld [vmem:[#allocation3 + $0x8] sm:$0xff]  ;;  %v20230_v46 = vld [vmem:[%s21043_s5 + $0x18] sm:$0xff]  }
 0x7d2   : > { %v9116_v56 = vmax.f32 %v9031_v48, %v9035_v40  ;;  %v9036_v58 = vmax.f32 %v8972_v54, 0.0  ;;  %15957 = vmatprep.mubr.msk.bf16.mxu0 %vm9071_vm2, %v20188_v4 }
 0x7d3   : > { %v9122_v1 = vmax.f32 %v20158_v7, %v9118_v62  ;;  %v9119_v27 = vmax.f32 %v9034_v19, %v9038_v31  ;;  %15958 = vmatmul.mubr.msk.bf16.gmra.mrb[8].mxu0 %vm9071_vm2, %v20192_v20 }
 0x7d4   : > { %v9120_v37 = vmax.f32 %v20160_v53, %v9116_v56  ;;  %v9117_v44 = vmax.f32 %v9032_v28, %v9036_v58  ;;  %v15917_v12 = vpop.f32.mrb[32].mxu1 }
 0x7d5   : > { %v9123_v18 = vmax.f32 %v20162_v5, %v9119_v27  ;;  %v8745_v16 = vpop.f32.mrb[33].mxu1  ;;  %v8977_v7 = vadd.f32 %v15917_v12, %v20132_v51 }
 0x7d6   : > { %v9121_v38 = vmax.f32 %v20164_v39, %v9117_v44  ;;  %v15918_v29 = vpop.f32.mrb[34].mxu1  ;;  %v8975_v6 = vadd.f32 %v20132_v51, %v8745_v16 }
 0x7d7   : > { %v9125_v0 = vpack.c.bf16 %v9123_v18, %v9122_v1  ;;  %v8748_v32 = vpop.f32.mrb[35].mxu1  ;;  %v8978_v21 = vadd.f32 %v15918_v29, %v20132_v51  ;;  %v9041_v10 = vmax.f32 %v8977_v7, 0.0 }
 0x7d8   : > { %v9124_v45 = vpack.c.bf16 %v9121_v38, %v9120_v37  ;;  %v8976_v39 = vadd.f32 %v20132_v51, %v8748_v32  ;;  %v9039_v3 = vmax.f32 %v8975_v6, 0.0  ;;  %v20247_v38 = vld [vmem:[#allocation3 + $0x40] sm:$0xff] }
 0x7d9   : > { %9128 = vst.msk [vmem:[#allocation3 + $0x68] sm:$0xff] %vm9071_vm2, %v9125_v0  ;;  %v9042_v47 = vmax.f32 %v8978_v21, 0.0 }
 0x7da   : > { %9127 = vst.msk [vmem:[#allocation3 + $0x60] sm:$0xff] %vm9071_vm2, %v9124_v45  ;;  %v9040_v36 = vmax.f32 %v8976_v39, 0.0 }
 0x7dc   : > { %v15921_v53 = vpop.f32.mrb[36].mxu1 }
 0x7dd   : > { %v8981_v5 = vadd.f32 %v15921_v53, %v20132_v51  ;;  %v8761_v14 = vpop.f32.mrb[37].mxu1 }
 0x7de   : > { %v8979_v26 = vadd.f32 %v20132_v51, %v8761_v14  ;;  %v15922_v13 = vpop.f32.mrb[38].mxu1  ;;  %v20259_v14 = vld [vmem:[#allocation3 + $0x48] sm:$0xff] }
 0x7df   : > { %v9045_v23 = vmax.f32 %v8981_v5, 0.0  ;;  %v8982_v9 = vadd.f32 %v15922_v13, %v20132_v51  ;;  %v8764_v17 = vpop.f32.mrb[39].mxu1 }
 0x7e0   : > { %v9043_v43 = vmax.f32 %v8979_v26, 0.0  ;;  %v8980_v8 = vadd.f32 %v20132_v51, %v8764_v17  ;;  %v20218_v24 = vld [vmem:[#allocation3 + $0x68] sm:$0xff] }
 0x7e1   : > { %v20210_v41 = vmax.f32 %v9041_v10, %v9045_v23  ;;  %v9046_v63 = vmax.f32 %v8982_v9, 0.0  ;;  %v20212_v42 = vld [vmem:[#allocation3 + $0x60] sm:$0xff] }
 0x7e2   : > { %v20214_v25 = vmax.f32 %v9039_v3, %v9043_v43  ;;  %v9044_v52 = vmax.f32 %v8980_v8, 0.0  ;;  %15961 = vmatprep.mubr.msk.bf16.mxu0 %vm9071_vm2, %v20212_v42 }
 0x7e3   : > { %v20220_v57 = vmax.f32 %v9042_v47, %v9046_v63  ;;  %15962 = vmatmul.mubr.msk.bf16.gmra.mrb[12].mxu0 %vm9071_vm2, %v20218_v24 }
 0x7e4   : > { %v20224_v30 = vmax.f32 %v9040_v36, %v9044_v52  ;;  %v15925_v33 = vpop.f32.mrb[40].mxu1  ;;  %15967 = vmatprep.mubr.msk.bf16.mxu0 %vm9071_vm2, %v9169_v2 }
 0x7e5   : > { %v8777_v49 = vpop.f32.mrb[41].mxu1  ;;  %v8985_v61 = vadd.f32 %v15925_v33, %v20132_v51 }
 0x7e6   : > { %v15926_v22 = vpop.f32.mrb[42].mxu1  ;;  %v8983_v48 = vadd.f32 %v20132_v51, %v8777_v49 }
 0x7e7   : > { %v8780_v34 = vpop.f32.mrb[43].mxu1  ;;  %v8986_v54 = vadd.f32 %v15926_v22, %v20132_v51  ;;  %v9049_v58 = vmax.f32 %v8985_v61, 0.0 }
 0x7e8   : > { %v8984_v31 = vadd.f32 %v20132_v51, %v8780_v34  ;;  %v9047_v37 = vmax.f32 %v8983_v48, 0.0 }
 0x7e9   : > { %v9050_v12 = vmax.f32 %v8986_v54, 0.0 }
 0x7ea   : > { %v9048_v29 = vmax.f32 %v8984_v31, 0.0 }
 0x7eb   : > { %15968 = vmatmul.mubr.msk.bf16.vlgmr.msra.gmra.mrb[0].mxu0 %vm9071_vm2, %v9170_v55 }
 0x7ec   : > { %15984 = vmatpush3.bf16.msra.mxu0 %v20126_v60  ;;  %v15929_v40 = vpop.f32.mrb[44].mxu1  ;;  %15971 = vmatprep.mubr.msk.bf16.mxu0 %vm9071_vm2, %v20104_v59 }
 0x7ed   : > { %v8989_v19 = vadd.f32 %v15929_v40, %v20132_v51  ;;  %v8793_v62 = vpop.f32.mrb[45].mxu1  ;;  %16001 = vmatprep.subr.bf16.mxu0 %v20230_v46 }
 0x7ee   : > { %v8987_v28 = vadd.f32 %v20132_v51, %v8793_v62  ;;  %v15930_v56 = vpop.f32.mrb[46].mxu1 }
 0x7ef   : > { %v9053_v1 = vmax.f32 %v8989_v19, 0.0  ;;  %v8990_v60 = vadd.f32 %v15930_v56, %v20132_v51  ;;  %v8796_v27 = vpop.f32.mrb[47].mxu1 }
 0x7f0   : > { %v9051_v44 = vmax.f32 %v8987_v28, 0.0  ;;  %v8988_v59 = vadd.f32 %v20132_v51, %v8796_v27  ;;  %v9448_v27 = vld [vmem:[#allocation3 + $0x30] sm:$0xff] }
 0x7f1   : > { %v20245_v18 = vmax.f32 %v9049_v58, %v9053_v1  ;;  %v9054_v16 = vmax.f32 %v8990_v60, 0.0 }
 0x7f2   : > { %v20249_v0 = vmax.f32 %v9047_v37, %v9051_v44  ;;  %v9052_v32 = vmax.f32 %v8988_v59, 0.0 }
 0x7f3   : > { %v20251_v45 = vmax.f32 %v9050_v12, %v9054_v16  ;;  %15972 = vmatmul.mubr.msk.bf16.gmra.mrb[4].mxu0 %vm9071_vm2, %v20108_v50 }
 0x7f4   : > { %v20255_v7 = vmax.f32 %v9048_v29, %v9052_v32  ;;  %v15933_v6 = vpop.f32.mrb[48].mxu1  ;;  %15975 = vmatprep.mubr.msk.bf16.mxu0 %vm9071_vm2, %v20247_v38 }
 0x7f5   : > { %v8809_v53 = vpop.f32.mrb[49].mxu1  ;;  %v8993_v39 = vadd.f32 %v15933_v6, %v20132_v51 }
 0x7f6   : > { %v15934_v21 = vpop.f32.mrb[50].mxu1  ;;  %v8991_v26 = vadd.f32 %v20132_v51, %v8809_v53 }
 0x7f7   : > { %v8812_v5 = vpop.f32.mrb[51].mxu1  ;;  %v8994_v50 = vadd.f32 %v15934_v21, %v20132_v51  ;;  %v9057_v43 = vmax.f32 %v8993_v39, 0.0  ;;  %v9449_v39 = vld [vmem:[#allocation3 + $0x38] sm:$0xff] }
 0x7f8   : > { %v8992_v9 = vadd.f32 %v20132_v51, %v8812_v5  ;;  %v9055_v2 = vmax.f32 %v8991_v26, 0.0 }
 0x7f9   : > { %v9058_v33 = vmax.f32 %v8994_v50, 0.0 }
 0x7fa   : > { %v9056_v34 = vmax.f32 %v8992_v9, 0.0 }
 0x7fb   : > { %15976 = vmatmul.mubr.msk.bf16.gmra.mrb[8].mxu0 %vm9071_vm2, %v20259_v14 }
 0x7fc   : > { %v15937_v13 = vpop.f32.mrb[52].mxu1  ;;  %15979 = vmatprep.mubr.msk.bf16.mxu0 %vm9071_vm2, %v20188_v4 }
 0x7fd   : > { %v8997_v10 = vadd.f32 %v15937_v13, %v20132_v51  ;;  %v8825_v23 = vpop.f32.mrb[53].mxu1 }
 0x7fe   : > { %v8995_v17 = vadd.f32 %v20132_v51, %v8825_v23  ;;  %v15938_v3 = vpop.f32.mrb[54].mxu1 }
 0x7ff   : > { %v9061_v8 = vmax.f32 %v8997_v10, 0.0  ;;  %v8998_v47 = vadd.f32 %v15938_v3, %v20132_v51  ;;  %v8828_v63 = vpop.f32.mrb[55].mxu1 }
 0x800   : > { %v9059_v36 = vmax.f32 %v8995_v17, 0.0  ;;  %v8996_v52 = vadd.f32 %v20132_v51, %v8828_v63 }
 0x801   : > { %v9141_v49 = vmax.f32 %v9057_v43, %v9061_v8  ;;  %v9062_v22 = vmax.f32 %v8998_v47, 0.0 }
 0x802   : > { %v9139_v55 = vmax.f32 %v9055_v2, %v9059_v36  ;;  %v9060_v61 = vmax.f32 %v8996_v52, 0.0  ;;  %v9452_v36 = vld [vmem:[#allocation3 + $0x70] sm:$0xff] }
 0x803   : > { %v9145_v48 = vmax.f32 %v20210_v41, %v9141_v49  ;;  %v9142_v40 = vmax.f32 %v9058_v33, %v9062_v22  ;;  %15980 = vmatmul.mubr.msk.bf16.gmra.mrb[12].mxu0 %vm9071_vm2, %v20192_v20  ;;  %v9914_v49 = vld [vmem:[#allocation3 + $0xb0] sm:$0xff]  ;;  %v10066_v22 = vld [vmem:[#allocation3 + $0xc0] sm:$0xff] }
 0x804   : > { %v9143_v54 = vmax.f32 %v20214_v25, %v9139_v55  ;;  %v9140_v19 = vmax.f32 %v9056_v34, %v9060_v61  ;;  %v15941_v62 = vpop.f32.mrb[56].mxu1  ;;  %15985 = vmatprep.mubr.msk.bf16.mxu0 %vm9071_vm2, %v20112_v15  ;;  %v17297_v25 = vld [vmem:[%s21043_s5 + $0x20] sm:$0xff]   ;;  %v10067_v34 = vld [vmem:[#allocation3 + $0xc8] sm:$0xff]  ;;  %v10068_v55 = vld [vmem:[#allocation3 + $0xd0] sm:$0xff] }
 0x805   : > { %v9146_v31 = vmax.f32 %v20220_v57, %v9142_v40  ;;  %v8841_v28 = vpop.f32.mrb[57].mxu1  ;;  %v9001_v15 = vadd.f32 %v15941_v62, %v20132_v51  ;;  %v10069_v61 = vld [vmem:[#allocation3 + $0xd8] sm:$0xff]  ;;  %v10222_v40 = vld [vmem:[#allocation3 + $0xe0] sm:$0xff]  ;;  %v10376_v62 = vld [vmem:[#allocation3 + $0xf0] sm:$0xff] }
 0x806   : > { %v9144_v56 = vmax.f32 %v20224_v30, %v9140_v19  ;;  %v15942_v58 = vpop.f32.mrb[58].mxu1  ;;  %v8999_v57 = vadd.f32 %v20132_v51, %v8841_v28  ;;  %v17303_v19 = vld [vmem:[%s21045_s7 + $0x18] sm:$0xff]   ;;  %v20387_v28 = vld [vmem:[#allocation4 + $0x10] sm:$0xff] }
 0x807   : > { %v9148_v1 = vpack.c.bf16 %v9146_v31, %v9145_v48  ;;  %v8844_v60 = vpop.f32.mrb[59].mxu1  ;;  %v9002_v37 = vadd.f32 %v15942_v58, %v20132_v51  ;;  %v9065_v32 = vmax.f32 %v9001_v15, 0.0  ;;  %v17302_v48 = vld [vmem:[%s21045_s7 + $0x10] sm:$0xff]   ;;  %v10377_v31 = vld [vmem:[#allocation3 + $0xf8] sm:$0xff]  ;;  %v17304_v58 = vld [vmem:[%s21045_s7] sm:$0xff]  }
 0x808   : > { %v9147_v41 = vpack.c.bf16 %v9144_v56, %v9143_v54  ;;  %v9000_v12 = vadd.f32 %v20132_v51, %v8844_v60  ;;  %v10223_v54 = vld [vmem:[#allocation3 + $0xe8] sm:$0xff]  ;;  %v20391_v56 = vld [vmem:[#allocation4 + $0x18] sm:$0xff] }
 0x809   : > { %9151 = vst.msk [vmem:[#allocation3 + $0x98] sm:$0xff] %vm9071_vm2, %v9148_v1  ;;  %v9066_v26 = vmax.f32 %v9002_v37, 0.0  ;;  %v20398_v1 = vld [vmem:[#allocation4 + $0x20] sm:$0xff]  ;;  %v20402_v60 = vld [vmem:[#allocation4 + $0x28] sm:$0xff] }
 0x80a   : > { %9150 = vst.msk [vmem:[#allocation3 + $0x90] sm:$0xff] %vm9071_vm2, %v9147_v41  ;;  %v9064_v10 = vmax.f32 %v9000_v12, 0.0  ;;  %v17305_v41 = vld [vmem:[%s21045_s7 + $0x8] sm:$0xff]  }
 0x80b   : > { %15986 = vmatmul.mubr.msk.bf16.vlgmr.msra.gmra.mrb[0].mxu0 %vm9071_vm2, %v20119_v35 }
 0x80c   : > { %16002 = vmatpush3.bf16.msra.mxu0 %v20230_v46  ;;  %v15945_v30 = vpop.f32.mrb[60].mxu1  ;;  %15989 = vmatprep.mubr.msk.bf16.mxu0 %vm9071_vm2, %v9448_v27  ;;  %v9063_v46 = vmax.f32 %v8999_v57, 0.0  ;;  %v20412_v27 = vld [vmem:[%s21045_s7 + $0x20] sm:$0xff]  }
 0x80d   : > { %v9005_v44 = vadd.f32 %v15945_v30, %v20132_v51  ;;  %v8857_v59 = vpop.f32.mrb[61].mxu1  ;;  %16019 = vmatprep.subr.bf16.mxu0 %v17297_v25 }
 0x80e   : > { %v9003_v16 = vadd.f32 %v20132_v51, %v8857_v59  ;;  %v15946_v29 = vpop.f32.mrb[62].mxu1 }
 0x80f   : > { %v9069_v35 = vmax.f32 %v9005_v44, 0.0  ;;  %v9006_v6 = vadd.f32 %v15946_v29, %v20132_v51  ;;  %v8860_v53 = vpop.f32.mrb[63].mxu1 }
 0x810   : > { %v9067_v21 = vmax.f32 %v9003_v16, 0.0  ;;  %v9004_v5 = vadd.f32 %v20132_v51, %v8860_v53  ;;  %v9607_v52 = vld [vmem:[#allocation3 + $0x98] sm:$0xff] }
 0x811   : > { %v9158_v13 = vmax.f32 %v9065_v32, %v9069_v35  ;;  %v9070_v50 = vmax.f32 %v9006_v6, 0.0 }
 0x812   : > { %v9156_v23 = vmax.f32 %v9063_v46, %v9067_v21  ;;  %v9068_v9 = vmax.f32 %v9004_v5, 0.0 }
 0x813   : > { %v9162_v17 = vmax.f32 %v20245_v18, %v9158_v13  ;;  %v9159_v3 = vmax.f32 %v9066_v26, %v9070_v50  ;;  %15990 = vmatmul.mubr.msk.bf16.gmra.mrb[4].mxu0 %vm9071_vm2, %v9449_v39  ;;  %v9453_v18 = vld [vmem:[#allocation3 + $0x78] sm:$0xff] }
 0x814   : > { %v9160_v43 = vmax.f32 %v20249_v0, %v9156_v23  ;;  %v9157_v8 = vmax.f32 %v9064_v10, %v9068_v9  ;;  %15993 = vmatprep.mubr.msk.bf16.mxu0 %vm9071_vm2, %v20212_v42  ;;  %v17298_v0 = vld [vmem:[%s21043_s5 + $0x28] sm:$0xff]  }
 0x815   : > { %v9163_v51 = vmax.f32 %v20251_v45, %v9159_v3  ;;  %v9604_v45 = vld [vmem:[#allocation3 + $0x80] sm:$0xff] }
 0x816   : > { %v9161_v47 = vmax.f32 %v20255_v7, %v9157_v8  ;;  %v9605_v7 = vld [vmem:[#allocation3 + $0x88] sm:$0xff] }
 0x817   : > { %v9165_v63 = vpack.c.bf16 %v9163_v51, %v9162_v17 }
 0x818   : > { %v9164_v2 = vpack.c.bf16 %v9161_v47, %v9160_v43 }
 0x819   : > { %9168 = vst.msk [vmem:[#allocation3 + $0xa8] sm:$0xff] %vm9071_vm2, %v9165_v63 }
 0x81a   : > { %9167 = vst.msk [vmem:[#allocation3 + $0xa0] sm:$0xff] %vm9071_vm2, %v9164_v2 }
 0x81b   : > { %15994 = vmatmul.mubr.msk.bf16.gmra.mrb[8].mxu0 %vm9071_vm2, %v20218_v24 }
 0x81c   : > { %15997 = vmatprep.mubr.msk.bf16.mxu0 %vm9071_vm2, %v9452_v36 }
 0x820   : > { %v9761_v33 = vld [vmem:[#allocation3 + $0xa8] sm:$0xff] }
 0x823   : > { %15998 = vmatmul.mubr.msk.bf16.gmra.mrb[12].mxu0 %vm9071_vm2, %v9453_v18 }
 0x824   : > { %16003 = vmatprep.mubr.msk.bf16.mxu0 %vm9071_vm2, %v20247_v38  ;;  %v9606_v38 = vld [vmem:[#allocation3 + $0x90] sm:$0xff] }
 0x82b   : > { %16004 = vmatmul.mubr.msk.bf16.vlgmr.msra.gmra.mrb[0].mxu0 %vm9071_vm2, %v20259_v14  ;;  %v17299_v14 = vld [vmem:[%s21043_s5 + $0x30] sm:$0xff]  }
 0x82c   : > { %16020 = vmatpush3.bf16.msra.mxu0 %v17297_v25  ;;  %16007 = vmatprep.mubr.msk.bf16.mxu0 %vm9071_vm2, %v20188_v4  ;;  %v20418_v25 = vld [vmem:[%s21044_s6] ss:$0 sm:$0xff] }
 0x82d   : > { %16037 = vmatprep.subr.bf16.mxu0 %v17298_v0 }
 0x833   : > { %16008 = vmatmul.mubr.msk.bf16.gmra.mrb[4].mxu0 %vm9071_vm2, %v20192_v20 }
 0x834   : > { %16011 = vmatprep.mubr.msk.bf16.mxu0 %vm9071_vm2, %v9604_v45 }
 0x83b   : > { %16012 = vmatmul.mubr.msk.bf16.gmra.mrb[8].mxu0 %vm9071_vm2, %v9605_v7 }
 0x83c   : > { %16015 = vmatprep.mubr.msk.bf16.mxu0 %vm9071_vm2, %v9606_v38 }
 0x843   : > { %16016 = vmatmul.mubr.msk.bf16.gmra.mrb[12].mxu0 %vm9071_vm2, %v9607_v52 }
 0x844   : > { %16021 = vmatprep.mubr.msk.bf16.mxu0 %vm9071_vm2, %v20188_v4  ;;  %v9760_v4 = vld [vmem:[#allocation3 + $0xa0] sm:$0xff] }
 0x84b   : > { %16022 = vmatmul.mubr.msk.bf16.vlgmr.msra.gmra.mrb[0].mxu0 %vm9071_vm2, %v20192_v20  ;;  %v17300_v20 = vld [vmem:[%s21043_s5 + $0x38] sm:$0xff]  }
 0x84c   : > { %16038 = vmatpush3.bf16.msra.mxu0 %v17298_v0  ;;  %16025 = vmatprep.mubr.msk.bf16.mxu0 %vm9071_vm2, %v20212_v42 }
 0x84d   : > { %16055 = vmatprep.subr.bf16.mxu0 %v17299_v14 }
 0x853   : > { %16026 = vmatmul.mubr.msk.bf16.gmra.mrb[4].mxu0 %vm9071_vm2, %v20218_v24 }
 0x854   : > { %16029 = vmatprep.mubr.msk.bf16.mxu0 %vm9071_vm2, %v9606_v38 }
 0x85b   : > { %16030 = vmatmul.mubr.msk.bf16.gmra.mrb[8].mxu0 %vm9071_vm2, %v9607_v52 }
 0x85c   : > { %16033 = vmatprep.mubr.msk.bf16.mxu0 %vm9071_vm2, %v9760_v4 }
 0x863   : > { %16034 = vmatmul.mubr.msk.bf16.gmra.mrb[12].mxu0 %vm9071_vm2, %v9761_v33 }
 0x864   : > { %16039 = vmatprep.mubr.msk.bf16.mxu0 %vm9071_vm2, %v20212_v42  ;;  %v9915_v42 = vld [vmem:[#allocation3 + $0xb8] sm:$0xff] }
 0x86b   : > { %16040 = vmatmul.mubr.msk.bf16.vlgmr.msra.gmra.mrb[0].mxu0 %vm9071_vm2, %v20218_v24  ;;  %v17301_v24 = vld [vmem:[%s21043_s5 + $0x40] sm:$0xff]  }
 0x86c   : > { %16056 = vmatpush3.bf16.msra.mxu0 %v17299_v14  ;;  %16043 = vmatprep.mubr.msk.bf16.mxu0 %vm9071_vm2, %v9452_v36 }
 0x86d   : > { %16073 = vmatprep.subr.bf16.mxu0 %v17300_v20 }
 0x873   : > { %16044 = vmatmul.mubr.msk.bf16.gmra.mrb[4].mxu0 %vm9071_vm2, %v9453_v18 }
 0x874   : > { %16047 = vmatprep.mubr.msk.bf16.mxu0 %vm9071_vm2, %v9760_v4 }
 0x87b   : > { %16048 = vmatmul.mubr.msk.bf16.gmra.mrb[8].mxu0 %vm9071_vm2, %v9761_v33 }
 0x87c   : > { %16051 = vmatprep.mubr.msk.bf16.mxu0 %vm9071_vm2, %v9914_v49 }
 0x883   : > { %16052 = vmatmul.mubr.msk.bf16.gmra.mrb[12].mxu0 %vm9071_vm2, %v9915_v42 }
 0x884   : > { %16057 = vmatprep.mubr.msk.bf16.mxu0 %vm9071_vm2, %v9604_v45 }
 0x88b   : > { %16058 = vmatmul.mubr.msk.bf16.vlgmr.msra.gmra.mrb[0].mxu0 %vm9071_vm2, %v9605_v7 }
 0x88c   : > { %16074 = vmatpush3.bf16.msra.mxu0 %v17300_v20  ;;  %16061 = vmatprep.mubr.msk.bf16.mxu0 %vm9071_vm2, %v9606_v38 }
 0x88d   : > { %16091 = vmatprep.subr.bf16.mxu0 %v17301_v24 }
 0x893   : > { %16062 = vmatmul.mubr.msk.bf16.gmra.mrb[4].mxu0 %vm9071_vm2, %v9607_v52 }
 0x894   : > { %16065 = vmatprep.mubr.msk.bf16.mxu0 %vm9071_vm2, %v10066_v22 }
 0x89b   : > { %16066 = vmatmul.mubr.msk.bf16.gmra.mrb[8].mxu0 %vm9071_vm2, %v10067_v34 }
 0x89c   : > { %16069 = vmatprep.mubr.msk.bf16.mxu0 %vm9071_vm2, %v10068_v55 }
 0x8a3   : > { %16070 = vmatmul.mubr.msk.bf16.gmra.mrb[12].mxu0 %vm9071_vm2, %v10069_v61 }
 0x8a4   : > { %16075 = vmatprep.mubr.msk.bf16.mxu0 %vm9071_vm2, %v9606_v38 }
 0x8ab   : > { %16076 = vmatmul.mubr.msk.bf16.vlgmr.msra.gmra.mrb[0].mxu0 %vm9071_vm2, %v9607_v52 }
 0x8ac   : > { %16092 = vmatpush3.bf16.msra.mxu0 %v17301_v24  ;;  %16079 = vmatprep.mubr.msk.bf16.mxu0 %vm9071_vm2, %v9760_v4 }
 0x8ad   : > { %16109 = vmatprep.subr.bf16.mxu0 %v17302_v48 }
 0x8b3   : > { %16080 = vmatmul.mubr.msk.bf16.gmra.mrb[4].mxu0 %vm9071_vm2, %v9761_v33 }
 0x8b4   : > { %16083 = vmatprep.mubr.msk.bf16.mxu0 %vm9071_vm2, %v10068_v55 }
 0x8bb   : > { %16084 = vmatmul.mubr.msk.bf16.gmra.mrb[8].mxu0 %vm9071_vm2, %v10069_v61  ;;  %v10610_v61 = vld [vmem:[#allocation4] sm:$0xff] }
 0x8bc   : > { %16087 = vmatprep.mubr.msk.bf16.mxu0 %vm9071_vm2, %v10222_v40 }
 0x8c3   : > { %16088 = vmatmul.mubr.msk.bf16.gmra.mrb[12].mxu0 %vm9071_vm2, %v10223_v54 }
 0x8c4   : > { %16093 = vmatprep.mubr.msk.bf16.mxu0 %vm9071_vm2, %v9760_v4 }
 0x8cb   : > { %16094 = vmatmul.mubr.msk.bf16.vlgmr.msra.gmra.mrb[0].mxu0 %vm9071_vm2, %v9761_v33 }
 0x8cc   : > { %16097 = vmatprep.mubr.msk.bf16.mxu0 %vm9071_vm2, %v9914_v49  ;;  %16110 = vmatpush3.bf16.msra.mxu0 %v17302_v48 }
 0x8cd   : > { %16111 = vmatprep.subr.bf16.mxu0 %v17303_v19 }
 0x8d0   : > { %16112 = vmatpush3.bf16.msra.mxu0 %v17303_v19 }
 0x8d1   : > { %16129 = vmatprep.subr.bf16.mxu0 %v17304_v58 }
 0x8d3   : > { %16098 = vmatmul.mubr.msk.bf16.gmra.mrb[4].mxu0 %vm9071_vm2, %v9915_v42 }
 0x8d4   : > { %16101 = vmatprep.mubr.msk.bf16.mxu0 %vm9071_vm2, %v10222_v40 }
 0x8db   : > { %16102 = vmatmul.mubr.msk.bf16.gmra.mrb[8].mxu0 %vm9071_vm2, %v10223_v54 }
 0x8dc   : > { %16105 = vmatprep.mubr.msk.bf16.mxu0 %vm9071_vm2, %v10376_v62 }
 0x8e3   : > { %16106 = vmatmul.mubr.msk.bf16.gmra.mrb[12].mxu0 %vm9071_vm2, %v10377_v31 }
 0x8e4   : > { %16113 = vmatprep.mubr.msk.bf16.mxu0 %vm2427_vm0, %v20387_v28 }
 0x8eb   : > { %16114 = vmatmul.mubr.msk.bf16.vlgmr.msra.gmra.mrb[16].mxu0 %vm2427_vm0, %v20391_v56 }
 0x8ec   : > { %16117 = vmatprep.mubr.msk.bf16.mxu0 %vm2427_vm0, %v20398_v1  ;;  %16130 = vmatpush3.bf16.msra.mxu0 %v17304_v58 }
 0x8ed   : > { %16131 = vmatprep.subr.bf16.mxu0 %v17305_v41 }
 0x8f0   : > { %16132 = vmatpush3.bf16.msra.mxu0 %v17305_v41 }
 0x8f1   : > { %16149 = vmatprep.subr.bf16.mxu0 %v20412_v27 }
 0x8f3   : > { %16118 = vmatmul.mubr.msk.bf16.gmra.mrb[20].mxu0 %vm2427_vm0, %v20402_v60 }
 0x99e   : > { %v16095_v15 = vpop.f32.mrb[0].mxu0 }
 0x99f   : > { %v10533_v57 = vadd.f32 %v16095_v15, %v20418_v25  ;;  %v10445_v30 = vpop.f32.mrb[1].mxu0 }
 0x9a0   : > { %v10531_v37 = vadd.f32 %v20418_v25, %v10445_v30  ;;  %v16096_v44 = vpop.f32.mrb[2].mxu0 }
 0x9a1   : > { %v10534_v59 = vadd.f32 %v16096_v44, %v20418_v25  ;;  %v10448_v12 = vpop.f32.mrb[3].mxu0  ;;  %v10549_v29 = vmax.f32 %v10533_v57, 0.0  ;;  %v10611_v44 = vld [vmem:[#allocation4 + $0x8] sm:$0xff] }
 0x9a2   : > { %v10532_v16 = vadd.f32 %v20418_v25, %v10448_v12  ;;  %v10547_v35 = vmax.f32 %v10531_v37, 0.0  ;;  %v10614_v12 = vld [vmem:[#allocation4 + $0x40] sm:$0xff] }
 0x9a3   : > { %v10550_v32 = vmax.f32 %v10534_v59, 0.0  ;;  %v17307_v59 = vld [vmem:[%s21045_s7 + $0x28] sm:$0xff]  }
 0x9a4   : > { %v10548_v6 = vmax.f32 %v10532_v16, 0.0  ;;  %v10615_v16 = vld [vmem:[#allocation4 + $0x48] sm:$0xff] }
 0x9a5   : > { %v10564_v53 = vpack.c.bf16 %v10550_v32, %v10549_v29  ;;  %v10906_v29 = vld [vmem:[#allocation4 + $0x38] sm:$0xff]  ;;  %v17311_v32 = vld [vmem:[%s21045_s7 + $0x48] sm:$0xff]  }
 0x9a6   : > { %v10563_v46 = vpack.c.bf16 %v10548_v6, %v10547_v35  ;;  %v16099_v21 = vpop.f32.mrb[4].mxu0  ;;  %v17312_v35 = vld [vmem:[%s21045_s7 + $0x50] sm:$0xff]   ;;  %v11069_v6 = vld [vmem:[#allocation4 + $0x80] sm:$0xff] }
 0x9a7   : > { %10593 = vst.msk [vmem:[#allocation4 + $0x58] sm:$0xff] %vm2427_vm0, %v10564_v53  ;;  %v10537_v5 = vadd.f32 %v16099_v21, %v20418_v25  ;;  %v10461_v39 = vpop.f32.mrb[5].mxu0  ;;  %v11070_v53 = vld [vmem:[#allocation4 + $0x88] sm:$0xff] }
 0x9a8   : > { %10592 = vst.msk [vmem:[#allocation4 + $0x50] sm:$0xff] %vm2427_vm0, %v10563_v46  ;;  %v10535_v26 = vadd.f32 %v20418_v25, %v10461_v39  ;;  %v16100_v13 = vpop.f32.mrb[6].mxu0  ;;  %v17314_v39 = vld [vmem:[%s21045_s7 + $0x60] sm:$0xff]  }
 0x9a9   : > { %v10538_v50 = vadd.f32 %v16100_v13, %v20418_v25  ;;  %v10464_v10 = vpop.f32.mrb[7].mxu0  ;;  %v10553_v9 = vmax.f32 %v10537_v5, 0.0  ;;  %v17313_v5 = vld [vmem:[%s21045_s7 + $0x58] sm:$0xff]  }
 0x9aa   : > { %v10536_v23 = vadd.f32 %v20418_v25, %v10464_v10  ;;  %v10551_v3 = vmax.f32 %v10535_v26, 0.0  ;;  %v17316_v10 = vld [vmem:[%s21045_s7 + $0x70] sm:$0xff]  }
 0x9ab   : > { %v10554_v17 = vmax.f32 %v10538_v50, 0.0  ;;  %v17315_v50 = vld [vmem:[%s21045_s7 + $0x68] sm:$0xff]  }
 0x9ac   : > { %v10552_v43 = vmax.f32 %v10536_v23, 0.0  ;;  %v11396_v23 = vld [vmem:[#allocation4 + $0xb0] sm:$0xff] }
 0x9ad   : > { %v10566_v8 = vpack.c.bf16 %v10554_v17, %v10553_v9  ;;  %v11397_v9 = vld [vmem:[#allocation4 + $0xb8] sm:$0xff] }
 0x9ae   : > { %v10565_v51 = vpack.c.bf16 %v10552_v43, %v10551_v3  ;;  %v16103_v47 = vpop.f32.mrb[8].mxu0  ;;  %v20438_v45 = vld [vmem:[#allocation4 + $0x58] sm:$0xff]  ;;  %v17318_v3 = vld [vmem:[%s21045_s7 + $0x80] sm:$0xff]  }
 0x9af   : > { %10595 = vst.msk [vmem:[#allocation4 + $0x68] sm:$0xff] %vm2427_vm0, %v10566_v8  ;;  %v10541_v63 = vadd.f32 %v16103_v47, %v20418_v25  ;;  %v10477_v2 = vpop.f32.mrb[9].mxu0  ;;  %v20432_v36 = vld [vmem:[#allocation4 + $0x50] sm:$0xff]  ;;  %v17317_v17 = vld [vmem:[%s21045_s7 + $0x78] sm:$0xff]   ;;  %v11556_v43 = vld [vmem:[#allocation4 + $0xc0] sm:$0xff] }
 0x9b0   : > { %10594 = vst.msk [vmem:[#allocation4 + $0x60] sm:$0xff] %vm2427_vm0, %v10565_v51  ;;  %v10539_v18 = vadd.f32 %v20418_v25, %v10477_v2  ;;  %v16104_v0 = vpop.f32.mrb[10].mxu0  ;;  %16121 = vmatprep.mubr.msk.bf16.mxu0 %vm2427_vm0, %v20432_v36  ;;  %v11557_v8 = vld [vmem:[#allocation4 + $0xc8] sm:$0xff]  ;;  %v11558_v51 = vld [vmem:[#allocation4 + $0xd0] sm:$0xff]  ;;  %v11559_v47 = vld [vmem:[#allocation4 + $0xd8] sm:$0xff] }
 0x9b1   : > { %v10542_v7 = vadd.f32 %v16104_v0, %v20418_v25  ;;  %v10480_v38 = vpop.f32.mrb[11].mxu0  ;;  %16122 = vmatmul.mubr.msk.bf16.gmra.mrb[24].mxu0 %vm2427_vm0, %v20438_v45  ;;  %v10557_v14 = vmax.f32 %v10541_v63, 0.0  ;;  %v17319_v63 = vld [vmem:[%s21045_s7 + $0x88] sm:$0xff]   ;;  %v17320_v2 = vld [vmem:[%s21047_s9 + $0x10] sm:$0xff]  }
 0x9b2   : > { %v10540_v52 = vadd.f32 %v20418_v25, %v10480_v38  ;;  %v10555_v33 = vmax.f32 %v10539_v18, 0.0  ;;  %v11721_v18 = vld [vmem:[#allocation4 + $0xe8] sm:$0xff]  ;;  %v11883_v0 = vld [vmem:[#allocation4 + $0xf0] sm:$0xff]  ;;  %v17322_v38 = vld [vmem:[%s21047_s9] sm:$0xff]  }
 0x9b3   : > { %v10558_v4 = vmax.f32 %v10542_v7, 0.0  ;;  %v17321_v7 = vld [vmem:[%s21047_s9 + $0x18] sm:$0xff]  }
 0x9b4   : > { %v10556_v20 = vmax.f32 %v10540_v52, 0.0  ;;  %v17328_v52 = vld [vmem:[%s21049_s11 + $0x18] ss:$48 sps:$4 sm:$0xff]  }
 0x9b5   : > { %v10568_v49 = vpack.c.bf16 %v10558_v4, %v10557_v14  ;;  %v17330_v14 = vld [vmem:[%s21049_s11 + $0x1c] ss:$48 sps:$4 sm:$0xff]  }
 0x9b6   : > { %v10567_v42 = vpack.c.bf16 %v10556_v20, %v10555_v33  ;;  %v16107_v24 = vpop.f32.mrb[12].mxu0  ;;  %v20452_v54 = vld [vmem:[#allocation4 + $0x68] sm:$0xff]  ;;  %12915 = vmatprep.subr.bf16.mxu1 %v17330_v14 }
 0x9b7   : > { %10604 = vst.msk [vmem:[#allocation4 + $0x98] sm:$0xff] %vm2427_vm0, %v10568_v49  ;;  %v10545_v22 = vadd.f32 %v16107_v24, %v20418_v25  ;;  %v10493_v34 = vpop.f32.mrb[13].mxu0  ;;  %v20446_v55 = vld [vmem:[#allocation4 + $0x60] sm:$0xff]  ;;  %v17333_v4 = vld [vmem:[%s21049_s11 + $0x7c] ss:$48 sps:$4 sm:$0xff]   ;;  %12916 = vmatpush1.bf16.msra.mxu1 %v17328_v52 }
 0x9b8   : > { %10603 = vst.msk [vmem:[#allocation4 + $0x90] sm:$0xff] %vm2427_vm0, %v10567_v42  ;;  %v10543_v48 = vadd.f32 %v20418_v25, %v10493_v34  ;;  %v16108_v40 = vpop.f32.mrb[14].mxu0  ;;  %16125 = vmatprep.mubr.msk.bf16.mxu0 %vm2427_vm0, %v20446_v55  ;;  %v17331_v33 = vld [vmem:[%s21049_s11 + $0x78] ss:$48 sps:$4 sm:$0xff]   ;;  %12917 = vmatprep.subr.bf16.mxu1 %v17333_v4  ;;  %v17336_v20 = vld [vmem:[%s21049_s11 + $0xdc] ss:$48 sps:$4 sm:$0xff]  }
 0x9b9   : > { %v10546_v19 = vadd.f32 %v16108_v40, %v20418_v25  ;;  %v10496_v62 = vpop.f32.mrb[15].mxu0  ;;  %16126 = vmatmul.mubr.msk.bf16.gmra.mrb[28].mxu0 %vm2427_vm0, %v20452_v54  ;;  %v10561_v58 = vmax.f32 %v10545_v22, 0.0  ;;  %v17334_v49 = vld [vmem:[%s21049_s11 + $0xd8] ss:$48 sps:$4 sm:$0xff]   ;;  %v14305_v42 = vld [vmem:[%s21046_s8] ss:$0 sm:$0xff] }
 0x9ba   : > { %v10544_v31 = vadd.f32 %v20418_v25, %v10496_v62  ;;  %16133 = vmatprep.mubr.msk.bf16.mxu0 %vm2427_vm0, %v10610_v61  ;;  %v10559_v15 = vmax.f32 %v10543_v48, 0.0  ;;  %v17308_v25 = vld [vmem:[%s21045_s7 + $0x30] sm:$0xff]  }
 0x9bb   : > { %v10562_v41 = vmax.f32 %v10546_v19, 0.0  ;;  %12918 = vmatpush1.bf16.msra.mxu1 %v17331_v33  ;;  %v17326_v33 = vld [vmem:[%s21047_s9 + $0x30] sm:$0xff]  }
 0x9bc   : > { %v10560_v57 = vmax.f32 %v10544_v31, 0.0  ;;  %12919 = vmatprep.subr.bf16.mxu1 %v17336_v20  ;;  %v17327_v20 = vld [vmem:[%s21047_s9 + $0x38] sm:$0xff]  }
 0x9bd   : > { %v10570_v30 = vpack.c.bf16 %v10562_v41, %v10561_v58 }
 0x9be   : > { %v10569_v37 = vpack.c.bf16 %v10560_v57, %v10559_v15  ;;  %v11072_v21 = vld [vmem:[#allocation4 + $0x98] sm:$0xff] }
 0x9bf   : > { %10606 = vst.msk [vmem:[#allocation4 + $0xa8] sm:$0xff] %vm2427_vm0, %v10570_v30  ;;  %v11071_v46 = vld [vmem:[#allocation4 + $0x90] sm:$0xff]  ;;  %12920 = vmatpush1.bf16.msra.mxu1 %v17334_v49 }
 0x9c0   : > { %10605 = vst.msk [vmem:[#allocation4 + $0xa0] sm:$0xff] %vm2427_vm0, %v10569_v37  ;;  %v17339_v49 = vld [vmem:[%s21049_s11 + $0x4] ss:$48 sps:$4 sm:$0xff]  }
 0x9c1   : > { %16134 = vmatmul.mubr.msk.bf16.vlgmr.msra.gmra.mrb[16].mxu0 %vm2427_vm0, %v10611_v44 }
 0x9c2   : > { %16150 = vmatpush3.bf16.msra.mxu0 %v20412_v27  ;;  %16137 = vmatprep.mubr.msk.bf16.mxu0 %vm2427_vm0, %v20387_v28  ;;  %v10905_v28 = vld [vmem:[#allocation4 + $0x30] sm:$0xff]  ;;  %v17309_v27 = vld [vmem:[%s21045_s7 + $0x38] sm:$0xff]  }
 0x9c3   : > { %16151 = vmatprep.subr.bf16.mxu0 %v17307_v59 }
 0x9c6   : > { %16152 = vmatpush3.bf16.msra.mxu0 %v17307_v59  ;;  %v11234_v13 = vld [vmem:[#allocation4 + $0xa8] sm:$0xff] }
 0x9c7   : > { %16169 = vmatprep.subr.bf16.mxu0 %v17308_v25  ;;  %v11233_v26 = vld [vmem:[#allocation4 + $0xa0] sm:$0xff] }
 0x9c9   : > { %16138 = vmatmul.mubr.msk.bf16.gmra.mrb[20].mxu0 %vm2427_vm0, %v20391_v56  ;;  %v17310_v56 = vld [vmem:[%s21045_s7 + $0x40] sm:$0xff]  }
 0x9ca   : > { %16141 = vmatprep.mubr.msk.bf16.mxu0 %vm2427_vm0, %v10614_v12 }
 0x9d1   : > { %16142 = vmatmul.mubr.msk.bf16.gmra.mrb[24].mxu0 %vm2427_vm0, %v10615_v16 }
 0x9d2   : > { %16145 = vmatprep.mubr.msk.bf16.mxu0 %vm2427_vm0, %v20432_v36 }
 0x9d9   : > { %16146 = vmatmul.mubr.msk.bf16.gmra.mrb[28].mxu0 %vm2427_vm0, %v20438_v45 }
 0x9da   : > { %16153 = vmatprep.mubr.msk.bf16.mxu0 %vm2427_vm0, %v20398_v1  ;;  %v10909_v1 = vld [vmem:[#allocation4 + $0x70] sm:$0xff] }
 0x9e1   : > { %16154 = vmatmul.mubr.msk.bf16.vlgmr.msra.gmra.mrb[16].mxu0 %vm2427_vm0, %v20402_v60  ;;  %v10910_v60 = vld [vmem:[#allocation4 + $0x78] sm:$0xff] }
 0x9e2   : > { %16170 = vmatpush3.bf16.msra.mxu0 %v17308_v25  ;;  %16157 = vmatprep.mubr.msk.bf16.mxu0 %vm2427_vm0, %v10905_v28 }
 0x9e3   : > { %16171 = vmatprep.subr.bf16.mxu0 %v17309_v27 }
 0x9e6   : > { %16172 = vmatpush3.bf16.msra.mxu0 %v17309_v27 }
 0x9e7   : > { %16189 = vmatprep.subr.bf16.mxu0 %v17310_v56 }
 0x9e9   : > { %16158 = vmatmul.mubr.msk.bf16.gmra.mrb[20].mxu0 %vm2427_vm0, %v10906_v29 }
 0x9ea   : > { %16161 = vmatprep.mubr.msk.bf16.mxu0 %vm2427_vm0, %v20446_v55 }
 0x9f1   : > { %16162 = vmatmul.mubr.msk.bf16.gmra.mrb[24].mxu0 %vm2427_vm0, %v20452_v54 }
 0x9f2   : > { %16165 = vmatprep.mubr.msk.bf16.mxu0 %vm2427_vm0, %v10909_v1 }
 0x9f9   : > { %16166 = vmatmul.mubr.msk.bf16.gmra.mrb[28].mxu0 %vm2427_vm0, %v10910_v60 }
 0x9fa   : > { %16173 = vmatprep.mubr.msk.bf16.mxu0 %vm2427_vm0, %v10614_v12 }
 0xa01   : > { %16174 = vmatmul.mubr.msk.bf16.vlgmr.msra.gmra.mrb[16].mxu0 %vm2427_vm0, %v10615_v16 }
 0xa02   : > { %16190 = vmatpush3.bf16.msra.mxu0 %v17310_v56  ;;  %16177 = vmatprep.mubr.msk.bf16.mxu0 %vm2427_vm0, %v20432_v36 }
 0xa03   : > { %16191 = vmatprep.subr.bf16.mxu0 %v17311_v32 }
 0xa06   : > { %16192 = vmatpush3.bf16.msra.mxu0 %v17311_v32 }
 0xa07   : > { %16209 = vmatprep.subr.bf16.mxu0 %v17312_v35 }
 0xa09   : > { %16178 = vmatmul.mubr.msk.bf16.gmra.mrb[20].mxu0 %vm2427_vm0, %v20438_v45 }
 0xa0a   : > { %16181 = vmatprep.mubr.msk.bf16.mxu0 %vm2427_vm0, %v11069_v6 }
 0xa11   : > { %16182 = vmatmul.mubr.msk.bf16.gmra.mrb[24].mxu0 %vm2427_vm0, %v11070_v53 }
 0xa12   : > { %16185 = vmatprep.mubr.msk.bf16.mxu0 %vm2427_vm0, %v11071_v46 }
 0xa19   : > { %16186 = vmatmul.mubr.msk.bf16.gmra.mrb[28].mxu0 %vm2427_vm0, %v11072_v21 }
 0xa1a   : > { %16193 = vmatprep.mubr.msk.bf16.mxu0 %vm2427_vm0, %v20432_v36  ;;  %v11720_v36 = vld [vmem:[#allocation4 + $0xe0] sm:$0xff] }
 0xa21   : > { %16194 = vmatmul.mubr.msk.bf16.vlgmr.msra.gmra.mrb[16].mxu0 %vm2427_vm0, %v20438_v45  ;;  %v11884_v45 = vld [vmem:[#allocation4 + $0xf8] sm:$0xff] }
 0xa22   : > { %16210 = vmatpush3.bf16.msra.mxu0 %v17312_v35  ;;  %16197 = vmatprep.mubr.msk.bf16.mxu0 %vm2427_vm0, %v20446_v55 }
 0xa23   : > { %16211 = vmatprep.subr.bf16.mxu0 %v17313_v5 }
 0xa26   : > { %16212 = vmatpush3.bf16.msra.mxu0 %v17313_v5 }
 0xa27   : > { %16229 = vmatprep.subr.bf16.mxu0 %v17314_v39 }
 0xa29   : > { %16198 = vmatmul.mubr.msk.bf16.gmra.mrb[20].mxu0 %vm2427_vm0, %v20452_v54 }
 0xa2a   : > { %16201 = vmatprep.mubr.msk.bf16.mxu0 %vm2427_vm0, %v11071_v46 }
 0xa31   : > { %16202 = vmatmul.mubr.msk.bf16.gmra.mrb[24].mxu0 %vm2427_vm0, %v11072_v21 }
 0xa32   : > { %16205 = vmatprep.mubr.msk.bf16.mxu0 %vm2427_vm0, %v11233_v26 }
 0xa39   : > { %16206 = vmatmul.mubr.msk.bf16.gmra.mrb[28].mxu0 %vm2427_vm0, %v11234_v13 }
 0xa3a   : > { %16213 = vmatprep.mubr.msk.bf16.mxu0 %vm2427_vm0, %v20446_v55 }
 0xa41   : > { %16214 = vmatmul.mubr.msk.bf16.vlgmr.msra.gmra.mrb[16].mxu0 %vm2427_vm0, %v20452_v54 }
 0xa42   : > { %16230 = vmatpush3.bf16.msra.mxu0 %v17314_v39  ;;  %16217 = vmatprep.mubr.msk.bf16.mxu0 %vm2427_vm0, %v10909_v1 }
 0xa43   : > { %16231 = vmatprep.subr.bf16.mxu0 %v17315_v50 }
 0xa46   : > { %16232 = vmatpush3.bf16.msra.mxu0 %v17315_v50 }
 0xa47   : > { %16249 = vmatprep.subr.bf16.mxu0 %v17316_v10 }
 0xa49   : > { %16218 = vmatmul.mubr.msk.bf16.gmra.mrb[20].mxu0 %vm2427_vm0, %v10910_v60 }
 0xa4a   : > { %16221 = vmatprep.mubr.msk.bf16.mxu0 %vm2427_vm0, %v11233_v26 }
 0xa51   : > { %16222 = vmatmul.mubr.msk.bf16.gmra.mrb[24].mxu0 %vm2427_vm0, %v11234_v13 }
 0xa52   : > { %16225 = vmatprep.mubr.msk.bf16.mxu0 %vm2427_vm0, %v11396_v23 }
 0xa59   : > { %16226 = vmatmul.mubr.msk.bf16.gmra.mrb[28].mxu0 %vm2427_vm0, %v11397_v9 }
 0xa5a   : > { %16233 = vmatprep.mubr.msk.bf16.mxu0 %vm2427_vm0, %v11069_v6 }
 0xa61   : > { %16234 = vmatmul.mubr.msk.bf16.vlgmr.msra.gmra.mrb[16].mxu0 %vm2427_vm0, %v11070_v53  ;;  %v17323_v53 = vld [vmem:[%s21047_s9 + $0x8] sm:$0xff]  }
 0xa62   : > { %16250 = vmatpush3.bf16.msra.mxu0 %v17316_v10  ;;  %16237 = vmatprep.mubr.msk.bf16.mxu0 %vm2427_vm0, %v11071_v46  ;;  %v17324_v10 = vld [vmem:[%s21047_s9 + $0x20] sm:$0xff]  }
 0xa63   : > { %16251 = vmatprep.subr.bf16.mxu0 %v17317_v17 }
 0xa66   : > { %16252 = vmatpush3.bf16.msra.mxu0 %v17317_v17 }
 0xa67   : > { %16269 = vmatprep.subr.bf16.mxu0 %v17318_v3 }
 0xa69   : > { %16238 = vmatmul.mubr.msk.bf16.gmra.mrb[20].mxu0 %vm2427_vm0, %v11072_v21 }
 0xa6a   : > { %16241 = vmatprep.mubr.msk.bf16.mxu0 %vm2427_vm0, %v11556_v43 }
 0xa71   : > { %16242 = vmatmul.mubr.msk.bf16.gmra.mrb[24].mxu0 %vm2427_vm0, %v11557_v8 }
 0xa72   : > { %16245 = vmatprep.mubr.msk.bf16.mxu0 %vm2427_vm0, %v11558_v51 }
 0xa79   : > { %16246 = vmatmul.mubr.msk.bf16.gmra.mrb[28].mxu0 %vm2427_vm0, %v11559_v47 }
 0xa7a   : > { %16253 = vmatprep.mubr.msk.bf16.mxu0 %vm2427_vm0, %v11071_v46 }
 0xa81   : > { %16254 = vmatmul.mubr.msk.bf16.vlgmr.msra.gmra.mrb[16].mxu0 %vm2427_vm0, %v11072_v21 }
 0xa82   : > { %16270 = vmatpush3.bf16.msra.mxu0 %v17318_v3  ;;  %16257 = vmatprep.mubr.msk.bf16.mxu0 %vm2427_vm0, %v11233_v26 }
 0xa83   : > { %16271 = vmatprep.subr.bf16.mxu0 %v17319_v63 }
 0xa86   : > { %16272 = vmatpush3.bf16.msra.mxu0 %v17319_v63 }
 0xa87   : > { %16289 = vmatprep.subr.bf16.mxu0 %v17320_v2 }
 0xa89   : > { %16258 = vmatmul.mubr.msk.bf16.gmra.mrb[20].mxu0 %vm2427_vm0, %v11234_v13 }
 0xa8a   : > { %16261 = vmatprep.mubr.msk.bf16.mxu0 %vm2427_vm0, %v11558_v51 }
 0xa91   : > { %16262 = vmatmul.mubr.msk.bf16.gmra.mrb[24].mxu0 %vm2427_vm0, %v11559_v47 }
 0xa92   : > { %16265 = vmatprep.mubr.msk.bf16.mxu0 %vm2427_vm0, %v11720_v36 }
 0xa99   : > { %16266 = vmatmul.mubr.msk.bf16.gmra.mrb[28].mxu0 %vm2427_vm0, %v11721_v18 }
 0xa9a   : > { %16273 = vmatprep.mubr.msk.bf16.mxu0 %vm2427_vm0, %v11233_v26 }
 0xaa1   : > { %16274 = vmatmul.mubr.msk.bf16.vlgmr.msra.gmra.mrb[16].mxu0 %vm2427_vm0, %v11234_v13 }
 0xaa2   : > { %16277 = vmatprep.mubr.msk.bf16.mxu0 %vm2427_vm0, %v11396_v23  ;;  %16290 = vmatpush3.bf16.msra.mxu0 %v17320_v2 }
 0xaa3   : > { %16291 = vmatprep.subr.bf16.mxu0 %v17321_v7 }
 0xaa6   : > { %16292 = vmatpush3.bf16.msra.mxu0 %v17321_v7  ;;  %v17325_v7 = vld [vmem:[%s21047_s9 + $0x28] sm:$0xff]  }
 0xaa7   : > { %16297 = vmatprep.subr.bf16.mxu0 %v17322_v38 }
 0xaa9   : > { %16278 = vmatmul.mubr.msk.bf16.gmra.mrb[20].mxu0 %vm2427_vm0, %v11397_v9 }
 0xaaa   : > { %16281 = vmatprep.mubr.msk.bf16.mxu0 %vm2427_vm0, %v11720_v36 }
 0xab1   : > { %16282 = vmatmul.mubr.msk.bf16.gmra.mrb[24].mxu0 %vm2427_vm0, %v11721_v18 }
 0xab2   : > { %16285 = vmatprep.mubr.msk.bf16.mxu0 %vm2427_vm0, %v11883_v0 }
 0xab9   : > { %16286 = vmatmul.mubr.msk.bf16.gmra.mrb[28].mxu0 %vm2427_vm0, %v11884_v45 }
 0xb74   : > { %v16275_v24 = vpop.f32.mrb[16].mxu0 }
 0xb75   : > { %v12048_v22 = vadd.f32 %v16275_v24, %v14305_v42  ;;  %v11960_v34 = vpop.f32.mrb[17].mxu0  ;;  %v17342_v24 = vld [vmem:[%s21049_s11 + $0x64] ss:$48 sps:$4 sm:$0xff]  }
 0xb76   : > { %v12046_v55 = vadd.f32 %v14305_v42, %v11960_v34  ;;  %v16276_v61 = vpop.f32.mrb[18].mxu0  ;;  %v17345_v34 = vld [vmem:[%s21049_s11 + $0xc4] ss:$48 sps:$4 sm:$0xff]  }
 0xb77   : > { %v12049_v48 = vadd.f32 %v16276_v61, %v14305_v42  ;;  %v11963_v40 = vpop.f32.mrb[19].mxu0  ;;  %v12064_v19 = vmax.f32 %v12048_v22, 0.0  ;;  %v17340_v22 = vld [vmem:[%s21049_s11 + $0x60] ss:$48 sps:$4 sm:$0xff]   ;;  %v17348_v61 = vld [vmem:[%s21049_s11 + $0x124] ss:$48 sps:$4 sm:$0xff]  }
 0xb78   : > { %v12047_v54 = vadd.f32 %v14305_v42, %v11963_v40  ;;  %v12062_v31 = vmax.f32 %v12046_v55, 0.0  ;;  %v17343_v55 = vld [vmem:[%s21049_s11 + $0xc0] ss:$48 sps:$4 sm:$0xff]  }
 0xb79   : > { %v12065_v62 = vmax.f32 %v12049_v48, 0.0  ;;  %v17351_v48 = vld [vmem:[%s21049_s11 + $0x13c] ss:$48 sps:$4 sm:$0xff]   ;;  %v17346_v40 = vld [vmem:[%s21049_s11 + $0x120] ss:$48 sps:$4 sm:$0xff]  }
 0xb7a   : > { %v12063_v58 = vmax.f32 %v12047_v54, 0.0  ;;  %v17349_v54 = vld [vmem:[%s21049_s11 + $0x138] ss:$48 sps:$4 sm:$0xff]   ;;  %12921 = vmatprep.subr.bf16.mxu1 %v17351_v48 }
 0xb7b   : > { %v12079_v41 = vpack.c.bf16 %v12065_v62, %v12064_v19  ;;  %12922 = vmatpush1.bf16.msra.mxu1 %v17349_v54  ;;  %v17354_v19 = vld [vmem:[%s21049_s11 + $0xc] ss:$48 sps:$4 sm:$0xff]  }
 0xb7c   : > { %v12078_v15 = vpack.c.bf16 %v12063_v58, %v12062_v31  ;;  %v16279_v57 = vpop.f32.mrb[20].mxu0  ;;  %v17357_v62 = vld [vmem:[%s21049_s11 + $0x2c] ss:$48 sps:$4 sm:$0xff]   ;;  %v14334_v31 = vld [vmem:[%s21048_s10] ss:$0 sm:$0xff] }
 0xb7d   : > { %v12052_v30 = vadd.f32 %v16279_v57, %v14305_v42  ;;  %v11976_v37 = vpop.f32.mrb[21].mxu0  ;;  %13021 = vmatprep.subr.bf16.mxu1 %v17357_v62 }
 0xb7e   : > { %v12050_v44 = vadd.f32 %v14305_v42, %v11976_v37  ;;  %v16280_v59 = vpop.f32.mrb[22].mxu0 }
 0xb7f   : > { %v12053_v25 = vadd.f32 %v16280_v59, %v14305_v42  ;;  %v11979_v12 = vpop.f32.mrb[23].mxu0  ;;  %v12068_v28 = vmax.f32 %v12052_v30, 0.0 }
 0xb80   : > { %v12051_v16 = vadd.f32 %v14305_v42, %v11979_v12  ;;  %v12066_v56 = vmax.f32 %v12050_v44, 0.0 }
 0xb81   : > { %v12069_v27 = vmax.f32 %v12053_v25, 0.0 }
 0xb82   : > { %v12067_v29 = vmax.f32 %v12051_v16, 0.0 }
 0xb83   : > { %v12081_v1 = vpack.c.bf16 %v12069_v27, %v12068_v28 }
 0xb84   : > { %v12080_v60 = vpack.c.bf16 %v12067_v29, %v12066_v56  ;;  %v16283_v32 = vpop.f32.mrb[24].mxu0  ;;  %v17352_v56 = vld [vmem:[%s21049_s11 + $0x8] ss:$48 sps:$4 sm:$0xff]  }
 0xb85   : > { %v12056_v35 = vadd.f32 %v16283_v32, %v14305_v42  ;;  %v11992_v6 = vpop.f32.mrb[25].mxu0  ;;  %v17355_v29 = vld [vmem:[%s21049_s11 + $0x28] ss:$48 sps:$4 sm:$0xff]   ;;  %v17363_v32 = vld [vmem:[%s21049_s11 + $0x8c] ss:$48 sps:$4 sm:$0xff]  }
 0xb86   : > { %v12054_v46 = vadd.f32 %v14305_v42, %v11992_v6  ;;  %v16284_v21 = vpop.f32.mrb[26].mxu0  ;;  %16293 = vmatprep.mubr.msk.bf16.mxu0 %vm2427_vm0, %v12080_v60  ;;  %v17360_v60 = vld [vmem:[%s21049_s11 + $0x6c] ss:$48 sps:$4 sm:$0xff]   ;;  %v17361_v6 = vld [vmem:[%s21049_s11 + $0x88] ss:$48 sps:$4 sm:$0xff]  }
 0xb87   : > { %v12057_v5 = vadd.f32 %v16284_v21, %v14305_v42  ;;  %v11995_v39 = vpop.f32.mrb[27].mxu0  ;;  %16294 = vmatmul.mubr.msk.bf16.vlgmr.msra.gmra.mrb[32].mxu0 %vm2427_vm0, %v12081_v1  ;;  %v12072_v13 = vmax.f32 %v12056_v35, 0.0  ;;  %v17358_v35 = vld [vmem:[%s21049_s11 + $0x68] ss:$48 sps:$4 sm:$0xff]  }
 0xb88   : > { %v12055_v26 = vadd.f32 %v14305_v42, %v11995_v39  ;;  %16298 = vmatpush3.bf16.msra.mxu0 %v17322_v38  ;;  %16301 = vmatprep.mubr.msk.bf16.mxu0 %vm2427_vm0, %v12078_v15  ;;  %v12070_v23 = vmax.f32 %v12054_v46, 0.0  ;;  %v17369_v46 = vld [vmem:[%s21049_s11 + $0xec] ss:$48 sps:$4 sm:$0xff]   ;;  %v17364_v21 = vld [vmem:[%s21049_s11 + $0xc8] ss:$48 sps:$4 sm:$0xff]  }
 0xb89   : > { %v12073_v50 = vmax.f32 %v12057_v5, 0.0  ;;  %16299 = vmatprep.subr.bf16.mxu0 %v17323_v53  ;;  %v17367_v5 = vld [vmem:[%s21049_s11 + $0xe8] ss:$48 sps:$4 sm:$0xff]   ;;  %v17372_v39 = vld [vmem:[%s21049_s11 + $0x12c] ss:$48 sps:$4 sm:$0xff]  }
 0xb8a   : > { %v12071_v9 = vmax.f32 %v12055_v26, 0.0  ;;  %v17375_v26 = vld [vmem:[%s21049_s11 + $0x14c] ss:$48 sps:$4 sm:$0xff]  }
 0xb8b   : > { %v12083_v17 = vpack.c.bf16 %v12073_v50, %v12072_v13  ;;  %v17370_v13 = vld [vmem:[%s21049_s11 + $0x128] ss:$48 sps:$4 sm:$0xff]  }
 0xb8c   : > { %v12082_v3 = vpack.c.bf16 %v12071_v9, %v12070_v23  ;;  %v16287_v43 = vpop.f32.mrb[28].mxu0  ;;  %16300 = vmatpush3.bf16.msra.mxu0 %v17323_v53  ;;  %v17366_v53 = vld [vmem:[%s21049_s11 + $0xcc] ss:$48 sps:$4 sm:$0xff]   ;;  %v17373_v50 = vld [vmem:[%s21049_s11 + $0x148] ss:$48 sps:$4 sm:$0xff]  }
 0xb8d   : > { %v12060_v8 = vadd.f32 %v16287_v43, %v14305_v42  ;;  %v12008_v51 = vpop.f32.mrb[29].mxu0  ;;  %16305 = vmatprep.subr.bf16.mxu0 %v17324_v10  ;;  %v17376_v23 = vld [vmem:[%s21049_s11 + $0x10] ss:$48 sps:$4 sm:$0xff]   ;;  %v17381_v9 = vld [vmem:[%s21049_s11 + $0x74] ss:$48 sps:$4 sm:$0xff]  }
 0xb8e   : > { %v12058_v47 = vadd.f32 %v14305_v42, %v12008_v51  ;;  %v16288_v63 = vpop.f32.mrb[30].mxu0  ;;  %v17382_v43 = vld [vmem:[%s21049_s11 + $0xd0] ss:$48 sps:$4 sm:$0xff]  }
 0xb8f   : > { %v12061_v2 = vadd.f32 %v16288_v63, %v14305_v42  ;;  %v12011_v36 = vpop.f32.mrb[31].mxu0  ;;  %v12076_v0 = vmax.f32 %v12060_v8, 0.0  ;;  %v17387_v8 = vld [vmem:[%s21049_s11 + $0x134] ss:$48 sps:$4 sm:$0xff]   ;;  %v17385_v51 = vld [vmem:[%s21049_s11 + $0x130] ss:$48 sps:$4 sm:$0xff]  }
 0xb90   : > { %v12059_v18 = vadd.f32 %v14305_v42, %v12011_v36  ;;  %v12074_v38 = vmax.f32 %v12058_v47, 0.0  ;;  %v17337_v42 = vld [vmem:[%s21049_s11] ss:$48 sps:$4 sm:$0xff]   ;;  %v17390_v47 = vld [vmem:[%s21049_s11 + $0x24] ss:$48 sps:$4 sm:$0xff]  }
 0xb91   : > { %v12077_v45 = vmax.f32 %v12061_v2, 0.0  ;;  %v17388_v63 = vld [vmem:[%s21049_s11 + $0x20] ss:$48 sps:$4 sm:$0xff]   ;;  %v17393_v2 = vld [vmem:[%s21049_s11 + $0x84] ss:$48 sps:$4 sm:$0xff]  }
 0xb92   : > { %v12075_v52 = vmax.f32 %v12059_v18, 0.0  ;;  %v17391_v36 = vld [vmem:[%s21049_s11 + $0x80] ss:$48 sps:$4 sm:$0xff]   ;;  %v17396_v18 = vld [vmem:[%s21049_s11 + $0xe4] ss:$48 sps:$4 sm:$0xff]  }
 0xb93   : > { %v12085_v14 = vpack.c.bf16 %v12077_v45, %v12076_v0  ;;  %16302 = vmatmul.mubr.msk.bf16.vlgmr.msra.gmra.mrb[32].mxu0 %vm2427_vm0, %v12079_v41  ;;  %v17394_v0 = vld [vmem:[%s21049_s11 + $0xe0] ss:$48 sps:$4 sm:$0xff]   ;;  %v17399_v45 = vld [vmem:[%s21049_s11 + $0x144] ss:$48 sps:$4 sm:$0xff]  }
 0xb94   : > { %v12084_v4 = vpack.c.bf16 %v12075_v52, %v12074_v38  ;;  %16306 = vmatpush3.bf16.msra.mxu0 %v17324_v10  ;;  %16309 = vmatprep.mubr.msk.bf16.mxu0 %vm2427_vm0, %v12082_v3  ;;  %v17378_v10 = vld [vmem:[%s21049_s11 + $0x14] ss:$48 sps:$4 sm:$0xff]   ;;  %v12450_v38 = vlaneseq }
 0xb95   : > { %16307 = vmatprep.subr.bf16.mxu0 %v17325_v7  ;;  %v17384_v3 = vld [vmem:[%s21049_s11 + $0xd4] ss:$48 sps:$4 sm:$0xff]  }
 0xb96   : > { %v20801_v52 = vshrl.u32 %v12450_v38, 7 }
 0xb98   : > { %16308 = vmatpush3.bf16.msra.mxu0 %v17325_v7  ;;  %v17397_v7 = vld [vmem:[%s21049_s11 + $0x140] ss:$48 sps:$4 sm:$0xff]  }
 0xb99   : > { %16313 = vmatprep.subr.bf16.mxu0 %v17326_v33 }
 0xb9f   : > { %16310 = vmatmul.mubr.msk.bf16.vlgmr.msra.gmra.mrb[32].mxu0 %vm2427_vm0, %v12083_v17  ;;  %v17379_v17 = vld [vmem:[%s21049_s11 + $0x70] ss:$48 sps:$4 sm:$0xff]  }
 0xba0   : > { %16314 = vmatpush3.bf16.msra.mxu0 %v17326_v33  ;;  %16317 = vmatprep.mubr.msk.bf16.mxu0 %vm2427_vm0, %v12084_v4  ;;  %v12476_v4 = vsub.s32 6, %v20801_v52  ;;  %v20808_v33 = vld [vmem:[%s21050_s12] sm:$0xff] }
 0xba1   : > { %16315 = vmatprep.subr.bf16.mxu0 %v17327_v20 }
 0xba4   : > { %16316 = vmatpush3.bf16.msra.mxu0 %v17327_v20  ;;  %v12456_v20 = vsub.s32 1, %v20801_v52 }
 0xba5   : > { %12756 = vmatprep.subr.bf16.mxu0 %v17339_v49  ;;  %v12480_v49 = vsub.s32 7, %v20801_v52 }
 0xbab   : > { %16318 = vmatmul.mubr.msk.bf16.vlgmr.msra.gmra.mrb[32].mxu0 %vm2427_vm0, %v12085_v14  ;;  %v12452_v14 = vsub.s32 0, %v20801_v52 }
 0xbac   : > { %12757 = vmatpush1.bf16.msra.mxu0 %v17337_v42  ;;  %12788 = vmatprep.mubr.bf16.mxu0 %v21256_v11  ;;  %v20816_v42 = vrot.slane %v20808_v33, %v12476_v4 }
 0xbad   : > { %12758 = vmatprep.subr.bf16.mxu0 %v17342_v24  ;;  %v20821_v24 = vrot.slane %v20808_v33, %v12456_v20 }
 0xbb0   : > { %12759 = vmatpush1.bf16.msra.mxu0 %v17340_v22  ;;  %v20824_v22 = vrot.slane %v20808_v33, %v12480_v49  ;;  %v12460_v49 = vsub.s32 2, %v20801_v52 }
 0xbb1   : > { %12760 = vmatprep.subr.bf16.mxu0 %v17345_v34 }
 0xbb4   : > { %12761 = vmatpush1.bf16.msra.mxu0 %v17343_v55 }
 0xbb5   : > { %12762 = vmatprep.subr.bf16.mxu0 %v17348_v61 }
 0xbb8   : > { %12763 = vmatpush1.bf16.msra.mxu0 %v17346_v40 }
 0xbb9   : > { %12809 = vmatprep.subr.bf16.mxu0 %v17354_v19 }
 0xc7e   : > { %v16319_v58 = vpop.f32.mrb[32].mxu0 }
 0xc7f   : > { %v12390_v41 = vadd.f32 %v16319_v58, %v14334_v31  ;;  %v12362_v15 = vpop.f32.mrb[33].mxu0 }
 0xc80   : > { %v12388_v57 = vadd.f32 %v14334_v31, %v12362_v15  ;;  %v16320_v30 = vpop.f32.mrb[34].mxu0 }
 0xc81   : > { %v12391_v37 = vadd.f32 %v16320_v30, %v14334_v31  ;;  %v12365_v44 = vpop.f32.mrb[35].mxu0  ;;  %v12394_v25 = vmax.f32 %v12390_v41, 0.0 }
 0xc82   : > { %v12389_v59 = vadd.f32 %v14334_v31, %v12365_v44  ;;  %v12392_v16 = vmax.f32 %v12388_v57, 0.0 }
 0xc83   : > { %v12395_v12 = vmax.f32 %v12391_v37, 0.0 }
 0xc84   : > { %v12393_v28 = vmax.f32 %v12389_v59, 0.0 }
 0xc85   : > { %v20673_v27 = vpack.c.bf16 %v12395_v12, %v12394_v25 }
 0xc86   : > { %v20681_v1 = vpack.c.bf16 %v12393_v28, %v12392_v16 }
 0xc88   : > { %14383 = vmatmul.mubr.msk.bf16.vlgmr.msra.gmra.mrb[36].mxu0 %vm4349_vm1, %v20681_v1  ;;  %14389 = vmatmul.mubr.msk.bf16.vlgmr.msra.gmra.mrb[64].mxu1 %vm4349_vm1, %v20681_v1 }
 0xc89   : > { %12810 = vmatpush1.bf16.msra.mxu0 %v17352_v56  ;;  %13022 = vmatpush1.bf16.msra.mxu1 %v17355_v29 }
 0xc8a   : > { %12811 = vmatprep.subr.bf16.mxu0 %v17360_v60  ;;  %13023 = vmatprep.subr.bf16.mxu1 %v17363_v32 }
 0xc8b   : > { %12798 = vmatprep.mubr.bf16.mxu0 %v21256_v11  ;;  %12957 = vmatprep.mubr.bf16.mxu1 %v21256_v11 }
 0xc8d   : > { %12812 = vmatpush1.bf16.msra.mxu0 %v17358_v35  ;;  %13024 = vmatpush1.bf16.msra.mxu1 %v17361_v6 }
 0xc8e   : > { %12813 = vmatprep.subr.bf16.mxu0 %v17366_v53  ;;  %13025 = vmatprep.subr.bf16.mxu1 %v17369_v46 }
 0xc90   : > { %14384 = vmatmul.mubr.msk.bf16.gmra.mrb[40].mxu0 %vm4349_vm1, %v20673_v27  ;;  %14390 = vmatmul.mubr.msk.bf16.gmra.mrb[68].mxu1 %vm4349_vm1, %v20673_v27 }
 0xc91   : > { %12814 = vmatpush1.bf16.msra.mxu0 %v17364_v21  ;;  %13026 = vmatpush1.bf16.msra.mxu1 %v17367_v5 }
 0xc92   : > { %12815 = vmatprep.subr.bf16.mxu0 %v17372_v39  ;;  %13027 = vmatprep.subr.bf16.mxu1 %v17375_v26 }
 0xc93   : > { %12841 = vmatprep.mubr.bf16.mxu0 %v21256_v11  ;;  %13053 = vmatprep.mubr.bf16.mxu1 %v21256_v11 }
 0xc95   : > { %12816 = vmatpush1.bf16.msra.mxu0 %v17370_v13  ;;  %13028 = vmatpush1.bf16.msra.mxu1 %v17373_v50 }
 0xc96   : > { %12862 = vmatprep.subr.bf16.mxu0 %v17378_v10 }
 0xc98   : > { %14385 = vmatmul.mubr.msk.bf16.vlgmr.msra.gmra.mrb[44].mxu0 %vm4349_vm1, %v20681_v1  ;;  %14393 = vmatmul.mubr.msk.bf16.vlgmr.msra.gmra.mrb[72].mxu1 %vm4349_vm1, %v20681_v1 }
 0xc99   : > { %12863 = vmatpush1.bf16.msra.mxu0 %v17376_v23  ;;  %12851 = vmatprep.mubr.bf16.mxu0 %v21256_v11 }
 0xc9a   : > { %12864 = vmatprep.subr.bf16.mxu0 %v17381_v9  ;;  %13063 = vmatprep.mubr.bf16.mxu1 %v21256_v11 }
 0xc9d   : > { %12865 = vmatpush1.bf16.msra.mxu0 %v17379_v17 }
 0xc9e   : > { %12866 = vmatprep.subr.bf16.mxu0 %v17384_v3 }
 0xca0   : > { %14386 = vmatmul.mubr.msk.bf16.gmra.mrb[48].mxu0 %vm4349_vm1, %v20673_v27  ;;  %14394 = vmatmul.mubr.msk.bf16.gmra.mrb[76].mxu1 %vm4349_vm1, %v20673_v27 }
 0xca1   : > { %12867 = vmatpush1.bf16.msra.mxu0 %v17382_v43  ;;  %12894 = vmatprep.mubr.bf16.mxu0 %v21256_v11 }
 0xca2   : > { %12868 = vmatprep.subr.bf16.mxu0 %v17387_v8 }
 0xca5   : > { %12869 = vmatpush1.bf16.msra.mxu0 %v17385_v51 }
 0xca6   : > { %12968 = vmatprep.subr.bf16.mxu0 %v17390_v47 }
 0xca8   : > { %14387 = vmatmul.mubr.msk.bf16.vlgmr.msra.gmra.mrb[52].mxu0 %vm4349_vm1, %v20681_v1 }
 0xca9   : > { %12969 = vmatpush1.bf16.msra.mxu0 %v17388_v63  ;;  %12904 = vmatprep.mubr.bf16.mxu0 %v21256_v11 }
 0xcaa   : > { %12970 = vmatprep.subr.bf16.mxu0 %v17393_v2 }
 0xcad   : > { %12971 = vmatpush1.bf16.msra.mxu0 %v17391_v36 }
 0xcae   : > { %12972 = vmatprep.subr.bf16.mxu0 %v17396_v18 }
 0xcb0   : > { %14388 = vmatmul.mubr.msk.bf16.gmra.mrb[56].mxu0 %vm4349_vm1, %v20673_v27 }
 0xcb1   : > { %12973 = vmatpush1.bf16.msra.mxu0 %v17394_v0  ;;  %13000 = vmatprep.mubr.bf16.mxu0 %v21256_v11 }
 0xcb2   : > { %12974 = vmatprep.subr.bf16.mxu0 %v17399_v45 }
 0xcb5   : > { %12975 = vmatpush1.bf16.msra.mxu0 %v17397_v7 }
 0xcb8   : > { %14391 = vmatmul.mubr.msk.bf16.vlgmr.msra.gmra.mrb[60].mxu0 %vm4349_vm1, %v20681_v1 }
 0xcb9   : > { %13010 = vmatprep.mubr.bf16.mxu0 %v21256_v11  ;;  %v12453_v11 = vrot.slane %v20808_v33, %v12452_v14 }
 0xcc0   : > { %14392 = vmatmul.mubr.msk.bf16.gmra.mrb[64].mxu0 %vm4349_vm1, %v20673_v27 }
 0xd5b   : > { %v12790_v34 = vpop.f32.mrb[36].mxu0  ;;  %v12949_v55 = vpop.f32.mrb[64].mxu1 }
 0xd5c   : > { %v12791_v61 = vadd.f32 %v12790_v34, %v12453_v11  ;;  %v12950_v48 = vadd.f32 %v12949_v55, %v20816_v42  ;;  %v12792_v40 = vpop.f32.mrb[37].mxu0  ;;  %v12951_v54 = vpop.f32.mrb[65].mxu1 }
 0xd5d   : > { %v12793_v19 = vadd.f32 %v12792_v40, %v20821_v24  ;;  %v12952_v62 = vadd.f32 %v12951_v54, %v20824_v22  ;;  %v12794_v31 = vpop.f32.mrb[38].mxu0  ;;  %v12953_v58 = vpop.f32.mrb[66].mxu1 }
 0xd5e   : > { %v13074_v41 = vsub.f32 0.0, %v12791_v61  ;;  %v13080_v15 = vsub.f32 0.0, %v12950_v48  ;;  %v12795_v57 = vadd.f32 %v12794_v31, %v12453_v11  ;;  %v12954_v30 = vadd.f32 %v12953_v58, %v20816_v42  ;;  %v12796_v37 = vpop.f32.mrb[39].mxu0  ;;  %v12955_v44 = vpop.f32.mrb[67].mxu1 }
 0xd5f   : > { %v13075_v59 = vsub.f32 0.0, %v12793_v19  ;;  %v13081_v25 = vsub.f32 0.0, %v12952_v62  ;;  %v12797_v12 = vadd.f32 %v12796_v37, %v20821_v24  ;;  %v12956_v16 = vadd.f32 %v12955_v44, %v20824_v22  ;;  %v20845_v62 = vld [vmem:[%s21050_s12 + $0x8] sm:$0xf] }
 0xd60   : > { %v13122_v28 = vmul.f32 1.442695, %v13074_v41  ;;  %v13134_v27 = vmul.f32 1.442695, %v13080_v15  ;;  %v13086_v56 = vsub.f32 0.0, %v12795_v57  ;;  %v13092_v29 = vsub.f32 0.0, %v12954_v30 }
 0xd61   : > { %v13124_v1 = vmul.f32 1.442695, %v13075_v59  ;;  %v13136_v60 = vmul.f32 1.442695, %v13081_v25  ;;  %v13087_v32 = vsub.f32 0.0, %v12797_v12  ;;  %v13093_v35 = vsub.f32 0.0, %v12956_v16 }
 0xd62   : > { %17400 = vpow2.f32 %v13122_v28  ;;  %v13146_v6 = vmul.f32 1.442695, %v13086_v56  ;;  %v13158_v53 = vmul.f32 1.442695, %v13092_v29  ;;  %v12464_v31 = vsub.s32 3, %v20801_v52 }
 0xd63   : > { %17402 = vpow2.f32 %v13134_v27  ;;  %v12800_v46 = vpop.f32.mrb[40].mxu0  ;;  %v12959_v21 = vpop.f32.mrb[68].mxu1  ;;  %v13148_v5 = vmul.f32 1.442695, %v13087_v32  ;;  %v13160_v10 = vmul.f32 1.442695, %v13093_v35  ;;  %v20859_v59 = vrot.slane %v20808_v33, %v12460_v49 }
 0xd64   : > { %17404 = vpow2.f32 %v13124_v1  ;;  %v12801_v39 = vadd.f32 %v12800_v46, %v12453_v11  ;;  %v12960_v26 = vadd.f32 %v12959_v21, %v20816_v42  ;;  %v12802_v13 = vpop.f32.mrb[41].mxu0  ;;  %v12961_v50 = vpop.f32.mrb[69].mxu1  ;;  %v20868_v1 = vrot.slane %v20808_v33, %v12464_v31 }
 0xd65   : > { %17406 = vpow2.f32 %v13136_v60  ;;  %v12803_v23 = vadd.f32 %v12802_v13, %v20821_v24  ;;  %v12962_v9 = vadd.f32 %v12961_v50, %v20824_v22  ;;  %v12804_v17 = vpop.f32.mrb[42].mxu0  ;;  %v12963_v3 = vpop.f32.mrb[70].mxu1 }
 0xd66   : > { %17408 = vpow2.f32 %v13146_v6  ;;  %v13098_v43 = vsub.f32 0.0, %v12801_v39  ;;  %v13104_v8 = vsub.f32 0.0, %v12960_v26  ;;  %v12805_v51 = vadd.f32 %v12804_v17, %v12453_v11  ;;  %v12806_v47 = vpop.f32.mrb[43].mxu0  ;;  %v12965_v63 = vpop.f32.mrb[71].mxu1 }
 0xd67   : > { %17410 = vpow2.f32 %v13158_v53  ;;  %v13099_v2 = vsub.f32 0.0, %v12803_v23  ;;  %v13105_v36 = vsub.f32 0.0, %v12962_v9  ;;  %v12964_v61 = vadd.f32 %v12963_v3, %v20816_v42 }
 0xd68   : > { %17412 = vpow2.f32 %v13148_v5  ;;  %v13170_v18 = vmul.f32 1.442695, %v13098_v43  ;;  %v13182_v0 = vmul.f32 1.442695, %v13104_v8  ;;  %v13110_v45 = vsub.f32 0.0, %v12805_v51 }
 0xd69   : > { %17414 = vpow2.f32 %v13160_v10  ;;  %v13172_v7 = vmul.f32 1.442695, %v13099_v2  ;;  %v13184_v38 = vmul.f32 1.442695, %v13105_v36  ;;  %v12807_v42 = vadd.f32 %v12806_v47, %v20821_v24 }
 0xd6a   : > { %17416 = vpow2.f32 %v13170_v18  ;;  %v13194_v4 = vmul.f32 1.442695, %v13110_v45  ;;  %v13116_v28 = vsub.f32 0.0, %v12964_v61  ;;  %v20864_v24 = vrot.slane %v20845_v62, %v12460_v49 }
 0xd6b   : > { %17418 = vpow2.f32 %v13182_v0  ;;  %v12843_v11 = vpop.f32.mrb[44].mxu0  ;;  %v13055_v34 = vpop.f32.mrb[72].mxu1  ;;  %v12966_v29 = vadd.f32 %v12965_v63, %v20824_v22  ;;  %v13111_v35 = vsub.f32 0.0, %v12807_v42  ;;  %v20871_v6 = vrot.slane %v20845_v62, %v12464_v31 }
 0xd6c   : > { %v17401_v55 = vpop.eup %17400  ;;  %17420 = vpow2.f32 %v13172_v7  ;;  %v12845_v48 = vpop.f32.mrb[45].mxu0  ;;  %v12844_v21 = vadd.f32 %v12843_v11, %v20859_v59  ;;  %v13206_v13 = vmul.f32 1.442695, %v13116_v28  ;;  %v13056_v50 = vadd.f32 %v13055_v34, %v20864_v24 }
 0xd6d   : > { %v13057_v40 = vpop.f32.mrb[73].mxu1  ;;  %v17403_v54 = vpop.eup %17402  ;;  %v13218_v19 = vadd.f32 1.0, %v17401_v55  ;;  %17422 = vpow2.f32 %v13184_v38  ;;  %v13117_v3 = vsub.f32 0.0, %v12966_v29  ;;  %v12846_v43 = vadd.f32 %v12845_v48, %v20868_v1 }
 0xd6e   : > { %v12847_v58 = vpop.f32.mrb[46].mxu0  ;;  %v20848_v41 = vpop.f32.mrb[74].mxu1  ;;  %v13224_v57 = vadd.f32 1.0, %v17403_v54  ;;  %17424 = vpow2.f32 %v13194_v4  ;;  %v13196_v2 = vmul.f32 1.442695, %v13111_v35  ;;  %v13058_v36 = vadd.f32 %v13057_v40, %v20871_v6 }
 0xd6f   : > { %v17405_v15 = vpop.eup %17404  ;;  %v20851_v30 = vpop.f32.mrb[47].mxu0  ;;  %17426 = vrcp.f32 %v13218_v19  ;;  %v13076_v38 = vsub.f32 0.0, %v12844_v21  ;;  %v12848_v4 = vadd.f32 %v12847_v58, %v20859_v59  ;;  %v13084_v34 = vsub.f32 0.0, %v13056_v50 }
 0xd70   : > { %v17407_v37 = vpop.eup %17406  ;;  %v13219_v44 = vadd.f32 1.0, %v17405_v15  ;;  %v20861_v25 = vpop.f32.mrb[75].mxu1  ;;  %17428 = vrcp.f32 %v13224_v57  ;;  %v13060_v55 = vadd.f32 %v20848_v41, %v20864_v24  ;;  %v13077_v40 = vsub.f32 0.0, %v12846_v43 }
 0xd71   : > { %v17409_v12 = vpop.eup %17408  ;;  %v13225_v16 = vadd.f32 1.0, %v17407_v37  ;;  %v12850_v54 = vadd.f32 %v20851_v30, %v20868_v1  ;;  %v13208_v31 = vmul.f32 1.442695, %v13117_v3  ;;  %v13085_v58 = vsub.f32 0.0, %v13058_v36 }
 0xd72   : > { %v17411_v27 = vpop.eup %17410  ;;  %17430 = vrcp.f32 %v13219_v44  ;;  %v13230_v56 = vadd.f32 1.0, %v17409_v12  ;;  %v13062_v15 = vadd.f32 %v20861_v25, %v20871_v6  ;;  %v13126_v41 = vmul.f32 1.442695, %v13076_v38 }
 0xd73   : > { %v17413_v60 = vpop.eup %17412  ;;  %17432 = vrcp.f32 %v13225_v16  ;;  %v13236_v32 = vadd.f32 1.0, %v17411_v27  ;;  %v12853_v5 = vpop.f32.mrb[48].mxu0  ;;  %v13088_v42 = vsub.f32 0.0, %v12848_v4  ;;  %v13142_v12 = vmul.f32 1.442695, %v13084_v34 }
 0xd74   : > { %v17415_v53 = vpop.eup %17414  ;;  %17434 = vrcp.f32 %v13230_v56  ;;  %v13231_v46 = vadd.f32 1.0, %v17413_v60  ;;  %v13065_v39 = vpop.f32.mrb[76].mxu1  ;;  %v12854_v37 = vadd.f32 %v12853_v5, %v20859_v59  ;;  %v13096_v16 = vsub.f32 0.0, %v13060_v55 }
 0xd75   : > { %v17417_v26 = vpop.eup %17416  ;;  %17436 = vrcp.f32 %v13236_v32  ;;  %v13237_v22 = vadd.f32 1.0, %v17415_v53  ;;  %v20876_v10 = vpop.f32.mrb[49].mxu0  ;;  %v13066_v28 = vadd.f32 %v13065_v39, %v20864_v24  ;;  %v13128_v56 = vmul.f32 1.442695, %v13077_v40 }
 0xd76   : > { %v20878_v23 = vpop.f32.mrb[77].mxu1  ;;  %v17419_v9 = vpop.eup %17418  ;;  %17438 = vrcp.f32 %v13231_v46  ;;  %v13242_v17 = vadd.f32 1.0, %v17417_v26  ;;  %v13089_v29 = vsub.f32 0.0, %v12850_v54  ;;  %v13144_v35 = vmul.f32 1.442695, %v13085_v58 }
 0xd77   : > { %v20881_v8 = vpop.f32.mrb[50].mxu0  ;;  %v20883_v51 = vpop.f32.mrb[78].mxu1  ;;  %17440 = vrcp.f32 %v13237_v22  ;;  %v13248_v63 = vadd.f32 1.0, %v17419_v9  ;;  %v13097_v53 = vsub.f32 0.0, %v13062_v15  ;;  %v13150_v5 = vmul.f32 1.442695, %v13088_v42 }
 0xd78   : > { %v17421_v47 = vpop.eup %17420  ;;  %v20886_v18 = vpop.f32.mrb[51].mxu0  ;;  %17442 = vrcp.f32 %v13242_v17  ;;  %v13100_v39 = vsub.f32 0.0, %v12854_v37  ;;  %v13166_v22 = vmul.f32 1.442695, %v13096_v16  ;;  %v13152_v9 = vmul.f32 1.442695, %v13089_v29 }
 0xd79   : > { %v20888_v0 = vpop.f32.mrb[79].mxu1  ;;  %v17423_v45 = vpop.eup %17422  ;;  %v13243_v7 = vadd.f32 1.0, %v17421_v47  ;;  %17444 = vrcp.f32 %v13248_v63  ;;  %v13168_v3 = vmul.f32 1.442695, %v13097_v53  ;;  %v12856_v55 = vadd.f32 %v20876_v10, %v20868_v1 }
 0xd7a   : > { %v17425_v49 = vpop.eup %17424  ;;  %v13249_v11 = vadd.f32 1.0, %v17423_v45  ;;  %v13174_v47 = vmul.f32 1.442695, %v13100_v39  ;;  %v13068_v40 = vadd.f32 %v20878_v23, %v20871_v6  ;;  %v12468_v54 = vsub.s32 4, %v20801_v52 }
 0xd7b   : > { %v17427_v61 = vpop.eup %17426  ;;  %17446 = vrcp.f32 %v13243_v7  ;;  %v13254_v48 = vadd.f32 1.0, %v17425_v49  ;;  %v20905_v44 = vpop.f32.mrb[52].mxu0  ;;  %v12472_v58 = vsub.s32 5, %v20801_v52  ;;  %v13101_v37 = vsub.f32 0.0, %v12856_v55 }
 0xd7c   : > { %v17429_v19 = vpop.eup %17428  ;;  %13314 = vst [vmem:[%s20893_s14] sm:$0xff] %v17427_v61  ;;  %17448 = vrcp.f32 %v13249_v11  ;;  %v20909_v25 = vpop.f32.mrb[53].mxu0  ;;  %v13109_v16 = vsub.f32 0.0, %v13068_v40 }
 0xd7d   : > { %v17431_v57 = vpop.eup %17430  ;;  %13320 = vst [vmem:[%s20893_s14 + $0x30] sm:$0xff] %v17429_v19  ;;  %17450 = vrcp.f32 %v13254_v48  ;;  %v20912_v60 = vpop.f32.mrb[54].mxu0 }
 0xd7e   : > { %v17433_v30 = vpop.eup %17432  ;;  %13315 = vst [vmem:[%s20893_s14 + $0x8] sm:$0xff] %v17431_v57  ;;  %17452 = vpow2.f32 %v13206_v13  ;;  %v20915_v46 = vpop.f32.mrb[55].mxu0  ;;  %v13108_v13 = vsub.f32 0.0, %v13066_v28  ;;  %v12469_v28 = vrot.slane %v20808_v33, %v12468_v54 }
 0xd7f   : > { %v17435_v27 = vpop.eup %17434  ;;  %13321 = vst [vmem:[%s20893_s14 + $0x38] sm:$0xff] %v17433_v30  ;;  %17454 = vpow2.f32 %v13196_v2 }
 0xd80   : > { %v17437_v32 = vpop.eup %17436  ;;  %13326 = vst [vmem:[%s20893_s14 + $0x60] sm:$0xff] %v17435_v27  ;;  %17456 = vpow2.f32 %v13208_v31  ;;  %v13190_v36 = vmul.f32 1.442695, %v13108_v13  ;;  %v13176_v13 = vmul.f32 1.442695, %v13101_v37 }
 0xd81   : > { %v17439_v21 = vpop.eup %17438  ;;  %13332 = vst [vmem:[%s20893_s14 + $0x90] sm:$0xff] %v17437_v32  ;;  %17458 = vpow2.f32 %v13126_v41  ;;  %v12858_v41 = vadd.f32 %v20881_v8, %v20859_v59  ;;  %v13070_v59 = vadd.f32 %v20883_v51, %v20864_v24  ;;  %v20949_v8 = vrot.slane %v20808_v33, %v12472_v58 }
 0xd82   : > { %v17441_v26 = vpop.eup %17440  ;;  %13327 = vst [vmem:[%s20893_s14 + $0x68] sm:$0xff] %v17439_v21  ;;  %17460 = vpow2.f32 %v13142_v12  ;;  %v13072_v24 = vadd.f32 %v20888_v0, %v20871_v6  ;;  %v12901_v6 = vadd.f32 %v20912_v60, %v12469_v28 }
 0xd83   : > { %v17443_v50 = vpop.eup %17442  ;;  %13333 = vst [vmem:[%s20893_s14 + $0x98] sm:$0xff] %v17441_v26  ;;  %17462 = vpow2.f32 %v13128_v56  ;;  %v20922_v63 = vpop.f32.mrb[56].mxu0  ;;  %v13112_v21 = vsub.f32 0.0, %v12858_v41 }
 0xd84   : > { %v17445_v17 = vpop.eup %17444  ;;  %13338 = vst [vmem:[%s20893_s14 + $0xc0] sm:$0xff] %v17443_v50  ;;  %17464 = vpow2.f32 %v13144_v35  ;;  %v20925_v45 = vpop.f32.mrb[57].mxu0  ;;  %v13192_v50 = vmul.f32 1.442695, %v13109_v16  ;;  %v12907_v55 = vadd.f32 %v20922_v63, %v12469_v28  ;;  %v13090_v63 = vsub.f32 0.0, %v12901_v6 }
 0xd85   : > { %v17447_v43 = vpop.eup %17446  ;;  %13344 = vst [vmem:[%s20893_s14 + $0xf0] sm:$0xff] %v17445_v17  ;;  %17466 = vpow2.f32 %v13150_v5  ;;  %v20928_v38 = vpop.f32.mrb[58].mxu0  ;;  %v12860_v5 = vadd.f32 %v20886_v18, %v20868_v1  ;;  %v13120_v1 = vsub.f32 0.0, %v13070_v59  ;;  %v12899_v18 = vadd.f32 %v20909_v25, %v20949_v8 }
 0xd86   : > { %v17449_v2 = vpop.eup %17448  ;;  %13339 = vst [vmem:[%s20893_s14 + $0xc8] sm:$0xff] %v17447_v43  ;;  %17468 = vpow2.f32 %v13166_v22  ;;  %v20931_v49 = vpop.f32.mrb[59].mxu0  ;;  %v13198_v25 = vmul.f32 1.442695, %v13112_v21  ;;  %v12911_v58 = vadd.f32 %v20928_v38, %v12469_v28  ;;  %v13102_v37 = vsub.f32 0.0, %v12907_v55 }
 0xd87   : > { %v17451_v7 = vpop.eup %17450  ;;  %13345 = vst [vmem:[%s20893_s14 + $0xf8] sm:$0xff] %v17449_v2  ;;  %17470 = vpow2.f32 %v13152_v9  ;;  %v12897_v9 = vadd.f32 %v20905_v44, %v12469_v28  ;;  %v13113_v2 = vsub.f32 0.0, %v12860_v5  ;;  %v12903_v44 = vadd.f32 %v20915_v46, %v20949_v8 }
 0xd88   : > { %v17453_v4 = vpop.eup %17452  ;;  %13350 = vst [vmem:[%s20893_s14 + $0x120] sm:$0xff] %v17451_v7  ;;  %17472 = vpow2.f32 %v13168_v3  ;;  %v13121_v7 = vsub.f32 0.0, %v13072_v24  ;;  %v13079_v40 = vsub.f32 0.0, %v12899_v18  ;;  %v12909_v46 = vadd.f32 %v20925_v45, %v20949_v8 }
 0xd89   : > { %v17455_v11 = vpop.eup %17454  ;;  %v13260_v34 = vadd.f32 1.0, %v17453_v4  ;;  %17474 = vpow2.f32 %v13174_v47  ;;  %v13154_v28 = vmul.f32 1.442695, %v13090_v63 }
 0xd8a   : > { %v17457_v61 = vpop.eup %17456  ;;  %v13255_v48 = vadd.f32 1.0, %v17455_v11  ;;  %17476 = vpow2.f32 %v13190_v36  ;;  %v13216_v41 = vmul.f32 1.442695, %v13121_v7  ;;  %v13103_v38 = vsub.f32 0.0, %v12909_v46 }
 0xd8b   : > { %v17459_v19 = vpop.eup %17458  ;;  %17478 = vrcp.f32 %v13260_v34  ;;  %v13261_v31 = vadd.f32 1.0, %v17457_v61  ;;  %v20941_v30 = vpop.f32.mrb[60].mxu0  ;;  %v13078_v34 = vsub.f32 0.0, %v12897_v9  ;;  %v12485_v9 = vrot.slane %v20845_v62, %v12452_v14 }
 0xd8c   : > { %v17461_v15 = vpop.eup %17460  ;;  %17480 = vrcp.f32 %v13255_v48  ;;  %v13220_v57 = vadd.f32 1.0, %v17459_v19  ;;  %v20944_v27 = vpop.f32.mrb[61].mxu0  ;;  %v13214_v48 = vmul.f32 1.442695, %v13120_v1  ;;  %v13180_v5 = vmul.f32 1.442695, %v13103_v38 }
 0xd8d   : > { %v17463_v10 = vpop.eup %17462  ;;  %17482 = vrcp.f32 %v13261_v31  ;;  %v13228_v42 = vadd.f32 1.0, %v17461_v15  ;;  %v20951_v32 = vpop.f32.mrb[62].mxu0  ;;  %v13200_v31 = vmul.f32 1.442695, %v13113_v2  ;;  %v13130_v45 = vmul.f32 1.442695, %v13078_v34 }
 0xd8e   : > { %v17465_v23 = vpop.eup %17464  ;;  %17484 = vrcp.f32 %v13220_v57  ;;  %v13221_v12 = vadd.f32 1.0, %v17463_v10  ;;  %v20955_v39 = vpop.f32.mrb[63].mxu0  ;;  %v13091_v10 = vsub.f32 0.0, %v12903_v44  ;;  %v12489_v1 = vrot.slane %v20845_v62, %v12456_v20 }
 0xd8f   : > { %v17467_v56 = vpop.eup %17466  ;;  %17486 = vrcp.f32 %v13228_v42  ;;  %v13229_v29 = vadd.f32 1.0, %v17465_v23  ;;  %v13007_v62 = vadd.f32 %v20951_v32, %v12485_v9 }
 0xd90   : > { %v17469_v35 = vpop.eup %17468  ;;  %17488 = vrcp.f32 %v13221_v12  ;;  %v13232_v53 = vadd.f32 1.0, %v17467_v56  ;;  %v13132_v12 = vmul.f32 1.442695, %v13079_v40  ;;  %v13114_v56 = vsub.f32 0.0, %v12911_v58 }
 0xd91   : > { %v17471_v26 = vpop.eup %17470  ;;  %17490 = vrcp.f32 %v13229_v29  ;;  %v13240_v22 = vadd.f32 1.0, %v17469_v35  ;;  %v13156_v59 = vmul.f32 1.442695, %v13091_v10  ;;  %v13005_v7 = vadd.f32 %v20944_v27, %v12489_v1 }
 0xd92   : > { %v17473_v33 = vpop.eup %17472  ;;  %17492 = vrcp.f32 %v13232_v53  ;;  %v13233_v51 = vadd.f32 1.0, %v17471_v26  ;;  %v13178_v53 = vmul.f32 1.442695, %v13102_v37  ;;  %v13009_v34 = vadd.f32 %v20955_v39, %v12489_v1 }
 0xd93   : > { %v17475_v17 = vpop.eup %17474  ;;  %17494 = vrcp.f32 %v13240_v22  ;;  %v13241_v3 = vadd.f32 1.0, %v17473_v33  ;;  %v20965_v4 = vpop.f32.mrb[64].mxu0  ;;  %v13202_v22 = vmul.f32 1.442695, %v13114_v56  ;;  %v12913_v33 = vadd.f32 %v20931_v49, %v20949_v8 }
 0xd94   : > { %v17477_v43 = vpop.eup %17476  ;;  %17496 = vrcp.f32 %v13233_v51  ;;  %v13244_v47 = vadd.f32 1.0, %v17475_v17  ;;  %v20969_v61 = vpop.f32.mrb[65].mxu0  ;;  %v13083_v46 = vsub.f32 0.0, %v13005_v7  ;;  %v13094_v63 = vsub.f32 0.0, %v13007_v62 }
 0xd95   : > { %v17479_v0 = vpop.eup %17478  ;;  %17498 = vrcp.f32 %v13241_v3  ;;  %v13252_v36 = vadd.f32 1.0, %v17477_v43  ;;  %v20974_v54 = vpop.f32.mrb[66].mxu0  ;;  %v13115_v8 = vsub.f32 0.0, %v12913_v33 }
 0xd96   : > { %v17481_v11 = vpop.eup %17480  ;;  %13356 = vst [vmem:[%s20893_s14 + $0x150] sm:$0xff] %v17479_v0  ;;  %17500 = vrcp.f32 %v13244_v47  ;;  %v20978_v15 = vpop.f32.mrb[67].mxu0  ;;  %v13003_v0 = vadd.f32 %v20941_v30, %v12485_v9  ;;  %v13017_v58 = vadd.f32 %v20974_v54, %v12485_v9  ;;  %v13162_v38 = vmul.f32 1.442695, %v13094_v63 }
 0xd97   : > { %v17483_v60 = vpop.eup %17482  ;;  %13351 = vst [vmem:[%s20893_s14 + $0x128] sm:$0xff] %v17481_v11  ;;  %17502 = vrcp.f32 %v13252_v36 }
 0xd98   : > { %v17485_v19 = vpop.eup %17484  ;;  %13357 = vst [vmem:[%s20893_s14 + $0x158] sm:$0xff] %v17483_v60  ;;  %17504 = vpow2.f32 %v13176_v13  ;;  %v13082_v30 = vsub.f32 0.0, %v13003_v0 }
 0xd99   : > { %v17487_v57 = vpop.eup %17486  ;;  %13316 = vst [vmem:[%s20893_s14 + $0x10] sm:$0xff] %v17485_v19  ;;  %17506 = vpow2.f32 %v13192_v50  ;;  %v13015_v19 = vadd.f32 %v20969_v61, %v12489_v1 }
 0xd9a   : > { %v17489_v42 = vpop.eup %17488  ;;  %13324 = vst [vmem:[%s20893_s14 + $0x50] sm:$0xff] %v17487_v57  ;;  %17508 = vpow2.f32 %v13198_v25  ;;  %v13204_v25 = vmul.f32 1.442695, %v13115_v8 }
 0xd9b   : > { %v17491_v23 = vpop.eup %17490  ;;  %13317 = vst [vmem:[%s20893_s14 + $0x18] sm:$0xff] %v17489_v42  ;;  %17510 = vpow2.f32 %v13214_v48  ;;  %v13013_v48 = vadd.f32 %v20965_v4, %v12485_v9  ;;  %v13019_v4 = vadd.f32 %v20978_v15, %v12489_v1 }
 0xd9c   : > { %v17493_v16 = vpop.eup %17492  ;;  %13325 = vst [vmem:[%s20893_s14 + $0x58] sm:$0xff] %v17491_v23  ;;  %17512 = vpow2.f32 %v13200_v31  ;;  %v13140_v23 = vmul.f32 1.442695, %v13083_v46 }
 0xd9d   : > { %v17495_v29 = vpop.eup %17494  ;;  %13328 = vst [vmem:[%s20893_s14 + $0x70] sm:$0xff] %v17493_v16  ;;  %17514 = vpow2.f32 %v13216_v41  ;;  %v13095_v41 = vsub.f32 0.0, %v13009_v34  ;;  %v13106_v61 = vsub.f32 0.0, %v13013_v48  ;;  %v13118_v16 = vsub.f32 0.0, %v13017_v58 }
 0xd9e   : > { %v17497_v35 = vpop.eup %17496  ;;  %13336 = vst [vmem:[%s20893_s14 + $0xb0] sm:$0xff] %v17495_v29  ;;  %17516 = vpow2.f32 %v13130_v45  ;;  %v13138_v45 = vmul.f32 1.442695, %v13082_v30  ;;  %v13119_v56 = vsub.f32 0.0, %v13019_v4 }
 0xd9f   : > { %v17499_v21 = vpop.eup %17498  ;;  %13329 = vst [vmem:[%s20893_s14 + $0x78] sm:$0xff] %v17497_v35  ;;  %17518 = vpow2.f32 %v13132_v12  ;;  %v13107_v12 = vsub.f32 0.0, %v13015_v19 }
 0xda0   : > { %v17501_v26 = vpop.eup %17500  ;;  %13337 = vst [vmem:[%s20893_s14 + $0xb8] sm:$0xff] %v17499_v21  ;;  %17520 = vpow2.f32 %v13154_v28  ;;  %v13164_v28 = vmul.f32 1.442695, %v13095_v41 }
 0xda1   : > { %v17503_v13 = vpop.eup %17502  ;;  %13340 = vst [vmem:[%s20893_s14 + $0xd0] sm:$0xff] %v17501_v26  ;;  %17522 = vpow2.f32 %v13156_v59  ;;  %v13186_v59 = vmul.f32 1.442695, %v13106_v61 }
 0xda2   : > { %v17505_v24 = vpop.eup %17504  ;;  %13348 = vst [vmem:[%s20893_s14 + $0x110] sm:$0xff] %v17503_v13  ;;  %17524 = vpow2.f32 %v13178_v53  ;;  %v13188_v53 = vmul.f32 1.442695, %v13107_v12 }
 0xda3   : > { %v17507_v51 = vpop.eup %17506  ;;  %v13245_v50 = vadd.f32 1.0, %v17505_v24  ;;  %17526 = vpow2.f32 %v13180_v5  ;;  %v13210_v5 = vmul.f32 1.442695, %v13118_v16 }
 0xda4   : > { %v17509_v17 = vpop.eup %17508  ;;  %v13253_v3 = vadd.f32 1.0, %v17507_v51  ;;  %17528 = vpow2.f32 %v13202_v22  ;;  %v13212_v22 = vmul.f32 1.442695, %v13119_v56 }
 0xda5   : > { %v17511_v18 = vpop.eup %17510  ;;  %17530 = vrcp.f32 %v13245_v50  ;;  %v13256_v43 = vadd.f32 1.0, %v17509_v17 }
 0xda6   : > { %v17513_v47 = vpop.eup %17512  ;;  %17532 = vrcp.f32 %v13253_v3  ;;  %v13264_v49 = vadd.f32 1.0, %v17511_v18 }
 0xda7   : > { %v17515_v2 = vpop.eup %17514  ;;  %17534 = vrcp.f32 %v13256_v43  ;;  %v13257_v6 = vadd.f32 1.0, %v17513_v47 }
 0xda8   : > { %v17517_v14 = vpop.eup %17516  ;;  %17536 = vrcp.f32 %v13264_v49  ;;  %v13265_v36 = vadd.f32 1.0, %v17515_v2 }
 0xda9   : > { %v17519_v52 = vpop.eup %17518  ;;  %17538 = vrcp.f32 %v13257_v6  ;;  %v13222_v20 = vadd.f32 1.0, %v17517_v14 }
 0xdaa   : > { %v17521_v44 = vpop.eup %17520  ;;  %17540 = vrcp.f32 %v13265_v36  ;;  %v13223_v11 = vadd.f32 1.0, %v17519_v52 }
 0xdab   : > { %v17523_v55 = vpop.eup %17522  ;;  %17542 = vrcp.f32 %v13222_v20  ;;  %v13234_v60 = vadd.f32 1.0, %v17521_v44 }
 0xdac   : > { %v17525_v40 = vpop.eup %17524  ;;  %17544 = vrcp.f32 %v13223_v11  ;;  %v13235_v27 = vadd.f32 1.0, %v17523_v55 }
 0xdad   : > { %v17527_v31 = vpop.eup %17526  ;;  %17546 = vrcp.f32 %v13234_v60  ;;  %v13246_v32 = vadd.f32 1.0, %v17525_v40 }
 0xdae   : > { %v17529_v39 = vpop.eup %17528  ;;  %17548 = vrcp.f32 %v13235_v27  ;;  %v13247_v57 = vadd.f32 1.0, %v17527_v31 }
 0xdaf   : > { %v17531_v10 = vpop.eup %17530  ;;  %17550 = vrcp.f32 %v13246_v32  ;;  %v13258_v42 = vadd.f32 1.0, %v17529_v39 }
 0xdb0   : > { %v17533_v37 = vpop.eup %17532  ;;  %13341 = vst [vmem:[%s20893_s14 + $0xd8] sm:$0xff] %v17531_v10  ;;  %17552 = vrcp.f32 %v13247_v57 }
 0xdb1   : > { %v17535_v54 = vpop.eup %17534  ;;  %13349 = vst [vmem:[%s20893_s14 + $0x118] sm:$0xff] %v17533_v37  ;;  %17554 = vrcp.f32 %v13258_v42 }
 0xdb2   : > { %v17537_v15 = vpop.eup %17536  ;;  %13352 = vst [vmem:[%s20893_s14 + $0x130] sm:$0xff] %v17535_v54  ;;  %17556 = vpow2.f32 %v13204_v25 }
 0xdb3   : > { %v17539_v29 = vpop.eup %17538  ;;  %13360 = vst [vmem:[%s20893_s14 + $0x170] sm:$0xff] %v17537_v15  ;;  %17558 = vpow2.f32 %v13138_v45 }
 0xdb4   : > { %v17541_v35 = vpop.eup %17540  ;;  %13353 = vst [vmem:[%s20893_s14 + $0x138] sm:$0xff] %v17539_v29  ;;  %17560 = vpow2.f32 %v13140_v23 }
 0xdb5   : > { %v17543_v21 = vpop.eup %17542  ;;  %13361 = vst [vmem:[%s20893_s14 + $0x178] sm:$0xff] %v17541_v35  ;;  %17562 = vpow2.f32 %v13162_v38 }
 0xdb6   : > { %v17545_v26 = vpop.eup %17544  ;;  %13318 = vst [vmem:[%s20893_s14 + $0x20] sm:$0xff] %v17543_v21  ;;  %17564 = vpow2.f32 %v13164_v28 }
 0xdb7   : > { %v17547_v13 = vpop.eup %17546  ;;  %13319 = vst [vmem:[%s20893_s14 + $0x28] sm:$0xff] %v17545_v26  ;;  %17566 = vpow2.f32 %v13186_v59 }
 0xdb8   : > { %v17549_v24 = vpop.eup %17548  ;;  %13330 = vst [vmem:[%s20893_s14 + $0x80] sm:$0xff] %v17547_v13  ;;  %17568 = vpow2.f32 %v13188_v53 }
 0xdb9   : > { %v17551_v33 = vpop.eup %17550  ;;  %13331 = vst [vmem:[%s20893_s14 + $0x88] sm:$0xff] %v17549_v24  ;;  %17570 = vpow2.f32 %v13210_v5 }
 0xdba   : > { %v17553_v51 = vpop.eup %17552  ;;  %13342 = vst [vmem:[%s20893_s14 + $0xe0] sm:$0xff] %v17551_v33  ;;  %17572 = vpow2.f32 %v13212_v22 }
 0xdbb   : > { %v17555_v50 = vpop.eup %17554  ;;  %13343 = vst [vmem:[%s20893_s14 + $0xe8] sm:$0xff] %v17553_v51 }
 0xdbc   : > { %v17557_v9 = vpop.eup %17556  ;;  %13354 = vst [vmem:[%s20893_s14 + $0x140] sm:$0xff] %v17555_v50 }
 0xdbd   : > { %v17559_v17 = vpop.eup %17558  ;;  %v13259_v3 = vadd.f32 1.0, %v17557_v9 }
 0xdbe   : > { %v17561_v1 = vpop.eup %17560  ;;  %v13226_v18 = vadd.f32 1.0, %v17559_v17 }
 0xdbf   : > { %v17563_v43 = vpop.eup %17562  ;;  %17574 = vrcp.f32 %v13259_v3  ;;  %v13227_v47 = vadd.f32 1.0, %v17561_v1 }
 0xdc0   : > { %v17565_v49 = vpop.eup %17564  ;;  %17576 = vrcp.f32 %v13226_v18  ;;  %v13238_v8 = vadd.f32 1.0, %v17563_v43 }
 0xdc1   : > { %v17567_v2 = vpop.eup %17566  ;;  %17578 = vrcp.f32 %v13227_v47  ;;  %v13239_v6 = vadd.f32 1.0, %v17565_v49 }
 0xdc2   : > { %v17569_v0 = vpop.eup %17568  ;;  %17580 = vrcp.f32 %v13238_v8  ;;  %v13250_v14 = vadd.f32 1.0, %v17567_v2 }
 0xdc3   : > { %v17571_v36 = vpop.eup %17570  ;;  %17582 = vrcp.f32 %v13239_v6  ;;  %v13251_v7 = vadd.f32 1.0, %v17569_v0 }
 0xdc4   : > { %v17573_v52 = vpop.eup %17572  ;;  %17584 = vrcp.f32 %v13250_v14  ;;  %v13262_v20 = vadd.f32 1.0, %v17571_v36 }
 0xdc5   : > { %17586 = vrcp.f32 %v13251_v7  ;;  %v13263_v62 = vadd.f32 1.0, %v17573_v52 }
 0xdc6   : > { %17588 = vrcp.f32 %v13262_v20 }
 0xdc7   : > { %17590 = vrcp.f32 %v13263_v62 }
 0xdc9   : > { %v17575_v44 = vpop.eup %17574 }
 0xdca   : > { %v17577_v11 = vpop.eup %17576  ;;  %13355 = vst [vmem:[%s20893_s14 + $0x148] sm:$0xff] %v17575_v44 }
 0xdcb   : > { %v17579_v25 = vpop.eup %17578  ;;  %13322 = vst [vmem:[%s20893_s14 + $0x40] sm:$0xff] %v17577_v11 }
 0xdcc   : > { %v17581_v34 = vpop.eup %17580  ;;  %13323 = vst [vmem:[%s20893_s14 + $0x48] sm:$0xff] %v17579_v25 }
 0xdcd   : > { %v17583_v55 = vpop.eup %17582  ;;  %13334 = vst [vmem:[%s20893_s14 + $0xa0] sm:$0xff] %v17581_v34 }
 0xdce   : > { %v17585_v60 = vpop.eup %17584  ;;  %13335 = vst [vmem:[%s20893_s14 + $0xa8] sm:$0xff] %v17583_v55 }
 0xdcf   : > { %v17587_v30 = vpop.eup %17586  ;;  %13346 = vst [vmem:[%s20893_s14 + $0x100] sm:$0xff] %v17585_v60 }
 0xdd0   : > { %v17589_v48 = vpop.eup %17588  ;;  %13347 = vst [vmem:[%s20893_s14 + $0x108] sm:$0xff] %v17587_v30 }
 0xdd1   : > { %v17591_v40 = vpop.eup %17590  ;;  %13358 = vst [vmem:[%s20893_s14 + $0x160] sm:$0xff] %v17589_v48 }
 0xdd2   : > { %13359 = vst [vmem:[%s20893_s14 + $0x168] sm:$0xff] %v17591_v40 }
 0xdd3 PF: > { %p20_p9 = scmp.ge.s32.totalorder %s17718_s29, 4   ;;  %s21257_s25 = smov %s17624_s26 }
 0xdd4   : > { %s21258_s26 = smov %s17727_s15  ;;  %s21259_s27 = smov %s17718_s29 }
 0xdd5   :  { %22 = sbr.rel (!%p20_p9) target bundleno = 2 (0x2), region = 214 }

</bundles_post_ra>
